<compile_context>
chip_gen: v7x
topology: tpu7x:2x2x1
jax: 0.10.0
libtpu: 0.0.40
codegen_flags: <defaults>
</compile_context>

<pallas_src>
import jax
import jax.numpy as jnp
import numpy as np
from jax.experimental import pallas as pl
from jax.experimental.pallas import tpu as pltpu


def _pick_tile(n, candidates):
    for c in candidates:
        if c <= n and n % c == 0:
            return c
    return n


def _pick_chunk(T):
    """Time-chunk (unroll) length: whole sequence if short, else largest divisor <= 16."""
    if T <= 16:
        return T
    for c in range(16, 0, -1):
        if T % c == 0:
            return c
    return 1


# ----------------------------------------------------------------------------
# Kernel A: fused input layer + GRU recurrence over time chunks.
#   grid = (T // t_chunk,)  -- sequential ("arbitrary") time axis.
#   outputs: top-layer hidden states as a time-major 2D slab [T*B, H] in bf16,
#            final hidden state [L, B, H] in f32 (written at the last grid step).
# ----------------------------------------------------------------------------
def _make_rnn_kernel(num_layers, t_chunk, B, E, H):
    n_w = 5 + 4 * (num_layers - 1)  # layer0: Wtok3,Wimg3,Wh2,Wch,b3 ; layer>0: Wx3,Wh2,Wch,b3

    def kernel(*args):
        emb_ref, cnn_ref, inw_ref, inb_ref = args[0:4]
        wrefs = args[4:4 + n_w]
        hid_ref, final_ref = args[4 + n_w], args[5 + n_w]
        state, gimg, htop = args[6 + n_w], args[7 + n_w], args[8 + n_w]

        g = pl.program_id(0)
        wtok3_ref, wimg3_ref, wh2_0_ref, wch_0_ref, b3_0_ref = wrefs[0:5]

        @pl.when(g == 0)
        def _init():
            # Fused input layer: Dropout(identity) -> Linear -> LeakyReLU(0.01)
            y = (jnp.dot(cnn_ref[...].astype(jnp.bfloat16), inw_ref[...],
                         preferred_element_type=jnp.float32) + inb_ref[...])
            img = jnp.where(y > 0, y, 0.01 * y)
            for l in range(num_layers):
                state[l] = img                      # initial state = imgfeat (all layers)
            # Time-invariant image contribution to layer-0's fused gate pre-activation
            # (+ layer-0 bias): computed exactly once.
            gimg[...] = (jnp.dot(img.astype(jnp.bfloat16), wimg3_ref[...],
                                 preferred_element_type=jnp.float32) + b3_0_ref[...])

        # ---- chunk-level hoists (loop-invariant loads / broadcasts) ----
        gimg_c = gimg[...]                                              # (B, 3H) f32
        upper = []
        for l in range(1, num_layers):
            wx3_ref, wh2_ref, wch_ref, b3_ref = wrefs[5 + 4 * (l - 1):5 + 4 * l]
            upper.append((l, wx3_ref, wh2_ref, wch_ref,
                          jnp.broadcast_to(b3_ref[...], (B, 3 * H))))   # pre-broadcast bias

        # Hoisted layer-0 token-path matmul, batched over the whole chunk (M = t_chunk*B).
        emb_chunk = emb_ref[...].reshape(t_chunk * B, E).astype(jnp.bfloat16)
        gtok = jnp.dot(emb_chunk, wtok3_ref[...],
                       preferred_element_type=jnp.float32)              # (t_chunk*B, 3H)

        def gru_update(h, gx, wh2_ref, wch_ref):
            # h: f32 [B,H] old state; gx: f32 [B,3H] input-path pre-activation (incl. bias)
            gh = jnp.dot(h.astype(jnp.bfloat16), wh2_ref[...],
                         preferred_element_type=jnp.float32)            # [B,2H]
            u = jax.nn.sigmoid(gx[:, 0:H] + gh[:, 0:H])
            r = jax.nn.sigmoid(gx[:, H:2 * H] + gh[:, H:2 * H])
            cand = jnp.tanh(gx[:, 2 * H:3 * H]
                            + jnp.dot((r * h).astype(jnp.bfloat16), wch_ref[...],
                                      preferred_element_type=jnp.float32))
            return u * h + (1.0 - u) * cand

        for c in range(t_chunk):                   # statically unrolled time chunk
            gx = gtok[c * B:(c + 1) * B, :] + gimg_c
            h_new = gru_update(state[0], gx, wh2_0_ref, wch_0_ref)
            state[0] = h_new
            x_in = h_new
            for (l, wx3_ref, wh2_ref, wch_ref, b3_b) in upper:
                gx = (jnp.dot(x_in.astype(jnp.bfloat16), wx3_ref[...],
                              preferred_element_type=jnp.float32) + b3_b)
                h_new = gru_update(state[l], gx, wh2_ref, wch_ref)
                state[l] = h_new
                x_in = h_new
            htop[c] = x_in                         # full (B,H) tile store into f32 scratch

        # One lane-dense bf16 block store per chunk (time-major: row = t*B + b).
        hid_ref[...] = htop[...].reshape(t_chunk * B, H).astype(jnp.bfloat16)

        @pl.when(g == pl.num_programs(0) - 1)
        def _finalize():
            final_ref[...] = state[...]

    return kernel


def rnn_forward(emb_tbe, cnn_features, prep):
    """emb_tbe: [T,B,E] f32 (time-major), cnn_features: [B,F] f32
       -> (hidden2d [T*B, H] bf16 time-major, final_state [L, B, H] f32)."""
    T, B, E = emb_tbe.shape
    F = cnn_features.shape[1]
    H = prep["in_w"].shape[1]
    layers = prep["layers"]
    L = len(layers)
    t_chunk = _pick_chunk(T)
    n_chunks = T // t_chunk

    flat_w = [w for layer in layers for w in layer]
    kernel = _make_rnn_kernel(L, t_chunk, B, E, H)

    in_specs = ([pl.BlockSpec((t_chunk, B, E), lambda g: (g, 0, 0)),   # token embedding chunk
                 pl.BlockSpec((B, F), lambda g: (0, 0)),               # raw CNN features
                 pl.BlockSpec((F, H), lambda g: (0, 0)),               # input-layer weight
                 pl.BlockSpec((1, H), lambda g: (0, 0))]               # input-layer bias
                + [pl.BlockSpec(w.shape, lambda g: (0, 0)) for w in flat_w])

    out_shapes = (jax.ShapeDtypeStruct((T * B, H), jnp.bfloat16),      # top-layer hidden slab
                  jax.ShapeDtypeStruct((L, B, H), jnp.float32))        # final hidden state
    out_specs = (pl.BlockSpec((t_chunk * B, H), lambda g: (g, 0)),
                 pl.BlockSpec((L, B, H), lambda g: (0, 0, 0)))

    hid2d, final_state = pl.pallas_call(
        kernel,
        out_shape=out_shapes,
        grid=(n_chunks,),
        in_specs=in_specs,
        out_specs=out_specs,
        scratch_shapes=[pltpu.VMEM((L, B, H), jnp.float32),            # carried hidden state
                        pltpu.VMEM((B, 3 * H), jnp.float32),           # cached img gate preact
                        pltpu.VMEM((t_chunk, B, H), jnp.float32)],     # chunk top-state buffer
        compiler_params=pltpu.CompilerParams(
            dimension_semantics=("arbitrary",)),                       # recurrence is serial
    )(emb_tbe, cnn_features, prep["in_w"], prep["in_b"], *flat_w)
    return hid2d, final_state


# ----------------------------------------------------------------------------
# Kernel B: output projection  [T*B, H] @ [H, Vp]  (Vp = V padded to mult. of 128)
# ----------------------------------------------------------------------------
def _proj_kernel(h_ref, w_ref, b_ref, o_ref):
    o_ref[...] = (jnp.dot(h_ref[...], w_ref[...],
                          preferred_element_type=jnp.float32) + b_ref[...])


def output_projection(hid2d, out_w_p, out_b_p, B, T, V):
    M, H = hid2d.shape
    Vp = out_w_p.shape[1]
    tm = _pick_tile(M, (256, 128, 64, 32, 16, 8))
    # Prefer >= 2 blocks along V so the two v7x TensorCores can split the work; tiles stay small.
    tn = next((c for c in (512, 256, 128) if Vp % c == 0 and Vp // c >= 2), Vp)
    logits2d = pl.pallas_call(
        _proj_kernel,
        out_shape=jax.ShapeDtypeStruct((M, Vp), jnp.float32),
        grid=(M // tm, Vp // tn),
        in_specs=[pl.BlockSpec((tm, H), lambda i, j: (i, 0)),
                  pl.BlockSpec((H, tn), lambda i, j: (0, j)),
                  pl.BlockSpec((1, tn), lambda i, j: (0, j))],
        out_specs=pl.BlockSpec((tm, tn), lambda i, j: (i, j)),
        compiler_params=pltpu.CompilerParams(
            dimension_semantics=("parallel", "parallel")),
    )(hid2d, out_w_p, out_b_p)
    # Wrapper-side layout plumbing only: drop vocab padding, time-major -> batch-major.
    logits_tbv = logits2d.reshape(T, B, Vp)[:, :, :V]
    return jnp.transpose(logits_tbv, (1, 0, 2))


# ----------------------------------------------------------------------------
# Parameters (PyTorch layout) + preprocessing into fused bf16 kernel weights
# ----------------------------------------------------------------------------
def init_raw_params(key, config):
    V = config["vocabulary_size"]; E = config["embedding_size"]
    F = config["number_of_cnn_features"]; H = config["hidden_state_sizes"]
    L = config["num_rnn_layers"]
    nnmapsize = H  # reference code is only consistent when hidden_state_sizes == nnmapsize

    keys = jax.random.split(key, 4 + 3 * L)
    raw = {
        "emb": jax.random.normal(keys[0], (V, E), jnp.float32),                   # nn.Embedding
        "in_w": jax.random.normal(keys[1], (F, H), jnp.float32) / np.sqrt(F),     # Linear(F,H).weight.T
        "in_b": jnp.zeros((1, H), jnp.float32),
        "out_w": jax.random.normal(keys[2], (H, V), jnp.float32) / np.sqrt(H),    # Linear(H,V).weight.T
        "out_b": jax.random.normal(keys[3], (1, V), jnp.float32) * 0.01,
    }
    gru = []
    for l in range(L):
        in_size = (E + nnmapsize) if l == 0 else H
        XH = in_size + H
        k = keys[4 + 3 * l:4 + 3 * (l + 1)]
        wu = jax.random.normal(k[0], (XH, H), jnp.float32) / np.sqrt(XH)
        wr = jax.random.normal(k[1], (XH, H), jnp.float32) / np.sqrt(XH)
        wc = jax.random.normal(k[2], (XH, H), jnp.float32) / np.sqrt(XH)
        gru.append((wu, jnp.zeros((1, H), jnp.float32),
                    wr, jnp.zeros((1, H), jnp.float32),
                    wc, jnp.zeros((1, H), jnp.float32)))
    raw["gru"] = gru
    return raw


def prepare_params(raw, config):
    """Fuse per-layer gate weights, cast matmul operands to bf16, pad vocab to mult. of 128."""
    E = config["embedding_size"]; H = config["hidden_state_sizes"]
    V = config["vocabulary_size"]
    bf = jnp.bfloat16
    Vp = ((V + 127) // 128) * 128
    out_w = raw["out_w"].astype(bf)
    out_b = raw["out_b"]
    prep = {
        "emb": raw["emb"],                 # f32 table; gathered in XLA, cast inside the kernel
        "in_w": raw["in_w"].astype(bf),
        "in_b": raw["in_b"],
        "out_w": out_w,                    # unpadded (reference path)
        "out_b": out_b,
        "out_w_p": out_w if Vp == V else jnp.pad(out_w, ((0, 0), (0, Vp - V))),
        "out_b_p": out_b if Vp == V else jnp.pad(out_b, ((0, 0), (0, Vp - V))),
    }
    layers = []
    for l, (wu, bu, wr, br, wc, bc) in enumerate(raw["gru"]):
        X = wu.shape[0] - H                                   # cell input width
        b3 = jnp.concatenate([bu, br, bc], axis=1)            # (1, 3H) f32
        wh2 = jnp.concatenate([wu[X:], wr[X:]], axis=1).astype(bf)   # (H, 2H)
        wch = wc[X:].astype(bf)                                      # (H, H)
        if l == 0:
            # layer-0 input = cat(token_emb[E], imgfeat[H]) -> split the x-part of the weights
            wtok3 = jnp.concatenate([wu[:E], wr[:E], wc[:E]], axis=1).astype(bf)      # (E, 3H)
            wimg3 = jnp.concatenate([wu[E:X], wr[E:X], wc[E:X]], axis=1).astype(bf)   # (H, 3H)
            layers.append((wtok3, wimg3, wh2, wch, b3))
        else:
            wx3 = jnp.concatenate([wu[:X], wr[:X], wc[:X]], axis=1).astype(bf)        # (H, 3H)
            layers.append((wx3, wh2, wch, b3))
    prep["layers"] = layers
    return prep


# ----------------------------------------------------------------------------
# Model wrapper
# ----------------------------------------------------------------------------
def image_caption_forward(prep, config, cnn_features, xTokens):
    """Pallas-backed forward.  Returns (logits [B,T,V], hidden_state [L,B,H])."""
    B, T = xTokens.shape
    V = config["vocabulary_size"]
    emb_tbe = prep["emb"][xTokens.T]                                   # [T, B, E] gather
    hid2d, final_state = rnn_forward(emb_tbe, cnn_features, prep)      # fused in-layer + GRU
    logits = output_projection(hid2d, prep["out_w_p"], prep["out_b_p"], B, T, V)
    return logits, final_state


# ----------------------------------------------------------------------------
# Pure-JAX reference (mirrors the PyTorch forward math with the same bf16 weights)
# ----------------------------------------------------------------------------
def reference_forward(prep, config, cnn_features, xTokens):
    L = config["num_rnn_layers"]; H = config["hidden_state_sizes"]
    B, T = xTokens.shape
    bf = jnp.bfloat16

    y = (jnp.dot(cnn_features.astype(bf), prep["in_w"],
                 preferred_element_type=jnp.float32) + prep["in_b"])
    img = jnp.where(y > 0, y, 0.01 * y)
    emb = prep["emb"][xTokens]

    state = [img for _ in range(L)]
    wtok3, wimg3, wh2_0, wch_0, b3_0 = prep["layers"][0]
    gimg = jnp.dot(img.astype(bf), wimg3, preferred_element_type=jnp.float32) + b3_0

    def cell(h, gx, wh2, wch):
        gh = jnp.dot(h.astype(bf), wh2, preferred_element_type=jnp.float32)
        u = jax.nn.sigmoid(gx[:, :H] + gh[:, :H])
        r = jax.nn.sigmoid(gx[:, H:2 * H] + gh[:, H:2 * H])
        cand = jnp.tanh(gx[:, 2 * H:]
                        + jnp.dot((r * h).astype(bf), wch, preferred_element_type=jnp.float32))
        return u * h + (1.0 - u) * cand

    tops = []
    for t in range(T):
        x_tok = emb[:, t, :].astype(bf)
        gx = jnp.dot(x_tok, wtok3, preferred_element_type=jnp.float32) + gimg
        h_new = cell(state[0], gx, wh2_0, wch_0)
        state[0] = h_new
        x_in = h_new
        for l in range(1, L):
            wx3, wh2, wch, b3 = prep["layers"][l]
            gx = jnp.dot(x_in.astype(bf), wx3, preferred_element_type=jnp.float32) + b3
            h_new = cell(state[l], gx, wh2, wch)
            state[l] = h_new
            x_in = h_new
        tops.append(x_in)

    hidden_bth = jnp.stack(tops, axis=1)
    logits = (jnp.dot(hidden_bth.reshape(B * T, H).astype(bf), prep["out_w"],
                      preferred_element_type=jnp.float32) + prep["out_b"]).reshape(B, T, -1)
    return logits, jnp.stack(state, axis=0)


# ----------------------------------------------------------------------------
if __name__ == "__main__":
    config = dict(
        vocabulary_size=256,        # multiple of 128 -> lane-dense logits (padded otherwise)
        embedding_size=128,         # multiple of 128 -> lane-dense embeddings
        number_of_cnn_features=256,
        hidden_state_sizes=128,     # == nnmapsize invariant of the reference code; lane-dense
        num_rnn_layers=2,
        cellType="GRU",
    )
    B, T = 8, 16                    # B = 8 sublanes; T <= 16 -> single-chunk grid of 1

    key = jax.random.PRNGKey(0)
    kp, kc, kt = jax.random.split(key, 3)
    raw = init_raw_params(kp, config)
    prep = prepare_params(raw, config)
    cnn_features = jax.random.normal(kc, (B, config["number_of_cnn_features"]), jnp.float32)
    xTokens = jax.random.randint(kt, (B, T), 0, config["vocabulary_size"], dtype=jnp.int32)

    logits, hidden = image_caption_forward(prep, config, cnn_features, xTokens)
    logits = jax.block_until_ready(logits)
    hidden = jax.block_until_ready(hidden)

    assert logits.shape == (B, T, config["vocabulary_size"]), logits.shape
    assert hidden.shape == (config["num_rnn_layers"], B, config["hidden_state_sizes"]), hidden.shape

    ref_logits, ref_hidden = reference_forward(prep, config, cnn_features, xTokens)
    np.testing.assert_allclose(np.asarray(logits), np.asarray(ref_logits), rtol=1e-2, atol=1e-2)
    np.testing.assert_allclose(np.asarray(hidden), np.asarray(ref_hidden), rtol=1e-2, atol=1e-2)

    print("KERNEL_OK")
</pallas_src>

<mosaic_0001>
module attributes {stable_mosaic.version = 11 : i64} {
  func.func @kernel(%arg0: i32, %arg1: memref<16x8x128xf32, #tpu.memory_space<vmem>>, %arg2: memref<8x256xf32, #tpu.memory_space<vmem>>, %arg3: memref<256x128xbf16, #tpu.memory_space<vmem>>, %arg4: memref<1x128xf32, #tpu.memory_space<vmem>>, %arg5: memref<128x384xbf16, #tpu.memory_space<vmem>>, %arg6: memref<128x384xbf16, #tpu.memory_space<vmem>>, %arg7: memref<128x256xbf16, #tpu.memory_space<vmem>>, %arg8: memref<128x128xbf16, #tpu.memory_space<vmem>>, %arg9: memref<1x384xf32, #tpu.memory_space<vmem>>, %arg10: memref<128x384xbf16, #tpu.memory_space<vmem>>, %arg11: memref<128x256xbf16, #tpu.memory_space<vmem>>, %arg12: memref<128x128xbf16, #tpu.memory_space<vmem>>, %arg13: memref<1x384xf32, #tpu.memory_space<vmem>>, %arg14: memref<128x128xbf16, #tpu.memory_space<vmem>>, %arg15: memref<2x8x128xf32, #tpu.memory_space<vmem>>, %arg16: memref<2x8x128xf32, #tpu.memory_space<vmem>>, %arg17: memref<8x384xf32, #tpu.memory_space<vmem>>, %arg18: memref<16x8x128xf32, #tpu.memory_space<vmem>>) attributes {dimension_semantics = [#tpu.dimension_semantics<arbitrary>], iteration_bounds = array<i64: 1>, scalar_prefetch = 0 : i64, scratch_operands = 3 : i64, tpu.core_type = #tpu.core_type<tc>, window_params = [{transform_indices = @transform_0, window_bounds = array<i64: 16, 8, 128>}, {pipeline_mode = #tpu.pipeline_mode<synchronous>, transform_indices = @transform_1, window_bounds = array<i64: 8, 256>}, {pipeline_mode = #tpu.pipeline_mode<synchronous>, transform_indices = @transform_2, window_bounds = array<i64: 256, 128>}, {pipeline_mode = #tpu.pipeline_mode<synchronous>, transform_indices = @transform_3, window_bounds = array<i64: 1, 128>}, {pipeline_mode = #tpu.pipeline_mode<synchronous>, transform_indices = @transform_4, window_bounds = array<i64: 128, 384>}, {pipeline_mode = #tpu.pipeline_mode<synchronous>, transform_indices = @transform_5, window_bounds = array<i64: 128, 384>}, {pipeline_mode = #tpu.pipeline_mode<synchronous>, transform_indices = @transform_6, window_bounds = array<i64: 128, 256>}, {pipeline_mode = #tpu.pipeline_mode<synchronous>, transform_indices = @transform_7, window_bounds = array<i64: 128, 128>}, {pipeline_mode = #tpu.pipeline_mode<synchronous>, transform_indices = @transform_8, window_bounds = array<i64: 1, 384>}, {pipeline_mode = #tpu.pipeline_mode<synchronous>, transform_indices = @transform_9, window_bounds = array<i64: 128, 384>}, {pipeline_mode = #tpu.pipeline_mode<synchronous>, transform_indices = @transform_10, window_bounds = array<i64: 128, 256>}, {pipeline_mode = #tpu.pipeline_mode<synchronous>, transform_indices = @transform_11, window_bounds = array<i64: 128, 128>}, {pipeline_mode = #tpu.pipeline_mode<synchronous>, transform_indices = @transform_12, window_bounds = array<i64: 1, 384>}, {transform_indices = @transform_13, window_bounds = array<i64: 128, 128>}, {pipeline_mode = #tpu.pipeline_mode<synchronous>, transform_indices = @transform_14, window_bounds = array<i64: 2, 8, 128>}]} {
    %c0_i32 = arith.constant 0 : i32
    %0 = arith.cmpi eq, %arg0, %c0_i32 : i32
    %1 = arith.extui %0 : i1 to i32
    %c0_i32_0 = arith.constant 0 : i32
    %2 = arith.cmpi ne, %1, %c0_i32_0 : i32
    scf.if %2 {
      %c0_577 = arith.constant 0 : index
      %c0_578 = arith.constant 0 : index
      %1315 = vector.load %arg2[%c0_577, %c0_578] : memref<8x256xf32, #tpu.memory_space<vmem>>, vector<8x256xf32>
      %1316 = arith.truncf %1315 : vector<8x256xf32> to vector<8x256xbf16>
      %c0_579 = arith.constant 0 : index
      %c0_580 = arith.constant 0 : index
      %1317 = vector.load %arg3[%c0_579, %c0_580] : memref<256x128xbf16, #tpu.memory_space<vmem>>, vector<256x128xbf16>
      %cst_581 = arith.constant dense<0.000000e+00> : vector<8x128xf32>
      %1318 = tpu.matmul %1316, %1317, %cst_581 {dimension_numbers = #tpu.dot_dimension_numbers<[1], [0], [0], [1], [0, 0, 1, 1], [], []>} : vector<8x256xbf16>, vector<256x128xbf16>, vector<8x128xf32> -> vector<8x128xf32>
      %c0_582 = arith.constant 0 : index
      %c0_583 = arith.constant 0 : index
      %1319 = vector.load %arg4[%c0_582, %c0_583] : memref<1x128xf32, #tpu.memory_space<vmem>>, vector<1x128xf32>
      %1320 = vector.broadcast %1319 : vector<1x128xf32> to vector<8x128xf32>
      %1321 = arith.addf %1318, %1320 : vector<8x128xf32>
      %cst_584 = arith.constant 0.000000e+00 : f32
      %1322 = vector.broadcast %cst_584 : f32 to vector<8x128xf32>
      %1323 = arith.cmpf ogt, %1321, %1322 : vector<8x128xf32>
      %cst_585 = arith.constant 0.00999999977 : f32
      %1324 = vector.broadcast %cst_585 : f32 to vector<8x128xf32>
      %1325 = arith.mulf %1324, %1321 : vector<8x128xf32>
      %1326 = arith.select %1323, %1321, %1325 : vector<8x128xi1>, vector<8x128xf32>
      %c0_586 = arith.constant 0 : index
      %c0_587 = arith.constant 0 : index
      %c0_588 = arith.constant 0 : index
      %1327 = vector.load %arg16[%c0_586, %c0_587, %c0_588] : memref<2x8x128xf32, #tpu.memory_space<vmem>>, vector<1x8x128xf32>
      %1328 = vector.shape_cast %1327 : vector<1x8x128xf32> to vector<8x128xf32>
      %1329 = vector.shape_cast %1326 : vector<8x128xf32> to vector<1x8x128xf32>
      tpu.vector_store %arg16[%c0_586, %c0_587, %c0_588], %1329 {strides = array<i32>} : memref<2x8x128xf32, #tpu.memory_space<vmem>>, vector<1x8x128xf32>,
      %c1_589 = arith.constant 1 : index
      %c0_590 = arith.constant 0 : index
      %c0_591 = arith.constant 0 : index
      %1330 = vector.load %arg16[%c1_589, %c0_590, %c0_591] : memref<2x8x128xf32, #tpu.memory_space<vmem>>, vector<1x8x128xf32>
      %1331 = vector.shape_cast %1330 : vector<1x8x128xf32> to vector<8x128xf32>
      %1332 = vector.shape_cast %1326 : vector<8x128xf32> to vector<1x8x128xf32>
      tpu.vector_store %arg16[%c1_589, %c0_590, %c0_591], %1332 {strides = array<i32>} : memref<2x8x128xf32, #tpu.memory_space<vmem>>, vector<1x8x128xf32>,
      %1333 = arith.truncf %1326 : vector<8x128xf32> to vector<8x128xbf16>
      %c0_592 = arith.constant 0 : index
      %c0_593 = arith.constant 0 : index
      %1334 = vector.load %arg6[%c0_592, %c0_593] : memref<128x384xbf16, #tpu.memory_space<vmem>>, vector<128x384xbf16>
      %cst_594 = arith.constant dense<0.000000e+00> : vector<8x384xf32>
      %1335 = tpu.matmul %1333, %1334, %cst_594 {dimension_numbers = #tpu.dot_dimension_numbers<[1], [0], [0], [1], [0, 0, 1, 1], [], []>} : vector<8x128xbf16>, vector<128x384xbf16>, vector<8x384xf32> -> vector<8x384xf32>
      %c0_595 = arith.constant 0 : index
      %c0_596 = arith.constant 0 : index
      %1336 = vector.load %arg9[%c0_595, %c0_596] : memref<1x384xf32, #tpu.memory_space<vmem>>, vector<1x384xf32>
      %1337 = vector.broadcast %1336 : vector<1x384xf32> to vector<8x384xf32>
      %1338 = arith.addf %1335, %1337 : vector<8x384xf32>
      %c0_597 = arith.constant 0 : index
      %c0_598 = arith.constant 0 : index
      %1339 = vector.load %arg17[%c0_597, %c0_598] : memref<8x384xf32, #tpu.memory_space<vmem>>, vector<8x384xf32>
      tpu.vector_store %arg17[%c0_597, %c0_598], %1338 {strides = array<i32>} : memref<8x384xf32, #tpu.memory_space<vmem>>, vector<8x384xf32>,
    } else {
    }
    %c0 = arith.constant 0 : index
    %c0_1 = arith.constant 0 : index
    %3 = vector.load %arg17[%c0, %c0_1] : memref<8x384xf32, #tpu.memory_space<vmem>>, vector<8x384xf32>
    %c0_2 = arith.constant 0 : index
    %c0_3 = arith.constant 0 : index
    %4 = vector.load %arg13[%c0_2, %c0_3] : memref<1x384xf32, #tpu.memory_space<vmem>>, vector<1x384xf32>
    %5 = vector.shape_cast %4 : vector<1x384xf32> to vector<1x384xf32>
    %6 = vector.broadcast %5 : vector<1x384xf32> to vector<8x384xf32>
    %c0_4 = arith.constant 0 : index
    %c0_5 = arith.constant 0 : index
    %c0_6 = arith.constant 0 : index
    %7 = vector.load %arg1[%c0_4, %c0_5, %c0_6] : memref<16x8x128xf32, #tpu.memory_space<vmem>>, vector<16x8x128xf32>
    %8 = vector.shape_cast %7 : vector<16x8x128xf32> to vector<128x128xf32>
    %9 = arith.truncf %8 : vector<128x128xf32> to vector<128x128xbf16>
    %c0_7 = arith.constant 0 : index
    %c0_8 = arith.constant 0 : index
    %10 = vector.load %arg5[%c0_7, %c0_8] : memref<128x384xbf16, #tpu.memory_space<vmem>>, vector<128x384xbf16>
    %cst = arith.constant dense<0.000000e+00> : vector<128x384xf32>
    %11 = tpu.matmul %9, %10, %cst {dimension_numbers = #tpu.dot_dimension_numbers<[1], [0], [0], [1], [0, 0, 1, 1], [], []>} : vector<128x128xbf16>, vector<128x384xbf16>, vector<128x384xf32> -> vector<128x384xf32>
    %12 = vector.extract_strided_slice %11 {offsets = [0, 0], sizes = [8, 384], strides = [1, 1]} : vector<128x384xf32> to vector<8x384xf32>
    %13 = arith.addf %12, %3 : vector<8x384xf32>
    %c0_9 = arith.constant 0 : index
    %c0_10 = arith.constant 0 : index
    %c0_11 = arith.constant 0 : index
    %14 = vector.load %arg16[%c0_9, %c0_10, %c0_11] : memref<2x8x128xf32, #tpu.memory_space<vmem>>, vector<1x8x128xf32>
    %15 = vector.shape_cast %14 : vector<1x8x128xf32> to vector<8x128xf32>
    %16 = arith.truncf %15 : vector<8x128xf32> to vector<8x128xbf16>
    %c0_12 = arith.constant 0 : index
    %c0_13 = arith.constant 0 : index
    %17 = vector.load %arg7[%c0_12, %c0_13] : memref<128x256xbf16, #tpu.memory_space<vmem>>, vector<128x256xbf16>
    %cst_14 = arith.constant dense<0.000000e+00> : vector<8x256xf32>
    %18 = tpu.matmul %16, %17, %cst_14 {dimension_numbers = #tpu.dot_dimension_numbers<[1], [0], [0], [1], [0, 0, 1, 1], [], []>} : vector<8x128xbf16>, vector<128x256xbf16>, vector<8x256xf32> -> vector<8x256xf32>
    %19 = vector.extract_strided_slice %13 {offsets = [0, 0], sizes = [8, 128], strides = [1, 1]} : vector<8x384xf32> to vector<8x128xf32>
    %20 = vector.extract_strided_slice %18 {offsets = [0, 0], sizes = [8, 128], strides = [1, 1]} : vector<8x256xf32> to vector<8x128xf32>
    %21 = arith.addf %19, %20 : vector<8x128xf32>
    %22 = arith.negf %21 : vector<8x128xf32>
    %23 = math.exp %22 : vector<8x128xf32>
    %cst_15 = arith.constant 1.000000e+00 : f32
    %24 = vector.broadcast %cst_15 : f32 to vector<8x128xf32>
    %25 = arith.addf %24, %23 : vector<8x128xf32>
    %26 = arith.divf %24, %25 : vector<8x128xf32>
    %27 = vector.extract_strided_slice %13 {offsets = [0, 128], sizes = [8, 128], strides = [1, 1]} : vector<8x384xf32> to vector<8x128xf32>
    %28 = vector.extract_strided_slice %18 {offsets = [0, 128], sizes = [8, 128], strides = [1, 1]} : vector<8x256xf32> to vector<8x128xf32>
    %29 = arith.addf %27, %28 : vector<8x128xf32>
    %30 = arith.negf %29 : vector<8x128xf32>
    %31 = math.exp %30 : vector<8x128xf32>
    %cst_16 = arith.constant 1.000000e+00 : f32
    %32 = vector.broadcast %cst_16 : f32 to vector<8x128xf32>
    %33 = arith.addf %32, %31 : vector<8x128xf32>
    %34 = arith.divf %32, %33 : vector<8x128xf32>
    %35 = vector.extract_strided_slice %13 {offsets = [0, 256], sizes = [8, 128], strides = [1, 1]} : vector<8x384xf32> to vector<8x128xf32>
    %36 = arith.mulf %34, %15 : vector<8x128xf32>
    %37 = arith.truncf %36 : vector<8x128xf32> to vector<8x128xbf16>
    %c0_17 = arith.constant 0 : index
    %c0_18 = arith.constant 0 : index
    %38 = vector.load %arg8[%c0_17, %c0_18] : memref<128x128xbf16, #tpu.memory_space<vmem>>, vector<128x128xbf16>
    %cst_19 = arith.constant dense<0.000000e+00> : vector<8x128xf32>
    %39 = tpu.matmul %37, %38, %cst_19 {dimension_numbers = #tpu.dot_dimension_numbers<[1], [0], [0], [1], [0, 0, 1, 1], [], []>} : vector<8x128xbf16>, vector<128x128xbf16>, vector<8x128xf32> -> vector<8x128xf32>
    %40 = arith.addf %35, %39 : vector<8x128xf32>
    %41 = math.tanh %40 : vector<8x128xf32>
    %42 = arith.mulf %26, %15 : vector<8x128xf32>
    %cst_20 = arith.constant 1.000000e+00 : f32
    %43 = vector.broadcast %cst_20 : f32 to vector<8x128xf32>
    %44 = arith.subf %43, %26 : vector<8x128xf32>
    %45 = arith.mulf %44, %41 : vector<8x128xf32>
    %46 = arith.addf %42, %45 : vector<8x128xf32>
    %c0_21 = arith.constant 0 : index
    %c0_22 = arith.constant 0 : index
    %c0_23 = arith.constant 0 : index
    %47 = vector.load %arg16[%c0_21, %c0_22, %c0_23] : memref<2x8x128xf32, #tpu.memory_space<vmem>>, vector<1x8x128xf32>
    %48 = vector.shape_cast %47 : vector<1x8x128xf32> to vector<8x128xf32>
    %49 = vector.shape_cast %46 : vector<8x128xf32> to vector<1x8x128xf32>
    tpu.vector_store %arg16[%c0_21, %c0_22, %c0_23], %49 {strides = array<i32>} : memref<2x8x128xf32, #tpu.memory_space<vmem>>, vector<1x8x128xf32>,
    %50 = arith.truncf %46 : vector<8x128xf32> to vector<8x128xbf16>
    %c0_24 = arith.constant 0 : index
    %c0_25 = arith.constant 0 : index
    %51 = vector.load %arg10[%c0_24, %c0_25] : memref<128x384xbf16, #tpu.memory_space<vmem>>, vector<128x384xbf16>
    %cst_26 = arith.constant dense<0.000000e+00> : vector<8x384xf32>
    %52 = tpu.matmul %50, %51, %cst_26 {dimension_numbers = #tpu.dot_dimension_numbers<[1], [0], [0], [1], [0, 0, 1, 1], [], []>} : vector<8x128xbf16>, vector<128x384xbf16>, vector<8x384xf32> -> vector<8x384xf32>
    %53 = arith.addf %52, %6 : vector<8x384xf32>
    %c1 = arith.constant 1 : index
    %c0_27 = arith.constant 0 : index
    %c0_28 = arith.constant 0 : index
    %54 = vector.load %arg16[%c1, %c0_27, %c0_28] : memref<2x8x128xf32, #tpu.memory_space<vmem>>, vector<1x8x128xf32>
    %55 = vector.shape_cast %54 : vector<1x8x128xf32> to vector<8x128xf32>
    %56 = arith.truncf %55 : vector<8x128xf32> to vector<8x128xbf16>
    %c0_29 = arith.constant 0 : index
    %c0_30 = arith.constant 0 : index
    %57 = vector.load %arg11[%c0_29, %c0_30] : memref<128x256xbf16, #tpu.memory_space<vmem>>, vector<128x256xbf16>
    %cst_31 = arith.constant dense<0.000000e+00> : vector<8x256xf32>
    %58 = tpu.matmul %56, %57, %cst_31 {dimension_numbers = #tpu.dot_dimension_numbers<[1], [0], [0], [1], [0, 0, 1, 1], [], []>} : vector<8x128xbf16>, vector<128x256xbf16>, vector<8x256xf32> -> vector<8x256xf32>
    %59 = vector.extract_strided_slice %53 {offsets = [0, 0], sizes = [8, 128], strides = [1, 1]} : vector<8x384xf32> to vector<8x128xf32>
    %60 = vector.extract_strided_slice %58 {offsets = [0, 0], sizes = [8, 128], strides = [1, 1]} : vector<8x256xf32> to vector<8x128xf32>
    %61 = arith.addf %59, %60 : vector<8x128xf32>
    %62 = arith.negf %61 : vector<8x128xf32>
    %63 = math.exp %62 : vector<8x128xf32>
    %cst_32 = arith.constant 1.000000e+00 : f32
    %64 = vector.broadcast %cst_32 : f32 to vector<8x128xf32>
    %65 = arith.addf %64, %63 : vector<8x128xf32>
    %66 = arith.divf %64, %65 : vector<8x128xf32>
    %67 = vector.extract_strided_slice %53 {offsets = [0, 128], sizes = [8, 128], strides = [1, 1]} : vector<8x384xf32> to vector<8x128xf32>
    %68 = vector.extract_strided_slice %58 {offsets = [0, 128], sizes = [8, 128], strides = [1, 1]} : vector<8x256xf32> to vector<8x128xf32>
    %69 = arith.addf %67, %68 : vector<8x128xf32>
    %70 = arith.negf %69 : vector<8x128xf32>
    %71 = math.exp %70 : vector<8x128xf32>
    %cst_33 = arith.constant 1.000000e+00 : f32
    %72 = vector.broadcast %cst_33 : f32 to vector<8x128xf32>
    %73 = arith.addf %72, %71 : vector<8x128xf32>
    %74 = arith.divf %72, %73 : vector<8x128xf32>
    %75 = vector.extract_strided_slice %53 {offsets = [0, 256], sizes = [8, 128], strides = [1, 1]} : vector<8x384xf32> to vector<8x128xf32>
    %76 = arith.mulf %74, %55 : vector<8x128xf32>
    %77 = arith.truncf %76 : vector<8x128xf32> to vector<8x128xbf16>
    %c0_34 = arith.constant 0 : index
    %c0_35 = arith.constant 0 : index
    %78 = vector.load %arg12[%c0_34, %c0_35] : memref<128x128xbf16, #tpu.memory_space<vmem>>, vector<128x128xbf16>
    %cst_36 = arith.constant dense<0.000000e+00> : vector<8x128xf32>
    %79 = tpu.matmul %77, %78, %cst_36 {dimension_numbers = #tpu.dot_dimension_numbers<[1], [0], [0], [1], [0, 0, 1, 1], [], []>} : vector<8x128xbf16>, vector<128x128xbf16>, vector<8x128xf32> -> vector<8x128xf32>
    %80 = arith.addf %75, %79 : vector<8x128xf32>
    %81 = math.tanh %80 : vector<8x128xf32>
    %82 = arith.mulf %66, %55 : vector<8x128xf32>
    %cst_37 = arith.constant 1.000000e+00 : f32
    %83 = vector.broadcast %cst_37 : f32 to vector<8x128xf32>
    %84 = arith.subf %83, %66 : vector<8x128xf32>
    %85 = arith.mulf %84, %81 : vector<8x128xf32>
    %86 = arith.addf %82, %85 : vector<8x128xf32>
    %c1_38 = arith.constant 1 : index
    %c0_39 = arith.constant 0 : index
    %c0_40 = arith.constant 0 : index
    %87 = vector.load %arg16[%c1_38, %c0_39, %c0_40] : memref<2x8x128xf32, #tpu.memory_space<vmem>>, vector<1x8x128xf32>
    %88 = vector.shape_cast %87 : vector<1x8x128xf32> to vector<8x128xf32>
    %89 = vector.shape_cast %86 : vector<8x128xf32> to vector<1x8x128xf32>
    tpu.vector_store %arg16[%c1_38, %c0_39, %c0_40], %89 {strides = array<i32>} : memref<2x8x128xf32, #tpu.memory_space<vmem>>, vector<1x8x128xf32>,
    %c0_41 = arith.constant 0 : index
    %c0_42 = arith.constant 0 : index
    %c0_43 = arith.constant 0 : index
    %90 = vector.load %arg18[%c0_41, %c0_42, %c0_43] : memref<16x8x128xf32, #tpu.memory_space<vmem>>, vector<1x8x128xf32>
    %91 = vector.shape_cast %90 : vector<1x8x128xf32> to vector<8x128xf32>
    %92 = vector.shape_cast %86 : vector<8x128xf32> to vector<1x8x128xf32>
    tpu.vector_store %arg18[%c0_41, %c0_42, %c0_43], %92 {strides = array<i32>} : memref<16x8x128xf32, #tpu.memory_space<vmem>>, vector<1x8x128xf32>,
    %93 = vector.extract_strided_slice %11 {offsets = [8, 0], sizes = [8, 384], strides = [1, 1]} : vector<128x384xf32> to vector<8x384xf32>
    %94 = arith.addf %93, %3 : vector<8x384xf32>
    %c0_44 = arith.constant 0 : index
    %c0_45 = arith.constant 0 : index
    %c0_46 = arith.constant 0 : index
    %95 = vector.load %arg16[%c0_44, %c0_45, %c0_46] : memref<2x8x128xf32, #tpu.memory_space<vmem>>, vector<1x8x128xf32>
    %96 = vector.shape_cast %95 : vector<1x8x128xf32> to vector<8x128xf32>
    %97 = arith.truncf %96 : vector<8x128xf32> to vector<8x128xbf16>
    %c0_47 = arith.constant 0 : index
    %c0_48 = arith.constant 0 : index
    %98 = vector.load %arg7[%c0_47, %c0_48] : memref<128x256xbf16, #tpu.memory_space<vmem>>, vector<128x256xbf16>
    %cst_49 = arith.constant dense<0.000000e+00> : vector<8x256xf32>
    %99 = tpu.matmul %97, %98, %cst_49 {dimension_numbers = #tpu.dot_dimension_numbers<[1], [0], [0], [1], [0, 0, 1, 1], [], []>} : vector<8x128xbf16>, vector<128x256xbf16>, vector<8x256xf32> -> vector<8x256xf32>
    %100 = vector.extract_strided_slice %94 {offsets = [0, 0], sizes = [8, 128], strides = [1, 1]} : vector<8x384xf32> to vector<8x128xf32>
    %101 = vector.extract_strided_slice %99 {offsets = [0, 0], sizes = [8, 128], strides = [1, 1]} : vector<8x256xf32> to vector<8x128xf32>
    %102 = arith.addf %100, %101 : vector<8x128xf32>
    %103 = arith.negf %102 : vector<8x128xf32>
    %104 = math.exp %103 : vector<8x128xf32>
    %cst_50 = arith.constant 1.000000e+00 : f32
    %105 = vector.broadcast %cst_50 : f32 to vector<8x128xf32>
    %106 = arith.addf %105, %104 : vector<8x128xf32>
    %107 = arith.divf %105, %106 : vector<8x128xf32>
    %108 = vector.extract_strided_slice %94 {offsets = [0, 128], sizes = [8, 128], strides = [1, 1]} : vector<8x384xf32> to vector<8x128xf32>
    %109 = vector.extract_strided_slice %99 {offsets = [0, 128], sizes = [8, 128], strides = [1, 1]} : vector<8x256xf32> to vector<8x128xf32>
    %110 = arith.addf %108, %109 : vector<8x128xf32>
    %111 = arith.negf %110 : vector<8x128xf32>
    %112 = math.exp %111 : vector<8x128xf32>
    %cst_51 = arith.constant 1.000000e+00 : f32
    %113 = vector.broadcast %cst_51 : f32 to vector<8x128xf32>
    %114 = arith.addf %113, %112 : vector<8x128xf32>
    %115 = arith.divf %113, %114 : vector<8x128xf32>
    %116 = vector.extract_strided_slice %94 {offsets = [0, 256], sizes = [8, 128], strides = [1, 1]} : vector<8x384xf32> to vector<8x128xf32>
    %117 = arith.mulf %115, %96 : vector<8x128xf32>
    %118 = arith.truncf %117 : vector<8x128xf32> to vector<8x128xbf16>
    %c0_52 = arith.constant 0 : index
    %c0_53 = arith.constant 0 : index
    %119 = vector.load %arg8[%c0_52, %c0_53] : memref<128x128xbf16, #tpu.memory_space<vmem>>, vector<128x128xbf16>
    %cst_54 = arith.constant dense<0.000000e+00> : vector<8x128xf32>
    %120 = tpu.matmul %118, %119, %cst_54 {dimension_numbers = #tpu.dot_dimension_numbers<[1], [0], [0], [1], [0, 0, 1, 1], [], []>} : vector<8x128xbf16>, vector<128x128xbf16>, vector<8x128xf32> -> vector<8x128xf32>
    %121 = arith.addf %116, %120 : vector<8x128xf32>
    %122 = math.tanh %121 : vector<8x128xf32>
    %123 = arith.mulf %107, %96 : vector<8x128xf32>
    %cst_55 = arith.constant 1.000000e+00 : f32
    %124 = vector.broadcast %cst_55 : f32 to vector<8x128xf32>
    %125 = arith.subf %124, %107 : vector<8x128xf32>
    %126 = arith.mulf %125, %122 : vector<8x128xf32>
    %127 = arith.addf %123, %126 : vector<8x128xf32>
    %c0_56 = arith.constant 0 : index
    %c0_57 = arith.constant 0 : index
    %c0_58 = arith.constant 0 : index
    %128 = vector.load %arg16[%c0_56, %c0_57, %c0_58] : memref<2x8x128xf32, #tpu.memory_space<vmem>>, vector<1x8x128xf32>
    %129 = vector.shape_cast %128 : vector<1x8x128xf32> to vector<8x128xf32>
    %130 = vector.shape_cast %127 : vector<8x128xf32> to vector<1x8x128xf32>
    tpu.vector_store %arg16[%c0_56, %c0_57, %c0_58], %130 {strides = array<i32>} : memref<2x8x128xf32, #tpu.memory_space<vmem>>, vector<1x8x128xf32>,
    %131 = arith.truncf %127 : vector<8x128xf32> to vector<8x128xbf16>
    %c0_59 = arith.constant 0 : index
    %c0_60 = arith.constant 0 : index
    %132 = vector.load %arg10[%c0_59, %c0_60] : memref<128x384xbf16, #tpu.memory_space<vmem>>, vector<128x384xbf16>
    %cst_61 = arith.constant dense<0.000000e+00> : vector<8x384xf32>
    %133 = tpu.matmul %131, %132, %cst_61 {dimension_numbers = #tpu.dot_dimension_numbers<[1], [0], [0], [1], [0, 0, 1, 1], [], []>} : vector<8x128xbf16>, vector<128x384xbf16>, vector<8x384xf32> -> vector<8x384xf32>
    %134 = arith.addf %133, %6 : vector<8x384xf32>
    %c1_62 = arith.constant 1 : index
    %c0_63 = arith.constant 0 : index
    %c0_64 = arith.constant 0 : index
    %135 = vector.load %arg16[%c1_62, %c0_63, %c0_64] : memref<2x8x128xf32, #tpu.memory_space<vmem>>, vector<1x8x128xf32>
    %136 = vector.shape_cast %135 : vector<1x8x128xf32> to vector<8x128xf32>
    %137 = arith.truncf %136 : vector<8x128xf32> to vector<8x128xbf16>
    %c0_65 = arith.constant 0 : index
    %c0_66 = arith.constant 0 : index
    %138 = vector.load %arg11[%c0_65, %c0_66] : memref<128x256xbf16, #tpu.memory_space<vmem>>, vector<128x256xbf16>
    %cst_67 = arith.constant dense<0.000000e+00> : vector<8x256xf32>
    %139 = tpu.matmul %137, %138, %cst_67 {dimension_numbers = #tpu.dot_dimension_numbers<[1], [0], [0], [1], [0, 0, 1, 1], [], []>} : vector<8x128xbf16>, vector<128x256xbf16>, vector<8x256xf32> -> vector<8x256xf32>
    %140 = vector.extract_strided_slice %134 {offsets = [0, 0], sizes = [8, 128], strides = [1, 1]} : vector<8x384xf32> to vector<8x128xf32>
    %141 = vector.extract_strided_slice %139 {offsets = [0, 0], sizes = [8, 128], strides = [1, 1]} : vector<8x256xf32> to vector<8x128xf32>
    %142 = arith.addf %140, %141 : vector<8x128xf32>
    %143 = arith.negf %142 : vector<8x128xf32>
    %144 = math.exp %143 : vector<8x128xf32>
    %cst_68 = arith.constant 1.000000e+00 : f32
    %145 = vector.broadcast %cst_68 : f32 to vector<8x128xf32>
    %146 = arith.addf %145, %144 : vector<8x128xf32>
    %147 = arith.divf %145, %146 : vector<8x128xf32>
    %148 = vector.extract_strided_slice %134 {offsets = [0, 128], sizes = [8, 128], strides = [1, 1]} : vector<8x384xf32> to vector<8x128xf32>
    %149 = vector.extract_strided_slice %139 {offsets = [0, 128], sizes = [8, 128], strides = [1, 1]} : vector<8x256xf32> to vector<8x128xf32>
    %150 = arith.addf %148, %149 : vector<8x128xf32>
    %151 = arith.negf %150 : vector<8x128xf32>
    %152 = math.exp %151 : vector<8x128xf32>
    %cst_69 = arith.constant 1.000000e+00 : f32
    %153 = vector.broadcast %cst_69 : f32 to vector<8x128xf32>
    %154 = arith.addf %153, %152 : vector<8x128xf32>
    %155 = arith.divf %153, %154 : vector<8x128xf32>
    %156 = vector.extract_strided_slice %134 {offsets = [0, 256], sizes = [8, 128], strides = [1, 1]} : vector<8x384xf32> to vector<8x128xf32>
    %157 = arith.mulf %155, %136 : vector<8x128xf32>
    %158 = arith.truncf %157 : vector<8x128xf32> to vector<8x128xbf16>
    %c0_70 = arith.constant 0 : index
    %c0_71 = arith.constant 0 : index
    %159 = vector.load %arg12[%c0_70, %c0_71] : memref<128x128xbf16, #tpu.memory_space<vmem>>, vector<128x128xbf16>
    %cst_72 = arith.constant dense<0.000000e+00> : vector<8x128xf32>
    %160 = tpu.matmul %158, %159, %cst_72 {dimension_numbers = #tpu.dot_dimension_numbers<[1], [0], [0], [1], [0, 0, 1, 1], [], []>} : vector<8x128xbf16>, vector<128x128xbf16>, vector<8x128xf32> -> vector<8x128xf32>
    %161 = arith.addf %156, %160 : vector<8x128xf32>
    %162 = math.tanh %161 : vector<8x128xf32>
    %163 = arith.mulf %147, %136 : vector<8x128xf32>
    %cst_73 = arith.constant 1.000000e+00 : f32
    %164 = vector.broadcast %cst_73 : f32 to vector<8x128xf32>
    %165 = arith.subf %164, %147 : vector<8x128xf32>
    %166 = arith.mulf %165, %162 : vector<8x128xf32>
    %167 = arith.addf %163, %166 : vector<8x128xf32>
    %c1_74 = arith.constant 1 : index
    %c0_75 = arith.constant 0 : index
    %c0_76 = arith.constant 0 : index
    %168 = vector.load %arg16[%c1_74, %c0_75, %c0_76] : memref<2x8x128xf32, #tpu.memory_space<vmem>>, vector<1x8x128xf32>
    %169 = vector.shape_cast %168 : vector<1x8x128xf32> to vector<8x128xf32>
    %170 = vector.shape_cast %167 : vector<8x128xf32> to vector<1x8x128xf32>
    tpu.vector_store %arg16[%c1_74, %c0_75, %c0_76], %170 {strides = array<i32>} : memref<2x8x128xf32, #tpu.memory_space<vmem>>, vector<1x8x128xf32>,
    %c1_77 = arith.constant 1 : index
    %c0_78 = arith.constant 0 : index
    %c0_79 = arith.constant 0 : index
    %171 = vector.load %arg18[%c1_77, %c0_78, %c0_79] : memref<16x8x128xf32, #tpu.memory_space<vmem>>, vector<1x8x128xf32>
    %172 = vector.shape_cast %171 : vector<1x8x128xf32> to vector<8x128xf32>
    %173 = vector.shape_cast %167 : vector<8x128xf32> to vector<1x8x128xf32>
    tpu.vector_store %arg18[%c1_77, %c0_78, %c0_79], %173 {strides = array<i32>} : memref<16x8x128xf32, #tpu.memory_space<vmem>>, vector<1x8x128xf32>,
    %174 = vector.extract_strided_slice %11 {offsets = [16, 0], sizes = [8, 384], strides = [1, 1]} : vector<128x384xf32> to vector<8x384xf32>
    %175 = arith.addf %174, %3 : vector<8x384xf32>
    %c0_80 = arith.constant 0 : index
    %c0_81 = arith.constant 0 : index
    %c0_82 = arith.constant 0 : index
    %176 = vector.load %arg16[%c0_80, %c0_81, %c0_82] : memref<2x8x128xf32, #tpu.memory_space<vmem>>, vector<1x8x128xf32>
    %177 = vector.shape_cast %176 : vector<1x8x128xf32> to vector<8x128xf32>
    %178 = arith.truncf %177 : vector<8x128xf32> to vector<8x128xbf16>
    %c0_83 = arith.constant 0 : index
    %c0_84 = arith.constant 0 : index
    %179 = vector.load %arg7[%c0_83, %c0_84] : memref<128x256xbf16, #tpu.memory_space<vmem>>, vector<128x256xbf16>
    %cst_85 = arith.constant dense<0.000000e+00> : vector<8x256xf32>
    %180 = tpu.matmul %178, %179, %cst_85 {dimension_numbers = #tpu.dot_dimension_numbers<[1], [0], [0], [1], [0, 0, 1, 1], [], []>} : vector<8x128xbf16>, vector<128x256xbf16>, vector<8x256xf32> -> vector<8x256xf32>
    %181 = vector.extract_strided_slice %175 {offsets = [0, 0], sizes = [8, 128], strides = [1, 1]} : vector<8x384xf32> to vector<8x128xf32>
    %182 = vector.extract_strided_slice %180 {offsets = [0, 0], sizes = [8, 128], strides = [1, 1]} : vector<8x256xf32> to vector<8x128xf32>
    %183 = arith.addf %181, %182 : vector<8x128xf32>
    %184 = arith.negf %183 : vector<8x128xf32>
    %185 = math.exp %184 : vector<8x128xf32>
    %cst_86 = arith.constant 1.000000e+00 : f32
    %186 = vector.broadcast %cst_86 : f32 to vector<8x128xf32>
    %187 = arith.addf %186, %185 : vector<8x128xf32>
    %188 = arith.divf %186, %187 : vector<8x128xf32>
    %189 = vector.extract_strided_slice %175 {offsets = [0, 128], sizes = [8, 128], strides = [1, 1]} : vector<8x384xf32> to vector<8x128xf32>
    %190 = vector.extract_strided_slice %180 {offsets = [0, 128], sizes = [8, 128], strides = [1, 1]} : vector<8x256xf32> to vector<8x128xf32>
    %191 = arith.addf %189, %190 : vector<8x128xf32>
    %192 = arith.negf %191 : vector<8x128xf32>
    %193 = math.exp %192 : vector<8x128xf32>
    %cst_87 = arith.constant 1.000000e+00 : f32
    %194 = vector.broadcast %cst_87 : f32 to vector<8x128xf32>
    %195 = arith.addf %194, %193 : vector<8x128xf32>
    %196 = arith.divf %194, %195 : vector<8x128xf32>
    %197 = vector.extract_strided_slice %175 {offsets = [0, 256], sizes = [8, 128], strides = [1, 1]} : vector<8x384xf32> to vector<8x128xf32>
    %198 = arith.mulf %196, %177 : vector<8x128xf32>
    %199 = arith.truncf %198 : vector<8x128xf32> to vector<8x128xbf16>
    %c0_88 = arith.constant 0 : index
    %c0_89 = arith.constant 0 : index
    %200 = vector.load %arg8[%c0_88, %c0_89] : memref<128x128xbf16, #tpu.memory_space<vmem>>, vector<128x128xbf16>
    %cst_90 = arith.constant dense<0.000000e+00> : vector<8x128xf32>
    %201 = tpu.matmul %199, %200, %cst_90 {dimension_numbers = #tpu.dot_dimension_numbers<[1], [0], [0], [1], [0, 0, 1, 1], [], []>} : vector<8x128xbf16>, vector<128x128xbf16>, vector<8x128xf32> -> vector<8x128xf32>
    %202 = arith.addf %197, %201 : vector<8x128xf32>
    %203 = math.tanh %202 : vector<8x128xf32>
    %204 = arith.mulf %188, %177 : vector<8x128xf32>
    %cst_91 = arith.constant 1.000000e+00 : f32
    %205 = vector.broadcast %cst_91 : f32 to vector<8x128xf32>
    %206 = arith.subf %205, %188 : vector<8x128xf32>
    %207 = arith.mulf %206, %203 : vector<8x128xf32>
    %208 = arith.addf %204, %207 : vector<8x128xf32>
    %c0_92 = arith.constant 0 : index
    %c0_93 = arith.constant 0 : index
    %c0_94 = arith.constant 0 : index
    %209 = vector.load %arg16[%c0_92, %c0_93, %c0_94] : memref<2x8x128xf32, #tpu.memory_space<vmem>>, vector<1x8x128xf32>
    %210 = vector.shape_cast %209 : vector<1x8x128xf32> to vector<8x128xf32>
    %211 = vector.shape_cast %208 : vector<8x128xf32> to vector<1x8x128xf32>
    tpu.vector_store %arg16[%c0_92, %c0_93, %c0_94], %211 {strides = array<i32>} : memref<2x8x128xf32, #tpu.memory_space<vmem>>, vector<1x8x128xf32>,
    %212 = arith.truncf %208 : vector<8x128xf32> to vector<8x128xbf16>
    %c0_95 = arith.constant 0 : index
    %c0_96 = arith.constant 0 : index
    %213 = vector.load %arg10[%c0_95, %c0_96] : memref<128x384xbf16, #tpu.memory_space<vmem>>, vector<128x384xbf16>
    %cst_97 = arith.constant dense<0.000000e+00> : vector<8x384xf32>
    %214 = tpu.matmul %212, %213, %cst_97 {dimension_numbers = #tpu.dot_dimension_numbers<[1], [0], [0], [1], [0, 0, 1, 1], [], []>} : vector<8x128xbf16>, vector<128x384xbf16>, vector<8x384xf32> -> vector<8x384xf32>
    %215 = arith.addf %214, %6 : vector<8x384xf32>
    %c1_98 = arith.constant 1 : index
    %c0_99 = arith.constant 0 : index
    %c0_100 = arith.constant 0 : index
    %216 = vector.load %arg16[%c1_98, %c0_99, %c0_100] : memref<2x8x128xf32, #tpu.memory_space<vmem>>, vector<1x8x128xf32>
    %217 = vector.shape_cast %216 : vector<1x8x128xf32> to vector<8x128xf32>
    %218 = arith.truncf %217 : vector<8x128xf32> to vector<8x128xbf16>
    %c0_101 = arith.constant 0 : index
    %c0_102 = arith.constant 0 : index
    %219 = vector.load %arg11[%c0_101, %c0_102] : memref<128x256xbf16, #tpu.memory_space<vmem>>, vector<128x256xbf16>
    %cst_103 = arith.constant dense<0.000000e+00> : vector<8x256xf32>
    %220 = tpu.matmul %218, %219, %cst_103 {dimension_numbers = #tpu.dot_dimension_numbers<[1], [0], [0], [1], [0, 0, 1, 1], [], []>} : vector<8x128xbf16>, vector<128x256xbf16>, vector<8x256xf32> -> vector<8x256xf32>
    %221 = vector.extract_strided_slice %215 {offsets = [0, 0], sizes = [8, 128], strides = [1, 1]} : vector<8x384xf32> to vector<8x128xf32>
    %222 = vector.extract_strided_slice %220 {offsets = [0, 0], sizes = [8, 128], strides = [1, 1]} : vector<8x256xf32> to vector<8x128xf32>
    %223 = arith.addf %221, %222 : vector<8x128xf32>
    %224 = arith.negf %223 : vector<8x128xf32>
    %225 = math.exp %224 : vector<8x128xf32>
    %cst_104 = arith.constant 1.000000e+00 : f32
    %226 = vector.broadcast %cst_104 : f32 to vector<8x128xf32>
    %227 = arith.addf %226, %225 : vector<8x128xf32>
    %228 = arith.divf %226, %227 : vector<8x128xf32>
    %229 = vector.extract_strided_slice %215 {offsets = [0, 128], sizes = [8, 128], strides = [1, 1]} : vector<8x384xf32> to vector<8x128xf32>
    %230 = vector.extract_strided_slice %220 {offsets = [0, 128], sizes = [8, 128], strides = [1, 1]} : vector<8x256xf32> to vector<8x128xf32>
    %231 = arith.addf %229, %230 : vector<8x128xf32>
    %232 = arith.negf %231 : vector<8x128xf32>
    %233 = math.exp %232 : vector<8x128xf32>
    %cst_105 = arith.constant 1.000000e+00 : f32
    %234 = vector.broadcast %cst_105 : f32 to vector<8x128xf32>
    %235 = arith.addf %234, %233 : vector<8x128xf32>
    %236 = arith.divf %234, %235 : vector<8x128xf32>
    %237 = vector.extract_strided_slice %215 {offsets = [0, 256], sizes = [8, 128], strides = [1, 1]} : vector<8x384xf32> to vector<8x128xf32>
    %238 = arith.mulf %236, %217 : vector<8x128xf32>
    %239 = arith.truncf %238 : vector<8x128xf32> to vector<8x128xbf16>
    %c0_106 = arith.constant 0 : index
    %c0_107 = arith.constant 0 : index
    %240 = vector.load %arg12[%c0_106, %c0_107] : memref<128x128xbf16, #tpu.memory_space<vmem>>, vector<128x128xbf16>
    %cst_108 = arith.constant dense<0.000000e+00> : vector<8x128xf32>
    %241 = tpu.matmul %239, %240, %cst_108 {dimension_numbers = #tpu.dot_dimension_numbers<[1], [0], [0], [1], [0, 0, 1, 1], [], []>} : vector<8x128xbf16>, vector<128x128xbf16>, vector<8x128xf32> -> vector<8x128xf32>
    %242 = arith.addf %237, %241 : vector<8x128xf32>
    %243 = math.tanh %242 : vector<8x128xf32>
    %244 = arith.mulf %228, %217 : vector<8x128xf32>
    %cst_109 = arith.constant 1.000000e+00 : f32
    %245 = vector.broadcast %cst_109 : f32 to vector<8x128xf32>
    %246 = arith.subf %245, %228 : vector<8x128xf32>
    %247 = arith.mulf %246, %243 : vector<8x128xf32>
    %248 = arith.addf %244, %247 : vector<8x128xf32>
    %c1_110 = arith.constant 1 : index
    %c0_111 = arith.constant 0 : index
    %c0_112 = arith.constant 0 : index
    %249 = vector.load %arg16[%c1_110, %c0_111, %c0_112] : memref<2x8x128xf32, #tpu.memory_space<vmem>>, vector<1x8x128xf32>
    %250 = vector.shape_cast %249 : vector<1x8x128xf32> to vector<8x128xf32>
    %251 = vector.shape_cast %248 : vector<8x128xf32> to vector<1x8x128xf32>
    tpu.vector_store %arg16[%c1_110, %c0_111, %c0_112], %251 {strides = array<i32>} : memref<2x8x128xf32, #tpu.memory_space<vmem>>, vector<1x8x128xf32>,
    %c2 = arith.constant 2 : index
    %c0_113 = arith.constant 0 : index
    %c0_114 = arith.constant 0 : index
    %252 = vector.load %arg18[%c2, %c0_113, %c0_114] : memref<16x8x128xf32, #tpu.memory_space<vmem>>, vector<1x8x128xf32>
    %253 = vector.shape_cast %252 : vector<1x8x128xf32> to vector<8x128xf32>
    %254 = vector.shape_cast %248 : vector<8x128xf32> to vector<1x8x128xf32>
    tpu.vector_store %arg18[%c2, %c0_113, %c0_114], %254 {strides = array<i32>} : memref<16x8x128xf32, #tpu.memory_space<vmem>>, vector<1x8x128xf32>,
    %255 = vector.extract_strided_slice %11 {offsets = [24, 0], sizes = [8, 384], strides = [1, 1]} : vector<128x384xf32> to vector<8x384xf32>
    %256 = arith.addf %255, %3 : vector<8x384xf32>
    %c0_115 = arith.constant 0 : index
    %c0_116 = arith.constant 0 : index
    %c0_117 = arith.constant 0 : index
    %257 = vector.load %arg16[%c0_115, %c0_116, %c0_117] : memref<2x8x128xf32, #tpu.memory_space<vmem>>, vector<1x8x128xf32>
    %258 = vector.shape_cast %257 : vector<1x8x128xf32> to vector<8x128xf32>
    %259 = arith.truncf %258 : vector<8x128xf32> to vector<8x128xbf16>
    %c0_118 = arith.constant 0 : index
    %c0_119 = arith.constant 0 : index
    %260 = vector.load %arg7[%c0_118, %c0_119] : memref<128x256xbf16, #tpu.memory_space<vmem>>, vector<128x256xbf16>
    %cst_120 = arith.constant dense<0.000000e+00> : vector<8x256xf32>
    %261 = tpu.matmul %259, %260, %cst_120 {dimension_numbers = #tpu.dot_dimension_numbers<[1], [0], [0], [1], [0, 0, 1, 1], [], []>} : vector<8x128xbf16>, vector<128x256xbf16>, vector<8x256xf32> -> vector<8x256xf32>
    %262 = vector.extract_strided_slice %256 {offsets = [0, 0], sizes = [8, 128], strides = [1, 1]} : vector<8x384xf32> to vector<8x128xf32>
    %263 = vector.extract_strided_slice %261 {offsets = [0, 0], sizes = [8, 128], strides = [1, 1]} : vector<8x256xf32> to vector<8x128xf32>
    %264 = arith.addf %262, %263 : vector<8x128xf32>
    %265 = arith.negf %264 : vector<8x128xf32>
    %266 = math.exp %265 : vector<8x128xf32>
    %cst_121 = arith.constant 1.000000e+00 : f32
    %267 = vector.broadcast %cst_121 : f32 to vector<8x128xf32>
    %268 = arith.addf %267, %266 : vector<8x128xf32>
    %269 = arith.divf %267, %268 : vector<8x128xf32>
    %270 = vector.extract_strided_slice %256 {offsets = [0, 128], sizes = [8, 128], strides = [1, 1]} : vector<8x384xf32> to vector<8x128xf32>
    %271 = vector.extract_strided_slice %261 {offsets = [0, 128], sizes = [8, 128], strides = [1, 1]} : vector<8x256xf32> to vector<8x128xf32>
    %272 = arith.addf %270, %271 : vector<8x128xf32>
    %273 = arith.negf %272 : vector<8x128xf32>
    %274 = math.exp %273 : vector<8x128xf32>
    %cst_122 = arith.constant 1.000000e+00 : f32
    %275 = vector.broadcast %cst_122 : f32 to vector<8x128xf32>
    %276 = arith.addf %275, %274 : vector<8x128xf32>
    %277 = arith.divf %275, %276 : vector<8x128xf32>
    %278 = vector.extract_strided_slice %256 {offsets = [0, 256], sizes = [8, 128], strides = [1, 1]} : vector<8x384xf32> to vector<8x128xf32>
    %279 = arith.mulf %277, %258 : vector<8x128xf32>
    %280 = arith.truncf %279 : vector<8x128xf32> to vector<8x128xbf16>
    %c0_123 = arith.constant 0 : index
    %c0_124 = arith.constant 0 : index
    %281 = vector.load %arg8[%c0_123, %c0_124] : memref<128x128xbf16, #tpu.memory_space<vmem>>, vector<128x128xbf16>
    %cst_125 = arith.constant dense<0.000000e+00> : vector<8x128xf32>
    %282 = tpu.matmul %280, %281, %cst_125 {dimension_numbers = #tpu.dot_dimension_numbers<[1], [0], [0], [1], [0, 0, 1, 1], [], []>} : vector<8x128xbf16>, vector<128x128xbf16>, vector<8x128xf32> -> vector<8x128xf32>
    %283 = arith.addf %278, %282 : vector<8x128xf32>
    %284 = math.tanh %283 : vector<8x128xf32>
    %285 = arith.mulf %269, %258 : vector<8x128xf32>
    %cst_126 = arith.constant 1.000000e+00 : f32
    %286 = vector.broadcast %cst_126 : f32 to vector<8x128xf32>
    %287 = arith.subf %286, %269 : vector<8x128xf32>
    %288 = arith.mulf %287, %284 : vector<8x128xf32>
    %289 = arith.addf %285, %288 : vector<8x128xf32>
    %c0_127 = arith.constant 0 : index
    %c0_128 = arith.constant 0 : index
    %c0_129 = arith.constant 0 : index
    %290 = vector.load %arg16[%c0_127, %c0_128, %c0_129] : memref<2x8x128xf32, #tpu.memory_space<vmem>>, vector<1x8x128xf32>
    %291 = vector.shape_cast %290 : vector<1x8x128xf32> to vector<8x128xf32>
    %292 = vector.shape_cast %289 : vector<8x128xf32> to vector<1x8x128xf32>
    tpu.vector_store %arg16[%c0_127, %c0_128, %c0_129], %292 {strides = array<i32>} : memref<2x8x128xf32, #tpu.memory_space<vmem>>, vector<1x8x128xf32>,
    %293 = arith.truncf %289 : vector<8x128xf32> to vector<8x128xbf16>
    %c0_130 = arith.constant 0 : index
    %c0_131 = arith.constant 0 : index
    %294 = vector.load %arg10[%c0_130, %c0_131] : memref<128x384xbf16, #tpu.memory_space<vmem>>, vector<128x384xbf16>
    %cst_132 = arith.constant dense<0.000000e+00> : vector<8x384xf32>
    %295 = tpu.matmul %293, %294, %cst_132 {dimension_numbers = #tpu.dot_dimension_numbers<[1], [0], [0], [1], [0, 0, 1, 1], [], []>} : vector<8x128xbf16>, vector<128x384xbf16>, vector<8x384xf32> -> vector<8x384xf32>
    %296 = arith.addf %295, %6 : vector<8x384xf32>
    %c1_133 = arith.constant 1 : index
    %c0_134 = arith.constant 0 : index
    %c0_135 = arith.constant 0 : index
    %297 = vector.load %arg16[%c1_133, %c0_134, %c0_135] : memref<2x8x128xf32, #tpu.memory_space<vmem>>, vector<1x8x128xf32>
    %298 = vector.shape_cast %297 : vector<1x8x128xf32> to vector<8x128xf32>
    %299 = arith.truncf %298 : vector<8x128xf32> to vector<8x128xbf16>
    %c0_136 = arith.constant 0 : index
    %c0_137 = arith.constant 0 : index
    %300 = vector.load %arg11[%c0_136, %c0_137] : memref<128x256xbf16, #tpu.memory_space<vmem>>, vector<128x256xbf16>
    %cst_138 = arith.constant dense<0.000000e+00> : vector<8x256xf32>
    %301 = tpu.matmul %299, %300, %cst_138 {dimension_numbers = #tpu.dot_dimension_numbers<[1], [0], [0], [1], [0, 0, 1, 1], [], []>} : vector<8x128xbf16>, vector<128x256xbf16>, vector<8x256xf32> -> vector<8x256xf32>
    %302 = vector.extract_strided_slice %296 {offsets = [0, 0], sizes = [8, 128], strides = [1, 1]} : vector<8x384xf32> to vector<8x128xf32>
    %303 = vector.extract_strided_slice %301 {offsets = [0, 0], sizes = [8, 128], strides = [1, 1]} : vector<8x256xf32> to vector<8x128xf32>
    %304 = arith.addf %302, %303 : vector<8x128xf32>
    %305 = arith.negf %304 : vector<8x128xf32>
    %306 = math.exp %305 : vector<8x128xf32>
    %cst_139 = arith.constant 1.000000e+00 : f32
    %307 = vector.broadcast %cst_139 : f32 to vector<8x128xf32>
    %308 = arith.addf %307, %306 : vector<8x128xf32>
    %309 = arith.divf %307, %308 : vector<8x128xf32>
    %310 = vector.extract_strided_slice %296 {offsets = [0, 128], sizes = [8, 128], strides = [1, 1]} : vector<8x384xf32> to vector<8x128xf32>
    %311 = vector.extract_strided_slice %301 {offsets = [0, 128], sizes = [8, 128], strides = [1, 1]} : vector<8x256xf32> to vector<8x128xf32>
    %312 = arith.addf %310, %311 : vector<8x128xf32>
    %313 = arith.negf %312 : vector<8x128xf32>
    %314 = math.exp %313 : vector<8x128xf32>
    %cst_140 = arith.constant 1.000000e+00 : f32
    %315 = vector.broadcast %cst_140 : f32 to vector<8x128xf32>
    %316 = arith.addf %315, %314 : vector<8x128xf32>
    %317 = arith.divf %315, %316 : vector<8x128xf32>
    %318 = vector.extract_strided_slice %296 {offsets = [0, 256], sizes = [8, 128], strides = [1, 1]} : vector<8x384xf32> to vector<8x128xf32>
    %319 = arith.mulf %317, %298 : vector<8x128xf32>
    %320 = arith.truncf %319 : vector<8x128xf32> to vector<8x128xbf16>
    %c0_141 = arith.constant 0 : index
    %c0_142 = arith.constant 0 : index
    %321 = vector.load %arg12[%c0_141, %c0_142] : memref<128x128xbf16, #tpu.memory_space<vmem>>, vector<128x128xbf16>
    %cst_143 = arith.constant dense<0.000000e+00> : vector<8x128xf32>
    %322 = tpu.matmul %320, %321, %cst_143 {dimension_numbers = #tpu.dot_dimension_numbers<[1], [0], [0], [1], [0, 0, 1, 1], [], []>} : vector<8x128xbf16>, vector<128x128xbf16>, vector<8x128xf32> -> vector<8x128xf32>
    %323 = arith.addf %318, %322 : vector<8x128xf32>
    %324 = math.tanh %323 : vector<8x128xf32>
    %325 = arith.mulf %309, %298 : vector<8x128xf32>
    %cst_144 = arith.constant 1.000000e+00 : f32
    %326 = vector.broadcast %cst_144 : f32 to vector<8x128xf32>
    %327 = arith.subf %326, %309 : vector<8x128xf32>
    %328 = arith.mulf %327, %324 : vector<8x128xf32>
    %329 = arith.addf %325, %328 : vector<8x128xf32>
    %c1_145 = arith.constant 1 : index
    %c0_146 = arith.constant 0 : index
    %c0_147 = arith.constant 0 : index
    %330 = vector.load %arg16[%c1_145, %c0_146, %c0_147] : memref<2x8x128xf32, #tpu.memory_space<vmem>>, vector<1x8x128xf32>
    %331 = vector.shape_cast %330 : vector<1x8x128xf32> to vector<8x128xf32>
    %332 = vector.shape_cast %329 : vector<8x128xf32> to vector<1x8x128xf32>
    tpu.vector_store %arg16[%c1_145, %c0_146, %c0_147], %332 {strides = array<i32>} : memref<2x8x128xf32, #tpu.memory_space<vmem>>, vector<1x8x128xf32>,
    %c3 = arith.constant 3 : index
    %c0_148 = arith.constant 0 : index
    %c0_149 = arith.constant 0 : index
    %333 = vector.load %arg18[%c3, %c0_148, %c0_149] : memref<16x8x128xf32, #tpu.memory_space<vmem>>, vector<1x8x128xf32>
    %334 = vector.shape_cast %333 : vector<1x8x128xf32> to vector<8x128xf32>
    %335 = vector.shape_cast %329 : vector<8x128xf32> to vector<1x8x128xf32>
    tpu.vector_store %arg18[%c3, %c0_148, %c0_149], %335 {strides = array<i32>} : memref<16x8x128xf32, #tpu.memory_space<vmem>>, vector<1x8x128xf32>,
    %336 = vector.extract_strided_slice %11 {offsets = [32, 0], sizes = [8, 384], strides = [1, 1]} : vector<128x384xf32> to vector<8x384xf32>
    %337 = arith.addf %336, %3 : vector<8x384xf32>
    %c0_150 = arith.constant 0 : index
    %c0_151 = arith.constant 0 : index
    %c0_152 = arith.constant 0 : index
    %338 = vector.load %arg16[%c0_150, %c0_151, %c0_152] : memref<2x8x128xf32, #tpu.memory_space<vmem>>, vector<1x8x128xf32>
    %339 = vector.shape_cast %338 : vector<1x8x128xf32> to vector<8x128xf32>
    %340 = arith.truncf %339 : vector<8x128xf32> to vector<8x128xbf16>
    %c0_153 = arith.constant 0 : index
    %c0_154 = arith.constant 0 : index
    %341 = vector.load %arg7[%c0_153, %c0_154] : memref<128x256xbf16, #tpu.memory_space<vmem>>, vector<128x256xbf16>
    %cst_155 = arith.constant dense<0.000000e+00> : vector<8x256xf32>
    %342 = tpu.matmul %340, %341, %cst_155 {dimension_numbers = #tpu.dot_dimension_numbers<[1], [0], [0], [1], [0, 0, 1, 1], [], []>} : vector<8x128xbf16>, vector<128x256xbf16>, vector<8x256xf32> -> vector<8x256xf32>
    %343 = vector.extract_strided_slice %337 {offsets = [0, 0], sizes = [8, 128], strides = [1, 1]} : vector<8x384xf32> to vector<8x128xf32>
    %344 = vector.extract_strided_slice %342 {offsets = [0, 0], sizes = [8, 128], strides = [1, 1]} : vector<8x256xf32> to vector<8x128xf32>
    %345 = arith.addf %343, %344 : vector<8x128xf32>
    %346 = arith.negf %345 : vector<8x128xf32>
    %347 = math.exp %346 : vector<8x128xf32>
    %cst_156 = arith.constant 1.000000e+00 : f32
    %348 = vector.broadcast %cst_156 : f32 to vector<8x128xf32>
    %349 = arith.addf %348, %347 : vector<8x128xf32>
    %350 = arith.divf %348, %349 : vector<8x128xf32>
    %351 = vector.extract_strided_slice %337 {offsets = [0, 128], sizes = [8, 128], strides = [1, 1]} : vector<8x384xf32> to vector<8x128xf32>
    %352 = vector.extract_strided_slice %342 {offsets = [0, 128], sizes = [8, 128], strides = [1, 1]} : vector<8x256xf32> to vector<8x128xf32>
    %353 = arith.addf %351, %352 : vector<8x128xf32>
    %354 = arith.negf %353 : vector<8x128xf32>
    %355 = math.exp %354 : vector<8x128xf32>
    %cst_157 = arith.constant 1.000000e+00 : f32
    %356 = vector.broadcast %cst_157 : f32 to vector<8x128xf32>
    %357 = arith.addf %356, %355 : vector<8x128xf32>
    %358 = arith.divf %356, %357 : vector<8x128xf32>
    %359 = vector.extract_strided_slice %337 {offsets = [0, 256], sizes = [8, 128], strides = [1, 1]} : vector<8x384xf32> to vector<8x128xf32>
    %360 = arith.mulf %358, %339 : vector<8x128xf32>
    %361 = arith.truncf %360 : vector<8x128xf32> to vector<8x128xbf16>
    %c0_158 = arith.constant 0 : index
    %c0_159 = arith.constant 0 : index
    %362 = vector.load %arg8[%c0_158, %c0_159] : memref<128x128xbf16, #tpu.memory_space<vmem>>, vector<128x128xbf16>
    %cst_160 = arith.constant dense<0.000000e+00> : vector<8x128xf32>
    %363 = tpu.matmul %361, %362, %cst_160 {dimension_numbers = #tpu.dot_dimension_numbers<[1], [0], [0], [1], [0, 0, 1, 1], [], []>} : vector<8x128xbf16>, vector<128x128xbf16>, vector<8x128xf32> -> vector<8x128xf32>
    %364 = arith.addf %359, %363 : vector<8x128xf32>
    %365 = math.tanh %364 : vector<8x128xf32>
    %366 = arith.mulf %350, %339 : vector<8x128xf32>
    %cst_161 = arith.constant 1.000000e+00 : f32
    %367 = vector.broadcast %cst_161 : f32 to vector<8x128xf32>
    %368 = arith.subf %367, %350 : vector<8x128xf32>
    %369 = arith.mulf %368, %365 : vector<8x128xf32>
    %370 = arith.addf %366, %369 : vector<8x128xf32>
    %c0_162 = arith.constant 0 : index
    %c0_163 = arith.constant 0 : index
    %c0_164 = arith.constant 0 : index
    %371 = vector.load %arg16[%c0_162, %c0_163, %c0_164] : memref<2x8x128xf32, #tpu.memory_space<vmem>>, vector<1x8x128xf32>
    %372 = vector.shape_cast %371 : vector<1x8x128xf32> to vector<8x128xf32>
    %373 = vector.shape_cast %370 : vector<8x128xf32> to vector<1x8x128xf32>
    tpu.vector_store %arg16[%c0_162, %c0_163, %c0_164], %373 {strides = array<i32>} : memref<2x8x128xf32, #tpu.memory_space<vmem>>, vector<1x8x128xf32>,
    %374 = arith.truncf %370 : vector<8x128xf32> to vector<8x128xbf16>
    %c0_165 = arith.constant 0 : index
    %c0_166 = arith.constant 0 : index
    %375 = vector.load %arg10[%c0_165, %c0_166] : memref<128x384xbf16, #tpu.memory_space<vmem>>, vector<128x384xbf16>
    %cst_167 = arith.constant dense<0.000000e+00> : vector<8x384xf32>
    %376 = tpu.matmul %374, %375, %cst_167 {dimension_numbers = #tpu.dot_dimension_numbers<[1], [0], [0], [1], [0, 0, 1, 1], [], []>} : vector<8x128xbf16>, vector<128x384xbf16>, vector<8x384xf32> -> vector<8x384xf32>
    %377 = arith.addf %376, %6 : vector<8x384xf32>
    %c1_168 = arith.constant 1 : index
    %c0_169 = arith.constant 0 : index
    %c0_170 = arith.constant 0 : index
    %378 = vector.load %arg16[%c1_168, %c0_169, %c0_170] : memref<2x8x128xf32, #tpu.memory_space<vmem>>, vector<1x8x128xf32>
    %379 = vector.shape_cast %378 : vector<1x8x128xf32> to vector<8x128xf32>
    %380 = arith.truncf %379 : vector<8x128xf32> to vector<8x128xbf16>
    %c0_171 = arith.constant 0 : index
    %c0_172 = arith.constant 0 : index
    %381 = vector.load %arg11[%c0_171, %c0_172] : memref<128x256xbf16, #tpu.memory_space<vmem>>, vector<128x256xbf16>
    %cst_173 = arith.constant dense<0.000000e+00> : vector<8x256xf32>
    %382 = tpu.matmul %380, %381, %cst_173 {dimension_numbers = #tpu.dot_dimension_numbers<[1], [0], [0], [1], [0, 0, 1, 1], [], []>} : vector<8x128xbf16>, vector<128x256xbf16>, vector<8x256xf32> -> vector<8x256xf32>
    %383 = vector.extract_strided_slice %377 {offsets = [0, 0], sizes = [8, 128], strides = [1, 1]} : vector<8x384xf32> to vector<8x128xf32>
    %384 = vector.extract_strided_slice %382 {offsets = [0, 0], sizes = [8, 128], strides = [1, 1]} : vector<8x256xf32> to vector<8x128xf32>
    %385 = arith.addf %383, %384 : vector<8x128xf32>
    %386 = arith.negf %385 : vector<8x128xf32>
    %387 = math.exp %386 : vector<8x128xf32>
    %cst_174 = arith.constant 1.000000e+00 : f32
    %388 = vector.broadcast %cst_174 : f32 to vector<8x128xf32>
    %389 = arith.addf %388, %387 : vector<8x128xf32>
    %390 = arith.divf %388, %389 : vector<8x128xf32>
    %391 = vector.extract_strided_slice %377 {offsets = [0, 128], sizes = [8, 128], strides = [1, 1]} : vector<8x384xf32> to vector<8x128xf32>
    %392 = vector.extract_strided_slice %382 {offsets = [0, 128], sizes = [8, 128], strides = [1, 1]} : vector<8x256xf32> to vector<8x128xf32>
    %393 = arith.addf %391, %392 : vector<8x128xf32>
    %394 = arith.negf %393 : vector<8x128xf32>
    %395 = math.exp %394 : vector<8x128xf32>
    %cst_175 = arith.constant 1.000000e+00 : f32
    %396 = vector.broadcast %cst_175 : f32 to vector<8x128xf32>
    %397 = arith.addf %396, %395 : vector<8x128xf32>
    %398 = arith.divf %396, %397 : vector<8x128xf32>
    %399 = vector.extract_strided_slice %377 {offsets = [0, 256], sizes = [8, 128], strides = [1, 1]} : vector<8x384xf32> to vector<8x128xf32>
    %400 = arith.mulf %398, %379 : vector<8x128xf32>
    %401 = arith.truncf %400 : vector<8x128xf32> to vector<8x128xbf16>
    %c0_176 = arith.constant 0 : index
    %c0_177 = arith.constant 0 : index
    %402 = vector.load %arg12[%c0_176, %c0_177] : memref<128x128xbf16, #tpu.memory_space<vmem>>, vector<128x128xbf16>
    %cst_178 = arith.constant dense<0.000000e+00> : vector<8x128xf32>
    %403 = tpu.matmul %401, %402, %cst_178 {dimension_numbers = #tpu.dot_dimension_numbers<[1], [0], [0], [1], [0, 0, 1, 1], [], []>} : vector<8x128xbf16>, vector<128x128xbf16>, vector<8x128xf32> -> vector<8x128xf32>
    %404 = arith.addf %399, %403 : vector<8x128xf32>
    %405 = math.tanh %404 : vector<8x128xf32>
    %406 = arith.mulf %390, %379 : vector<8x128xf32>
    %cst_179 = arith.constant 1.000000e+00 : f32
    %407 = vector.broadcast %cst_179 : f32 to vector<8x128xf32>
    %408 = arith.subf %407, %390 : vector<8x128xf32>
    %409 = arith.mulf %408, %405 : vector<8x128xf32>
    %410 = arith.addf %406, %409 : vector<8x128xf32>
    %c1_180 = arith.constant 1 : index
    %c0_181 = arith.constant 0 : index
    %c0_182 = arith.constant 0 : index
    %411 = vector.load %arg16[%c1_180, %c0_181, %c0_182] : memref<2x8x128xf32, #tpu.memory_space<vmem>>, vector<1x8x128xf32>
    %412 = vector.shape_cast %411 : vector<1x8x128xf32> to vector<8x128xf32>
    %413 = vector.shape_cast %410 : vector<8x128xf32> to vector<1x8x128xf32>
    tpu.vector_store %arg16[%c1_180, %c0_181, %c0_182], %413 {strides = array<i32>} : memref<2x8x128xf32, #tpu.memory_space<vmem>>, vector<1x8x128xf32>,
    %c4 = arith.constant 4 : index
    %c0_183 = arith.constant 0 : index
    %c0_184 = arith.constant 0 : index
    %414 = vector.load %arg18[%c4, %c0_183, %c0_184] : memref<16x8x128xf32, #tpu.memory_space<vmem>>, vector<1x8x128xf32>
    %415 = vector.shape_cast %414 : vector<1x8x128xf32> to vector<8x128xf32>
    %416 = vector.shape_cast %410 : vector<8x128xf32> to vector<1x8x128xf32>
    tpu.vector_store %arg18[%c4, %c0_183, %c0_184], %416 {strides = array<i32>} : memref<16x8x128xf32, #tpu.memory_space<vmem>>, vector<1x8x128xf32>,
    %417 = vector.extract_strided_slice %11 {offsets = [40, 0], sizes = [8, 384], strides = [1, 1]} : vector<128x384xf32> to vector<8x384xf32>
    %418 = arith.addf %417, %3 : vector<8x384xf32>
    %c0_185 = arith.constant 0 : index
    %c0_186 = arith.constant 0 : index
    %c0_187 = arith.constant 0 : index
    %419 = vector.load %arg16[%c0_185, %c0_186, %c0_187] : memref<2x8x128xf32, #tpu.memory_space<vmem>>, vector<1x8x128xf32>
    %420 = vector.shape_cast %419 : vector<1x8x128xf32> to vector<8x128xf32>
    %421 = arith.truncf %420 : vector<8x128xf32> to vector<8x128xbf16>
    %c0_188 = arith.constant 0 : index
    %c0_189 = arith.constant 0 : index
    %422 = vector.load %arg7[%c0_188, %c0_189] : memref<128x256xbf16, #tpu.memory_space<vmem>>, vector<128x256xbf16>
    %cst_190 = arith.constant dense<0.000000e+00> : vector<8x256xf32>
    %423 = tpu.matmul %421, %422, %cst_190 {dimension_numbers = #tpu.dot_dimension_numbers<[1], [0], [0], [1], [0, 0, 1, 1], [], []>} : vector<8x128xbf16>, vector<128x256xbf16>, vector<8x256xf32> -> vector<8x256xf32>
    %424 = vector.extract_strided_slice %418 {offsets = [0, 0], sizes = [8, 128], strides = [1, 1]} : vector<8x384xf32> to vector<8x128xf32>
    %425 = vector.extract_strided_slice %423 {offsets = [0, 0], sizes = [8, 128], strides = [1, 1]} : vector<8x256xf32> to vector<8x128xf32>
    %426 = arith.addf %424, %425 : vector<8x128xf32>
    %427 = arith.negf %426 : vector<8x128xf32>
    %428 = math.exp %427 : vector<8x128xf32>
    %cst_191 = arith.constant 1.000000e+00 : f32
    %429 = vector.broadcast %cst_191 : f32 to vector<8x128xf32>
    %430 = arith.addf %429, %428 : vector<8x128xf32>
    %431 = arith.divf %429, %430 : vector<8x128xf32>
    %432 = vector.extract_strided_slice %418 {offsets = [0, 128], sizes = [8, 128], strides = [1, 1]} : vector<8x384xf32> to vector<8x128xf32>
    %433 = vector.extract_strided_slice %423 {offsets = [0, 128], sizes = [8, 128], strides = [1, 1]} : vector<8x256xf32> to vector<8x128xf32>
    %434 = arith.addf %432, %433 : vector<8x128xf32>
    %435 = arith.negf %434 : vector<8x128xf32>
    %436 = math.exp %435 : vector<8x128xf32>
    %cst_192 = arith.constant 1.000000e+00 : f32
    %437 = vector.broadcast %cst_192 : f32 to vector<8x128xf32>
    %438 = arith.addf %437, %436 : vector<8x128xf32>
    %439 = arith.divf %437, %438 : vector<8x128xf32>
    %440 = vector.extract_strided_slice %418 {offsets = [0, 256], sizes = [8, 128], strides = [1, 1]} : vector<8x384xf32> to vector<8x128xf32>
    %441 = arith.mulf %439, %420 : vector<8x128xf32>
    %442 = arith.truncf %441 : vector<8x128xf32> to vector<8x128xbf16>
    %c0_193 = arith.constant 0 : index
    %c0_194 = arith.constant 0 : index
    %443 = vector.load %arg8[%c0_193, %c0_194] : memref<128x128xbf16, #tpu.memory_space<vmem>>, vector<128x128xbf16>
    %cst_195 = arith.constant dense<0.000000e+00> : vector<8x128xf32>
    %444 = tpu.matmul %442, %443, %cst_195 {dimension_numbers = #tpu.dot_dimension_numbers<[1], [0], [0], [1], [0, 0, 1, 1], [], []>} : vector<8x128xbf16>, vector<128x128xbf16>, vector<8x128xf32> -> vector<8x128xf32>
    %445 = arith.addf %440, %444 : vector<8x128xf32>
    %446 = math.tanh %445 : vector<8x128xf32>
    %447 = arith.mulf %431, %420 : vector<8x128xf32>
    %cst_196 = arith.constant 1.000000e+00 : f32
    %448 = vector.broadcast %cst_196 : f32 to vector<8x128xf32>
    %449 = arith.subf %448, %431 : vector<8x128xf32>
    %450 = arith.mulf %449, %446 : vector<8x128xf32>
    %451 = arith.addf %447, %450 : vector<8x128xf32>
    %c0_197 = arith.constant 0 : index
    %c0_198 = arith.constant 0 : index
    %c0_199 = arith.constant 0 : index
    %452 = vector.load %arg16[%c0_197, %c0_198, %c0_199] : memref<2x8x128xf32, #tpu.memory_space<vmem>>, vector<1x8x128xf32>
    %453 = vector.shape_cast %452 : vector<1x8x128xf32> to vector<8x128xf32>
    %454 = vector.shape_cast %451 : vector<8x128xf32> to vector<1x8x128xf32>
    tpu.vector_store %arg16[%c0_197, %c0_198, %c0_199], %454 {strides = array<i32>} : memref<2x8x128xf32, #tpu.memory_space<vmem>>, vector<1x8x128xf32>,
    %455 = arith.truncf %451 : vector<8x128xf32> to vector<8x128xbf16>
    %c0_200 = arith.constant 0 : index
    %c0_201 = arith.constant 0 : index
    %456 = vector.load %arg10[%c0_200, %c0_201] : memref<128x384xbf16, #tpu.memory_space<vmem>>, vector<128x384xbf16>
    %cst_202 = arith.constant dense<0.000000e+00> : vector<8x384xf32>
    %457 = tpu.matmul %455, %456, %cst_202 {dimension_numbers = #tpu.dot_dimension_numbers<[1], [0], [0], [1], [0, 0, 1, 1], [], []>} : vector<8x128xbf16>, vector<128x384xbf16>, vector<8x384xf32> -> vector<8x384xf32>
    %458 = arith.addf %457, %6 : vector<8x384xf32>
    %c1_203 = arith.constant 1 : index
    %c0_204 = arith.constant 0 : index
    %c0_205 = arith.constant 0 : index
    %459 = vector.load %arg16[%c1_203, %c0_204, %c0_205] : memref<2x8x128xf32, #tpu.memory_space<vmem>>, vector<1x8x128xf32>
    %460 = vector.shape_cast %459 : vector<1x8x128xf32> to vector<8x128xf32>
    %461 = arith.truncf %460 : vector<8x128xf32> to vector<8x128xbf16>
    %c0_206 = arith.constant 0 : index
    %c0_207 = arith.constant 0 : index
    %462 = vector.load %arg11[%c0_206, %c0_207] : memref<128x256xbf16, #tpu.memory_space<vmem>>, vector<128x256xbf16>
    %cst_208 = arith.constant dense<0.000000e+00> : vector<8x256xf32>
    %463 = tpu.matmul %461, %462, %cst_208 {dimension_numbers = #tpu.dot_dimension_numbers<[1], [0], [0], [1], [0, 0, 1, 1], [], []>} : vector<8x128xbf16>, vector<128x256xbf16>, vector<8x256xf32> -> vector<8x256xf32>
    %464 = vector.extract_strided_slice %458 {offsets = [0, 0], sizes = [8, 128], strides = [1, 1]} : vector<8x384xf32> to vector<8x128xf32>
    %465 = vector.extract_strided_slice %463 {offsets = [0, 0], sizes = [8, 128], strides = [1, 1]} : vector<8x256xf32> to vector<8x128xf32>
    %466 = arith.addf %464, %465 : vector<8x128xf32>
    %467 = arith.negf %466 : vector<8x128xf32>
    %468 = math.exp %467 : vector<8x128xf32>
    %cst_209 = arith.constant 1.000000e+00 : f32
    %469 = vector.broadcast %cst_209 : f32 to vector<8x128xf32>
    %470 = arith.addf %469, %468 : vector<8x128xf32>
    %471 = arith.divf %469, %470 : vector<8x128xf32>
    %472 = vector.extract_strided_slice %458 {offsets = [0, 128], sizes = [8, 128], strides = [1, 1]} : vector<8x384xf32> to vector<8x128xf32>
    %473 = vector.extract_strided_slice %463 {offsets = [0, 128], sizes = [8, 128], strides = [1, 1]} : vector<8x256xf32> to vector<8x128xf32>
    %474 = arith.addf %472, %473 : vector<8x128xf32>
    %475 = arith.negf %474 : vector<8x128xf32>
    %476 = math.exp %475 : vector<8x128xf32>
    %cst_210 = arith.constant 1.000000e+00 : f32
    %477 = vector.broadcast %cst_210 : f32 to vector<8x128xf32>
    %478 = arith.addf %477, %476 : vector<8x128xf32>
    %479 = arith.divf %477, %478 : vector<8x128xf32>
    %480 = vector.extract_strided_slice %458 {offsets = [0, 256], sizes = [8, 128], strides = [1, 1]} : vector<8x384xf32> to vector<8x128xf32>
    %481 = arith.mulf %479, %460 : vector<8x128xf32>
    %482 = arith.truncf %481 : vector<8x128xf32> to vector<8x128xbf16>
    %c0_211 = arith.constant 0 : index
    %c0_212 = arith.constant 0 : index
    %483 = vector.load %arg12[%c0_211, %c0_212] : memref<128x128xbf16, #tpu.memory_space<vmem>>, vector<128x128xbf16>
    %cst_213 = arith.constant dense<0.000000e+00> : vector<8x128xf32>
    %484 = tpu.matmul %482, %483, %cst_213 {dimension_numbers = #tpu.dot_dimension_numbers<[1], [0], [0], [1], [0, 0, 1, 1], [], []>} : vector<8x128xbf16>, vector<128x128xbf16>, vector<8x128xf32> -> vector<8x128xf32>
    %485 = arith.addf %480, %484 : vector<8x128xf32>
    %486 = math.tanh %485 : vector<8x128xf32>
    %487 = arith.mulf %471, %460 : vector<8x128xf32>
    %cst_214 = arith.constant 1.000000e+00 : f32
    %488 = vector.broadcast %cst_214 : f32 to vector<8x128xf32>
    %489 = arith.subf %488, %471 : vector<8x128xf32>
    %490 = arith.mulf %489, %486 : vector<8x128xf32>
    %491 = arith.addf %487, %490 : vector<8x128xf32>
    %c1_215 = arith.constant 1 : index
    %c0_216 = arith.constant 0 : index
    %c0_217 = arith.constant 0 : index
    %492 = vector.load %arg16[%c1_215, %c0_216, %c0_217] : memref<2x8x128xf32, #tpu.memory_space<vmem>>, vector<1x8x128xf32>
    %493 = vector.shape_cast %492 : vector<1x8x128xf32> to vector<8x128xf32>
    %494 = vector.shape_cast %491 : vector<8x128xf32> to vector<1x8x128xf32>
    tpu.vector_store %arg16[%c1_215, %c0_216, %c0_217], %494 {strides = array<i32>} : memref<2x8x128xf32, #tpu.memory_space<vmem>>, vector<1x8x128xf32>,
    %c5 = arith.constant 5 : index
    %c0_218 = arith.constant 0 : index
    %c0_219 = arith.constant 0 : index
    %495 = vector.load %arg18[%c5, %c0_218, %c0_219] : memref<16x8x128xf32, #tpu.memory_space<vmem>>, vector<1x8x128xf32>
    %496 = vector.shape_cast %495 : vector<1x8x128xf32> to vector<8x128xf32>
    %497 = vector.shape_cast %491 : vector<8x128xf32> to vector<1x8x128xf32>
    tpu.vector_store %arg18[%c5, %c0_218, %c0_219], %497 {strides = array<i32>} : memref<16x8x128xf32, #tpu.memory_space<vmem>>, vector<1x8x128xf32>,
    %498 = vector.extract_strided_slice %11 {offsets = [48, 0], sizes = [8, 384], strides = [1, 1]} : vector<128x384xf32> to vector<8x384xf32>
    %499 = arith.addf %498, %3 : vector<8x384xf32>
    %c0_220 = arith.constant 0 : index
    %c0_221 = arith.constant 0 : index
    %c0_222 = arith.constant 0 : index
    %500 = vector.load %arg16[%c0_220, %c0_221, %c0_222] : memref<2x8x128xf32, #tpu.memory_space<vmem>>, vector<1x8x128xf32>
    %501 = vector.shape_cast %500 : vector<1x8x128xf32> to vector<8x128xf32>
    %502 = arith.truncf %501 : vector<8x128xf32> to vector<8x128xbf16>
    %c0_223 = arith.constant 0 : index
    %c0_224 = arith.constant 0 : index
    %503 = vector.load %arg7[%c0_223, %c0_224] : memref<128x256xbf16, #tpu.memory_space<vmem>>, vector<128x256xbf16>
    %cst_225 = arith.constant dense<0.000000e+00> : vector<8x256xf32>
    %504 = tpu.matmul %502, %503, %cst_225 {dimension_numbers = #tpu.dot_dimension_numbers<[1], [0], [0], [1], [0, 0, 1, 1], [], []>} : vector<8x128xbf16>, vector<128x256xbf16>, vector<8x256xf32> -> vector<8x256xf32>
    %505 = vector.extract_strided_slice %499 {offsets = [0, 0], sizes = [8, 128], strides = [1, 1]} : vector<8x384xf32> to vector<8x128xf32>
    %506 = vector.extract_strided_slice %504 {offsets = [0, 0], sizes = [8, 128], strides = [1, 1]} : vector<8x256xf32> to vector<8x128xf32>
    %507 = arith.addf %505, %506 : vector<8x128xf32>
    %508 = arith.negf %507 : vector<8x128xf32>
    %509 = math.exp %508 : vector<8x128xf32>
    %cst_226 = arith.constant 1.000000e+00 : f32
    %510 = vector.broadcast %cst_226 : f32 to vector<8x128xf32>
    %511 = arith.addf %510, %509 : vector<8x128xf32>
    %512 = arith.divf %510, %511 : vector<8x128xf32>
    %513 = vector.extract_strided_slice %499 {offsets = [0, 128], sizes = [8, 128], strides = [1, 1]} : vector<8x384xf32> to vector<8x128xf32>
    %514 = vector.extract_strided_slice %504 {offsets = [0, 128], sizes = [8, 128], strides = [1, 1]} : vector<8x256xf32> to vector<8x128xf32>
    %515 = arith.addf %513, %514 : vector<8x128xf32>
    %516 = arith.negf %515 : vector<8x128xf32>
    %517 = math.exp %516 : vector<8x128xf32>
    %cst_227 = arith.constant 1.000000e+00 : f32
    %518 = vector.broadcast %cst_227 : f32 to vector<8x128xf32>
    %519 = arith.addf %518, %517 : vector<8x128xf32>
    %520 = arith.divf %518, %519 : vector<8x128xf32>
    %521 = vector.extract_strided_slice %499 {offsets = [0, 256], sizes = [8, 128], strides = [1, 1]} : vector<8x384xf32> to vector<8x128xf32>
    %522 = arith.mulf %520, %501 : vector<8x128xf32>
    %523 = arith.truncf %522 : vector<8x128xf32> to vector<8x128xbf16>
    %c0_228 = arith.constant 0 : index
    %c0_229 = arith.constant 0 : index
    %524 = vector.load %arg8[%c0_228, %c0_229] : memref<128x128xbf16, #tpu.memory_space<vmem>>, vector<128x128xbf16>
    %cst_230 = arith.constant dense<0.000000e+00> : vector<8x128xf32>
    %525 = tpu.matmul %523, %524, %cst_230 {dimension_numbers = #tpu.dot_dimension_numbers<[1], [0], [0], [1], [0, 0, 1, 1], [], []>} : vector<8x128xbf16>, vector<128x128xbf16>, vector<8x128xf32> -> vector<8x128xf32>
    %526 = arith.addf %521, %525 : vector<8x128xf32>
    %527 = math.tanh %526 : vector<8x128xf32>
    %528 = arith.mulf %512, %501 : vector<8x128xf32>
    %cst_231 = arith.constant 1.000000e+00 : f32
    %529 = vector.broadcast %cst_231 : f32 to vector<8x128xf32>
    %530 = arith.subf %529, %512 : vector<8x128xf32>
    %531 = arith.mulf %530, %527 : vector<8x128xf32>
    %532 = arith.addf %528, %531 : vector<8x128xf32>
    %c0_232 = arith.constant 0 : index
    %c0_233 = arith.constant 0 : index
    %c0_234 = arith.constant 0 : index
    %533 = vector.load %arg16[%c0_232, %c0_233, %c0_234] : memref<2x8x128xf32, #tpu.memory_space<vmem>>, vector<1x8x128xf32>
    %534 = vector.shape_cast %533 : vector<1x8x128xf32> to vector<8x128xf32>
    %535 = vector.shape_cast %532 : vector<8x128xf32> to vector<1x8x128xf32>
    tpu.vector_store %arg16[%c0_232, %c0_233, %c0_234], %535 {strides = array<i32>} : memref<2x8x128xf32, #tpu.memory_space<vmem>>, vector<1x8x128xf32>,
    %536 = arith.truncf %532 : vector<8x128xf32> to vector<8x128xbf16>
    %c0_235 = arith.constant 0 : index
    %c0_236 = arith.constant 0 : index
    %537 = vector.load %arg10[%c0_235, %c0_236] : memref<128x384xbf16, #tpu.memory_space<vmem>>, vector<128x384xbf16>
    %cst_237 = arith.constant dense<0.000000e+00> : vector<8x384xf32>
    %538 = tpu.matmul %536, %537, %cst_237 {dimension_numbers = #tpu.dot_dimension_numbers<[1], [0], [0], [1], [0, 0, 1, 1], [], []>} : vector<8x128xbf16>, vector<128x384xbf16>, vector<8x384xf32> -> vector<8x384xf32>
    %539 = arith.addf %538, %6 : vector<8x384xf32>
    %c1_238 = arith.constant 1 : index
    %c0_239 = arith.constant 0 : index
    %c0_240 = arith.constant 0 : index
    %540 = vector.load %arg16[%c1_238, %c0_239, %c0_240] : memref<2x8x128xf32, #tpu.memory_space<vmem>>, vector<1x8x128xf32>
    %541 = vector.shape_cast %540 : vector<1x8x128xf32> to vector<8x128xf32>
    %542 = arith.truncf %541 : vector<8x128xf32> to vector<8x128xbf16>
    %c0_241 = arith.constant 0 : index
    %c0_242 = arith.constant 0 : index
    %543 = vector.load %arg11[%c0_241, %c0_242] : memref<128x256xbf16, #tpu.memory_space<vmem>>, vector<128x256xbf16>
    %cst_243 = arith.constant dense<0.000000e+00> : vector<8x256xf32>
    %544 = tpu.matmul %542, %543, %cst_243 {dimension_numbers = #tpu.dot_dimension_numbers<[1], [0], [0], [1], [0, 0, 1, 1], [], []>} : vector<8x128xbf16>, vector<128x256xbf16>, vector<8x256xf32> -> vector<8x256xf32>
    %545 = vector.extract_strided_slice %539 {offsets = [0, 0], sizes = [8, 128], strides = [1, 1]} : vector<8x384xf32> to vector<8x128xf32>
    %546 = vector.extract_strided_slice %544 {offsets = [0, 0], sizes = [8, 128], strides = [1, 1]} : vector<8x256xf32> to vector<8x128xf32>
    %547 = arith.addf %545, %546 : vector<8x128xf32>
    %548 = arith.negf %547 : vector<8x128xf32>
    %549 = math.exp %548 : vector<8x128xf32>
    %cst_244 = arith.constant 1.000000e+00 : f32
    %550 = vector.broadcast %cst_244 : f32 to vector<8x128xf32>
    %551 = arith.addf %550, %549 : vector<8x128xf32>
    %552 = arith.divf %550, %551 : vector<8x128xf32>
    %553 = vector.extract_strided_slice %539 {offsets = [0, 128], sizes = [8, 128], strides = [1, 1]} : vector<8x384xf32> to vector<8x128xf32>
    %554 = vector.extract_strided_slice %544 {offsets = [0, 128], sizes = [8, 128], strides = [1, 1]} : vector<8x256xf32> to vector<8x128xf32>
    %555 = arith.addf %553, %554 : vector<8x128xf32>
    %556 = arith.negf %555 : vector<8x128xf32>
    %557 = math.exp %556 : vector<8x128xf32>
    %cst_245 = arith.constant 1.000000e+00 : f32
    %558 = vector.broadcast %cst_245 : f32 to vector<8x128xf32>
    %559 = arith.addf %558, %557 : vector<8x128xf32>
    %560 = arith.divf %558, %559 : vector<8x128xf32>
    %561 = vector.extract_strided_slice %539 {offsets = [0, 256], sizes = [8, 128], strides = [1, 1]} : vector<8x384xf32> to vector<8x128xf32>
    %562 = arith.mulf %560, %541 : vector<8x128xf32>
    %563 = arith.truncf %562 : vector<8x128xf32> to vector<8x128xbf16>
    %c0_246 = arith.constant 0 : index
    %c0_247 = arith.constant 0 : index
    %564 = vector.load %arg12[%c0_246, %c0_247] : memref<128x128xbf16, #tpu.memory_space<vmem>>, vector<128x128xbf16>
    %cst_248 = arith.constant dense<0.000000e+00> : vector<8x128xf32>
    %565 = tpu.matmul %563, %564, %cst_248 {dimension_numbers = #tpu.dot_dimension_numbers<[1], [0], [0], [1], [0, 0, 1, 1], [], []>} : vector<8x128xbf16>, vector<128x128xbf16>, vector<8x128xf32> -> vector<8x128xf32>
    %566 = arith.addf %561, %565 : vector<8x128xf32>
    %567 = math.tanh %566 : vector<8x128xf32>
    %568 = arith.mulf %552, %541 : vector<8x128xf32>
    %cst_249 = arith.constant 1.000000e+00 : f32
    %569 = vector.broadcast %cst_249 : f32 to vector<8x128xf32>
    %570 = arith.subf %569, %552 : vector<8x128xf32>
    %571 = arith.mulf %570, %567 : vector<8x128xf32>
    %572 = arith.addf %568, %571 : vector<8x128xf32>
    %c1_250 = arith.constant 1 : index
    %c0_251 = arith.constant 0 : index
    %c0_252 = arith.constant 0 : index
    %573 = vector.load %arg16[%c1_250, %c0_251, %c0_252] : memref<2x8x128xf32, #tpu.memory_space<vmem>>, vector<1x8x128xf32>
    %574 = vector.shape_cast %573 : vector<1x8x128xf32> to vector<8x128xf32>
    %575 = vector.shape_cast %572 : vector<8x128xf32> to vector<1x8x128xf32>
    tpu.vector_store %arg16[%c1_250, %c0_251, %c0_252], %575 {strides = array<i32>} : memref<2x8x128xf32, #tpu.memory_space<vmem>>, vector<1x8x128xf32>,
    %c6 = arith.constant 6 : index
    %c0_253 = arith.constant 0 : index
    %c0_254 = arith.constant 0 : index
    %576 = vector.load %arg18[%c6, %c0_253, %c0_254] : memref<16x8x128xf32, #tpu.memory_space<vmem>>, vector<1x8x128xf32>
    %577 = vector.shape_cast %576 : vector<1x8x128xf32> to vector<8x128xf32>
    %578 = vector.shape_cast %572 : vector<8x128xf32> to vector<1x8x128xf32>
    tpu.vector_store %arg18[%c6, %c0_253, %c0_254], %578 {strides = array<i32>} : memref<16x8x128xf32, #tpu.memory_space<vmem>>, vector<1x8x128xf32>,
    %579 = vector.extract_strided_slice %11 {offsets = [56, 0], sizes = [8, 384], strides = [1, 1]} : vector<128x384xf32> to vector<8x384xf32>
    %580 = arith.addf %579, %3 : vector<8x384xf32>
    %c0_255 = arith.constant 0 : index
    %c0_256 = arith.constant 0 : index
    %c0_257 = arith.constant 0 : index
    %581 = vector.load %arg16[%c0_255, %c0_256, %c0_257] : memref<2x8x128xf32, #tpu.memory_space<vmem>>, vector<1x8x128xf32>
    %582 = vector.shape_cast %581 : vector<1x8x128xf32> to vector<8x128xf32>
    %583 = arith.truncf %582 : vector<8x128xf32> to vector<8x128xbf16>
    %c0_258 = arith.constant 0 : index
    %c0_259 = arith.constant 0 : index
    %584 = vector.load %arg7[%c0_258, %c0_259] : memref<128x256xbf16, #tpu.memory_space<vmem>>, vector<128x256xbf16>
    %cst_260 = arith.constant dense<0.000000e+00> : vector<8x256xf32>
    %585 = tpu.matmul %583, %584, %cst_260 {dimension_numbers = #tpu.dot_dimension_numbers<[1], [0], [0], [1], [0, 0, 1, 1], [], []>} : vector<8x128xbf16>, vector<128x256xbf16>, vector<8x256xf32> -> vector<8x256xf32>
    %586 = vector.extract_strided_slice %580 {offsets = [0, 0], sizes = [8, 128], strides = [1, 1]} : vector<8x384xf32> to vector<8x128xf32>
    %587 = vector.extract_strided_slice %585 {offsets = [0, 0], sizes = [8, 128], strides = [1, 1]} : vector<8x256xf32> to vector<8x128xf32>
    %588 = arith.addf %586, %587 : vector<8x128xf32>
    %589 = arith.negf %588 : vector<8x128xf32>
    %590 = math.exp %589 : vector<8x128xf32>
    %cst_261 = arith.constant 1.000000e+00 : f32
    %591 = vector.broadcast %cst_261 : f32 to vector<8x128xf32>
    %592 = arith.addf %591, %590 : vector<8x128xf32>
    %593 = arith.divf %591, %592 : vector<8x128xf32>
    %594 = vector.extract_strided_slice %580 {offsets = [0, 128], sizes = [8, 128], strides = [1, 1]} : vector<8x384xf32> to vector<8x128xf32>
    %595 = vector.extract_strided_slice %585 {offsets = [0, 128], sizes = [8, 128], strides = [1, 1]} : vector<8x256xf32> to vector<8x128xf32>
    %596 = arith.addf %594, %595 : vector<8x128xf32>
    %597 = arith.negf %596 : vector<8x128xf32>
    %598 = math.exp %597 : vector<8x128xf32>
    %cst_262 = arith.constant 1.000000e+00 : f32
    %599 = vector.broadcast %cst_262 : f32 to vector<8x128xf32>
    %600 = arith.addf %599, %598 : vector<8x128xf32>
    %601 = arith.divf %599, %600 : vector<8x128xf32>
    %602 = vector.extract_strided_slice %580 {offsets = [0, 256], sizes = [8, 128], strides = [1, 1]} : vector<8x384xf32> to vector<8x128xf32>
    %603 = arith.mulf %601, %582 : vector<8x128xf32>
    %604 = arith.truncf %603 : vector<8x128xf32> to vector<8x128xbf16>
    %c0_263 = arith.constant 0 : index
    %c0_264 = arith.constant 0 : index
    %605 = vector.load %arg8[%c0_263, %c0_264] : memref<128x128xbf16, #tpu.memory_space<vmem>>, vector<128x128xbf16>
    %cst_265 = arith.constant dense<0.000000e+00> : vector<8x128xf32>
    %606 = tpu.matmul %604, %605, %cst_265 {dimension_numbers = #tpu.dot_dimension_numbers<[1], [0], [0], [1], [0, 0, 1, 1], [], []>} : vector<8x128xbf16>, vector<128x128xbf16>, vector<8x128xf32> -> vector<8x128xf32>
    %607 = arith.addf %602, %606 : vector<8x128xf32>
    %608 = math.tanh %607 : vector<8x128xf32>
    %609 = arith.mulf %593, %582 : vector<8x128xf32>
    %cst_266 = arith.constant 1.000000e+00 : f32
    %610 = vector.broadcast %cst_266 : f32 to vector<8x128xf32>
    %611 = arith.subf %610, %593 : vector<8x128xf32>
    %612 = arith.mulf %611, %608 : vector<8x128xf32>
    %613 = arith.addf %609, %612 : vector<8x128xf32>
    %c0_267 = arith.constant 0 : index
    %c0_268 = arith.constant 0 : index
    %c0_269 = arith.constant 0 : index
    %614 = vector.load %arg16[%c0_267, %c0_268, %c0_269] : memref<2x8x128xf32, #tpu.memory_space<vmem>>, vector<1x8x128xf32>
    %615 = vector.shape_cast %614 : vector<1x8x128xf32> to vector<8x128xf32>
    %616 = vector.shape_cast %613 : vector<8x128xf32> to vector<1x8x128xf32>
    tpu.vector_store %arg16[%c0_267, %c0_268, %c0_269], %616 {strides = array<i32>} : memref<2x8x128xf32, #tpu.memory_space<vmem>>, vector<1x8x128xf32>,
    %617 = arith.truncf %613 : vector<8x128xf32> to vector<8x128xbf16>
    %c0_270 = arith.constant 0 : index
    %c0_271 = arith.constant 0 : index
    %618 = vector.load %arg10[%c0_270, %c0_271] : memref<128x384xbf16, #tpu.memory_space<vmem>>, vector<128x384xbf16>
    %cst_272 = arith.constant dense<0.000000e+00> : vector<8x384xf32>
    %619 = tpu.matmul %617, %618, %cst_272 {dimension_numbers = #tpu.dot_dimension_numbers<[1], [0], [0], [1], [0, 0, 1, 1], [], []>} : vector<8x128xbf16>, vector<128x384xbf16>, vector<8x384xf32> -> vector<8x384xf32>
    %620 = arith.addf %619, %6 : vector<8x384xf32>
    %c1_273 = arith.constant 1 : index
    %c0_274 = arith.constant 0 : index
    %c0_275 = arith.constant 0 : index
    %621 = vector.load %arg16[%c1_273, %c0_274, %c0_275] : memref<2x8x128xf32, #tpu.memory_space<vmem>>, vector<1x8x128xf32>
    %622 = vector.shape_cast %621 : vector<1x8x128xf32> to vector<8x128xf32>
    %623 = arith.truncf %622 : vector<8x128xf32> to vector<8x128xbf16>
    %c0_276 = arith.constant 0 : index
    %c0_277 = arith.constant 0 : index
    %624 = vector.load %arg11[%c0_276, %c0_277] : memref<128x256xbf16, #tpu.memory_space<vmem>>, vector<128x256xbf16>
    %cst_278 = arith.constant dense<0.000000e+00> : vector<8x256xf32>
    %625 = tpu.matmul %623, %624, %cst_278 {dimension_numbers = #tpu.dot_dimension_numbers<[1], [0], [0], [1], [0, 0, 1, 1], [], []>} : vector<8x128xbf16>, vector<128x256xbf16>, vector<8x256xf32> -> vector<8x256xf32>
    %626 = vector.extract_strided_slice %620 {offsets = [0, 0], sizes = [8, 128], strides = [1, 1]} : vector<8x384xf32> to vector<8x128xf32>
    %627 = vector.extract_strided_slice %625 {offsets = [0, 0], sizes = [8, 128], strides = [1, 1]} : vector<8x256xf32> to vector<8x128xf32>
    %628 = arith.addf %626, %627 : vector<8x128xf32>
    %629 = arith.negf %628 : vector<8x128xf32>
    %630 = math.exp %629 : vector<8x128xf32>
    %cst_279 = arith.constant 1.000000e+00 : f32
    %631 = vector.broadcast %cst_279 : f32 to vector<8x128xf32>
    %632 = arith.addf %631, %630 : vector<8x128xf32>
    %633 = arith.divf %631, %632 : vector<8x128xf32>
    %634 = vector.extract_strided_slice %620 {offsets = [0, 128], sizes = [8, 128], strides = [1, 1]} : vector<8x384xf32> to vector<8x128xf32>
    %635 = vector.extract_strided_slice %625 {offsets = [0, 128], sizes = [8, 128], strides = [1, 1]} : vector<8x256xf32> to vector<8x128xf32>
    %636 = arith.addf %634, %635 : vector<8x128xf32>
    %637 = arith.negf %636 : vector<8x128xf32>
    %638 = math.exp %637 : vector<8x128xf32>
    %cst_280 = arith.constant 1.000000e+00 : f32
    %639 = vector.broadcast %cst_280 : f32 to vector<8x128xf32>
    %640 = arith.addf %639, %638 : vector<8x128xf32>
    %641 = arith.divf %639, %640 : vector<8x128xf32>
    %642 = vector.extract_strided_slice %620 {offsets = [0, 256], sizes = [8, 128], strides = [1, 1]} : vector<8x384xf32> to vector<8x128xf32>
    %643 = arith.mulf %641, %622 : vector<8x128xf32>
    %644 = arith.truncf %643 : vector<8x128xf32> to vector<8x128xbf16>
    %c0_281 = arith.constant 0 : index
    %c0_282 = arith.constant 0 : index
    %645 = vector.load %arg12[%c0_281, %c0_282] : memref<128x128xbf16, #tpu.memory_space<vmem>>, vector<128x128xbf16>
    %cst_283 = arith.constant dense<0.000000e+00> : vector<8x128xf32>
    %646 = tpu.matmul %644, %645, %cst_283 {dimension_numbers = #tpu.dot_dimension_numbers<[1], [0], [0], [1], [0, 0, 1, 1], [], []>} : vector<8x128xbf16>, vector<128x128xbf16>, vector<8x128xf32> -> vector<8x128xf32>
    %647 = arith.addf %642, %646 : vector<8x128xf32>
    %648 = math.tanh %647 : vector<8x128xf32>
    %649 = arith.mulf %633, %622 : vector<8x128xf32>
    %cst_284 = arith.constant 1.000000e+00 : f32
    %650 = vector.broadcast %cst_284 : f32 to vector<8x128xf32>
    %651 = arith.subf %650, %633 : vector<8x128xf32>
    %652 = arith.mulf %651, %648 : vector<8x128xf32>
    %653 = arith.addf %649, %652 : vector<8x128xf32>
    %c1_285 = arith.constant 1 : index
    %c0_286 = arith.constant 0 : index
    %c0_287 = arith.constant 0 : index
    %654 = vector.load %arg16[%c1_285, %c0_286, %c0_287] : memref<2x8x128xf32, #tpu.memory_space<vmem>>, vector<1x8x128xf32>
    %655 = vector.shape_cast %654 : vector<1x8x128xf32> to vector<8x128xf32>
    %656 = vector.shape_cast %653 : vector<8x128xf32> to vector<1x8x128xf32>
    tpu.vector_store %arg16[%c1_285, %c0_286, %c0_287], %656 {strides = array<i32>} : memref<2x8x128xf32, #tpu.memory_space<vmem>>, vector<1x8x128xf32>,
    %c7 = arith.constant 7 : index
    %c0_288 = arith.constant 0 : index
    %c0_289 = arith.constant 0 : index
    %657 = vector.load %arg18[%c7, %c0_288, %c0_289] : memref<16x8x128xf32, #tpu.memory_space<vmem>>, vector<1x8x128xf32>
    %658 = vector.shape_cast %657 : vector<1x8x128xf32> to vector<8x128xf32>
    %659 = vector.shape_cast %653 : vector<8x128xf32> to vector<1x8x128xf32>
    tpu.vector_store %arg18[%c7, %c0_288, %c0_289], %659 {strides = array<i32>} : memref<16x8x128xf32, #tpu.memory_space<vmem>>, vector<1x8x128xf32>,
    %660 = vector.extract_strided_slice %11 {offsets = [64, 0], sizes = [8, 384], strides = [1, 1]} : vector<128x384xf32> to vector<8x384xf32>
    %661 = arith.addf %660, %3 : vector<8x384xf32>
    %c0_290 = arith.constant 0 : index
    %c0_291 = arith.constant 0 : index
    %c0_292 = arith.constant 0 : index
    %662 = vector.load %arg16[%c0_290, %c0_291, %c0_292] : memref<2x8x128xf32, #tpu.memory_space<vmem>>, vector<1x8x128xf32>
    %663 = vector.shape_cast %662 : vector<1x8x128xf32> to vector<8x128xf32>
    %664 = arith.truncf %663 : vector<8x128xf32> to vector<8x128xbf16>
    %c0_293 = arith.constant 0 : index
    %c0_294 = arith.constant 0 : index
    %665 = vector.load %arg7[%c0_293, %c0_294] : memref<128x256xbf16, #tpu.memory_space<vmem>>, vector<128x256xbf16>
    %cst_295 = arith.constant dense<0.000000e+00> : vector<8x256xf32>
    %666 = tpu.matmul %664, %665, %cst_295 {dimension_numbers = #tpu.dot_dimension_numbers<[1], [0], [0], [1], [0, 0, 1, 1], [], []>} : vector<8x128xbf16>, vector<128x256xbf16>, vector<8x256xf32> -> vector<8x256xf32>
    %667 = vector.extract_strided_slice %661 {offsets = [0, 0], sizes = [8, 128], strides = [1, 1]} : vector<8x384xf32> to vector<8x128xf32>
    %668 = vector.extract_strided_slice %666 {offsets = [0, 0], sizes = [8, 128], strides = [1, 1]} : vector<8x256xf32> to vector<8x128xf32>
    %669 = arith.addf %667, %668 : vector<8x128xf32>
    %670 = arith.negf %669 : vector<8x128xf32>
    %671 = math.exp %670 : vector<8x128xf32>
    %cst_296 = arith.constant 1.000000e+00 : f32
    %672 = vector.broadcast %cst_296 : f32 to vector<8x128xf32>
    %673 = arith.addf %672, %671 : vector<8x128xf32>
    %674 = arith.divf %672, %673 : vector<8x128xf32>
    %675 = vector.extract_strided_slice %661 {offsets = [0, 128], sizes = [8, 128], strides = [1, 1]} : vector<8x384xf32> to vector<8x128xf32>
    %676 = vector.extract_strided_slice %666 {offsets = [0, 128], sizes = [8, 128], strides = [1, 1]} : vector<8x256xf32> to vector<8x128xf32>
    %677 = arith.addf %675, %676 : vector<8x128xf32>
    %678 = arith.negf %677 : vector<8x128xf32>
    %679 = math.exp %678 : vector<8x128xf32>
    %cst_297 = arith.constant 1.000000e+00 : f32
    %680 = vector.broadcast %cst_297 : f32 to vector<8x128xf32>
    %681 = arith.addf %680, %679 : vector<8x128xf32>
    %682 = arith.divf %680, %681 : vector<8x128xf32>
    %683 = vector.extract_strided_slice %661 {offsets = [0, 256], sizes = [8, 128], strides = [1, 1]} : vector<8x384xf32> to vector<8x128xf32>
    %684 = arith.mulf %682, %663 : vector<8x128xf32>
    %685 = arith.truncf %684 : vector<8x128xf32> to vector<8x128xbf16>
    %c0_298 = arith.constant 0 : index
    %c0_299 = arith.constant 0 : index
    %686 = vector.load %arg8[%c0_298, %c0_299] : memref<128x128xbf16, #tpu.memory_space<vmem>>, vector<128x128xbf16>
    %cst_300 = arith.constant dense<0.000000e+00> : vector<8x128xf32>
    %687 = tpu.matmul %685, %686, %cst_300 {dimension_numbers = #tpu.dot_dimension_numbers<[1], [0], [0], [1], [0, 0, 1, 1], [], []>} : vector<8x128xbf16>, vector<128x128xbf16>, vector<8x128xf32> -> vector<8x128xf32>
    %688 = arith.addf %683, %687 : vector<8x128xf32>
    %689 = math.tanh %688 : vector<8x128xf32>
    %690 = arith.mulf %674, %663 : vector<8x128xf32>
    %cst_301 = arith.constant 1.000000e+00 : f32
    %691 = vector.broadcast %cst_301 : f32 to vector<8x128xf32>
    %692 = arith.subf %691, %674 : vector<8x128xf32>
    %693 = arith.mulf %692, %689 : vector<8x128xf32>
    %694 = arith.addf %690, %693 : vector<8x128xf32>
    %c0_302 = arith.constant 0 : index
    %c0_303 = arith.constant 0 : index
    %c0_304 = arith.constant 0 : index
    %695 = vector.load %arg16[%c0_302, %c0_303, %c0_304] : memref<2x8x128xf32, #tpu.memory_space<vmem>>, vector<1x8x128xf32>
    %696 = vector.shape_cast %695 : vector<1x8x128xf32> to vector<8x128xf32>
    %697 = vector.shape_cast %694 : vector<8x128xf32> to vector<1x8x128xf32>
    tpu.vector_store %arg16[%c0_302, %c0_303, %c0_304], %697 {strides = array<i32>} : memref<2x8x128xf32, #tpu.memory_space<vmem>>, vector<1x8x128xf32>,
    %698 = arith.truncf %694 : vector<8x128xf32> to vector<8x128xbf16>
    %c0_305 = arith.constant 0 : index
    %c0_306 = arith.constant 0 : index
    %699 = vector.load %arg10[%c0_305, %c0_306] : memref<128x384xbf16, #tpu.memory_space<vmem>>, vector<128x384xbf16>
    %cst_307 = arith.constant dense<0.000000e+00> : vector<8x384xf32>
    %700 = tpu.matmul %698, %699, %cst_307 {dimension_numbers = #tpu.dot_dimension_numbers<[1], [0], [0], [1], [0, 0, 1, 1], [], []>} : vector<8x128xbf16>, vector<128x384xbf16>, vector<8x384xf32> -> vector<8x384xf32>
    %701 = arith.addf %700, %6 : vector<8x384xf32>
    %c1_308 = arith.constant 1 : index
    %c0_309 = arith.constant 0 : index
    %c0_310 = arith.constant 0 : index
    %702 = vector.load %arg16[%c1_308, %c0_309, %c0_310] : memref<2x8x128xf32, #tpu.memory_space<vmem>>, vector<1x8x128xf32>
    %703 = vector.shape_cast %702 : vector<1x8x128xf32> to vector<8x128xf32>
    %704 = arith.truncf %703 : vector<8x128xf32> to vector<8x128xbf16>
    %c0_311 = arith.constant 0 : index
    %c0_312 = arith.constant 0 : index
    %705 = vector.load %arg11[%c0_311, %c0_312] : memref<128x256xbf16, #tpu.memory_space<vmem>>, vector<128x256xbf16>
    %cst_313 = arith.constant dense<0.000000e+00> : vector<8x256xf32>
    %706 = tpu.matmul %704, %705, %cst_313 {dimension_numbers = #tpu.dot_dimension_numbers<[1], [0], [0], [1], [0, 0, 1, 1], [], []>} : vector<8x128xbf16>, vector<128x256xbf16>, vector<8x256xf32> -> vector<8x256xf32>
    %707 = vector.extract_strided_slice %701 {offsets = [0, 0], sizes = [8, 128], strides = [1, 1]} : vector<8x384xf32> to vector<8x128xf32>
    %708 = vector.extract_strided_slice %706 {offsets = [0, 0], sizes = [8, 128], strides = [1, 1]} : vector<8x256xf32> to vector<8x128xf32>
    %709 = arith.addf %707, %708 : vector<8x128xf32>
    %710 = arith.negf %709 : vector<8x128xf32>
    %711 = math.exp %710 : vector<8x128xf32>
    %cst_314 = arith.constant 1.000000e+00 : f32
    %712 = vector.broadcast %cst_314 : f32 to vector<8x128xf32>
    %713 = arith.addf %712, %711 : vector<8x128xf32>
    %714 = arith.divf %712, %713 : vector<8x128xf32>
    %715 = vector.extract_strided_slice %701 {offsets = [0, 128], sizes = [8, 128], strides = [1, 1]} : vector<8x384xf32> to vector<8x128xf32>
    %716 = vector.extract_strided_slice %706 {offsets = [0, 128], sizes = [8, 128], strides = [1, 1]} : vector<8x256xf32> to vector<8x128xf32>
    %717 = arith.addf %715, %716 : vector<8x128xf32>
    %718 = arith.negf %717 : vector<8x128xf32>
    %719 = math.exp %718 : vector<8x128xf32>
    %cst_315 = arith.constant 1.000000e+00 : f32
    %720 = vector.broadcast %cst_315 : f32 to vector<8x128xf32>
    %721 = arith.addf %720, %719 : vector<8x128xf32>
    %722 = arith.divf %720, %721 : vector<8x128xf32>
    %723 = vector.extract_strided_slice %701 {offsets = [0, 256], sizes = [8, 128], strides = [1, 1]} : vector<8x384xf32> to vector<8x128xf32>
    %724 = arith.mulf %722, %703 : vector<8x128xf32>
    %725 = arith.truncf %724 : vector<8x128xf32> to vector<8x128xbf16>
    %c0_316 = arith.constant 0 : index
    %c0_317 = arith.constant 0 : index
    %726 = vector.load %arg12[%c0_316, %c0_317] : memref<128x128xbf16, #tpu.memory_space<vmem>>, vector<128x128xbf16>
    %cst_318 = arith.constant dense<0.000000e+00> : vector<8x128xf32>
    %727 = tpu.matmul %725, %726, %cst_318 {dimension_numbers = #tpu.dot_dimension_numbers<[1], [0], [0], [1], [0, 0, 1, 1], [], []>} : vector<8x128xbf16>, vector<128x128xbf16>, vector<8x128xf32> -> vector<8x128xf32>
    %728 = arith.addf %723, %727 : vector<8x128xf32>
    %729 = math.tanh %728 : vector<8x128xf32>
    %730 = arith.mulf %714, %703 : vector<8x128xf32>
    %cst_319 = arith.constant 1.000000e+00 : f32
    %731 = vector.broadcast %cst_319 : f32 to vector<8x128xf32>
    %732 = arith.subf %731, %714 : vector<8x128xf32>
    %733 = arith.mulf %732, %729 : vector<8x128xf32>
    %734 = arith.addf %730, %733 : vector<8x128xf32>
    %c1_320 = arith.constant 1 : index
    %c0_321 = arith.constant 0 : index
    %c0_322 = arith.constant 0 : index
    %735 = vector.load %arg16[%c1_320, %c0_321, %c0_322] : memref<2x8x128xf32, #tpu.memory_space<vmem>>, vector<1x8x128xf32>
    %736 = vector.shape_cast %735 : vector<1x8x128xf32> to vector<8x128xf32>
    %737 = vector.shape_cast %734 : vector<8x128xf32> to vector<1x8x128xf32>
    tpu.vector_store %arg16[%c1_320, %c0_321, %c0_322], %737 {strides = array<i32>} : memref<2x8x128xf32, #tpu.memory_space<vmem>>, vector<1x8x128xf32>,
    %c8 = arith.constant 8 : index
    %c0_323 = arith.constant 0 : index
    %c0_324 = arith.constant 0 : index
    %738 = vector.load %arg18[%c8, %c0_323, %c0_324] : memref<16x8x128xf32, #tpu.memory_space<vmem>>, vector<1x8x128xf32>
    %739 = vector.shape_cast %738 : vector<1x8x128xf32> to vector<8x128xf32>
    %740 = vector.shape_cast %734 : vector<8x128xf32> to vector<1x8x128xf32>
    tpu.vector_store %arg18[%c8, %c0_323, %c0_324], %740 {strides = array<i32>} : memref<16x8x128xf32, #tpu.memory_space<vmem>>, vector<1x8x128xf32>,
    %741 = vector.extract_strided_slice %11 {offsets = [72, 0], sizes = [8, 384], strides = [1, 1]} : vector<128x384xf32> to vector<8x384xf32>
    %742 = arith.addf %741, %3 : vector<8x384xf32>
    %c0_325 = arith.constant 0 : index
    %c0_326 = arith.constant 0 : index
    %c0_327 = arith.constant 0 : index
    %743 = vector.load %arg16[%c0_325, %c0_326, %c0_327] : memref<2x8x128xf32, #tpu.memory_space<vmem>>, vector<1x8x128xf32>
    %744 = vector.shape_cast %743 : vector<1x8x128xf32> to vector<8x128xf32>
    %745 = arith.truncf %744 : vector<8x128xf32> to vector<8x128xbf16>
    %c0_328 = arith.constant 0 : index
    %c0_329 = arith.constant 0 : index
    %746 = vector.load %arg7[%c0_328, %c0_329] : memref<128x256xbf16, #tpu.memory_space<vmem>>, vector<128x256xbf16>
    %cst_330 = arith.constant dense<0.000000e+00> : vector<8x256xf32>
    %747 = tpu.matmul %745, %746, %cst_330 {dimension_numbers = #tpu.dot_dimension_numbers<[1], [0], [0], [1], [0, 0, 1, 1], [], []>} : vector<8x128xbf16>, vector<128x256xbf16>, vector<8x256xf32> -> vector<8x256xf32>
    %748 = vector.extract_strided_slice %742 {offsets = [0, 0], sizes = [8, 128], strides = [1, 1]} : vector<8x384xf32> to vector<8x128xf32>
    %749 = vector.extract_strided_slice %747 {offsets = [0, 0], sizes = [8, 128], strides = [1, 1]} : vector<8x256xf32> to vector<8x128xf32>
    %750 = arith.addf %748, %749 : vector<8x128xf32>
    %751 = arith.negf %750 : vector<8x128xf32>
    %752 = math.exp %751 : vector<8x128xf32>
    %cst_331 = arith.constant 1.000000e+00 : f32
    %753 = vector.broadcast %cst_331 : f32 to vector<8x128xf32>
    %754 = arith.addf %753, %752 : vector<8x128xf32>
    %755 = arith.divf %753, %754 : vector<8x128xf32>
    %756 = vector.extract_strided_slice %742 {offsets = [0, 128], sizes = [8, 128], strides = [1, 1]} : vector<8x384xf32> to vector<8x128xf32>
    %757 = vector.extract_strided_slice %747 {offsets = [0, 128], sizes = [8, 128], strides = [1, 1]} : vector<8x256xf32> to vector<8x128xf32>
    %758 = arith.addf %756, %757 : vector<8x128xf32>
    %759 = arith.negf %758 : vector<8x128xf32>
    %760 = math.exp %759 : vector<8x128xf32>
    %cst_332 = arith.constant 1.000000e+00 : f32
    %761 = vector.broadcast %cst_332 : f32 to vector<8x128xf32>
    %762 = arith.addf %761, %760 : vector<8x128xf32>
    %763 = arith.divf %761, %762 : vector<8x128xf32>
    %764 = vector.extract_strided_slice %742 {offsets = [0, 256], sizes = [8, 128], strides = [1, 1]} : vector<8x384xf32> to vector<8x128xf32>
    %765 = arith.mulf %763, %744 : vector<8x128xf32>
    %766 = arith.truncf %765 : vector<8x128xf32> to vector<8x128xbf16>
    %c0_333 = arith.constant 0 : index
    %c0_334 = arith.constant 0 : index
    %767 = vector.load %arg8[%c0_333, %c0_334] : memref<128x128xbf16, #tpu.memory_space<vmem>>, vector<128x128xbf16>
    %cst_335 = arith.constant dense<0.000000e+00> : vector<8x128xf32>
    %768 = tpu.matmul %766, %767, %cst_335 {dimension_numbers = #tpu.dot_dimension_numbers<[1], [0], [0], [1], [0, 0, 1, 1], [], []>} : vector<8x128xbf16>, vector<128x128xbf16>, vector<8x128xf32> -> vector<8x128xf32>
    %769 = arith.addf %764, %768 : vector<8x128xf32>
    %770 = math.tanh %769 : vector<8x128xf32>
    %771 = arith.mulf %755, %744 : vector<8x128xf32>
    %cst_336 = arith.constant 1.000000e+00 : f32
    %772 = vector.broadcast %cst_336 : f32 to vector<8x128xf32>
    %773 = arith.subf %772, %755 : vector<8x128xf32>
    %774 = arith.mulf %773, %770 : vector<8x128xf32>
    %775 = arith.addf %771, %774 : vector<8x128xf32>
    %c0_337 = arith.constant 0 : index
    %c0_338 = arith.constant 0 : index
    %c0_339 = arith.constant 0 : index
    %776 = vector.load %arg16[%c0_337, %c0_338, %c0_339] : memref<2x8x128xf32, #tpu.memory_space<vmem>>, vector<1x8x128xf32>
    %777 = vector.shape_cast %776 : vector<1x8x128xf32> to vector<8x128xf32>
    %778 = vector.shape_cast %775 : vector<8x128xf32> to vector<1x8x128xf32>
    tpu.vector_store %arg16[%c0_337, %c0_338, %c0_339], %778 {strides = array<i32>} : memref<2x8x128xf32, #tpu.memory_space<vmem>>, vector<1x8x128xf32>,
    %779 = arith.truncf %775 : vector<8x128xf32> to vector<8x128xbf16>
    %c0_340 = arith.constant 0 : index
    %c0_341 = arith.constant 0 : index
    %780 = vector.load %arg10[%c0_340, %c0_341] : memref<128x384xbf16, #tpu.memory_space<vmem>>, vector<128x384xbf16>
    %cst_342 = arith.constant dense<0.000000e+00> : vector<8x384xf32>
    %781 = tpu.matmul %779, %780, %cst_342 {dimension_numbers = #tpu.dot_dimension_numbers<[1], [0], [0], [1], [0, 0, 1, 1], [], []>} : vector<8x128xbf16>, vector<128x384xbf16>, vector<8x384xf32> -> vector<8x384xf32>
    %782 = arith.addf %781, %6 : vector<8x384xf32>
    %c1_343 = arith.constant 1 : index
    %c0_344 = arith.constant 0 : index
    %c0_345 = arith.constant 0 : index
    %783 = vector.load %arg16[%c1_343, %c0_344, %c0_345] : memref<2x8x128xf32, #tpu.memory_space<vmem>>, vector<1x8x128xf32>
    %784 = vector.shape_cast %783 : vector<1x8x128xf32> to vector<8x128xf32>
    %785 = arith.truncf %784 : vector<8x128xf32> to vector<8x128xbf16>
    %c0_346 = arith.constant 0 : index
    %c0_347 = arith.constant 0 : index
    %786 = vector.load %arg11[%c0_346, %c0_347] : memref<128x256xbf16, #tpu.memory_space<vmem>>, vector<128x256xbf16>
    %cst_348 = arith.constant dense<0.000000e+00> : vector<8x256xf32>
    %787 = tpu.matmul %785, %786, %cst_348 {dimension_numbers = #tpu.dot_dimension_numbers<[1], [0], [0], [1], [0, 0, 1, 1], [], []>} : vector<8x128xbf16>, vector<128x256xbf16>, vector<8x256xf32> -> vector<8x256xf32>
    %788 = vector.extract_strided_slice %782 {offsets = [0, 0], sizes = [8, 128], strides = [1, 1]} : vector<8x384xf32> to vector<8x128xf32>
    %789 = vector.extract_strided_slice %787 {offsets = [0, 0], sizes = [8, 128], strides = [1, 1]} : vector<8x256xf32> to vector<8x128xf32>
    %790 = arith.addf %788, %789 : vector<8x128xf32>
    %791 = arith.negf %790 : vector<8x128xf32>
    %792 = math.exp %791 : vector<8x128xf32>
    %cst_349 = arith.constant 1.000000e+00 : f32
    %793 = vector.broadcast %cst_349 : f32 to vector<8x128xf32>
    %794 = arith.addf %793, %792 : vector<8x128xf32>
    %795 = arith.divf %793, %794 : vector<8x128xf32>
    %796 = vector.extract_strided_slice %782 {offsets = [0, 128], sizes = [8, 128], strides = [1, 1]} : vector<8x384xf32> to vector<8x128xf32>
    %797 = vector.extract_strided_slice %787 {offsets = [0, 128], sizes = [8, 128], strides = [1, 1]} : vector<8x256xf32> to vector<8x128xf32>
    %798 = arith.addf %796, %797 : vector<8x128xf32>
    %799 = arith.negf %798 : vector<8x128xf32>
    %800 = math.exp %799 : vector<8x128xf32>
    %cst_350 = arith.constant 1.000000e+00 : f32
    %801 = vector.broadcast %cst_350 : f32 to vector<8x128xf32>
    %802 = arith.addf %801, %800 : vector<8x128xf32>
    %803 = arith.divf %801, %802 : vector<8x128xf32>
    %804 = vector.extract_strided_slice %782 {offsets = [0, 256], sizes = [8, 128], strides = [1, 1]} : vector<8x384xf32> to vector<8x128xf32>
    %805 = arith.mulf %803, %784 : vector<8x128xf32>
    %806 = arith.truncf %805 : vector<8x128xf32> to vector<8x128xbf16>
    %c0_351 = arith.constant 0 : index
    %c0_352 = arith.constant 0 : index
    %807 = vector.load %arg12[%c0_351, %c0_352] : memref<128x128xbf16, #tpu.memory_space<vmem>>, vector<128x128xbf16>
    %cst_353 = arith.constant dense<0.000000e+00> : vector<8x128xf32>
    %808 = tpu.matmul %806, %807, %cst_353 {dimension_numbers = #tpu.dot_dimension_numbers<[1], [0], [0], [1], [0, 0, 1, 1], [], []>} : vector<8x128xbf16>, vector<128x128xbf16>, vector<8x128xf32> -> vector<8x128xf32>
    %809 = arith.addf %804, %808 : vector<8x128xf32>
    %810 = math.tanh %809 : vector<8x128xf32>
    %811 = arith.mulf %795, %784 : vector<8x128xf32>
    %cst_354 = arith.constant 1.000000e+00 : f32
    %812 = vector.broadcast %cst_354 : f32 to vector<8x128xf32>
    %813 = arith.subf %812, %795 : vector<8x128xf32>
    %814 = arith.mulf %813, %810 : vector<8x128xf32>
    %815 = arith.addf %811, %814 : vector<8x128xf32>
    %c1_355 = arith.constant 1 : index
    %c0_356 = arith.constant 0 : index
    %c0_357 = arith.constant 0 : index
    %816 = vector.load %arg16[%c1_355, %c0_356, %c0_357] : memref<2x8x128xf32, #tpu.memory_space<vmem>>, vector<1x8x128xf32>
    %817 = vector.shape_cast %816 : vector<1x8x128xf32> to vector<8x128xf32>
    %818 = vector.shape_cast %815 : vector<8x128xf32> to vector<1x8x128xf32>
    tpu.vector_store %arg16[%c1_355, %c0_356, %c0_357], %818 {strides = array<i32>} : memref<2x8x128xf32, #tpu.memory_space<vmem>>, vector<1x8x128xf32>,
    %c9 = arith.constant 9 : index
    %c0_358 = arith.constant 0 : index
    %c0_359 = arith.constant 0 : index
    %819 = vector.load %arg18[%c9, %c0_358, %c0_359] : memref<16x8x128xf32, #tpu.memory_space<vmem>>, vector<1x8x128xf32>
    %820 = vector.shape_cast %819 : vector<1x8x128xf32> to vector<8x128xf32>
    %821 = vector.shape_cast %815 : vector<8x128xf32> to vector<1x8x128xf32>
    tpu.vector_store %arg18[%c9, %c0_358, %c0_359], %821 {strides = array<i32>} : memref<16x8x128xf32, #tpu.memory_space<vmem>>, vector<1x8x128xf32>,
    %822 = vector.extract_strided_slice %11 {offsets = [80, 0], sizes = [8, 384], strides = [1, 1]} : vector<128x384xf32> to vector<8x384xf32>
    %823 = arith.addf %822, %3 : vector<8x384xf32>
    %c0_360 = arith.constant 0 : index
    %c0_361 = arith.constant 0 : index
    %c0_362 = arith.constant 0 : index
    %824 = vector.load %arg16[%c0_360, %c0_361, %c0_362] : memref<2x8x128xf32, #tpu.memory_space<vmem>>, vector<1x8x128xf32>
    %825 = vector.shape_cast %824 : vector<1x8x128xf32> to vector<8x128xf32>
    %826 = arith.truncf %825 : vector<8x128xf32> to vector<8x128xbf16>
    %c0_363 = arith.constant 0 : index
    %c0_364 = arith.constant 0 : index
    %827 = vector.load %arg7[%c0_363, %c0_364] : memref<128x256xbf16, #tpu.memory_space<vmem>>, vector<128x256xbf16>
    %cst_365 = arith.constant dense<0.000000e+00> : vector<8x256xf32>
    %828 = tpu.matmul %826, %827, %cst_365 {dimension_numbers = #tpu.dot_dimension_numbers<[1], [0], [0], [1], [0, 0, 1, 1], [], []>} : vector<8x128xbf16>, vector<128x256xbf16>, vector<8x256xf32> -> vector<8x256xf32>
    %829 = vector.extract_strided_slice %823 {offsets = [0, 0], sizes = [8, 128], strides = [1, 1]} : vector<8x384xf32> to vector<8x128xf32>
    %830 = vector.extract_strided_slice %828 {offsets = [0, 0], sizes = [8, 128], strides = [1, 1]} : vector<8x256xf32> to vector<8x128xf32>
    %831 = arith.addf %829, %830 : vector<8x128xf32>
    %832 = arith.negf %831 : vector<8x128xf32>
    %833 = math.exp %832 : vector<8x128xf32>
    %cst_366 = arith.constant 1.000000e+00 : f32
    %834 = vector.broadcast %cst_366 : f32 to vector<8x128xf32>
    %835 = arith.addf %834, %833 : vector<8x128xf32>
    %836 = arith.divf %834, %835 : vector<8x128xf32>
    %837 = vector.extract_strided_slice %823 {offsets = [0, 128], sizes = [8, 128], strides = [1, 1]} : vector<8x384xf32> to vector<8x128xf32>
    %838 = vector.extract_strided_slice %828 {offsets = [0, 128], sizes = [8, 128], strides = [1, 1]} : vector<8x256xf32> to vector<8x128xf32>
    %839 = arith.addf %837, %838 : vector<8x128xf32>
    %840 = arith.negf %839 : vector<8x128xf32>
    %841 = math.exp %840 : vector<8x128xf32>
    %cst_367 = arith.constant 1.000000e+00 : f32
    %842 = vector.broadcast %cst_367 : f32 to vector<8x128xf32>
    %843 = arith.addf %842, %841 : vector<8x128xf32>
    %844 = arith.divf %842, %843 : vector<8x128xf32>
    %845 = vector.extract_strided_slice %823 {offsets = [0, 256], sizes = [8, 128], strides = [1, 1]} : vector<8x384xf32> to vector<8x128xf32>
    %846 = arith.mulf %844, %825 : vector<8x128xf32>
    %847 = arith.truncf %846 : vector<8x128xf32> to vector<8x128xbf16>
    %c0_368 = arith.constant 0 : index
    %c0_369 = arith.constant 0 : index
    %848 = vector.load %arg8[%c0_368, %c0_369] : memref<128x128xbf16, #tpu.memory_space<vmem>>, vector<128x128xbf16>
    %cst_370 = arith.constant dense<0.000000e+00> : vector<8x128xf32>
    %849 = tpu.matmul %847, %848, %cst_370 {dimension_numbers = #tpu.dot_dimension_numbers<[1], [0], [0], [1], [0, 0, 1, 1], [], []>} : vector<8x128xbf16>, vector<128x128xbf16>, vector<8x128xf32> -> vector<8x128xf32>
    %850 = arith.addf %845, %849 : vector<8x128xf32>
    %851 = math.tanh %850 : vector<8x128xf32>
    %852 = arith.mulf %836, %825 : vector<8x128xf32>
    %cst_371 = arith.constant 1.000000e+00 : f32
    %853 = vector.broadcast %cst_371 : f32 to vector<8x128xf32>
    %854 = arith.subf %853, %836 : vector<8x128xf32>
    %855 = arith.mulf %854, %851 : vector<8x128xf32>
    %856 = arith.addf %852, %855 : vector<8x128xf32>
    %c0_372 = arith.constant 0 : index
    %c0_373 = arith.constant 0 : index
    %c0_374 = arith.constant 0 : index
    %857 = vector.load %arg16[%c0_372, %c0_373, %c0_374] : memref<2x8x128xf32, #tpu.memory_space<vmem>>, vector<1x8x128xf32>
    %858 = vector.shape_cast %857 : vector<1x8x128xf32> to vector<8x128xf32>
    %859 = vector.shape_cast %856 : vector<8x128xf32> to vector<1x8x128xf32>
    tpu.vector_store %arg16[%c0_372, %c0_373, %c0_374], %859 {strides = array<i32>} : memref<2x8x128xf32, #tpu.memory_space<vmem>>, vector<1x8x128xf32>,
    %860 = arith.truncf %856 : vector<8x128xf32> to vector<8x128xbf16>
    %c0_375 = arith.constant 0 : index
    %c0_376 = arith.constant 0 : index
    %861 = vector.load %arg10[%c0_375, %c0_376] : memref<128x384xbf16, #tpu.memory_space<vmem>>, vector<128x384xbf16>
    %cst_377 = arith.constant dense<0.000000e+00> : vector<8x384xf32>
    %862 = tpu.matmul %860, %861, %cst_377 {dimension_numbers = #tpu.dot_dimension_numbers<[1], [0], [0], [1], [0, 0, 1, 1], [], []>} : vector<8x128xbf16>, vector<128x384xbf16>, vector<8x384xf32> -> vector<8x384xf32>
    %863 = arith.addf %862, %6 : vector<8x384xf32>
    %c1_378 = arith.constant 1 : index
    %c0_379 = arith.constant 0 : index
    %c0_380 = arith.constant 0 : index
    %864 = vector.load %arg16[%c1_378, %c0_379, %c0_380] : memref<2x8x128xf32, #tpu.memory_space<vmem>>, vector<1x8x128xf32>
    %865 = vector.shape_cast %864 : vector<1x8x128xf32> to vector<8x128xf32>
    %866 = arith.truncf %865 : vector<8x128xf32> to vector<8x128xbf16>
    %c0_381 = arith.constant 0 : index
    %c0_382 = arith.constant 0 : index
    %867 = vector.load %arg11[%c0_381, %c0_382] : memref<128x256xbf16, #tpu.memory_space<vmem>>, vector<128x256xbf16>
    %cst_383 = arith.constant dense<0.000000e+00> : vector<8x256xf32>
    %868 = tpu.matmul %866, %867, %cst_383 {dimension_numbers = #tpu.dot_dimension_numbers<[1], [0], [0], [1], [0, 0, 1, 1], [], []>} : vector<8x128xbf16>, vector<128x256xbf16>, vector<8x256xf32> -> vector<8x256xf32>
    %869 = vector.extract_strided_slice %863 {offsets = [0, 0], sizes = [8, 128], strides = [1, 1]} : vector<8x384xf32> to vector<8x128xf32>
    %870 = vector.extract_strided_slice %868 {offsets = [0, 0], sizes = [8, 128], strides = [1, 1]} : vector<8x256xf32> to vector<8x128xf32>
    %871 = arith.addf %869, %870 : vector<8x128xf32>
    %872 = arith.negf %871 : vector<8x128xf32>
    %873 = math.exp %872 : vector<8x128xf32>
    %cst_384 = arith.constant 1.000000e+00 : f32
    %874 = vector.broadcast %cst_384 : f32 to vector<8x128xf32>
    %875 = arith.addf %874, %873 : vector<8x128xf32>
    %876 = arith.divf %874, %875 : vector<8x128xf32>
    %877 = vector.extract_strided_slice %863 {offsets = [0, 128], sizes = [8, 128], strides = [1, 1]} : vector<8x384xf32> to vector<8x128xf32>
    %878 = vector.extract_strided_slice %868 {offsets = [0, 128], sizes = [8, 128], strides = [1, 1]} : vector<8x256xf32> to vector<8x128xf32>
    %879 = arith.addf %877, %878 : vector<8x128xf32>
    %880 = arith.negf %879 : vector<8x128xf32>
    %881 = math.exp %880 : vector<8x128xf32>
    %cst_385 = arith.constant 1.000000e+00 : f32
    %882 = vector.broadcast %cst_385 : f32 to vector<8x128xf32>
    %883 = arith.addf %882, %881 : vector<8x128xf32>
    %884 = arith.divf %882, %883 : vector<8x128xf32>
    %885 = vector.extract_strided_slice %863 {offsets = [0, 256], sizes = [8, 128], strides = [1, 1]} : vector<8x384xf32> to vector<8x128xf32>
    %886 = arith.mulf %884, %865 : vector<8x128xf32>
    %887 = arith.truncf %886 : vector<8x128xf32> to vector<8x128xbf16>
    %c0_386 = arith.constant 0 : index
    %c0_387 = arith.constant 0 : index
    %888 = vector.load %arg12[%c0_386, %c0_387] : memref<128x128xbf16, #tpu.memory_space<vmem>>, vector<128x128xbf16>
    %cst_388 = arith.constant dense<0.000000e+00> : vector<8x128xf32>
    %889 = tpu.matmul %887, %888, %cst_388 {dimension_numbers = #tpu.dot_dimension_numbers<[1], [0], [0], [1], [0, 0, 1, 1], [], []>} : vector<8x128xbf16>, vector<128x128xbf16>, vector<8x128xf32> -> vector<8x128xf32>
    %890 = arith.addf %885, %889 : vector<8x128xf32>
    %891 = math.tanh %890 : vector<8x128xf32>
    %892 = arith.mulf %876, %865 : vector<8x128xf32>
    %cst_389 = arith.constant 1.000000e+00 : f32
    %893 = vector.broadcast %cst_389 : f32 to vector<8x128xf32>
    %894 = arith.subf %893, %876 : vector<8x128xf32>
    %895 = arith.mulf %894, %891 : vector<8x128xf32>
    %896 = arith.addf %892, %895 : vector<8x128xf32>
    %c1_390 = arith.constant 1 : index
    %c0_391 = arith.constant 0 : index
    %c0_392 = arith.constant 0 : index
    %897 = vector.load %arg16[%c1_390, %c0_391, %c0_392] : memref<2x8x128xf32, #tpu.memory_space<vmem>>, vector<1x8x128xf32>
    %898 = vector.shape_cast %897 : vector<1x8x128xf32> to vector<8x128xf32>
    %899 = vector.shape_cast %896 : vector<8x128xf32> to vector<1x8x128xf32>
    tpu.vector_store %arg16[%c1_390, %c0_391, %c0_392], %899 {strides = array<i32>} : memref<2x8x128xf32, #tpu.memory_space<vmem>>, vector<1x8x128xf32>,
    %c10 = arith.constant 10 : index
    %c0_393 = arith.constant 0 : index
    %c0_394 = arith.constant 0 : index
    %900 = vector.load %arg18[%c10, %c0_393, %c0_394] : memref<16x8x128xf32, #tpu.memory_space<vmem>>, vector<1x8x128xf32>
    %901 = vector.shape_cast %900 : vector<1x8x128xf32> to vector<8x128xf32>
    %902 = vector.shape_cast %896 : vector<8x128xf32> to vector<1x8x128xf32>
    tpu.vector_store %arg18[%c10, %c0_393, %c0_394], %902 {strides = array<i32>} : memref<16x8x128xf32, #tpu.memory_space<vmem>>, vector<1x8x128xf32>,
    %903 = vector.extract_strided_slice %11 {offsets = [88, 0], sizes = [8, 384], strides = [1, 1]} : vector<128x384xf32> to vector<8x384xf32>
    %904 = arith.addf %903, %3 : vector<8x384xf32>
    %c0_395 = arith.constant 0 : index
    %c0_396 = arith.constant 0 : index
    %c0_397 = arith.constant 0 : index
    %905 = vector.load %arg16[%c0_395, %c0_396, %c0_397] : memref<2x8x128xf32, #tpu.memory_space<vmem>>, vector<1x8x128xf32>
    %906 = vector.shape_cast %905 : vector<1x8x128xf32> to vector<8x128xf32>
    %907 = arith.truncf %906 : vector<8x128xf32> to vector<8x128xbf16>
    %c0_398 = arith.constant 0 : index
    %c0_399 = arith.constant 0 : index
    %908 = vector.load %arg7[%c0_398, %c0_399] : memref<128x256xbf16, #tpu.memory_space<vmem>>, vector<128x256xbf16>
    %cst_400 = arith.constant dense<0.000000e+00> : vector<8x256xf32>
    %909 = tpu.matmul %907, %908, %cst_400 {dimension_numbers = #tpu.dot_dimension_numbers<[1], [0], [0], [1], [0, 0, 1, 1], [], []>} : vector<8x128xbf16>, vector<128x256xbf16>, vector<8x256xf32> -> vector<8x256xf32>
    %910 = vector.extract_strided_slice %904 {offsets = [0, 0], sizes = [8, 128], strides = [1, 1]} : vector<8x384xf32> to vector<8x128xf32>
    %911 = vector.extract_strided_slice %909 {offsets = [0, 0], sizes = [8, 128], strides = [1, 1]} : vector<8x256xf32> to vector<8x128xf32>
    %912 = arith.addf %910, %911 : vector<8x128xf32>
    %913 = arith.negf %912 : vector<8x128xf32>
    %914 = math.exp %913 : vector<8x128xf32>
    %cst_401 = arith.constant 1.000000e+00 : f32
    %915 = vector.broadcast %cst_401 : f32 to vector<8x128xf32>
    %916 = arith.addf %915, %914 : vector<8x128xf32>
    %917 = arith.divf %915, %916 : vector<8x128xf32>
    %918 = vector.extract_strided_slice %904 {offsets = [0, 128], sizes = [8, 128], strides = [1, 1]} : vector<8x384xf32> to vector<8x128xf32>
    %919 = vector.extract_strided_slice %909 {offsets = [0, 128], sizes = [8, 128], strides = [1, 1]} : vector<8x256xf32> to vector<8x128xf32>
    %920 = arith.addf %918, %919 : vector<8x128xf32>
    %921 = arith.negf %920 : vector<8x128xf32>
    %922 = math.exp %921 : vector<8x128xf32>
    %cst_402 = arith.constant 1.000000e+00 : f32
    %923 = vector.broadcast %cst_402 : f32 to vector<8x128xf32>
    %924 = arith.addf %923, %922 : vector<8x128xf32>
    %925 = arith.divf %923, %924 : vector<8x128xf32>
    %926 = vector.extract_strided_slice %904 {offsets = [0, 256], sizes = [8, 128], strides = [1, 1]} : vector<8x384xf32> to vector<8x128xf32>
    %927 = arith.mulf %925, %906 : vector<8x128xf32>
    %928 = arith.truncf %927 : vector<8x128xf32> to vector<8x128xbf16>
    %c0_403 = arith.constant 0 : index
    %c0_404 = arith.constant 0 : index
    %929 = vector.load %arg8[%c0_403, %c0_404] : memref<128x128xbf16, #tpu.memory_space<vmem>>, vector<128x128xbf16>
    %cst_405 = arith.constant dense<0.000000e+00> : vector<8x128xf32>
    %930 = tpu.matmul %928, %929, %cst_405 {dimension_numbers = #tpu.dot_dimension_numbers<[1], [0], [0], [1], [0, 0, 1, 1], [], []>} : vector<8x128xbf16>, vector<128x128xbf16>, vector<8x128xf32> -> vector<8x128xf32>
    %931 = arith.addf %926, %930 : vector<8x128xf32>
    %932 = math.tanh %931 : vector<8x128xf32>
    %933 = arith.mulf %917, %906 : vector<8x128xf32>
    %cst_406 = arith.constant 1.000000e+00 : f32
    %934 = vector.broadcast %cst_406 : f32 to vector<8x128xf32>
    %935 = arith.subf %934, %917 : vector<8x128xf32>
    %936 = arith.mulf %935, %932 : vector<8x128xf32>
    %937 = arith.addf %933, %936 : vector<8x128xf32>
    %c0_407 = arith.constant 0 : index
    %c0_408 = arith.constant 0 : index
    %c0_409 = arith.constant 0 : index
    %938 = vector.load %arg16[%c0_407, %c0_408, %c0_409] : memref<2x8x128xf32, #tpu.memory_space<vmem>>, vector<1x8x128xf32>
    %939 = vector.shape_cast %938 : vector<1x8x128xf32> to vector<8x128xf32>
    %940 = vector.shape_cast %937 : vector<8x128xf32> to vector<1x8x128xf32>
    tpu.vector_store %arg16[%c0_407, %c0_408, %c0_409], %940 {strides = array<i32>} : memref<2x8x128xf32, #tpu.memory_space<vmem>>, vector<1x8x128xf32>,
    %941 = arith.truncf %937 : vector<8x128xf32> to vector<8x128xbf16>
    %c0_410 = arith.constant 0 : index
    %c0_411 = arith.constant 0 : index
    %942 = vector.load %arg10[%c0_410, %c0_411] : memref<128x384xbf16, #tpu.memory_space<vmem>>, vector<128x384xbf16>
    %cst_412 = arith.constant dense<0.000000e+00> : vector<8x384xf32>
    %943 = tpu.matmul %941, %942, %cst_412 {dimension_numbers = #tpu.dot_dimension_numbers<[1], [0], [0], [1], [0, 0, 1, 1], [], []>} : vector<8x128xbf16>, vector<128x384xbf16>, vector<8x384xf32> -> vector<8x384xf32>
    %944 = arith.addf %943, %6 : vector<8x384xf32>
    %c1_413 = arith.constant 1 : index
    %c0_414 = arith.constant 0 : index
    %c0_415 = arith.constant 0 : index
    %945 = vector.load %arg16[%c1_413, %c0_414, %c0_415] : memref<2x8x128xf32, #tpu.memory_space<vmem>>, vector<1x8x128xf32>
    %946 = vector.shape_cast %945 : vector<1x8x128xf32> to vector<8x128xf32>
    %947 = arith.truncf %946 : vector<8x128xf32> to vector<8x128xbf16>
    %c0_416 = arith.constant 0 : index
    %c0_417 = arith.constant 0 : index
    %948 = vector.load %arg11[%c0_416, %c0_417] : memref<128x256xbf16, #tpu.memory_space<vmem>>, vector<128x256xbf16>
    %cst_418 = arith.constant dense<0.000000e+00> : vector<8x256xf32>
    %949 = tpu.matmul %947, %948, %cst_418 {dimension_numbers = #tpu.dot_dimension_numbers<[1], [0], [0], [1], [0, 0, 1, 1], [], []>} : vector<8x128xbf16>, vector<128x256xbf16>, vector<8x256xf32> -> vector<8x256xf32>
    %950 = vector.extract_strided_slice %944 {offsets = [0, 0], sizes = [8, 128], strides = [1, 1]} : vector<8x384xf32> to vector<8x128xf32>
    %951 = vector.extract_strided_slice %949 {offsets = [0, 0], sizes = [8, 128], strides = [1, 1]} : vector<8x256xf32> to vector<8x128xf32>
    %952 = arith.addf %950, %951 : vector<8x128xf32>
    %953 = arith.negf %952 : vector<8x128xf32>
    %954 = math.exp %953 : vector<8x128xf32>
    %cst_419 = arith.constant 1.000000e+00 : f32
    %955 = vector.broadcast %cst_419 : f32 to vector<8x128xf32>
    %956 = arith.addf %955, %954 : vector<8x128xf32>
    %957 = arith.divf %955, %956 : vector<8x128xf32>
    %958 = vector.extract_strided_slice %944 {offsets = [0, 128], sizes = [8, 128], strides = [1, 1]} : vector<8x384xf32> to vector<8x128xf32>
    %959 = vector.extract_strided_slice %949 {offsets = [0, 128], sizes = [8, 128], strides = [1, 1]} : vector<8x256xf32> to vector<8x128xf32>
    %960 = arith.addf %958, %959 : vector<8x128xf32>
    %961 = arith.negf %960 : vector<8x128xf32>
    %962 = math.exp %961 : vector<8x128xf32>
    %cst_420 = arith.constant 1.000000e+00 : f32
    %963 = vector.broadcast %cst_420 : f32 to vector<8x128xf32>
    %964 = arith.addf %963, %962 : vector<8x128xf32>
    %965 = arith.divf %963, %964 : vector<8x128xf32>
    %966 = vector.extract_strided_slice %944 {offsets = [0, 256], sizes = [8, 128], strides = [1, 1]} : vector<8x384xf32> to vector<8x128xf32>
    %967 = arith.mulf %965, %946 : vector<8x128xf32>
    %968 = arith.truncf %967 : vector<8x128xf32> to vector<8x128xbf16>
    %c0_421 = arith.constant 0 : index
    %c0_422 = arith.constant 0 : index
    %969 = vector.load %arg12[%c0_421, %c0_422] : memref<128x128xbf16, #tpu.memory_space<vmem>>, vector<128x128xbf16>
    %cst_423 = arith.constant dense<0.000000e+00> : vector<8x128xf32>
    %970 = tpu.matmul %968, %969, %cst_423 {dimension_numbers = #tpu.dot_dimension_numbers<[1], [0], [0], [1], [0, 0, 1, 1], [], []>} : vector<8x128xbf16>, vector<128x128xbf16>, vector<8x128xf32> -> vector<8x128xf32>
    %971 = arith.addf %966, %970 : vector<8x128xf32>
    %972 = math.tanh %971 : vector<8x128xf32>
    %973 = arith.mulf %957, %946 : vector<8x128xf32>
    %cst_424 = arith.constant 1.000000e+00 : f32
    %974 = vector.broadcast %cst_424 : f32 to vector<8x128xf32>
    %975 = arith.subf %974, %957 : vector<8x128xf32>
    %976 = arith.mulf %975, %972 : vector<8x128xf32>
    %977 = arith.addf %973, %976 : vector<8x128xf32>
    %c1_425 = arith.constant 1 : index
    %c0_426 = arith.constant 0 : index
    %c0_427 = arith.constant 0 : index
    %978 = vector.load %arg16[%c1_425, %c0_426, %c0_427] : memref<2x8x128xf32, #tpu.memory_space<vmem>>, vector<1x8x128xf32>
    %979 = vector.shape_cast %978 : vector<1x8x128xf32> to vector<8x128xf32>
    %980 = vector.shape_cast %977 : vector<8x128xf32> to vector<1x8x128xf32>
    tpu.vector_store %arg16[%c1_425, %c0_426, %c0_427], %980 {strides = array<i32>} : memref<2x8x128xf32, #tpu.memory_space<vmem>>, vector<1x8x128xf32>,
    %c11 = arith.constant 11 : index
    %c0_428 = arith.constant 0 : index
    %c0_429 = arith.constant 0 : index
    %981 = vector.load %arg18[%c11, %c0_428, %c0_429] : memref<16x8x128xf32, #tpu.memory_space<vmem>>, vector<1x8x128xf32>
    %982 = vector.shape_cast %981 : vector<1x8x128xf32> to vector<8x128xf32>
    %983 = vector.shape_cast %977 : vector<8x128xf32> to vector<1x8x128xf32>
    tpu.vector_store %arg18[%c11, %c0_428, %c0_429], %983 {strides = array<i32>} : memref<16x8x128xf32, #tpu.memory_space<vmem>>, vector<1x8x128xf32>,
    %984 = vector.extract_strided_slice %11 {offsets = [96, 0], sizes = [8, 384], strides = [1, 1]} : vector<128x384xf32> to vector<8x384xf32>
    %985 = arith.addf %984, %3 : vector<8x384xf32>
    %c0_430 = arith.constant 0 : index
    %c0_431 = arith.constant 0 : index
    %c0_432 = arith.constant 0 : index
    %986 = vector.load %arg16[%c0_430, %c0_431, %c0_432] : memref<2x8x128xf32, #tpu.memory_space<vmem>>, vector<1x8x128xf32>
    %987 = vector.shape_cast %986 : vector<1x8x128xf32> to vector<8x128xf32>
    %988 = arith.truncf %987 : vector<8x128xf32> to vector<8x128xbf16>
    %c0_433 = arith.constant 0 : index
    %c0_434 = arith.constant 0 : index
    %989 = vector.load %arg7[%c0_433, %c0_434] : memref<128x256xbf16, #tpu.memory_space<vmem>>, vector<128x256xbf16>
    %cst_435 = arith.constant dense<0.000000e+00> : vector<8x256xf32>
    %990 = tpu.matmul %988, %989, %cst_435 {dimension_numbers = #tpu.dot_dimension_numbers<[1], [0], [0], [1], [0, 0, 1, 1], [], []>} : vector<8x128xbf16>, vector<128x256xbf16>, vector<8x256xf32> -> vector<8x256xf32>
    %991 = vector.extract_strided_slice %985 {offsets = [0, 0], sizes = [8, 128], strides = [1, 1]} : vector<8x384xf32> to vector<8x128xf32>
    %992 = vector.extract_strided_slice %990 {offsets = [0, 0], sizes = [8, 128], strides = [1, 1]} : vector<8x256xf32> to vector<8x128xf32>
    %993 = arith.addf %991, %992 : vector<8x128xf32>
    %994 = arith.negf %993 : vector<8x128xf32>
    %995 = math.exp %994 : vector<8x128xf32>
    %cst_436 = arith.constant 1.000000e+00 : f32
    %996 = vector.broadcast %cst_436 : f32 to vector<8x128xf32>
    %997 = arith.addf %996, %995 : vector<8x128xf32>
    %998 = arith.divf %996, %997 : vector<8x128xf32>
    %999 = vector.extract_strided_slice %985 {offsets = [0, 128], sizes = [8, 128], strides = [1, 1]} : vector<8x384xf32> to vector<8x128xf32>
    %1000 = vector.extract_strided_slice %990 {offsets = [0, 128], sizes = [8, 128], strides = [1, 1]} : vector<8x256xf32> to vector<8x128xf32>
    %1001 = arith.addf %999, %1000 : vector<8x128xf32>
    %1002 = arith.negf %1001 : vector<8x128xf32>
    %1003 = math.exp %1002 : vector<8x128xf32>
    %cst_437 = arith.constant 1.000000e+00 : f32
    %1004 = vector.broadcast %cst_437 : f32 to vector<8x128xf32>
    %1005 = arith.addf %1004, %1003 : vector<8x128xf32>
    %1006 = arith.divf %1004, %1005 : vector<8x128xf32>
    %1007 = vector.extract_strided_slice %985 {offsets = [0, 256], sizes = [8, 128], strides = [1, 1]} : vector<8x384xf32> to vector<8x128xf32>
    %1008 = arith.mulf %1006, %987 : vector<8x128xf32>
    %1009 = arith.truncf %1008 : vector<8x128xf32> to vector<8x128xbf16>
    %c0_438 = arith.constant 0 : index
    %c0_439 = arith.constant 0 : index
    %1010 = vector.load %arg8[%c0_438, %c0_439] : memref<128x128xbf16, #tpu.memory_space<vmem>>, vector<128x128xbf16>
    %cst_440 = arith.constant dense<0.000000e+00> : vector<8x128xf32>
    %1011 = tpu.matmul %1009, %1010, %cst_440 {dimension_numbers = #tpu.dot_dimension_numbers<[1], [0], [0], [1], [0, 0, 1, 1], [], []>} : vector<8x128xbf16>, vector<128x128xbf16>, vector<8x128xf32> -> vector<8x128xf32>
    %1012 = arith.addf %1007, %1011 : vector<8x128xf32>
    %1013 = math.tanh %1012 : vector<8x128xf32>
    %1014 = arith.mulf %998, %987 : vector<8x128xf32>
    %cst_441 = arith.constant 1.000000e+00 : f32
    %1015 = vector.broadcast %cst_441 : f32 to vector<8x128xf32>
    %1016 = arith.subf %1015, %998 : vector<8x128xf32>
    %1017 = arith.mulf %1016, %1013 : vector<8x128xf32>
    %1018 = arith.addf %1014, %1017 : vector<8x128xf32>
    %c0_442 = arith.constant 0 : index
    %c0_443 = arith.constant 0 : index
    %c0_444 = arith.constant 0 : index
    %1019 = vector.load %arg16[%c0_442, %c0_443, %c0_444] : memref<2x8x128xf32, #tpu.memory_space<vmem>>, vector<1x8x128xf32>
    %1020 = vector.shape_cast %1019 : vector<1x8x128xf32> to vector<8x128xf32>
    %1021 = vector.shape_cast %1018 : vector<8x128xf32> to vector<1x8x128xf32>
    tpu.vector_store %arg16[%c0_442, %c0_443, %c0_444], %1021 {strides = array<i32>} : memref<2x8x128xf32, #tpu.memory_space<vmem>>, vector<1x8x128xf32>,
    %1022 = arith.truncf %1018 : vector<8x128xf32> to vector<8x128xbf16>
    %c0_445 = arith.constant 0 : index
    %c0_446 = arith.constant 0 : index
    %1023 = vector.load %arg10[%c0_445, %c0_446] : memref<128x384xbf16, #tpu.memory_space<vmem>>, vector<128x384xbf16>
    %cst_447 = arith.constant dense<0.000000e+00> : vector<8x384xf32>
    %1024 = tpu.matmul %1022, %1023, %cst_447 {dimension_numbers = #tpu.dot_dimension_numbers<[1], [0], [0], [1], [0, 0, 1, 1], [], []>} : vector<8x128xbf16>, vector<128x384xbf16>, vector<8x384xf32> -> vector<8x384xf32>
    %1025 = arith.addf %1024, %6 : vector<8x384xf32>
    %c1_448 = arith.constant 1 : index
    %c0_449 = arith.constant 0 : index
    %c0_450 = arith.constant 0 : index
    %1026 = vector.load %arg16[%c1_448, %c0_449, %c0_450] : memref<2x8x128xf32, #tpu.memory_space<vmem>>, vector<1x8x128xf32>
    %1027 = vector.shape_cast %1026 : vector<1x8x128xf32> to vector<8x128xf32>
    %1028 = arith.truncf %1027 : vector<8x128xf32> to vector<8x128xbf16>
    %c0_451 = arith.constant 0 : index
    %c0_452 = arith.constant 0 : index
    %1029 = vector.load %arg11[%c0_451, %c0_452] : memref<128x256xbf16, #tpu.memory_space<vmem>>, vector<128x256xbf16>
    %cst_453 = arith.constant dense<0.000000e+00> : vector<8x256xf32>
    %1030 = tpu.matmul %1028, %1029, %cst_453 {dimension_numbers = #tpu.dot_dimension_numbers<[1], [0], [0], [1], [0, 0, 1, 1], [], []>} : vector<8x128xbf16>, vector<128x256xbf16>, vector<8x256xf32> -> vector<8x256xf32>
    %1031 = vector.extract_strided_slice %1025 {offsets = [0, 0], sizes = [8, 128], strides = [1, 1]} : vector<8x384xf32> to vector<8x128xf32>
    %1032 = vector.extract_strided_slice %1030 {offsets = [0, 0], sizes = [8, 128], strides = [1, 1]} : vector<8x256xf32> to vector<8x128xf32>
    %1033 = arith.addf %1031, %1032 : vector<8x128xf32>
    %1034 = arith.negf %1033 : vector<8x128xf32>
    %1035 = math.exp %1034 : vector<8x128xf32>
    %cst_454 = arith.constant 1.000000e+00 : f32
    %1036 = vector.broadcast %cst_454 : f32 to vector<8x128xf32>
    %1037 = arith.addf %1036, %1035 : vector<8x128xf32>
    %1038 = arith.divf %1036, %1037 : vector<8x128xf32>
    %1039 = vector.extract_strided_slice %1025 {offsets = [0, 128], sizes = [8, 128], strides = [1, 1]} : vector<8x384xf32> to vector<8x128xf32>
    %1040 = vector.extract_strided_slice %1030 {offsets = [0, 128], sizes = [8, 128], strides = [1, 1]} : vector<8x256xf32> to vector<8x128xf32>
    %1041 = arith.addf %1039, %1040 : vector<8x128xf32>
    %1042 = arith.negf %1041 : vector<8x128xf32>
    %1043 = math.exp %1042 : vector<8x128xf32>
    %cst_455 = arith.constant 1.000000e+00 : f32
    %1044 = vector.broadcast %cst_455 : f32 to vector<8x128xf32>
    %1045 = arith.addf %1044, %1043 : vector<8x128xf32>
    %1046 = arith.divf %1044, %1045 : vector<8x128xf32>
    %1047 = vector.extract_strided_slice %1025 {offsets = [0, 256], sizes = [8, 128], strides = [1, 1]} : vector<8x384xf32> to vector<8x128xf32>
    %1048 = arith.mulf %1046, %1027 : vector<8x128xf32>
    %1049 = arith.truncf %1048 : vector<8x128xf32> to vector<8x128xbf16>
    %c0_456 = arith.constant 0 : index
    %c0_457 = arith.constant 0 : index
    %1050 = vector.load %arg12[%c0_456, %c0_457] : memref<128x128xbf16, #tpu.memory_space<vmem>>, vector<128x128xbf16>
    %cst_458 = arith.constant dense<0.000000e+00> : vector<8x128xf32>
    %1051 = tpu.matmul %1049, %1050, %cst_458 {dimension_numbers = #tpu.dot_dimension_numbers<[1], [0], [0], [1], [0, 0, 1, 1], [], []>} : vector<8x128xbf16>, vector<128x128xbf16>, vector<8x128xf32> -> vector<8x128xf32>
    %1052 = arith.addf %1047, %1051 : vector<8x128xf32>
    %1053 = math.tanh %1052 : vector<8x128xf32>
    %1054 = arith.mulf %1038, %1027 : vector<8x128xf32>
    %cst_459 = arith.constant 1.000000e+00 : f32
    %1055 = vector.broadcast %cst_459 : f32 to vector<8x128xf32>
    %1056 = arith.subf %1055, %1038 : vector<8x128xf32>
    %1057 = arith.mulf %1056, %1053 : vector<8x128xf32>
    %1058 = arith.addf %1054, %1057 : vector<8x128xf32>
    %c1_460 = arith.constant 1 : index
    %c0_461 = arith.constant 0 : index
    %c0_462 = arith.constant 0 : index
    %1059 = vector.load %arg16[%c1_460, %c0_461, %c0_462] : memref<2x8x128xf32, #tpu.memory_space<vmem>>, vector<1x8x128xf32>
    %1060 = vector.shape_cast %1059 : vector<1x8x128xf32> to vector<8x128xf32>
    %1061 = vector.shape_cast %1058 : vector<8x128xf32> to vector<1x8x128xf32>
    tpu.vector_store %arg16[%c1_460, %c0_461, %c0_462], %1061 {strides = array<i32>} : memref<2x8x128xf32, #tpu.memory_space<vmem>>, vector<1x8x128xf32>,
    %c12 = arith.constant 12 : index
    %c0_463 = arith.constant 0 : index
    %c0_464 = arith.constant 0 : index
    %1062 = vector.load %arg18[%c12, %c0_463, %c0_464] : memref<16x8x128xf32, #tpu.memory_space<vmem>>, vector<1x8x128xf32>
    %1063 = vector.shape_cast %1062 : vector<1x8x128xf32> to vector<8x128xf32>
    %1064 = vector.shape_cast %1058 : vector<8x128xf32> to vector<1x8x128xf32>
    tpu.vector_store %arg18[%c12, %c0_463, %c0_464], %1064 {strides = array<i32>} : memref<16x8x128xf32, #tpu.memory_space<vmem>>, vector<1x8x128xf32>,
    %1065 = vector.extract_strided_slice %11 {offsets = [104, 0], sizes = [8, 384], strides = [1, 1]} : vector<128x384xf32> to vector<8x384xf32>
    %1066 = arith.addf %1065, %3 : vector<8x384xf32>
    %c0_465 = arith.constant 0 : index
    %c0_466 = arith.constant 0 : index
    %c0_467 = arith.constant 0 : index
    %1067 = vector.load %arg16[%c0_465, %c0_466, %c0_467] : memref<2x8x128xf32, #tpu.memory_space<vmem>>, vector<1x8x128xf32>
    %1068 = vector.shape_cast %1067 : vector<1x8x128xf32> to vector<8x128xf32>
    %1069 = arith.truncf %1068 : vector<8x128xf32> to vector<8x128xbf16>
    %c0_468 = arith.constant 0 : index
    %c0_469 = arith.constant 0 : index
    %1070 = vector.load %arg7[%c0_468, %c0_469] : memref<128x256xbf16, #tpu.memory_space<vmem>>, vector<128x256xbf16>
    %cst_470 = arith.constant dense<0.000000e+00> : vector<8x256xf32>
    %1071 = tpu.matmul %1069, %1070, %cst_470 {dimension_numbers = #tpu.dot_dimension_numbers<[1], [0], [0], [1], [0, 0, 1, 1], [], []>} : vector<8x128xbf16>, vector<128x256xbf16>, vector<8x256xf32> -> vector<8x256xf32>
    %1072 = vector.extract_strided_slice %1066 {offsets = [0, 0], sizes = [8, 128], strides = [1, 1]} : vector<8x384xf32> to vector<8x128xf32>
    %1073 = vector.extract_strided_slice %1071 {offsets = [0, 0], sizes = [8, 128], strides = [1, 1]} : vector<8x256xf32> to vector<8x128xf32>
    %1074 = arith.addf %1072, %1073 : vector<8x128xf32>
    %1075 = arith.negf %1074 : vector<8x128xf32>
    %1076 = math.exp %1075 : vector<8x128xf32>
    %cst_471 = arith.constant 1.000000e+00 : f32
    %1077 = vector.broadcast %cst_471 : f32 to vector<8x128xf32>
    %1078 = arith.addf %1077, %1076 : vector<8x128xf32>
    %1079 = arith.divf %1077, %1078 : vector<8x128xf32>
    %1080 = vector.extract_strided_slice %1066 {offsets = [0, 128], sizes = [8, 128], strides = [1, 1]} : vector<8x384xf32> to vector<8x128xf32>
    %1081 = vector.extract_strided_slice %1071 {offsets = [0, 128], sizes = [8, 128], strides = [1, 1]} : vector<8x256xf32> to vector<8x128xf32>
    %1082 = arith.addf %1080, %1081 : vector<8x128xf32>
    %1083 = arith.negf %1082 : vector<8x128xf32>
    %1084 = math.exp %1083 : vector<8x128xf32>
    %cst_472 = arith.constant 1.000000e+00 : f32
    %1085 = vector.broadcast %cst_472 : f32 to vector<8x128xf32>
    %1086 = arith.addf %1085, %1084 : vector<8x128xf32>
    %1087 = arith.divf %1085, %1086 : vector<8x128xf32>
    %1088 = vector.extract_strided_slice %1066 {offsets = [0, 256], sizes = [8, 128], strides = [1, 1]} : vector<8x384xf32> to vector<8x128xf32>
    %1089 = arith.mulf %1087, %1068 : vector<8x128xf32>
    %1090 = arith.truncf %1089 : vector<8x128xf32> to vector<8x128xbf16>
    %c0_473 = arith.constant 0 : index
    %c0_474 = arith.constant 0 : index
    %1091 = vector.load %arg8[%c0_473, %c0_474] : memref<128x128xbf16, #tpu.memory_space<vmem>>, vector<128x128xbf16>
    %cst_475 = arith.constant dense<0.000000e+00> : vector<8x128xf32>
    %1092 = tpu.matmul %1090, %1091, %cst_475 {dimension_numbers = #tpu.dot_dimension_numbers<[1], [0], [0], [1], [0, 0, 1, 1], [], []>} : vector<8x128xbf16>, vector<128x128xbf16>, vector<8x128xf32> -> vector<8x128xf32>
    %1093 = arith.addf %1088, %1092 : vector<8x128xf32>
    %1094 = math.tanh %1093 : vector<8x128xf32>
    %1095 = arith.mulf %1079, %1068 : vector<8x128xf32>
    %cst_476 = arith.constant 1.000000e+00 : f32
    %1096 = vector.broadcast %cst_476 : f32 to vector<8x128xf32>
    %1097 = arith.subf %1096, %1079 : vector<8x128xf32>
    %1098 = arith.mulf %1097, %1094 : vector<8x128xf32>
    %1099 = arith.addf %1095, %1098 : vector<8x128xf32>
    %c0_477 = arith.constant 0 : index
    %c0_478 = arith.constant 0 : index
    %c0_479 = arith.constant 0 : index
    %1100 = vector.load %arg16[%c0_477, %c0_478, %c0_479] : memref<2x8x128xf32, #tpu.memory_space<vmem>>, vector<1x8x128xf32>
    %1101 = vector.shape_cast %1100 : vector<1x8x128xf32> to vector<8x128xf32>
    %1102 = vector.shape_cast %1099 : vector<8x128xf32> to vector<1x8x128xf32>
    tpu.vector_store %arg16[%c0_477, %c0_478, %c0_479], %1102 {strides = array<i32>} : memref<2x8x128xf32, #tpu.memory_space<vmem>>, vector<1x8x128xf32>,
    %1103 = arith.truncf %1099 : vector<8x128xf32> to vector<8x128xbf16>
    %c0_480 = arith.constant 0 : index
    %c0_481 = arith.constant 0 : index
    %1104 = vector.load %arg10[%c0_480, %c0_481] : memref<128x384xbf16, #tpu.memory_space<vmem>>, vector<128x384xbf16>
    %cst_482 = arith.constant dense<0.000000e+00> : vector<8x384xf32>
    %1105 = tpu.matmul %1103, %1104, %cst_482 {dimension_numbers = #tpu.dot_dimension_numbers<[1], [0], [0], [1], [0, 0, 1, 1], [], []>} : vector<8x128xbf16>, vector<128x384xbf16>, vector<8x384xf32> -> vector<8x384xf32>
    %1106 = arith.addf %1105, %6 : vector<8x384xf32>
    %c1_483 = arith.constant 1 : index
    %c0_484 = arith.constant 0 : index
    %c0_485 = arith.constant 0 : index
    %1107 = vector.load %arg16[%c1_483, %c0_484, %c0_485] : memref<2x8x128xf32, #tpu.memory_space<vmem>>, vector<1x8x128xf32>
    %1108 = vector.shape_cast %1107 : vector<1x8x128xf32> to vector<8x128xf32>
    %1109 = arith.truncf %1108 : vector<8x128xf32> to vector<8x128xbf16>
    %c0_486 = arith.constant 0 : index
    %c0_487 = arith.constant 0 : index
    %1110 = vector.load %arg11[%c0_486, %c0_487] : memref<128x256xbf16, #tpu.memory_space<vmem>>, vector<128x256xbf16>
    %cst_488 = arith.constant dense<0.000000e+00> : vector<8x256xf32>
    %1111 = tpu.matmul %1109, %1110, %cst_488 {dimension_numbers = #tpu.dot_dimension_numbers<[1], [0], [0], [1], [0, 0, 1, 1], [], []>} : vector<8x128xbf16>, vector<128x256xbf16>, vector<8x256xf32> -> vector<8x256xf32>
    %1112 = vector.extract_strided_slice %1106 {offsets = [0, 0], sizes = [8, 128], strides = [1, 1]} : vector<8x384xf32> to vector<8x128xf32>
    %1113 = vector.extract_strided_slice %1111 {offsets = [0, 0], sizes = [8, 128], strides = [1, 1]} : vector<8x256xf32> to vector<8x128xf32>
    %1114 = arith.addf %1112, %1113 : vector<8x128xf32>
    %1115 = arith.negf %1114 : vector<8x128xf32>
    %1116 = math.exp %1115 : vector<8x128xf32>
    %cst_489 = arith.constant 1.000000e+00 : f32
    %1117 = vector.broadcast %cst_489 : f32 to vector<8x128xf32>
    %1118 = arith.addf %1117, %1116 : vector<8x128xf32>
    %1119 = arith.divf %1117, %1118 : vector<8x128xf32>
    %1120 = vector.extract_strided_slice %1106 {offsets = [0, 128], sizes = [8, 128], strides = [1, 1]} : vector<8x384xf32> to vector<8x128xf32>
    %1121 = vector.extract_strided_slice %1111 {offsets = [0, 128], sizes = [8, 128], strides = [1, 1]} : vector<8x256xf32> to vector<8x128xf32>
    %1122 = arith.addf %1120, %1121 : vector<8x128xf32>
    %1123 = arith.negf %1122 : vector<8x128xf32>
    %1124 = math.exp %1123 : vector<8x128xf32>
    %cst_490 = arith.constant 1.000000e+00 : f32
    %1125 = vector.broadcast %cst_490 : f32 to vector<8x128xf32>
    %1126 = arith.addf %1125, %1124 : vector<8x128xf32>
    %1127 = arith.divf %1125, %1126 : vector<8x128xf32>
    %1128 = vector.extract_strided_slice %1106 {offsets = [0, 256], sizes = [8, 128], strides = [1, 1]} : vector<8x384xf32> to vector<8x128xf32>
    %1129 = arith.mulf %1127, %1108 : vector<8x128xf32>
    %1130 = arith.truncf %1129 : vector<8x128xf32> to vector<8x128xbf16>
    %c0_491 = arith.constant 0 : index
    %c0_492 = arith.constant 0 : index
    %1131 = vector.load %arg12[%c0_491, %c0_492] : memref<128x128xbf16, #tpu.memory_space<vmem>>, vector<128x128xbf16>
    %cst_493 = arith.constant dense<0.000000e+00> : vector<8x128xf32>
    %1132 = tpu.matmul %1130, %1131, %cst_493 {dimension_numbers = #tpu.dot_dimension_numbers<[1], [0], [0], [1], [0, 0, 1, 1], [], []>} : vector<8x128xbf16>, vector<128x128xbf16>, vector<8x128xf32> -> vector<8x128xf32>
    %1133 = arith.addf %1128, %1132 : vector<8x128xf32>
    %1134 = math.tanh %1133 : vector<8x128xf32>
    %1135 = arith.mulf %1119, %1108 : vector<8x128xf32>
    %cst_494 = arith.constant 1.000000e+00 : f32
    %1136 = vector.broadcast %cst_494 : f32 to vector<8x128xf32>
    %1137 = arith.subf %1136, %1119 : vector<8x128xf32>
    %1138 = arith.mulf %1137, %1134 : vector<8x128xf32>
    %1139 = arith.addf %1135, %1138 : vector<8x128xf32>
    %c1_495 = arith.constant 1 : index
    %c0_496 = arith.constant 0 : index
    %c0_497 = arith.constant 0 : index
    %1140 = vector.load %arg16[%c1_495, %c0_496, %c0_497] : memref<2x8x128xf32, #tpu.memory_space<vmem>>, vector<1x8x128xf32>
    %1141 = vector.shape_cast %1140 : vector<1x8x128xf32> to vector<8x128xf32>
    %1142 = vector.shape_cast %1139 : vector<8x128xf32> to vector<1x8x128xf32>
    tpu.vector_store %arg16[%c1_495, %c0_496, %c0_497], %1142 {strides = array<i32>} : memref<2x8x128xf32, #tpu.memory_space<vmem>>, vector<1x8x128xf32>,
    %c13 = arith.constant 13 : index
    %c0_498 = arith.constant 0 : index
    %c0_499 = arith.constant 0 : index
    %1143 = vector.load %arg18[%c13, %c0_498, %c0_499] : memref<16x8x128xf32, #tpu.memory_space<vmem>>, vector<1x8x128xf32>
    %1144 = vector.shape_cast %1143 : vector<1x8x128xf32> to vector<8x128xf32>
    %1145 = vector.shape_cast %1139 : vector<8x128xf32> to vector<1x8x128xf32>
    tpu.vector_store %arg18[%c13, %c0_498, %c0_499], %1145 {strides = array<i32>} : memref<16x8x128xf32, #tpu.memory_space<vmem>>, vector<1x8x128xf32>,
    %1146 = vector.extract_strided_slice %11 {offsets = [112, 0], sizes = [8, 384], strides = [1, 1]} : vector<128x384xf32> to vector<8x384xf32>
    %1147 = arith.addf %1146, %3 : vector<8x384xf32>
    %c0_500 = arith.constant 0 : index
    %c0_501 = arith.constant 0 : index
    %c0_502 = arith.constant 0 : index
    %1148 = vector.load %arg16[%c0_500, %c0_501, %c0_502] : memref<2x8x128xf32, #tpu.memory_space<vmem>>, vector<1x8x128xf32>
    %1149 = vector.shape_cast %1148 : vector<1x8x128xf32> to vector<8x128xf32>
    %1150 = arith.truncf %1149 : vector<8x128xf32> to vector<8x128xbf16>
    %c0_503 = arith.constant 0 : index
    %c0_504 = arith.constant 0 : index
    %1151 = vector.load %arg7[%c0_503, %c0_504] : memref<128x256xbf16, #tpu.memory_space<vmem>>, vector<128x256xbf16>
    %cst_505 = arith.constant dense<0.000000e+00> : vector<8x256xf32>
    %1152 = tpu.matmul %1150, %1151, %cst_505 {dimension_numbers = #tpu.dot_dimension_numbers<[1], [0], [0], [1], [0, 0, 1, 1], [], []>} : vector<8x128xbf16>, vector<128x256xbf16>, vector<8x256xf32> -> vector<8x256xf32>
    %1153 = vector.extract_strided_slice %1147 {offsets = [0, 0], sizes = [8, 128], strides = [1, 1]} : vector<8x384xf32> to vector<8x128xf32>
    %1154 = vector.extract_strided_slice %1152 {offsets = [0, 0], sizes = [8, 128], strides = [1, 1]} : vector<8x256xf32> to vector<8x128xf32>
    %1155 = arith.addf %1153, %1154 : vector<8x128xf32>
    %1156 = arith.negf %1155 : vector<8x128xf32>
    %1157 = math.exp %1156 : vector<8x128xf32>
    %cst_506 = arith.constant 1.000000e+00 : f32
    %1158 = vector.broadcast %cst_506 : f32 to vector<8x128xf32>
    %1159 = arith.addf %1158, %1157 : vector<8x128xf32>
    %1160 = arith.divf %1158, %1159 : vector<8x128xf32>
    %1161 = vector.extract_strided_slice %1147 {offsets = [0, 128], sizes = [8, 128], strides = [1, 1]} : vector<8x384xf32> to vector<8x128xf32>
    %1162 = vector.extract_strided_slice %1152 {offsets = [0, 128], sizes = [8, 128], strides = [1, 1]} : vector<8x256xf32> to vector<8x128xf32>
    %1163 = arith.addf %1161, %1162 : vector<8x128xf32>
    %1164 = arith.negf %1163 : vector<8x128xf32>
    %1165 = math.exp %1164 : vector<8x128xf32>
    %cst_507 = arith.constant 1.000000e+00 : f32
    %1166 = vector.broadcast %cst_507 : f32 to vector<8x128xf32>
    %1167 = arith.addf %1166, %1165 : vector<8x128xf32>
    %1168 = arith.divf %1166, %1167 : vector<8x128xf32>
    %1169 = vector.extract_strided_slice %1147 {offsets = [0, 256], sizes = [8, 128], strides = [1, 1]} : vector<8x384xf32> to vector<8x128xf32>
    %1170 = arith.mulf %1168, %1149 : vector<8x128xf32>
    %1171 = arith.truncf %1170 : vector<8x128xf32> to vector<8x128xbf16>
    %c0_508 = arith.constant 0 : index
    %c0_509 = arith.constant 0 : index
    %1172 = vector.load %arg8[%c0_508, %c0_509] : memref<128x128xbf16, #tpu.memory_space<vmem>>, vector<128x128xbf16>
    %cst_510 = arith.constant dense<0.000000e+00> : vector<8x128xf32>
    %1173 = tpu.matmul %1171, %1172, %cst_510 {dimension_numbers = #tpu.dot_dimension_numbers<[1], [0], [0], [1], [0, 0, 1, 1], [], []>} : vector<8x128xbf16>, vector<128x128xbf16>, vector<8x128xf32> -> vector<8x128xf32>
    %1174 = arith.addf %1169, %1173 : vector<8x128xf32>
    %1175 = math.tanh %1174 : vector<8x128xf32>
    %1176 = arith.mulf %1160, %1149 : vector<8x128xf32>
    %cst_511 = arith.constant 1.000000e+00 : f32
    %1177 = vector.broadcast %cst_511 : f32 to vector<8x128xf32>
    %1178 = arith.subf %1177, %1160 : vector<8x128xf32>
    %1179 = arith.mulf %1178, %1175 : vector<8x128xf32>
    %1180 = arith.addf %1176, %1179 : vector<8x128xf32>
    %c0_512 = arith.constant 0 : index
    %c0_513 = arith.constant 0 : index
    %c0_514 = arith.constant 0 : index
    %1181 = vector.load %arg16[%c0_512, %c0_513, %c0_514] : memref<2x8x128xf32, #tpu.memory_space<vmem>>, vector<1x8x128xf32>
    %1182 = vector.shape_cast %1181 : vector<1x8x128xf32> to vector<8x128xf32>
    %1183 = vector.shape_cast %1180 : vector<8x128xf32> to vector<1x8x128xf32>
    tpu.vector_store %arg16[%c0_512, %c0_513, %c0_514], %1183 {strides = array<i32>} : memref<2x8x128xf32, #tpu.memory_space<vmem>>, vector<1x8x128xf32>,
    %1184 = arith.truncf %1180 : vector<8x128xf32> to vector<8x128xbf16>
    %c0_515 = arith.constant 0 : index
    %c0_516 = arith.constant 0 : index
    %1185 = vector.load %arg10[%c0_515, %c0_516] : memref<128x384xbf16, #tpu.memory_space<vmem>>, vector<128x384xbf16>
    %cst_517 = arith.constant dense<0.000000e+00> : vector<8x384xf32>
    %1186 = tpu.matmul %1184, %1185, %cst_517 {dimension_numbers = #tpu.dot_dimension_numbers<[1], [0], [0], [1], [0, 0, 1, 1], [], []>} : vector<8x128xbf16>, vector<128x384xbf16>, vector<8x384xf32> -> vector<8x384xf32>
    %1187 = arith.addf %1186, %6 : vector<8x384xf32>
    %c1_518 = arith.constant 1 : index
    %c0_519 = arith.constant 0 : index
    %c0_520 = arith.constant 0 : index
    %1188 = vector.load %arg16[%c1_518, %c0_519, %c0_520] : memref<2x8x128xf32, #tpu.memory_space<vmem>>, vector<1x8x128xf32>
    %1189 = vector.shape_cast %1188 : vector<1x8x128xf32> to vector<8x128xf32>
    %1190 = arith.truncf %1189 : vector<8x128xf32> to vector<8x128xbf16>
    %c0_521 = arith.constant 0 : index
    %c0_522 = arith.constant 0 : index
    %1191 = vector.load %arg11[%c0_521, %c0_522] : memref<128x256xbf16, #tpu.memory_space<vmem>>, vector<128x256xbf16>
    %cst_523 = arith.constant dense<0.000000e+00> : vector<8x256xf32>
    %1192 = tpu.matmul %1190, %1191, %cst_523 {dimension_numbers = #tpu.dot_dimension_numbers<[1], [0], [0], [1], [0, 0, 1, 1], [], []>} : vector<8x128xbf16>, vector<128x256xbf16>, vector<8x256xf32> -> vector<8x256xf32>
    %1193 = vector.extract_strided_slice %1187 {offsets = [0, 0], sizes = [8, 128], strides = [1, 1]} : vector<8x384xf32> to vector<8x128xf32>
    %1194 = vector.extract_strided_slice %1192 {offsets = [0, 0], sizes = [8, 128], strides = [1, 1]} : vector<8x256xf32> to vector<8x128xf32>
    %1195 = arith.addf %1193, %1194 : vector<8x128xf32>
    %1196 = arith.negf %1195 : vector<8x128xf32>
    %1197 = math.exp %1196 : vector<8x128xf32>
    %cst_524 = arith.constant 1.000000e+00 : f32
    %1198 = vector.broadcast %cst_524 : f32 to vector<8x128xf32>
    %1199 = arith.addf %1198, %1197 : vector<8x128xf32>
    %1200 = arith.divf %1198, %1199 : vector<8x128xf32>
    %1201 = vector.extract_strided_slice %1187 {offsets = [0, 128], sizes = [8, 128], strides = [1, 1]} : vector<8x384xf32> to vector<8x128xf32>
    %1202 = vector.extract_strided_slice %1192 {offsets = [0, 128], sizes = [8, 128], strides = [1, 1]} : vector<8x256xf32> to vector<8x128xf32>
    %1203 = arith.addf %1201, %1202 : vector<8x128xf32>
    %1204 = arith.negf %1203 : vector<8x128xf32>
    %1205 = math.exp %1204 : vector<8x128xf32>
    %cst_525 = arith.constant 1.000000e+00 : f32
    %1206 = vector.broadcast %cst_525 : f32 to vector<8x128xf32>
    %1207 = arith.addf %1206, %1205 : vector<8x128xf32>
    %1208 = arith.divf %1206, %1207 : vector<8x128xf32>
    %1209 = vector.extract_strided_slice %1187 {offsets = [0, 256], sizes = [8, 128], strides = [1, 1]} : vector<8x384xf32> to vector<8x128xf32>
    %1210 = arith.mulf %1208, %1189 : vector<8x128xf32>
    %1211 = arith.truncf %1210 : vector<8x128xf32> to vector<8x128xbf16>
    %c0_526 = arith.constant 0 : index
    %c0_527 = arith.constant 0 : index
    %1212 = vector.load %arg12[%c0_526, %c0_527] : memref<128x128xbf16, #tpu.memory_space<vmem>>, vector<128x128xbf16>
    %cst_528 = arith.constant dense<0.000000e+00> : vector<8x128xf32>
    %1213 = tpu.matmul %1211, %1212, %cst_528 {dimension_numbers = #tpu.dot_dimension_numbers<[1], [0], [0], [1], [0, 0, 1, 1], [], []>} : vector<8x128xbf16>, vector<128x128xbf16>, vector<8x128xf32> -> vector<8x128xf32>
    %1214 = arith.addf %1209, %1213 : vector<8x128xf32>
    %1215 = math.tanh %1214 : vector<8x128xf32>
    %1216 = arith.mulf %1200, %1189 : vector<8x128xf32>
    %cst_529 = arith.constant 1.000000e+00 : f32
    %1217 = vector.broadcast %cst_529 : f32 to vector<8x128xf32>
    %1218 = arith.subf %1217, %1200 : vector<8x128xf32>
    %1219 = arith.mulf %1218, %1215 : vector<8x128xf32>
    %1220 = arith.addf %1216, %1219 : vector<8x128xf32>
    %c1_530 = arith.constant 1 : index
    %c0_531 = arith.constant 0 : index
    %c0_532 = arith.constant 0 : index
    %1221 = vector.load %arg16[%c1_530, %c0_531, %c0_532] : memref<2x8x128xf32, #tpu.memory_space<vmem>>, vector<1x8x128xf32>
    %1222 = vector.shape_cast %1221 : vector<1x8x128xf32> to vector<8x128xf32>
    %1223 = vector.shape_cast %1220 : vector<8x128xf32> to vector<1x8x128xf32>
    tpu.vector_store %arg16[%c1_530, %c0_531, %c0_532], %1223 {strides = array<i32>} : memref<2x8x128xf32, #tpu.memory_space<vmem>>, vector<1x8x128xf32>,
    %c14 = arith.constant 14 : index
    %c0_533 = arith.constant 0 : index
    %c0_534 = arith.constant 0 : index
    %1224 = vector.load %arg18[%c14, %c0_533, %c0_534] : memref<16x8x128xf32, #tpu.memory_space<vmem>>, vector<1x8x128xf32>
    %1225 = vector.shape_cast %1224 : vector<1x8x128xf32> to vector<8x128xf32>
    %1226 = vector.shape_cast %1220 : vector<8x128xf32> to vector<1x8x128xf32>
    tpu.vector_store %arg18[%c14, %c0_533, %c0_534], %1226 {strides = array<i32>} : memref<16x8x128xf32, #tpu.memory_space<vmem>>, vector<1x8x128xf32>,
    %1227 = vector.extract_strided_slice %11 {offsets = [120, 0], sizes = [8, 384], strides = [1, 1]} : vector<128x384xf32> to vector<8x384xf32>
    %1228 = arith.addf %1227, %3 : vector<8x384xf32>
    %c0_535 = arith.constant 0 : index
    %c0_536 = arith.constant 0 : index
    %c0_537 = arith.constant 0 : index
    %1229 = vector.load %arg16[%c0_535, %c0_536, %c0_537] : memref<2x8x128xf32, #tpu.memory_space<vmem>>, vector<1x8x128xf32>
    %1230 = vector.shape_cast %1229 : vector<1x8x128xf32> to vector<8x128xf32>
    %1231 = arith.truncf %1230 : vector<8x128xf32> to vector<8x128xbf16>
    %c0_538 = arith.constant 0 : index
    %c0_539 = arith.constant 0 : index
    %1232 = vector.load %arg7[%c0_538, %c0_539] : memref<128x256xbf16, #tpu.memory_space<vmem>>, vector<128x256xbf16>
    %cst_540 = arith.constant dense<0.000000e+00> : vector<8x256xf32>
    %1233 = tpu.matmul %1231, %1232, %cst_540 {dimension_numbers = #tpu.dot_dimension_numbers<[1], [0], [0], [1], [0, 0, 1, 1], [], []>} : vector<8x128xbf16>, vector<128x256xbf16>, vector<8x256xf32> -> vector<8x256xf32>
    %1234 = vector.extract_strided_slice %1228 {offsets = [0, 0], sizes = [8, 128], strides = [1, 1]} : vector<8x384xf32> to vector<8x128xf32>
    %1235 = vector.extract_strided_slice %1233 {offsets = [0, 0], sizes = [8, 128], strides = [1, 1]} : vector<8x256xf32> to vector<8x128xf32>
    %1236 = arith.addf %1234, %1235 : vector<8x128xf32>
    %1237 = arith.negf %1236 : vector<8x128xf32>
    %1238 = math.exp %1237 : vector<8x128xf32>
    %cst_541 = arith.constant 1.000000e+00 : f32
    %1239 = vector.broadcast %cst_541 : f32 to vector<8x128xf32>
    %1240 = arith.addf %1239, %1238 : vector<8x128xf32>
    %1241 = arith.divf %1239, %1240 : vector<8x128xf32>
    %1242 = vector.extract_strided_slice %1228 {offsets = [0, 128], sizes = [8, 128], strides = [1, 1]} : vector<8x384xf32> to vector<8x128xf32>
    %1243 = vector.extract_strided_slice %1233 {offsets = [0, 128], sizes = [8, 128], strides = [1, 1]} : vector<8x256xf32> to vector<8x128xf32>
    %1244 = arith.addf %1242, %1243 : vector<8x128xf32>
    %1245 = arith.negf %1244 : vector<8x128xf32>
    %1246 = math.exp %1245 : vector<8x128xf32>
    %cst_542 = arith.constant 1.000000e+00 : f32
    %1247 = vector.broadcast %cst_542 : f32 to vector<8x128xf32>
    %1248 = arith.addf %1247, %1246 : vector<8x128xf32>
    %1249 = arith.divf %1247, %1248 : vector<8x128xf32>
    %1250 = vector.extract_strided_slice %1228 {offsets = [0, 256], sizes = [8, 128], strides = [1, 1]} : vector<8x384xf32> to vector<8x128xf32>
    %1251 = arith.mulf %1249, %1230 : vector<8x128xf32>
    %1252 = arith.truncf %1251 : vector<8x128xf32> to vector<8x128xbf16>
    %c0_543 = arith.constant 0 : index
    %c0_544 = arith.constant 0 : index
    %1253 = vector.load %arg8[%c0_543, %c0_544] : memref<128x128xbf16, #tpu.memory_space<vmem>>, vector<128x128xbf16>
    %cst_545 = arith.constant dense<0.000000e+00> : vector<8x128xf32>
    %1254 = tpu.matmul %1252, %1253, %cst_545 {dimension_numbers = #tpu.dot_dimension_numbers<[1], [0], [0], [1], [0, 0, 1, 1], [], []>} : vector<8x128xbf16>, vector<128x128xbf16>, vector<8x128xf32> -> vector<8x128xf32>
    %1255 = arith.addf %1250, %1254 : vector<8x128xf32>
    %1256 = math.tanh %1255 : vector<8x128xf32>
    %1257 = arith.mulf %1241, %1230 : vector<8x128xf32>
    %cst_546 = arith.constant 1.000000e+00 : f32
    %1258 = vector.broadcast %cst_546 : f32 to vector<8x128xf32>
    %1259 = arith.subf %1258, %1241 : vector<8x128xf32>
    %1260 = arith.mulf %1259, %1256 : vector<8x128xf32>
    %1261 = arith.addf %1257, %1260 : vector<8x128xf32>
    %c0_547 = arith.constant 0 : index
    %c0_548 = arith.constant 0 : index
    %c0_549 = arith.constant 0 : index
    %1262 = vector.load %arg16[%c0_547, %c0_548, %c0_549] : memref<2x8x128xf32, #tpu.memory_space<vmem>>, vector<1x8x128xf32>
    %1263 = vector.shape_cast %1262 : vector<1x8x128xf32> to vector<8x128xf32>
    %1264 = vector.shape_cast %1261 : vector<8x128xf32> to vector<1x8x128xf32>
    tpu.vector_store %arg16[%c0_547, %c0_548, %c0_549], %1264 {strides = array<i32>} : memref<2x8x128xf32, #tpu.memory_space<vmem>>, vector<1x8x128xf32>,
    %1265 = arith.truncf %1261 : vector<8x128xf32> to vector<8x128xbf16>
    %c0_550 = arith.constant 0 : index
    %c0_551 = arith.constant 0 : index
    %1266 = vector.load %arg10[%c0_550, %c0_551] : memref<128x384xbf16, #tpu.memory_space<vmem>>, vector<128x384xbf16>
    %cst_552 = arith.constant dense<0.000000e+00> : vector<8x384xf32>
    %1267 = tpu.matmul %1265, %1266, %cst_552 {dimension_numbers = #tpu.dot_dimension_numbers<[1], [0], [0], [1], [0, 0, 1, 1], [], []>} : vector<8x128xbf16>, vector<128x384xbf16>, vector<8x384xf32> -> vector<8x384xf32>
    %1268 = arith.addf %1267, %6 : vector<8x384xf32>
    %c1_553 = arith.constant 1 : index
    %c0_554 = arith.constant 0 : index
    %c0_555 = arith.constant 0 : index
    %1269 = vector.load %arg16[%c1_553, %c0_554, %c0_555] : memref<2x8x128xf32, #tpu.memory_space<vmem>>, vector<1x8x128xf32>
    %1270 = vector.shape_cast %1269 : vector<1x8x128xf32> to vector<8x128xf32>
    %1271 = arith.truncf %1270 : vector<8x128xf32> to vector<8x128xbf16>
    %c0_556 = arith.constant 0 : index
    %c0_557 = arith.constant 0 : index
    %1272 = vector.load %arg11[%c0_556, %c0_557] : memref<128x256xbf16, #tpu.memory_space<vmem>>, vector<128x256xbf16>
    %cst_558 = arith.constant dense<0.000000e+00> : vector<8x256xf32>
    %1273 = tpu.matmul %1271, %1272, %cst_558 {dimension_numbers = #tpu.dot_dimension_numbers<[1], [0], [0], [1], [0, 0, 1, 1], [], []>} : vector<8x128xbf16>, vector<128x256xbf16>, vector<8x256xf32> -> vector<8x256xf32>
    %1274 = vector.extract_strided_slice %1268 {offsets = [0, 0], sizes = [8, 128], strides = [1, 1]} : vector<8x384xf32> to vector<8x128xf32>
    %1275 = vector.extract_strided_slice %1273 {offsets = [0, 0], sizes = [8, 128], strides = [1, 1]} : vector<8x256xf32> to vector<8x128xf32>
    %1276 = arith.addf %1274, %1275 : vector<8x128xf32>
    %1277 = arith.negf %1276 : vector<8x128xf32>
    %1278 = math.exp %1277 : vector<8x128xf32>
    %cst_559 = arith.constant 1.000000e+00 : f32
    %1279 = vector.broadcast %cst_559 : f32 to vector<8x128xf32>
    %1280 = arith.addf %1279, %1278 : vector<8x128xf32>
    %1281 = arith.divf %1279, %1280 : vector<8x128xf32>
    %1282 = vector.extract_strided_slice %1268 {offsets = [0, 128], sizes = [8, 128], strides = [1, 1]} : vector<8x384xf32> to vector<8x128xf32>
    %1283 = vector.extract_strided_slice %1273 {offsets = [0, 128], sizes = [8, 128], strides = [1, 1]} : vector<8x256xf32> to vector<8x128xf32>
    %1284 = arith.addf %1282, %1283 : vector<8x128xf32>
    %1285 = arith.negf %1284 : vector<8x128xf32>
    %1286 = math.exp %1285 : vector<8x128xf32>
    %cst_560 = arith.constant 1.000000e+00 : f32
    %1287 = vector.broadcast %cst_560 : f32 to vector<8x128xf32>
    %1288 = arith.addf %1287, %1286 : vector<8x128xf32>
    %1289 = arith.divf %1287, %1288 : vector<8x128xf32>
    %1290 = vector.extract_strided_slice %1268 {offsets = [0, 256], sizes = [8, 128], strides = [1, 1]} : vector<8x384xf32> to vector<8x128xf32>
    %1291 = arith.mulf %1289, %1270 : vector<8x128xf32>
    %1292 = arith.truncf %1291 : vector<8x128xf32> to vector<8x128xbf16>
    %c0_561 = arith.constant 0 : index
    %c0_562 = arith.constant 0 : index
    %1293 = vector.load %arg12[%c0_561, %c0_562] : memref<128x128xbf16, #tpu.memory_space<vmem>>, vector<128x128xbf16>
    %cst_563 = arith.constant dense<0.000000e+00> : vector<8x128xf32>
    %1294 = tpu.matmul %1292, %1293, %cst_563 {dimension_numbers = #tpu.dot_dimension_numbers<[1], [0], [0], [1], [0, 0, 1, 1], [], []>} : vector<8x128xbf16>, vector<128x128xbf16>, vector<8x128xf32> -> vector<8x128xf32>
    %1295 = arith.addf %1290, %1294 : vector<8x128xf32>
    %1296 = math.tanh %1295 : vector<8x128xf32>
    %1297 = arith.mulf %1281, %1270 : vector<8x128xf32>
    %cst_564 = arith.constant 1.000000e+00 : f32
    %1298 = vector.broadcast %cst_564 : f32 to vector<8x128xf32>
    %1299 = arith.subf %1298, %1281 : vector<8x128xf32>
    %1300 = arith.mulf %1299, %1296 : vector<8x128xf32>
    %1301 = arith.addf %1297, %1300 : vector<8x128xf32>
    %c1_565 = arith.constant 1 : index
    %c0_566 = arith.constant 0 : index
    %c0_567 = arith.constant 0 : index
    %1302 = vector.load %arg16[%c1_565, %c0_566, %c0_567] : memref<2x8x128xf32, #tpu.memory_space<vmem>>, vector<1x8x128xf32>
    %1303 = vector.shape_cast %1302 : vector<1x8x128xf32> to vector<8x128xf32>
    %1304 = vector.shape_cast %1301 : vector<8x128xf32> to vector<1x8x128xf32>
    tpu.vector_store %arg16[%c1_565, %c0_566, %c0_567], %1304 {strides = array<i32>} : memref<2x8x128xf32, #tpu.memory_space<vmem>>, vector<1x8x128xf32>,
    %c15 = arith.constant 15 : index
    %c0_568 = arith.constant 0 : index
    %c0_569 = arith.constant 0 : index
    %1305 = vector.load %arg18[%c15, %c0_568, %c0_569] : memref<16x8x128xf32, #tpu.memory_space<vmem>>, vector<1x8x128xf32>
    %1306 = vector.shape_cast %1305 : vector<1x8x128xf32> to vector<8x128xf32>
    %1307 = vector.shape_cast %1301 : vector<8x128xf32> to vector<1x8x128xf32>
    tpu.vector_store %arg18[%c15, %c0_568, %c0_569], %1307 {strides = array<i32>} : memref<16x8x128xf32, #tpu.memory_space<vmem>>, vector<1x8x128xf32>,
    %c0_570 = arith.constant 0 : index
    %c0_571 = arith.constant 0 : index
    %c0_572 = arith.constant 0 : index
    %1308 = vector.load %arg18[%c0_570, %c0_571, %c0_572] : memref<16x8x128xf32, #tpu.memory_space<vmem>>, vector<16x8x128xf32>
    %1309 = vector.shape_cast %1308 : vector<16x8x128xf32> to vector<128x128xf32>
    %1310 = arith.truncf %1309 : vector<128x128xf32> to vector<128x128xbf16>
    %c0_573 = arith.constant 0 : index
    %c0_574 = arith.constant 0 : index
    %1311 = vector.load %arg14[%c0_573, %c0_574] : memref<128x128xbf16, #tpu.memory_space<vmem>>, vector<128x128xbf16>
    tpu.vector_store %arg14[%c0_573, %c0_574], %1310 {strides = array<i32>} : memref<128x128xbf16, #tpu.memory_space<vmem>>, vector<128x128xbf16>,
    %c0_i32_575 = arith.constant 0 : i32
    %1312 = arith.cmpi eq, %arg0, %c0_i32_575 : i32
    %1313 = arith.extui %1312 : i1 to i32
    %c0_i32_576 = arith.constant 0 : i32
    %1314 = arith.cmpi ne, %1313, %c0_i32_576 : i32
    scf.if %1314 {
      %c0_577 = arith.constant 0 : index
      %c0_578 = arith.constant 0 : index
      %c0_579 = arith.constant 0 : index
      %1315 = vector.load %arg16[%c0_577, %c0_578, %c0_579] : memref<2x8x128xf32, #tpu.memory_space<vmem>>, vector<2x8x128xf32>
      %c0_580 = arith.constant 0 : index
      %c0_581 = arith.constant 0 : index
      %c0_582 = arith.constant 0 : index
      %1316 = vector.load %arg15[%c0_580, %c0_581, %c0_582] : memref<2x8x128xf32, #tpu.memory_space<vmem>>, vector<2x8x128xf32>
      tpu.vector_store %arg15[%c0_580, %c0_581, %c0_582], %1315 {strides = array<i32>} : memref<2x8x128xf32, #tpu.memory_space<vmem>>, vector<2x8x128xf32>,
    } else {
    }
    return
  }
  func.func @transform_0(%arg0: i32) -> (i32, i32, i32) {
    %c0_i32 = arith.constant 0 : i32
    %c0_i32_0 = arith.constant 0 : i32
    %c0_i32_1 = arith.constant 0 : i32
    return %arg0, %c0_i32, %c0_i32_0 : i32, i32, i32
  }
  func.func @transform_1(%arg0: i32) -> (i32, i32) {
    %c0_i32 = arith.constant 0 : i32
    %c0_i32_0 = arith.constant 0 : i32
    %c0_i32_1 = arith.constant 0 : i32
    return %c0_i32, %c0_i32_0 : i32, i32
  }
  func.func @transform_2(%arg0: i32) -> (i32, i32) {
    %c0_i32 = arith.constant 0 : i32
    %c0_i32_0 = arith.constant 0 : i32
    %c0_i32_1 = arith.constant 0 : i32
    return %c0_i32, %c0_i32_0 : i32, i32
  }
  func.func @transform_3(%arg0: i32) -> (i32, i32) {
    %c0_i32 = arith.constant 0 : i32
    %c0_i32_0 = arith.constant 0 : i32
    %c0_i32_1 = arith.constant 0 : i32
    return %c0_i32, %c0_i32_0 : i32, i32
  }
  func.func @transform_4(%arg0: i32) -> (i32, i32) {
    %c0_i32 = arith.constant 0 : i32
    %c0_i32_0 = arith.constant 0 : i32
    %c0_i32_1 = arith.constant 0 : i32
    return %c0_i32, %c0_i32_0 : i32, i32
  }
  func.func @transform_5(%arg0: i32) -> (i32, i32) {
    %c0_i32 = arith.constant 0 : i32
    %c0_i32_0 = arith.constant 0 : i32
    %c0_i32_1 = arith.constant 0 : i32
    return %c0_i32, %c0_i32_0 : i32, i32
  }
  func.func @transform_6(%arg0: i32) -> (i32, i32) {
    %c0_i32 = arith.constant 0 : i32
    %c0_i32_0 = arith.constant 0 : i32
    %c0_i32_1 = arith.constant 0 : i32
    return %c0_i32, %c0_i32_0 : i32, i32
  }
  func.func @transform_7(%arg0: i32) -> (i32, i32) {
    %c0_i32 = arith.constant 0 : i32
    %c0_i32_0 = arith.constant 0 : i32
    %c0_i32_1 = arith.constant 0 : i32
    return %c0_i32, %c0_i32_0 : i32, i32
  }
  func.func @transform_8(%arg0: i32) -> (i32, i32) {
    %c0_i32 = arith.constant 0 : i32
    %c0_i32_0 = arith.constant 0 : i32
    %c0_i32_1 = arith.constant 0 : i32
    return %c0_i32, %c0_i32_0 : i32, i32
  }
  func.func @transform_9(%arg0: i32) -> (i32, i32) {
    %c0_i32 = arith.constant 0 : i32
    %c0_i32_0 = arith.constant 0 : i32
    %c0_i32_1 = arith.constant 0 : i32
    return %c0_i32, %c0_i32_0 : i32, i32
  }
  func.func @transform_10(%arg0: i32) -> (i32, i32) {
    %c0_i32 = arith.constant 0 : i32
    %c0_i32_0 = arith.constant 0 : i32
    %c0_i32_1 = arith.constant 0 : i32
    return %c0_i32, %c0_i32_0 : i32, i32
  }
  func.func @transform_11(%arg0: i32) -> (i32, i32) {
    %c0_i32 = arith.constant 0 : i32
    %c0_i32_0 = arith.constant 0 : i32
    %c0_i32_1 = arith.constant 0 : i32
    return %c0_i32, %c0_i32_0 : i32, i32
  }
  func.func @transform_12(%arg0: i32) -> (i32, i32) {
    %c0_i32 = arith.constant 0 : i32
    %c0_i32_0 = arith.constant 0 : i32
    %c0_i32_1 = arith.constant 0 : i32
    return %c0_i32, %c0_i32_0 : i32, i32
  }
  func.func @transform_13(%arg0: i32) -> (i32, i32) {
    %c0_i32 = arith.constant 0 : i32
    %c0_i32_0 = arith.constant 0 : i32
    return %arg0, %c0_i32 : i32, i32
  }
  func.func @transform_14(%arg0: i32) -> (i32, i32, i32) {
    %c0_i32 = arith.constant 0 : i32
    %c0_i32_0 = arith.constant 0 : i32
    %c0_i32_1 = arith.constant 0 : i32
    %c0_i32_2 = arith.constant 0 : i32
    return %c0_i32, %c0_i32_0, %c0_i32_1 : i32, i32, i32
  }
}

</mosaic_0001>

<bundles_post_ra>
// kernel: tpu_custom_call.1
= control target key start
LH: loop header
LB: loop body
LE: loop exit
PB: predicated region body
PF: predicated region fallthrough
CT: control target
= control target key end

     0   :  { %20 = vsyncpa [#allocation6], 0  ;;  %s21285_s0 = inlined_call_operand.hbm [shape: f32[16,8,128], index: 0, kind: input, shape index: {}]   ;;  %s21286_s1 = inlined_call_operand.hbm [shape: f32[8,256], index: 1, kind: input, shape index: {}]   ;;  %s21287_s2 = inlined_call_operand.hbm [shape: bf16[256,128], index: 2, kind: input, shape index: {}]   ;;  %s21288_s3 = inlined_call_operand.vmem [shape: f32[1,128], index: 3, kind: input, shape index: {}]   ;;  %s21289_s4 = inlined_call_operand.hbm [shape: bf16[128,384], index: 4, kind: input, shape index: {}]   ;;  %s21290_s5 = inlined_call_operand.hbm [shape: bf16[128,384], index: 5, kind: input, shape index: {}]   ;;  %s21291_s6 = inlined_call_operand.hbm [shape: bf16[128,256], index: 6, kind: input, shape index: {}]   ;;  %s21292_s7 = inlined_call_operand.hbm [shape: bf16[128,128], index: 7, kind: input, shape index: {}]   ;;  %s21293_s8 = inlined_call_operand.vmem [shape: f32[1,384], index: 8, kind: input, shape index: {}]   ;;  %s21294_s9 = inlined_call_operand.hbm [shape: bf16[128,384], index: 9, kind: input, shape index: {}]   ;;  %s21295_s10 = inlined_call_operand.hbm [shape: bf16[128,256], index: 10, kind: input, shape index: {}]   ;;  %s21296_s11 = inlined_call_operand.hbm [shape: bf16[128,128], index: 11, kind: input, shape index: {}]   ;;  %s21297_s12 = inlined_call_operand.vmem [shape: f32[1,384], index: 12, kind: input, shape index: {}]   ;;  %s21298_s13 = inlined_call_operand.hbm [shape: bf16[128,128], index: 13, kind: output, shape index: {0}]   ;;  %s21299_s14 = inlined_call_operand.hbm [shape: f32[2,8,128], index: 14, kind: output, shape index: {1}]  }
   0x1   :  { %21 = vsyncpa [#allocation9], 0 }
   0x2   :  { %22 = vsyncpa [#allocation12], 0 }
   0x3   :  { %23 = vsyncpa [#allocation15], 0 }
   0x4   :  { %24 = vsyncpa [#allocation18], 0 }
   0x5   :  { %25 = vsyncpa [#allocation21], 0 }
   0x6   :  { %26 = vsyncpa [#allocation7], 0 }
   0x7   :  { %27 = vsyncpa [#allocation24], 0  ;;  %s18357_s29 = smov [#allocation8]   ;;  %s18358_s15 = smov [#allocation11]  }
   0x8   :  { %s46_s30 = sshll.u32 %s18357_s29, 4  ;;  %s69_s16 = sshll.u32 %s18358_s15, 4  ;;  %s47_s30 = int_to_ptr.vmem [resolvable:$true] %s46_s30  ;;  %s18453_s16 = int_to_ptr.vmem [resolvable:$true] %s69_s16 }
   0x9   :  { %s18077_s19 = scalar_lea.hbm %s21286_s1, 256 }
   0xa   :  { %p18078_p0 = scmp.ne.s32.totalorder %s21286_s1, %s18077_s19  ;;  %p18081_p1 = scmp.lt.u32.totalorder %s18077_s19, %s21286_s1 }
   0xc   :  { %p18083_p2 = pnand %p18081_p1, %p18078_p0 }
   0xe   :  { %18086 = shalt.err (!%p18083_p2)
}
   0xf   :  { %s18087_s24 = scalar_lea.vmem %s47_s30, 256  ;;  %p18092_p4 = scmp.lt.s32.totalorder %s47_s30, %s47_s30 }
  0x10   :  { %p18088_p3 = scmp.ne.s32.totalorder %s47_s30, %s18087_s24  ;;  %p18093_p5 = scmp.lt.s32.totalorder %s18087_s24, %s18087_s24 }
  0x12   :  { %p18094_p6 = por %p18093_p5, %p18092_p4 }
  0x14   :  { %p18095_p7 = pnand %p18094_p6, %p18088_p3 }
  0x16   :  { %18098 = shalt.err (!%p18095_p7)
}
  0x17   :  { %49 = dma.hbm_to_vmem [thread:$0]  %s21286_s1, 256, %s47_s30, [#allocation9]  }
  0x18   :  { %s18099_s29 = scalar_lea.hbm %s21289_s4, 3072 }
  0x19   :  { %p18100_p8 = scmp.ne.s32.totalorder %s21289_s4, %s18099_s29  ;;  %p18103_p9 = scmp.lt.u32.totalorder %s18099_s29, %s21289_s4 }
  0x1b   :  { %p18105_p10 = pnand %p18103_p9, %p18100_p8 }
  0x1d   :  { %18108 = shalt.err (!%p18105_p10)
}
  0x1e   :  { %s18109_s20 = scalar_lea.vmem %s18453_s16, 3072  ;;  %p18114_p12 = scmp.lt.s32.totalorder %s18453_s16, %s18453_s16 }
  0x1f   :  { %p18110_p11 = scmp.ne.s32.totalorder %s18453_s16, %s18109_s20  ;;  %p18115_p13 = scmp.lt.s32.totalorder %s18109_s20, %s18109_s20 }
  0x21   :  { %p18116_p0 = por %p18115_p13, %p18114_p12 }
  0x23   :  { %p18117_p1 = pnand %p18116_p0, %p18110_p11 }
  0x25   :  { %18120 = shalt.err (!%p18117_p1)
}
  0x26   :  { %s18359_s1 = smov 192   ;;  %s18360_s30 = smov 12  }
  0x27   :  { %75 = dma.hbm_to_vmem [thread:$0]  %s21289_s4, 3072, %s18453_s16, [#allocation12], %s18359_s1, %s18359_s1, %s18360_s30  }
  0x28   :  { %s18361_s23 = smov [#allocation14]   ;;  %s18362_s25 = smov [#allocation17]  }
  0x29   :  { %s93_s24 = sshll.u32 %s18361_s23, 4  ;;  %s119_s26 = sshll.u32 %s18362_s25, 4  ;;  %s94_s24 = int_to_ptr.vmem [resolvable:$true] %s93_s24  ;;  %s18487_s26 = int_to_ptr.vmem [resolvable:$true] %s119_s26 }
  0x2a   :  { %s18121_s29 = scalar_lea.hbm %s21291_s6, 2048 }
  0x2b   :  { %p18122_p2 = scmp.ne.s32.totalorder %s21291_s6, %s18121_s29  ;;  %p18125_p3 = scmp.lt.u32.totalorder %s18121_s29, %s21291_s6 }
  0x2d   :  { %p18127_p4 = pnand %p18125_p3, %p18122_p2 }
  0x2f   :  { %18130 = shalt.err (!%p18127_p4)
}
  0x30   :  { %s18131_s4 = scalar_lea.vmem %s94_s24, 2048  ;;  %p18136_p6 = scmp.lt.s32.totalorder %s94_s24, %s94_s24 }
  0x31   :  { %p18132_p5 = scmp.ne.s32.totalorder %s94_s24, %s18131_s4  ;;  %p18137_p7 = scmp.lt.s32.totalorder %s18131_s4, %s18131_s4 }
  0x33   :  { %p18138_p8 = por %p18137_p7, %p18136_p6 }
  0x35   :  { %p18139_p9 = pnand %p18138_p8, %p18132_p5 }
  0x37   :  { %18142 = shalt.err (!%p18139_p9)
}
  0x38   :  { %s18363_s16 = smov 128   ;;  %s18364_s20 = smov 8  }
  0x39   :  { %99 = dma.hbm_to_vmem [thread:$0]  %s21291_s6, 2048, %s94_s24, [#allocation15], %s18363_s16, %s18363_s16, %s18364_s20  }
  0x3a   :  { %s18143_s27 = scalar_lea.hbm %s21294_s9, 3072 }
  0x3b   :  { %p18144_p10 = scmp.ne.s32.totalorder %s21294_s9, %s18143_s27  ;;  %p18147_p11 = scmp.lt.u32.totalorder %s18143_s27, %s21294_s9 }
  0x3d   :  { %p18149_p12 = pnand %p18147_p11, %p18144_p10 }
  0x3f   :  { %18152 = shalt.err (!%p18149_p12)
}
  0x40   :  { %s18153_s18 = scalar_lea.vmem %s18487_s26, 3072  ;;  %p18158_p0 = scmp.lt.s32.totalorder %s18487_s26, %s18487_s26 }
  0x41   :  { %p18154_p13 = scmp.ne.s32.totalorder %s18487_s26, %s18153_s18  ;;  %p18159_p1 = scmp.lt.s32.totalorder %s18153_s18, %s18153_s18 }
  0x43   :  { %p18160_p2 = por %p18159_p1, %p18158_p0 }
  0x45   :  { %p18161_p3 = pnand %p18160_p2, %p18154_p13 }
  0x47   :  { %18164 = shalt.err (!%p18161_p3)
}
  0x48   :  { %125 = dma.hbm_to_vmem [thread:$0]  %s21294_s9, 3072, %s18487_s26, [#allocation18], %s18359_s1, %s18359_s1, %s18360_s30  }
  0x49   :  { %s18365_s19 = smov [#allocation5]   ;;  %s18366_s21 = smov [#allocation10]  }
  0x4a   :  { %s33_s4 = sshll.u32 %s18365_s19, 4  ;;  %s55_s22 = sshll.u32 %s18366_s21, 4  ;;  %s34_s4 = int_to_ptr.vmem [resolvable:$true] %s33_s4  ;;  %s18524_s22 = int_to_ptr.vmem [resolvable:$true] %s55_s22 }
  0x4b   :  { %s18165_s27 = scalar_lea.hbm %s21285_s0, 2048 }
  0x4c   :  { %p18166_p4 = scmp.ne.s32.totalorder %s21285_s0, %s18165_s27  ;;  %p18169_p5 = scmp.lt.u32.totalorder %s18165_s27, %s21285_s0 }
  0x4e   :  { %p18171_p6 = pnand %p18169_p5, %p18166_p4 }
  0x50   :  { %18174 = shalt.err (!%p18171_p6)
}
  0x51   :  { %s18175_s9 = scalar_lea.vmem %s34_s4, 2048  ;;  %p18180_p8 = scmp.lt.s32.totalorder %s34_s4, %s34_s4 }
  0x52   :  { %p18176_p7 = scmp.ne.s32.totalorder %s34_s4, %s18175_s9  ;;  %p18181_p9 = scmp.lt.s32.totalorder %s18175_s9, %s18175_s9 }
  0x54   :  { %p18182_p10 = por %p18181_p9, %p18180_p8 }
  0x56   :  { %p18183_p11 = pnand %p18182_p10, %p18176_p7 }
  0x58   :  { %18186 = shalt.err (!%p18183_p11)
}
  0x59   :  { %39 = dma.hbm_to_vmem [thread:$0]  %s21285_s0, 2048, %s34_s4, [#allocation6], %s18363_s16, %s18363_s16, %s18364_s20  }
  0x5a   :  { %s18187_s19 = scalar_lea.hbm %s21287_s2, 2048 }
  0x5b   :  { %p18188_p12 = scmp.ne.s32.totalorder %s21287_s2, %s18187_s19  ;;  %p18191_p13 = scmp.lt.u32.totalorder %s18187_s19, %s21287_s2 }
  0x5d   :  { %p18193_p0 = pnand %p18191_p13, %p18188_p12 }
  0x5f   :  { %18196 = shalt.err (!%p18193_p0)
}
  0x60   :  { %s18197_s28 = scalar_lea.vmem %s18524_s22, 2048  ;;  %p18202_p2 = scmp.lt.s32.totalorder %s18524_s22, %s18524_s22 }
  0x61   :  { %p18198_p1 = scmp.ne.s32.totalorder %s18524_s22, %s18197_s28  ;;  %p18203_p3 = scmp.lt.s32.totalorder %s18197_s28, %s18197_s28 }
  0x63   :  { %p18204_p4 = por %p18203_p3, %p18202_p2 }
  0x65   :  { %p18205_p5 = pnand %p18204_p4, %p18198_p1 }
  0x67   :  { %18208 = shalt.err (!%p18205_p5)
}
  0x68   :  { %s18367_s0 = smov 64   ;;  %s18368_s4 = smov 4  }
  0x69   :  { %61 = dma.hbm_to_vmem [thread:$0]  %s21287_s2, 2048, %s18524_s22, [#allocation9], %s18367_s0, %s18367_s0, %s18368_s4  }
  0x6a   :  { %s18369_s17 = smov [#allocation13]   ;;  %s18370_s26 = smov [#allocation16]  }
  0x6b   :  { %s81_s9 = sshll.u32 %s18369_s17, 4  ;;  %s105_s18 = sshll.u32 %s18370_s26, 4  ;;  %s82_s9 = int_to_ptr.vmem [resolvable:$true] %s81_s9  ;;  %s18561_s18 = int_to_ptr.vmem [resolvable:$true] %s105_s18 }
  0x6c   :  { %s18209_s19 = scalar_lea.hbm %s21290_s5, 3072 }
  0x6d   :  { %p18210_p6 = scmp.ne.s32.totalorder %s21290_s5, %s18209_s19  ;;  %p18213_p7 = scmp.lt.u32.totalorder %s18209_s19, %s21290_s5 }
  0x6f   :  { %p18215_p8 = pnand %p18213_p7, %p18210_p6 }
  0x71   :  { %18218 = shalt.err (!%p18215_p8)
}
  0x72   :  { %s18219_s2 = scalar_lea.vmem %s82_s9, 3072  ;;  %p18224_p10 = scmp.lt.s32.totalorder %s82_s9, %s82_s9 }
  0x73   :  { %p18220_p9 = scmp.ne.s32.totalorder %s82_s9, %s18219_s2  ;;  %p18225_p11 = scmp.lt.s32.totalorder %s18219_s2, %s18219_s2 }
  0x75   :  { %p18226_p12 = por %p18225_p11, %p18224_p10 }
  0x77   :  { %p18227_p13 = pnand %p18226_p12, %p18220_p9 }
  0x79   :  { %18230 = shalt.err (!%p18227_p13)
}
  0x7a   :  { %87 = dma.hbm_to_vmem [thread:$0]  %s21290_s5, 3072, %s82_s9, [#allocation12], %s18359_s1, %s18359_s1, %s18360_s30  }
  0x7b   :  { %s18231_s17 = scalar_lea.hbm %s21292_s7, 1024 }
  0x7c   :  { %p18232_p0 = scmp.ne.s32.totalorder %s21292_s7, %s18231_s17  ;;  %p18235_p1 = scmp.lt.u32.totalorder %s18231_s17, %s21292_s7 }
  0x7e   :  { %p18237_p2 = pnand %p18235_p1, %p18232_p0 }
  0x80   :  { %18240 = shalt.err (!%p18237_p2)
}
  0x81   :  { %s18241_s21 = scalar_lea.vmem %s18561_s18, 1024  ;;  %p18246_p4 = scmp.lt.s32.totalorder %s18561_s18, %s18561_s18 }
  0x82   :  { %p18242_p3 = scmp.ne.s32.totalorder %s18561_s18, %s18241_s21  ;;  %p18247_p5 = scmp.lt.s32.totalorder %s18241_s21, %s18241_s21 }
  0x84   :  { %p18248_p6 = por %p18247_p5, %p18246_p4 }
  0x86   :  { %p18249_p7 = pnand %p18248_p6, %p18242_p3 }
  0x88   :  { %18252 = shalt.err (!%p18249_p7)
}
  0x89   :  { %111 = dma.hbm_to_vmem [thread:$0]  %s21292_s7, 1024, %s18561_s18, [#allocation15], %s18367_s0, %s18367_s0, %s18368_s4  }
  0x8a   :  { %s18371_s30 = smov [#allocation19]   ;;  %s18372_s23 = smov [#allocation20]  }
  0x8b   :  { %s131_s9 = sshll.u32 %s18371_s30, 4  ;;  %s143_s25 = sshll.u32 %s18372_s23, 4  ;;  %s132_s9 = int_to_ptr.vmem [resolvable:$true] %s131_s9  ;;  %s18598_s25 = int_to_ptr.vmem [resolvable:$true] %s143_s25 }
  0x8c   :  { %s18253_s22 = scalar_lea.hbm %s21295_s10, 2048 }
  0x8d   :  { %p18254_p8 = scmp.ne.s32.totalorder %s21295_s10, %s18253_s22  ;;  %p18257_p9 = scmp.lt.u32.totalorder %s18253_s22, %s21295_s10 }
  0x8f   :  { %p18259_p10 = pnand %p18257_p9, %p18254_p8 }
  0x91   :  { %18262 = shalt.err (!%p18259_p10)
}
  0x92   :  { %s18263_s7 = scalar_lea.vmem %s132_s9, 2048  ;;  %p18268_p12 = scmp.lt.s32.totalorder %s132_s9, %s132_s9 }
  0x93   :  { %p18264_p11 = scmp.ne.s32.totalorder %s132_s9, %s18263_s7  ;;  %p18269_p13 = scmp.lt.s32.totalorder %s18263_s7, %s18263_s7 }
  0x95   :  { %p18270_p0 = por %p18269_p13, %p18268_p12 }
  0x97   :  { %p18271_p1 = pnand %p18270_p0, %p18264_p11 }
  0x99   :  { %18274 = shalt.err (!%p18271_p1)
}
  0x9a   :  { %137 = dma.hbm_to_vmem [thread:$0]  %s21295_s10, 2048, %s132_s9, [#allocation18], %s18363_s16, %s18363_s16, %s18364_s20  }
  0x9b   :  { %s18275_s19 = scalar_lea.hbm %s21296_s11, 1024 }
  0x9c   :  { %p18276_p2 = scmp.ne.s32.totalorder %s21296_s11, %s18275_s19  ;;  %p18279_p3 = scmp.lt.u32.totalorder %s18275_s19, %s21296_s11 }
  0x9e   :  { %p18281_p4 = pnand %p18279_p3, %p18276_p2 }
  0xa0   :  { %18284 = shalt.err (!%p18281_p4)
}
  0xa1   :  { %s18285_s23 = scalar_lea.vmem %s18598_s25, 1024  ;;  %p18290_p6 = scmp.lt.s32.totalorder %s18598_s25, %s18598_s25 }
  0xa2   :  { %p18286_p5 = scmp.ne.s32.totalorder %s18598_s25, %s18285_s23  ;;  %p18291_p7 = scmp.lt.s32.totalorder %s18285_s23, %s18285_s23 }
  0xa4   :  { %p18292_p8 = por %p18291_p7, %p18290_p6 }
  0xa6   :  { %p18293_p9 = pnand %p18292_p8, %p18286_p5 }
  0xa8   :  { %18296 = shalt.err (!%p18293_p9)
}
  0xa9   :  { %149 = dma.hbm_to_vmem [thread:$0]  %s21296_s11, 1024, %s18598_s25, [#allocation21], %s18367_s0, %s18367_s0, %s18368_s4  }
  0xaa   :  { %18341 = dma.done.wait [#allocation6], 2048  }
  0xab   :  { %18342 = vsyncadd [#allocation6], 4294965248 }
  0xac   :  { %18343 = dma.done.wait [#allocation9], 2304  }
  0xad   :  { %18344 = vsyncadd [#allocation9], 4294964992 }
  0xae   :  { %18345 = dma.done.wait [#allocation12], 6144  }
  0xaf   :  { %18346 = vsyncadd [#allocation12], 4294961152 }
  0xb0   :  { %18347 = dma.done.wait [#allocation15], 3072  }
  0xb1   :  { %18348 = vsyncadd [#allocation15], 4294964224 }
  0xb2   :  { %18349 = dma.done.wait [#allocation18], 5120  }
  0xb3   :  { %18350 = vsyncadd [#allocation18], 4294962176 }
  0xb4   :  { %18351 = dma.done.wait [#allocation21], 1024  }
  0xb5   :  { %18352 = vsyncadd [#allocation21], 4294966272  ;;  %v16701_v0 = vld [vmem:[#allocation10 + $0x40] sm:$0xff]   ;;  %v16703_v2 = vld [vmem:[#allocation10 + $0x48] sm:$0xff]   ;;  %v21305_v31 = vmov 0.0   ;;  %v21303_v46 = vmov 0  }
  0xb6   :  { %v16702_v1 = vld [vmem:[#allocation10] sm:$0xff]   ;;  %15013 = vmatprep.subr.bf16.mxu0 %v16701_v0  ;;  %v16704_v3 = vld [vmem:[#allocation10 + $0x8] sm:$0xff]   ;;  %v16705_v4 = vld [vmem:[#allocation10 + $0x50] sm:$0xff]   ;;  %582 = vmatprep.mubr.bf16.mxu1 %v21303_v46  ;;  %vm18375_vm0 = vmmov 0   ;;  %s18377_s28 = smov [#allocation22]  }
  0xb7   :  { %15014 = vmatpush3.bf16.msra.mxu0 %v16702_v1  ;;  %v16706_v5 = vld [vmem:[#allocation10 + $0x10] sm:$0xff]   ;;  %v16707_v6 = vld [vmem:[#allocation10 + $0x58] sm:$0xff]   ;;  %v16709_v8 = vld [vmem:[#allocation10 + $0x60] sm:$0xff]   ;;  %s13620_s29 = sshll.u32 %s18377_s28, 4  ;;  %s21248_s29 = int_to_ptr.vmem [resolvable:$true] %s13620_s29 }
  0xb8   :  { %15015 = vmatprep.subr.bf16.mxu0 %v16703_v2  ;;  %v16708_v7 = vld [vmem:[#allocation10 + $0x18] sm:$0xff]   ;;  %v16710_v9 = vld [vmem:[#allocation10 + $0x20] sm:$0xff]   ;;  %v16711_v10 = vld [vmem:[#allocation10 + $0x68] sm:$0xff]  }
  0xb9   :  { %v188_v11 = vld [vmem:[#allocation8 + $0x8] sm:$0xff]  ;;  %v16717_v13 = vld [vmem:[#allocation13 + $0x4] ss:$12 sps:$4 sm:$0xff]   ;;  %v16719_v14 = vld [vmem:[#allocation13] ss:$12 sps:$4 sm:$0xff]  }
  0xba   :  { %v190_v12 = vpack.c.bf16 %v188_v11, %v188_v11  ;;  %v16712_v15 = vld [vmem:[#allocation10 + $0x28] sm:$0xff]   ;;  %v16713_v17 = vld [vmem:[#allocation10 + $0x70] sm:$0xff]   ;;  %550 = vmatprep.subr.bf16.mxu1 %v16717_v13  ;;  %v16723_v18 = vld [vmem:[#allocation13 + $0x18] ss:$12 sps:$4 sm:$0xff]  }
  0xbb   :  { %15016 = vmatpush3.bf16.msra.mxu0 %v16704_v3  ;;  %v16721_v16 = vld [vmem:[#allocation13 + $0x1c] ss:$12 sps:$4 sm:$0xff]   ;;  %551 = vmatpush1.bf16.msra.mxu1 %v16719_v14  ;;  %v16725_v19 = vld [vmem:[#allocation13 + $0x34] ss:$12 sps:$4 sm:$0xff]   ;;  %v16729_v24 = vld [vmem:[#allocation13 + $0x4c] ss:$12 sps:$4 sm:$0xff]  }
  0xbc   :  { %15017 = vmatprep.subr.bf16.mxu0 %v16705_v4  ;;  %358 = vmatprep.mubr.bf16.mxu0 %v190_v12  ;;  %v16714_v20 = vld [vmem:[#allocation10 + $0x30] sm:$0xff]   ;;  %v16715_v21 = vld [vmem:[#allocation10 + $0x78] sm:$0xff]   ;;  %v16735_v30 = vld [vmem:[#allocation13 + $0x60] ss:$12 sps:$4 sm:$0xff]  }
  0xbd   :  { %552 = vmatprep.subr.bf16.mxu1 %v16721_v16  ;;  %v16716_v22 = vld [vmem:[#allocation10 + $0x38] sm:$0xff]   ;;  %v187_v25 = vld [vmem:[#allocation8] sm:$0xff]  ;;  %v16724_v33 = vld [vmem:[#allocation13 + $0x20] ss:$12 sps:$4 sm:$0xff]  }
  0xbe   :  { %v16727_v23 = vld [vmem:[#allocation13 + $0x30] ss:$12 sps:$4 sm:$0xff]   ;;  %v16720_v26 = vld [vmem:[#allocation13 + $0x8] ss:$12 sps:$4 sm:$0xff]   ;;  %v189_v28 = vpack.c.bf16 %v187_v25, %v187_v25  ;;  %v16739_v34 = vld [vmem:[#allocation13 + $0x78] ss:$12 sps:$4 sm:$0xff]  }
  0xbf   :  { %15018 = vmatpush3.bf16.msra.mxu0 %v16706_v5  ;;  %553 = vmatpush1.bf16.msra.mxu1 %v16723_v18  ;;  %v16731_v27 = vld [vmem:[#allocation13 + $0x48] ss:$12 sps:$4 sm:$0xff]   ;;  %v16733_v29 = vld [vmem:[#allocation13 + $0x64] ss:$12 sps:$4 sm:$0xff]   ;;  %v16740_v38 = vld [vmem:[#allocation13 + $0x80] ss:$12 sps:$4 sm:$0xff]  }
  0xc0   :  { %15019 = vmatprep.subr.bf16.mxu0 %v16707_v6  ;;  %554 = vmatprep.subr.bf16.mxu1 %v16725_v19  ;;  %v16737_v32 = vld [vmem:[#allocation13 + $0x7c] ss:$12 sps:$4 sm:$0xff]   ;;  %v16728_v35 = vld [vmem:[#allocation13 + $0x38] ss:$12 sps:$4 sm:$0xff]   ;;  %v16741_v39 = vld [vmem:[#allocation13 + $0x94] ss:$12 sps:$4 sm:$0xff]  }
  0xc1   :  { %v16732_v36 = vld [vmem:[#allocation13 + $0x50] ss:$12 sps:$4 sm:$0xff]   ;;  %v16736_v37 = vld [vmem:[#allocation13 + $0x68] ss:$12 sps:$4 sm:$0xff]   ;;  %v16744_v41 = vld [vmem:[#allocation13 + $0x98] ss:$12 sps:$4 sm:$0xff]  }
  0xc2   :  { %v16743_v40 = vld [vmem:[#allocation13 + $0x90] ss:$12 sps:$4 sm:$0xff]   ;;  %v16745_v42 = vld [vmem:[#allocation13 + $0xac] ss:$12 sps:$4 sm:$0xff]   ;;  %v16747_v43 = vld [vmem:[#allocation13 + $0xa8] ss:$12 sps:$4 sm:$0xff]  }
  0xc3   :  { %15020 = vmatpush3.bf16.msra.mxu0 %v16708_v7  ;;  %555 = vmatpush1.bf16.msra.mxu1 %v16727_v23  ;;  %v16748_v44 = vld [vmem:[#allocation13 + $0xb0] ss:$12 sps:$4 sm:$0xff]   ;;  %v16752_v47 = vld [vmem:[#allocation11 + $0x8] ss:$12 sps:$4 sm:$0xff]   ;;  %v16749_v58 = vld [vmem:[#allocation11] ss:$12 sps:$4 sm:$0xff]  }
  0xc4   :  { %15021 = vmatprep.subr.bf16.mxu0 %v16709_v8  ;;  %556 = vmatprep.subr.bf16.mxu1 %v16729_v24  ;;  %v16751_v45 = vld [vmem:[#allocation11 + $0x4] ss:$12 sps:$4 sm:$0xff]   ;;  %v655_v56 = vld [vmem:[#allocation5 + $0x8] sm:$0xff]  ;;  %v16756_v60 = vld [vmem:[#allocation11 + $0x20] ss:$12 sps:$4 sm:$0xff]  }
  0xc5   :  { %v13653_v48 = vld [vmem:[%s21288_s3] ss:$0 sm:$0xff]  ;;  %v16755_v59 = vld [vmem:[#allocation11 + $0x1c] ss:$12 sps:$4 sm:$0xff]   ;;  %v16753_v63 = vld [vmem:[#allocation11 + $0x18] ss:$12 sps:$4 sm:$0xff]  }
  0xc6   :  { %v654_v55 = vld [vmem:[#allocation5] sm:$0xff]  ;;  %v16760_v2 = vld [vmem:[#allocation11 + $0x38] ss:$12 sps:$4 sm:$0xff]   ;;  %v16772_v11 = vld [vmem:[#allocation11 + $0x80] ss:$12 sps:$4 sm:$0xff]  }
  0xc7   :  { %15022 = vmatpush3.bf16.msra.mxu0 %v16710_v9  ;;  %557 = vmatpush1.bf16.msra.mxu1 %v16731_v27  ;;  %v18655_v0 = vpack.c.bf16 %v655_v56, %v654_v55  ;;  %v16759_v1 = vld [vmem:[#allocation11 + $0x34] ss:$12 sps:$4 sm:$0xff]   ;;  %v16757_v3 = vld [vmem:[#allocation11 + $0x30] ss:$12 sps:$4 sm:$0xff]   ;;  %v16763_v4 = vld [vmem:[#allocation11 + $0x4c] ss:$12 sps:$4 sm:$0xff]  }
  0xc8   :  { %15023 = vmatprep.subr.bf16.mxu0 %v16711_v10  ;;  %558 = vmatprep.subr.bf16.mxu1 %v16733_v29  ;;  %v16764_v5 = vld [vmem:[#allocation11 + $0x50] ss:$12 sps:$4 sm:$0xff]   ;;  %v16761_v6 = vld [vmem:[#allocation11 + $0x48] ss:$12 sps:$4 sm:$0xff]   ;;  %v16765_v9 = vld [vmem:[#allocation11 + $0x60] ss:$12 sps:$4 sm:$0xff]  }
  0xc9   :  { %v16767_v7 = vld [vmem:[#allocation11 + $0x64] ss:$12 sps:$4 sm:$0xff]   ;;  %v16768_v8 = vld [vmem:[#allocation11 + $0x68] ss:$12 sps:$4 sm:$0xff]   ;;  %v16779_v16 = vld [vmem:[#allocation11 + $0xac] ss:$12 sps:$4 sm:$0xff]  }
  0xca   :  { %v16771_v10 = vld [vmem:[#allocation11 + $0x7c] ss:$12 sps:$4 sm:$0xff]   ;;  %v16769_v12 = vld [vmem:[#allocation11 + $0x78] ss:$12 sps:$4 sm:$0xff]   ;;  %v16775_v13 = vld [vmem:[#allocation11 + $0x94] ss:$12 sps:$4 sm:$0xff]  }
  0xcb   :  { %15024 = vmatpush3.bf16.msra.mxu0 %v16712_v15  ;;  %559 = vmatpush1.bf16.msra.mxu1 %v16735_v30  ;;  %v16776_v14 = vld [vmem:[#allocation11 + $0x98] ss:$12 sps:$4 sm:$0xff]   ;;  %v16773_v15 = vld [vmem:[#allocation11 + $0x90] ss:$12 sps:$4 sm:$0xff]   ;;  %v16777_v18 = vld [vmem:[#allocation11 + $0xa8] ss:$12 sps:$4 sm:$0xff]  }
  0xcc   :  { %15025 = vmatprep.subr.bf16.mxu0 %v16713_v17  ;;  %560 = vmatprep.subr.bf16.mxu1 %v16737_v32  ;;  %v16780_v17 = vld [vmem:[#allocation11 + $0xb0] ss:$12 sps:$4 sm:$0xff]   ;;  %v656_v19 = vld [vmem:[#allocation5 + $0x10] sm:$0xff]  ;;  %v661_v30 = vld [vmem:[#allocation5 + $0x38] sm:$0xff] }
  0xcd   :  { %v659_v23 = vld [vmem:[#allocation5 + $0x28] sm:$0xff]  ;;  %v16781_v24 = vld [vmem:[#allocation14] ss:$8 sps:$4 sm:$0xff]   ;;  %v16789_v32 = vld [vmem:[#allocation14 + $0x24] ss:$8 sps:$4 sm:$0xff]  }
  0xce   :  { %v660_v29 = vld [vmem:[#allocation5 + $0x30] sm:$0xff]  ;;  %v16804_v56 = vld [vmem:[#allocation14 + $0x74] ss:$8 sps:$4 sm:$0xff]  }
  0xcf   :  { %15026 = vmatpush3.bf16.msra.mxu0 %v16714_v20  ;;  %561 = vmatpush1.bf16.msra.mxu1 %v16739_v34  ;;  %v657_v20 = vld [vmem:[#allocation5 + $0x18] sm:$0xff]  ;;  %v663_v34 = vld [vmem:[#allocation5 + $0x48] sm:$0xff] }
  0xd0   :  { %15027 = vmatprep.subr.bf16.mxu0 %v16715_v21  ;;  %562 = vmatprep.subr.bf16.mxu1 %v16741_v39  ;;  %v16783_v21 = vld [vmem:[#allocation14 + $0x4] ss:$8 sps:$4 sm:$0xff]   ;;  %v671_v25 = vpack.c.bf16 %v657_v20, %v656_v19  ;;  %v16790_v39 = vld [vmem:[#allocation14 + $0x30] ss:$8 sps:$4 sm:$0xff]   ;;  %v407_v20 = vlaneseq }
  0xd3   :  { %15028 = vmatpush3.bf16.msra.mxu0 %v16716_v22  ;;  %563 = vmatpush1.bf16.msra.mxu1 %v16743_v40  ;;  %v658_v22 = vld [vmem:[#allocation5 + $0x20] sm:$0xff]  ;;  %v664_v40 = vld [vmem:[#allocation5 + $0x50] sm:$0xff] }
  0xd4   :  { %15492 = vmatprep.subr.bf16.mxu0 %v21305_v31  ;;  %564 = vmatprep.subr.bf16.mxu1 %v16745_v42  ;;  %v672_v27 = vpack.c.bf16 %v659_v23, %v658_v22  ;;  %v16795_v42 = vld [vmem:[#allocation14 + $0x44] ss:$8 sps:$4 sm:$0xff]  }
  0xd6   :  { %359 = vmatmul.mubr.bf16.vlgmr.msra.gmra.mrb[0].mxu0 %v189_v28  ;;  %v16784_v28 = vld [vmem:[#allocation14 + $0x10] ss:$8 sps:$4 sm:$0xff]  }
  0xd7   :  { %15493 = vmatpush3.bf16.msra.mxu0 %v16720_v26  ;;  %565 = vmatpush1.bf16.msra.mxu1 %v16747_v43  ;;  %v16786_v26 = vld [vmem:[#allocation14 + $0x14] ss:$8 sps:$4 sm:$0xff]  }
  0xd8   :  { %15494 = vmatprep.subr.bf16.mxu0 %v21305_v31  ;;  %15508 = vmatprep.mubr.msk.bf16.mxu0 %vm18375_vm0, %v21305_v31  ;;  %v666_v43 = vld [vmem:[#allocation5 + $0x60] sm:$0xff] }
  0xd9   :  { %838 = vmatprep.subr.bf16.mxu1 %v16751_v45  ;;  %v16793_v45 = vld [vmem:[#allocation14 + $0x40] ss:$8 sps:$4 sm:$0xff]  }
  0xdb   :  { %15495 = vmatpush3.bf16.msra.mxu0 %v16724_v33  ;;  %v662_v33 = vld [vmem:[#allocation5 + $0x40] sm:$0xff] }
  0xdc   :  { %15496 = vmatprep.subr.bf16.mxu0 %v21305_v31 }
  0xdf   :  { %15497 = vmatpush3.bf16.msra.mxu0 %v16728_v35  ;;  %v16787_v35 = vld [vmem:[#allocation14 + $0x20] ss:$8 sps:$4 sm:$0xff]  }
  0xe0   :  { %15498 = vmatprep.subr.bf16.mxu0 %v21305_v31 }
  0xe3   :  { %15499 = vmatpush3.bf16.msra.mxu0 %v16732_v36  ;;  %v673_v36 = vpack.c.bf16 %v661_v30, %v660_v29 }
  0xe4   :  { %15500 = vmatprep.subr.bf16.mxu0 %v21305_v31 }
  0xe7   :  { %15501 = vmatpush3.bf16.msra.mxu0 %v16736_v37  ;;  %v16792_v37 = vld [vmem:[#allocation14 + $0x34] ss:$8 sps:$4 sm:$0xff]  }
  0xe8   :  { %15502 = vmatprep.subr.bf16.mxu0 %v21305_v31 }
  0xeb   :  { %15503 = vmatpush3.bf16.msra.mxu0 %v16740_v38  ;;  %v674_v38 = vpack.c.bf16 %v663_v34, %v662_v33 }
  0xec   :  { %15504 = vmatprep.subr.bf16.mxu0 %v21305_v31 }
  0xef   :  { %15505 = vmatpush3.bf16.msra.mxu0 %v16744_v41  ;;  %v665_v41 = vld [vmem:[#allocation5 + $0x58] sm:$0xff] }
  0xf0   :  { %15506 = vmatprep.subr.bf16.mxu0 %v21305_v31 }
  0xf3   :  { %15507 = vmatpush3.bf16.msra.mxu0 %v16748_v44  ;;  %v667_v44 = vld [vmem:[#allocation5 + $0x68] sm:$0xff] }
  0xf4   :  { %15512 = vmatprep.subr.bf16.mxu0 %v16752_v47 }
 0x1a9   :  { %v15029_v49 = vpop.f32.mrb[0].mxu0 }
 0x1aa   :  { %v15030_v50 = vpop.f32.mrb[1].mxu0 }
 0x1ab   :  { %v15031_v51 = vadd.f32 %v15030_v50, %v15029_v49  ;;  %v15032_v52 = vpop.f32.mrb[2].mxu0  ;;  %v676_v49 = vpack.c.bf16 %v667_v44, %v666_v43  ;;  %v16796_v50 = vld [vmem:[#allocation14 + $0x50] ss:$8 sps:$4 sm:$0xff]  }
 0x1ac   :  { %v15033_v53 = vpop.f32.mrb[3].mxu0  ;;  %v669_v52 = vld [vmem:[#allocation5 + $0x78] sm:$0xff] }
 0x1ad   :  { %v361_v54 = vadd.f32 %v15031_v51, %v13653_v48  ;;  %v16798_v48 = vld [vmem:[#allocation14 + $0x54] ss:$8 sps:$4 sm:$0xff]   ;;  %v668_v51 = vld [vmem:[#allocation5 + $0x70] sm:$0xff] }
 0x1ae   :  { %v16801_v53 = vld [vmem:[#allocation14 + $0x64] ss:$8 sps:$4 sm:$0xff]   ;;  %v677_v55 = vpack.c.bf16 %v669_v52, %v668_v51 }
 0x1af   :  { %vm366_vm1 = vcmp.gt.f32.partialorder %v361_v54, 0.0  ;;  %v367_v57 = vmul.f32 0.01, %v361_v54 }
 0x1b1   :  { %v18649_v61 = vsel %vm366_vm1, %v361_v54, %v367_v57  ;;  %v16799_v54 = vld [vmem:[#allocation14 + $0x60] ss:$8 sps:$4 sm:$0xff]   ;;  %v16802_v57 = vld [vmem:[#allocation14 + $0x70] ss:$8 sps:$4 sm:$0xff]  }
 0x1b2   :  { %v18653_v62 = vpack.c.bf16 %v18649_v61, %v18649_v61 }
 0x1b4   :  { %583 = vmatmul.mubr.bf16.vlgmr.msra.gmra.mrb[0].mxu1 %v18653_v62  ;;  %15509 = vmatmul.mubr.bf16.vlgmr.msra.gmra.mrb[4].mxu0 %v18653_v62 }
 0x1b5   :  { %839 = vmatpush1.bf16.msra.mxu1 %v16749_v58  ;;  %15513 = vmatpush3.bf16.msra.mxu0 %v16752_v47  ;;  %v675_v47 = vpack.c.bf16 %v665_v41, %v664_v40  ;;  %v16805_v58 = vld [vmem:[#allocation16] sm:$0xff]  }
 0x1b6   :  { %840 = vmatprep.subr.bf16.mxu1 %v16755_v59  ;;  %15514 = vmatprep.subr.bf16.mxu0 %v16756_v60  ;;  %v16806_v59 = vld [vmem:[#allocation16 + $0x8] sm:$0xff]  }
 0x1b7   :  { %870 = vmatprep.mubr.bf16.mxu1 %v21303_v46  ;;  %15528 = vmatprep.mubr.bf16.mxu0 %v18655_v0 }
 0x1b9   :  { %841 = vmatpush1.bf16.msra.mxu1 %v16753_v63  ;;  %15515 = vmatpush3.bf16.msra.mxu0 %v16756_v60  ;;  %v16807_v60 = vld [vmem:[#allocation16 + $0x10] sm:$0xff]   ;;  %v16808_v63 = vld [vmem:[#allocation16 + $0x18] sm:$0xff]  }
 0x1ba   :  { %842 = vmatprep.subr.bf16.mxu1 %v16759_v1  ;;  %15516 = vmatprep.subr.bf16.mxu0 %v16760_v2  ;;  %v16810_v1 = vld [vmem:[#allocation16 + $0x28] sm:$0xff]  }
 0x1bd   :  { %843 = vmatpush1.bf16.msra.mxu1 %v16757_v3  ;;  %15517 = vmatpush3.bf16.msra.mxu0 %v16760_v2  ;;  %v16811_v2 = vld [vmem:[#allocation16 + $0x30] sm:$0xff]   ;;  %v16812_v3 = vld [vmem:[#allocation16 + $0x38] sm:$0xff]  }
 0x1be   :  { %844 = vmatprep.subr.bf16.mxu1 %v16763_v4  ;;  %15518 = vmatprep.subr.bf16.mxu0 %v16764_v5  ;;  %v18683_v4 = vld [vmem:[#allocation17] ss:$12 sps:$4 sm:$0xff]  }
 0x1c1   :  { %845 = vmatpush1.bf16.msra.mxu1 %v16761_v6  ;;  %15519 = vmatpush3.bf16.msra.mxu0 %v16764_v5  ;;  %v18685_v5 = vld [vmem:[#allocation17 + $0x4] ss:$12 sps:$4 sm:$0xff]   ;;  %v18687_v6 = vld [vmem:[#allocation17 + $0x1c] ss:$12 sps:$4 sm:$0xff]  }
 0x1c2   :  { %846 = vmatprep.subr.bf16.mxu1 %v16767_v7  ;;  %15520 = vmatprep.subr.bf16.mxu0 %v16768_v8  ;;  %v18690_v7 = vld [vmem:[#allocation17 + $0x18] ss:$12 sps:$4 sm:$0xff]  }
 0x1c5   :  { %847 = vmatpush1.bf16.msra.mxu1 %v16765_v9  ;;  %15521 = vmatpush3.bf16.msra.mxu0 %v16768_v8  ;;  %v18694_v8 = vld [vmem:[#allocation17 + $0x34] ss:$12 sps:$4 sm:$0xff]   ;;  %v18696_v9 = vld [vmem:[#allocation17 + $0x30] ss:$12 sps:$4 sm:$0xff]  }
 0x1c6   :  { %848 = vmatprep.subr.bf16.mxu1 %v16771_v10  ;;  %15522 = vmatprep.subr.bf16.mxu0 %v16772_v11  ;;  %v18700_v10 = vld [vmem:[#allocation17 + $0x48] ss:$12 sps:$4 sm:$0xff]  }
 0x1c9   :  { %849 = vmatpush1.bf16.msra.mxu1 %v16769_v12  ;;  %15523 = vmatpush3.bf16.msra.mxu0 %v16772_v11  ;;  %v18702_v11 = vld [vmem:[#allocation17 + $0x4c] ss:$12 sps:$4 sm:$0xff]  }
 0x1ca   :  { %850 = vmatprep.subr.bf16.mxu1 %v16775_v13  ;;  %15524 = vmatprep.subr.bf16.mxu0 %v16776_v14 }
 0x1cd   :  { %851 = vmatpush1.bf16.msra.mxu1 %v16773_v15  ;;  %15525 = vmatpush3.bf16.msra.mxu0 %v16776_v14 }
 0x1ce   :  { %852 = vmatprep.subr.bf16.mxu1 %v16779_v16  ;;  %15526 = vmatprep.subr.bf16.mxu0 %v16780_v17 }
 0x1d1   :  { %853 = vmatpush1.bf16.msra.mxu1 %v16777_v18  ;;  %15527 = vmatpush3.bf16.msra.mxu0 %v16780_v17 }
 0x1d2   :  { %1149 = vmatprep.subr.bf16.mxu0 %v16783_v21  ;;  %15544 = vmatprep.subr.bf16.mxu1 %v21305_v31  ;;  %v18707_v21 = vshrl.u32 %v407_v20, 7 }
 0x1d4   :  { %871 = vmatmul.mubr.bf16.vlgmr.msra.gmra.mrb[4].mxu1 %v18655_v0  ;;  %15529 = vmatmul.mubr.bf16.vlgmr.msra.gmra.mrb[8].mxu0 %v671_v25  ;;  %v16809_v0 = vld [vmem:[#allocation16 + $0x20] sm:$0xff]   ;;  %v21301_v22 = vsub.s32 0, %v18707_v21  ;;  %v21300_v23 = vsub.s32 2, %v18707_v21 }
 0x1d5   :  { %1150 = vmatpush1.bf16.msra.mxu0 %v16781_v24  ;;  %880 = vmatprep.mubr.bf16.mxu1 %v21303_v46  ;;  %v405_v24 = vld [vmem:[%s21293_s8] sm:$0x7] }
 0x1d6   :  { %1151 = vmatprep.subr.bf16.mxu0 %v16786_v26  ;;  %15532 = vmatprep.mubr.bf16.mxu0 %v672_v27  ;;  %v410_v26 = vrot.slane %v405_v24, %v21301_v22 }
 0x1d7   :  { %15545 = vmatpush3.bf16.msra.mxu1 %v16805_v58 }
 0x1d8   :  { %15546 = vmatprep.subr.bf16.mxu1 %v21305_v31 }
 0x1d9   :  { %1152 = vmatpush1.bf16.msra.mxu0 %v16784_v28 }
 0x1da   :  { %1153 = vmatprep.subr.bf16.mxu0 %v16789_v32 }
 0x1db   :  { %15547 = vmatpush3.bf16.msra.mxu1 %v16806_v59 }
 0x1dc   :  { %881 = vmatmul.mubr.bf16.gmra.mrb[8].mxu1 %v671_v25  ;;  %15533 = vmatmul.mubr.bf16.gmra.mrb[12].mxu0 %v673_v36  ;;  %v21302_v25 = vsub.s32 1, %v18707_v21 }
 0x1dd   :  { %1154 = vmatpush1.bf16.msra.mxu0 %v16787_v35  ;;  %890 = vmatprep.mubr.bf16.mxu1 %v21303_v46 }
 0x1de   :  { %1155 = vmatprep.subr.bf16.mxu0 %v16792_v37  ;;  %15536 = vmatprep.mubr.bf16.mxu0 %v674_v38  ;;  %v414_v28 = vrot.slane %v405_v24, %v21302_v25 }
 0x1df   :  { %15548 = vmatprep.subr.bf16.mxu1 %v21305_v31 }
 0x1e0   :  { %15549 = vmatpush3.bf16.msra.mxu1 %v16807_v60 }
 0x1e1   :  { %1156 = vmatpush1.bf16.msra.mxu0 %v16790_v39  ;;  %15550 = vmatprep.subr.bf16.mxu1 %v21305_v31 }
 0x1e2   :  { %1157 = vmatprep.subr.bf16.mxu0 %v16795_v42 }
 0x1e4   :  { %891 = vmatmul.mubr.bf16.gmra.mrb[12].mxu1 %v672_v27  ;;  %15537 = vmatmul.mubr.bf16.gmra.mrb[16].mxu0 %v675_v47  ;;  %v418_v27 = vrot.slane %v405_v24, %v21300_v23 }
 0x1e5   :  { %1158 = vmatpush1.bf16.msra.mxu0 %v16793_v45  ;;  %900 = vmatprep.mubr.bf16.mxu1 %v21303_v46 }
 0x1e6   :  { %1159 = vmatprep.subr.bf16.mxu0 %v16798_v48  ;;  %15540 = vmatprep.mubr.bf16.mxu0 %v676_v49 }
 0x1e7   :  { %15551 = vmatpush3.bf16.msra.mxu1 %v16808_v63 }
 0x1e8   :  { %15552 = vmatprep.subr.bf16.mxu1 %v21305_v31 }
 0x1e9   :  { %1160 = vmatpush1.bf16.msra.mxu0 %v16796_v50 }
 0x1ea   :  { %1161 = vmatprep.subr.bf16.mxu0 %v16801_v53 }
 0x1eb   :  { %15553 = vmatpush3.bf16.msra.mxu1 %v16809_v0 }
 0x1ec   :  { %901 = vmatmul.mubr.bf16.gmra.mrb[16].mxu1 %v673_v36  ;;  %15541 = vmatmul.mubr.bf16.gmra.mrb[20].mxu0 %v677_v55 }
 0x1ed   :  { %1162 = vmatpush1.bf16.msra.mxu0 %v16799_v54  ;;  %910 = vmatprep.mubr.bf16.mxu1 %v21303_v46 }
 0x1ee   :  { %1163 = vmatprep.subr.bf16.mxu0 %v16804_v56  ;;  %1181 = vmatprep.mubr.bf16.mxu0 %v21303_v46 }
 0x1ef   :  { %15554 = vmatprep.subr.bf16.mxu1 %v21305_v31 }
 0x1f0   :  { %15555 = vmatpush3.bf16.msra.mxu1 %v16810_v1 }
 0x1f1   :  { %1164 = vmatpush1.bf16.msra.mxu0 %v16802_v57  ;;  %15556 = vmatprep.subr.bf16.mxu1 %v21305_v31 }
 0x1f2   :  { %1478 = vmatprep.subr.bf16.mxu0 %v18685_v5 }
 0x1f4   :  { %911 = vmatmul.mubr.bf16.gmra.mrb[20].mxu1 %v674_v38  ;;  %1182 = vmatmul.mubr.bf16.vlgmr.msra.gmra.mrb[24].mxu0 %v18653_v62 }
 0x1f5   :  { %920 = vmatprep.mubr.bf16.mxu1 %v21303_v46  ;;  %1510 = vmatprep.mubr.bf16.mxu0 %v21303_v46 }
 0x1f6   :  { %15557 = vmatpush3.bf16.msra.mxu1 %v16811_v2  ;;  %1479 = vmatpush1.bf16.msra.mxu0 %v18683_v4 }
 0x1f7   :  { %15558 = vmatprep.subr.bf16.mxu1 %v21305_v31  ;;  %1480 = vmatprep.subr.bf16.mxu0 %v18687_v6 }
 0x1fa   :  { %15559 = vmatpush3.bf16.msra.mxu1 %v16812_v3  ;;  %1481 = vmatpush1.bf16.msra.mxu0 %v18690_v7 }
 0x1fb   :  { %15564 = vmatprep.subr.bf16.mxu1 %v21305_v31  ;;  %1482 = vmatprep.subr.bf16.mxu0 %v18694_v8 }
 0x1fc   :  { %921 = vmatmul.mubr.bf16.gmra.mrb[24].mxu1 %v675_v47 }
 0x1fd   :  { %930 = vmatprep.mubr.bf16.mxu1 %v21303_v46 }
 0x1fe   :  { %1483 = vmatpush1.bf16.msra.mxu0 %v18696_v9 }
 0x1ff   :  { %1484 = vmatprep.subr.bf16.mxu0 %v18702_v11 }
 0x202   :  { %1485 = vmatpush1.bf16.msra.mxu0 %v18700_v10 }
 0x204   :  { %931 = vmatmul.mubr.bf16.gmra.mrb[28].mxu1 %v676_v49 }
 0x205   :  { %940 = vmatprep.mubr.bf16.mxu1 %v21303_v46 }
 0x20c   :  { %941 = vmatmul.mubr.bf16.gmra.mrb[32].mxu1 %v677_v55 }
 0x20d   :  { %15560 = vmatprep.mubr.msk.bf16.mxu1 %vm18375_vm0, %v21305_v31 }
 0x287   :  { %v584_v12 = vpop.f32.mrb[0].mxu1  ;;  %v625_v13 = vpop.f32.mrb[4].mxu0 }
 0x288   :  { %v586_v14 = vpop.f32.mrb[1].mxu1  ;;  %v15510_v15 = vpop.f32.mrb[5].mxu0  ;;  %v18721_v29 = vadd.f32 %v584_v12, %v410_v26  ;;  %v18723_v30 = vadd.f32 %v625_v13, %v418_v27 }
 0x289   :  { %v588_v16 = vpop.f32.mrb[2].mxu1  ;;  %v628_v17 = vpop.f32.mrb[6].mxu0  ;;  %v18725_v32 = vadd.f32 %v586_v14, %v414_v28 }
 0x28a   :  { %v589_v18 = vpop.f32.mrb[3].mxu1  ;;  %v15511_v19 = vpop.f32.mrb[7].mxu0 }
 0x2a7   :  { %v872_v33 = vpop.f32.mrb[4].mxu1  ;;  %v15530_v34 = vpop.f32.mrb[8].mxu0 }
 0x2a8   :  { %v18728_v35 = vadd.f32 %v872_v33, %v18721_v29  ;;  %v18731_v36 = vadd.f32 %v15530_v34, %v18723_v30  ;;  %v874_v37 = vpop.f32.mrb[5].mxu1  ;;  %v985_v38 = vpop.f32.mrb[9].mxu0 }
 0x2a9   :  { %v18734_v39 = vadd.f32 %v874_v37, %v18725_v32  ;;  %v18737_v40 = vadd.f32 %v985_v38, %v18723_v30  ;;  %v876_v41 = vpop.f32.mrb[6].mxu1  ;;  %v15531_v42 = vpop.f32.mrb[10].mxu0 }
 0x2aa   :  { %v18740_v43 = vadd.f32 %v876_v41, %v18721_v29  ;;  %v18743_v44 = vadd.f32 %v15531_v42, %v18723_v30  ;;  %v878_v45 = vpop.f32.mrb[7].mxu1  ;;  %v988_v47 = vpop.f32.mrb[11].mxu0 }
 0x2ab   :  { %v18746_v48 = vadd.f32 %v878_v45, %v18725_v32  ;;  %v18749_v49 = vadd.f32 %v988_v47, %v18723_v30 }
 0x2af   :  { %v882_v50 = vpop.f32.mrb[8].mxu1  ;;  %v15534_v51 = vpop.f32.mrb[12].mxu0 }
 0x2b0   :  { %v18752_v52 = vadd.f32 %v882_v50, %v18721_v29  ;;  %v18755_v53 = vadd.f32 %v15534_v51, %v18723_v30  ;;  %v884_v54 = vpop.f32.mrb[9].mxu1  ;;  %v1001_v55 = vpop.f32.mrb[13].mxu0 }
 0x2b1   :  { %v18758_v56 = vadd.f32 %v884_v54, %v18725_v32  ;;  %v18761_v57 = vadd.f32 %v1001_v55, %v18723_v30  ;;  %v886_v58 = vpop.f32.mrb[10].mxu1  ;;  %v15535_v59 = vpop.f32.mrb[14].mxu0 }
 0x2b2   :  { %21307 = vst [vmem:[#allocation33_spill] sm:$0xff] %v18755_v53  ;;  %v18764_v60 = vadd.f32 %v886_v58, %v18721_v29  ;;  %v18767_v63 = vadd.f32 %v15535_v59, %v18723_v30  ;;  %v888_v0 = vpop.f32.mrb[11].mxu1  ;;  %v1004_v1 = vpop.f32.mrb[15].mxu0  ;;  %v18068_v53 = vld [vmem:[#allocation14 + $0x30] ss:$8 sps:$4 sm:$0xff]  }
 0x2b3   :  { %v18770_v2 = vadd.f32 %v888_v0, %v18725_v32  ;;  %v18773_v3 = vadd.f32 %v1004_v1, %v18723_v30 }
 0x2b4   :  { %21308 = vst [vmem:[#allocation34_spill] sm:$0xff] %v18767_v63  ;;  %v18065_v63 = vld [vmem:[#allocation14 + $0x24] ss:$8 sps:$4 sm:$0xff]  }
 0x2b5   :  { %21309 = vst [vmem:[#allocation35_spill] sm:$0xff] %v18773_v3 }
 0x2b7   :  { %v892_v12 = vpop.f32.mrb[12].mxu1  ;;  %v15538_v13 = vpop.f32.mrb[16].mxu0 }
 0x2b8   :  { %v18776_v14 = vadd.f32 %v892_v12, %v18721_v29  ;;  %v18779_v15 = vadd.f32 %v15538_v13, %v18723_v30  ;;  %v894_v16 = vpop.f32.mrb[13].mxu1  ;;  %v1017_v17 = vpop.f32.mrb[17].mxu0 }
 0x2b9   :  { %v18782_v18 = vadd.f32 %v894_v16, %v18725_v32  ;;  %v18785_v19 = vadd.f32 %v1017_v17, %v18723_v30  ;;  %v896_v20 = vpop.f32.mrb[14].mxu1  ;;  %v15539_v24 = vpop.f32.mrb[18].mxu0 }
 0x2ba   :  { %21310 = vst [vmem:[#allocation36_spill] sm:$0xff] %v18779_v15  ;;  %v18788_v26 = vadd.f32 %v896_v20, %v18721_v29  ;;  %v18791_v27 = vadd.f32 %v15539_v24, %v18723_v30  ;;  %v898_v28 = vpop.f32.mrb[15].mxu1  ;;  %v1020_v33 = vpop.f32.mrb[19].mxu0 }
 0x2bb   :  { %21311 = vst [vmem:[#allocation37_spill] sm:$0xff] %v18785_v19  ;;  %v18794_v34 = vadd.f32 %v898_v28, %v18725_v32  ;;  %v18797_v37 = vadd.f32 %v1020_v33, %v18723_v30  ;;  %v18062_v19 = vld [vmem:[#allocation14] ss:$8 sps:$4 sm:$0xff]  }
 0x2bc   :  { %21312 = vst [vmem:[#allocation38_spill] sm:$0xff] %v18791_v27 }
 0x2bd   :  { %21313 = vst [vmem:[#allocation39_spill] sm:$0xff] %v18794_v34  ;;  %21314 = vst [vmem:[#allocation40_spill] sm:$0xff] %v18797_v37  ;;  %v18965_v37 = vld [vmem:[#allocation19 + $0x74] ss:$8 sps:$4 sm:$0xff]  }
 0x2bf   :  { %v902_v38 = vpop.f32.mrb[16].mxu1  ;;  %v15542_v41 = vpop.f32.mrb[20].mxu0 }
 0x2c0   :  { %v18800_v42 = vadd.f32 %v902_v38, %v18721_v29  ;;  %v18803_v45 = vadd.f32 %v15542_v41, %v18723_v30  ;;  %v904_v47 = vpop.f32.mrb[17].mxu1  ;;  %v1033_v50 = vpop.f32.mrb[21].mxu0 }
 0x2c1   :  { %v18806_v51 = vadd.f32 %v904_v47, %v18725_v32  ;;  %v18809_v54 = vadd.f32 %v1033_v50, %v18723_v30  ;;  %v906_v55 = vpop.f32.mrb[18].mxu1  ;;  %v15543_v58 = vpop.f32.mrb[22].mxu0 }
 0x2c2   :  { %21315 = vst [vmem:[#allocation41_spill] sm:$0xff] %v18800_v42  ;;  %21316 = vst [vmem:[#allocation42_spill] sm:$0xff] %v18803_v45  ;;  %v18812_v59 = vadd.f32 %v906_v55, %v18721_v29  ;;  %v18815_v0 = vadd.f32 %v15543_v58, %v18723_v30  ;;  %v908_v1 = vpop.f32.mrb[19].mxu1  ;;  %v1036_v12 = vpop.f32.mrb[23].mxu0  ;;  %v18073_v42 = vld [vmem:[#allocation14 + $0x64] ss:$8 sps:$4 sm:$0xff]  }
 0x2c3   :  { %21317 = vst [vmem:[#allocation43_spill] sm:$0xff] %v18806_v51  ;;  %21318 = vst [vmem:[#allocation44_spill] sm:$0xff] %v18809_v54  ;;  %v18818_v13 = vadd.f32 %v908_v1, %v18725_v32  ;;  %v18821_v16 = vadd.f32 %v1036_v12, %v18723_v30  ;;  %v18069_v51 = vld [vmem:[#allocation14 + $0x44] ss:$8 sps:$4 sm:$0xff]  }
 0x2c4   :  { %21319 = vst [vmem:[#allocation45_spill] sm:$0xff] %v18812_v59  ;;  %21320 = vst [vmem:[#allocation46_spill] sm:$0xff] %v18815_v0  ;;  %v18067_v59 = vld [vmem:[#allocation14 + $0x34] ss:$8 sps:$4 sm:$0xff]  }
 0x2c5   :  { %21321 = vst [vmem:[#allocation47_spill] sm:$0xff] %v18818_v13  ;;  %21322 = vst [vmem:[#allocation48_spill] sm:$0xff] %v18821_v16  ;;  %v16816_v16 = vld [vmem:[#allocation17 + $0x8] ss:$12 sps:$4 sm:$0xff]  }
 0x2c6   :  { %v18066_v13 = vld [vmem:[#allocation14 + $0x20] ss:$8 sps:$4 sm:$0xff]  }
 0x2c7   :  { %v912_v17 = vpop.f32.mrb[20].mxu1  ;;  %v1183_v20 = vpop.f32.mrb[24].mxu0 }
 0x2c8   :  { %v18824_v24 = vadd.f32 %v912_v17, %v18721_v29  ;;  %v18827_v28 = vadd.f32 %v1183_v20, %v18728_v35  ;;  %v914_v33 = vpop.f32.mrb[21].mxu1  ;;  %v1185_v38 = vpop.f32.mrb[25].mxu0 }
 0x2c9   :  { %v18830_v41 = vadd.f32 %v914_v33, %v18725_v32  ;;  %v1197_v47 = vadd.f32 %v1185_v38, %v18734_v39  ;;  %v916_v50 = vpop.f32.mrb[22].mxu1  ;;  %v1187_v55 = vpop.f32.mrb[26].mxu0 }
 0x2ca   :  { %21323 = vst [vmem:[#allocation49_spill] sm:$0xff] %v18824_v24  ;;  %v18834_v30 = vadd.f32 %v916_v50, %v18721_v29  ;;  %v918_v58 = vpop.f32.mrb[23].mxu1  ;;  %v1188_v1 = vpop.f32.mrb[27].mxu0  ;;  %v18064_v24 = vld [vmem:[#allocation14 + $0x10] ss:$8 sps:$4 sm:$0xff]  }
 0x2cb   :  { %21324 = vst [vmem:[#allocation50_spill] sm:$0xff] %v18830_v41  ;;  %v13735_v12 = vmul.f32 -1.442695, %v1197_v47  ;;  %v18837_v17 = vadd.f32 %v918_v58, %v18725_v32  ;;  %v18063_v41 = vld [vmem:[#allocation14 + $0x14] ss:$8 sps:$4 sm:$0xff]  }
 0x2cc   :  { %21325 = vst [vmem:[#allocation51_spill] sm:$0xff] %v18834_v30  ;;  %v18061_v30 = vld [vmem:[#allocation14 + $0x4] ss:$8 sps:$4 sm:$0xff]  }
 0x2cd   :  { %21326 = vst [vmem:[#allocation52_spill] sm:$0xff] %v18837_v17  ;;  %17741 = vpow2.f32 %v13735_v12  ;;  %v18968_v17 = vld [vmem:[#allocation19 + $0x70] ss:$8 sps:$4 sm:$0xff]  }
 0x2cf   :  { %v922_v35 = vpop.f32.mrb[24].mxu1 }
 0x2d0   :  { %v18840_v20 = vadd.f32 %v922_v35, %v18721_v29  ;;  %v924_v33 = vpop.f32.mrb[25].mxu1 }
 0x2d1   :  { %v18843_v23 = vadd.f32 %v924_v33, %v18725_v32  ;;  %v926_v39 = vpop.f32.mrb[26].mxu1 }
 0x2d2   :  { %21327 = vst [vmem:[#allocation53_spill] sm:$0xff] %v18840_v20  ;;  %v18846_v38 = vadd.f32 %v926_v39, %v18721_v29  ;;  %v928_v50 = vpop.f32.mrb[27].mxu1 }
 0x2d3   :  { %21328 = vst [vmem:[#allocation54_spill] sm:$0xff] %v18843_v23  ;;  %v18849_v55 = vadd.f32 %v928_v50, %v18725_v32 }
 0x2d4   :  { %21329 = vst [vmem:[#allocation55_spill] sm:$0xff] %v18846_v38 }
 0x2d5   :  { %21330 = vst [vmem:[#allocation56_spill] sm:$0xff] %v18849_v55 }
 0x2d7   :  { %v17742_v47 = vpop.eup %17741  ;;  %v932_v58 = vpop.f32.mrb[28].mxu1 }
 0x2d8   :  { %v1201_v1 = vadd.f32 1.0, %v17742_v47  ;;  %v18852_v12 = vadd.f32 %v932_v58, %v18721_v29  ;;  %v934_v35 = vpop.f32.mrb[29].mxu1 }
 0x2d9   :  { %v18855_v22 = vadd.f32 %v934_v35, %v18725_v32  ;;  %v936_v33 = vpop.f32.mrb[30].mxu1 }
 0x2da   :  { %21331 = vst [vmem:[#allocation57_spill] sm:$0xff] %v18852_v12  ;;  %17743 = vrcp.f32 %v1201_v1  ;;  %v18858_v25 = vadd.f32 %v936_v33, %v18721_v29  ;;  %v938_v39 = vpop.f32.mrb[31].mxu1 }
 0x2db   :  { %21332 = vst [vmem:[#allocation58_spill] sm:$0xff] %v18855_v22  ;;  %v18861_v46 = vadd.f32 %v938_v39, %v18725_v32 }
 0x2dc   :  { %21333 = vst [vmem:[#allocation59_spill] sm:$0xff] %v18858_v25 }
 0x2dd   :  { %21334 = vst [vmem:[#allocation60_spill] sm:$0xff] %v18861_v46 }
 0x2df   :  { %v942_v50 = vpop.f32.mrb[32].mxu1 }
 0x2e0   :  { %v18864_v31 = vadd.f32 %v942_v50, %v18721_v29  ;;  %v944_v47 = vpop.f32.mrb[33].mxu1  ;;  %v16820_v50 = vld [vmem:[#allocation17 + $0x20] ss:$12 sps:$4 sm:$0xff]  }
 0x2e1   :  { %v18867_v58 = vadd.f32 %v944_v47, %v18725_v32  ;;  %v946_v0 = vpop.f32.mrb[34].mxu1  ;;  %v18890_v47 = vld [vmem:[#allocation17 + $0x78] ss:$12 sps:$4 sm:$0xff]  }
 0x2e2   :  { %21335 = vst [vmem:[#allocation61_spill] sm:$0xff] %v18864_v31  ;;  %v18870_v35 = vadd.f32 %v946_v0, %v18721_v29  ;;  %v948_v1 = vpop.f32.mrb[35].mxu1  ;;  %v21339_v31 = vmov 0.0   ;;  %v16824_v29 = vld [vmem:[#allocation17 + $0x38] ss:$12 sps:$4 sm:$0xff]  }
 0x2e3   :  { %21336 = vst [vmem:[#allocation62_spill] sm:$0xff] %v18867_v58  ;;  %v18873_v33 = vadd.f32 %v948_v1, %v18725_v32  ;;  %v16828_v32 = vld [vmem:[#allocation17 + $0x50] ss:$12 sps:$4 sm:$0xff]   ;;  %v18883_v0 = vld [vmem:[#allocation17 + $0x60] ss:$12 sps:$4 sm:$0xff]  }
 0x2e4   :  { %21337 = vst [vmem:[#allocation63_spill] sm:$0xff] %v18870_v35  ;;  %v17744_v45 = vpop.eup %17743  ;;  %v16836_v1 = vld [vmem:[#allocation17 + $0x80] ss:$12 sps:$4 sm:$0xff]  }
 0x2e5   :  { %21338 = vst [vmem:[#allocation64_spill] sm:$0xff] %v18873_v33  ;;  %v1204_v39 = vmul.f32 %v17744_v45, %v18649_v61  ;;  %v18881_v45 = vld [vmem:[#allocation17 + $0x64] ss:$12 sps:$4 sm:$0xff]  }
 0x2e6   :  { %1486 = vmatprep.subr.bf16.mxu0 %v18881_v45  ;;  %v16844_v33 = vld [vmem:[#allocation17 + $0xb0] ss:$12 sps:$4 sm:$0xff]  }
 0x2e7   :  { %v1205_v46 = vpack.c.bf16 %v1204_v39, %v1204_v39  ;;  %1487 = vmatpush1.bf16.msra.mxu0 %v18883_v0  ;;  %v18895_v39 = vld [vmem:[#allocation17 + $0x94] ss:$12 sps:$4 sm:$0xff]  }
 0x2e9   :  { %15561 = vmatmul.mubr.bf16.vlgmr.msra.gmra.mrb[36].mxu1 %v1205_v46  ;;  %v16832_v46 = vld [vmem:[#allocation17 + $0x68] ss:$12 sps:$4 sm:$0xff]  }
 0x2ea   :  { %15565 = vmatpush3.bf16.msra.mxu1 %v16816_v16  ;;  %15580 = vmatprep.mubr.msk.bf16.mxu1 %vm18375_vm0, %v21339_v31  ;;  %v18888_v16 = vld [vmem:[#allocation17 + $0x7c] ss:$12 sps:$4 sm:$0xff]  }
 0x2eb   :  { %15566 = vmatprep.subr.bf16.mxu1 %v21339_v31  ;;  %1488 = vmatprep.subr.bf16.mxu0 %v18888_v16 }
 0x2ec   :  { %1489 = vmatpush1.bf16.msra.mxu0 %v18890_v47 }
 0x2ed   :  { %1490 = vmatprep.subr.bf16.mxu0 %v18895_v39 }
 0x2ee   :  { %15567 = vmatpush3.bf16.msra.mxu1 %v16820_v50  ;;  %v18897_v50 = vld [vmem:[#allocation17 + $0x90] ss:$12 sps:$4 sm:$0xff]  }
 0x2ef   :  { %15568 = vmatprep.subr.bf16.mxu1 %v21339_v31 }
 0x2f0   :  { %1491 = vmatpush1.bf16.msra.mxu0 %v18897_v50 }
 0x2f2   :  { %15569 = vmatpush3.bf16.msra.mxu1 %v16824_v29  ;;  %v16840_v29 = vld [vmem:[#allocation17 + $0x98] ss:$12 sps:$4 sm:$0xff]  }
 0x2f3   :  { %15570 = vmatprep.subr.bf16.mxu1 %v21339_v31 }
 0x2f6   :  { %15571 = vmatpush3.bf16.msra.mxu1 %v16828_v32  ;;  %v18902_v32 = vld [vmem:[#allocation17 + $0xac] ss:$12 sps:$4 sm:$0xff]  }
 0x2f7   :  { %15572 = vmatprep.subr.bf16.mxu1 %v21339_v31  ;;  %1492 = vmatprep.subr.bf16.mxu0 %v18902_v32 }
 0x2fa   :  { %15573 = vmatpush3.bf16.msra.mxu1 %v16832_v46  ;;  %v18904_v46 = vld [vmem:[#allocation17 + $0xa8] ss:$12 sps:$4 sm:$0xff]  }
 0x2fb   :  { %15574 = vmatprep.subr.bf16.mxu1 %v21339_v31  ;;  %1493 = vmatpush1.bf16.msra.mxu0 %v18904_v46 }
 0x2fe   :  { %15575 = vmatpush3.bf16.msra.mxu1 %v16836_v1  ;;  %v18908_v1 = vld [vmem:[#allocation19 + $0x4] ss:$8 sps:$4 sm:$0xff]  }
 0x2ff   :  { %15576 = vmatprep.subr.bf16.mxu1 %v21339_v31  ;;  %1658 = vmatprep.subr.bf16.mxu0 %v18908_v1 }
 0x302   :  { %15577 = vmatpush3.bf16.msra.mxu1 %v16840_v29  ;;  %v13734_v29 = vmul.f32 -1.442695, %v18827_v28  ;;  %v18918_v28 = vld [vmem:[#allocation19] ss:$8 sps:$4 sm:$0xff]  }
 0x303   :  { %15578 = vmatprep.subr.bf16.mxu1 %v21339_v31 }
 0x304   :  { %17745 = vpow2.f32 %v13734_v29  ;;  %v18959_v29 = vld [vmem:[#allocation19 + $0x64] ss:$8 sps:$4 sm:$0xff]  }
 0x306   :  { %15579 = vmatpush3.bf16.msra.mxu1 %v16844_v33 }
 0x307   :  { %15584 = vmatprep.subr.bf16.mxu1 %v21339_v31 }
 0x30e   :  { %v17746_v35 = vpop.eup %17745 }
 0x30f   :  { %v1194_v58 = vadd.f32 1.0, %v17746_v35  ;;  %v18924_v35 = vld [vmem:[#allocation19 + $0x14] ss:$8 sps:$4 sm:$0xff]  }
 0x311   :  { %17747 = vrcp.f32 %v1194_v58 }
 0x31b   :  { %v17748_v55 = vpop.eup %17747 }
 0x31c   :  { %v1313_v38 = vsub.f32 1.0, %v17748_v55  ;;  %v1312_v23 = vmul.f32 %v17748_v55, %v18649_v61  ;;  %v18953_v55 = vld [vmem:[#allocation19 + $0x54] ss:$8 sps:$4 sm:$0xff]  }
 0x3bc   :  { %v1304_v25 = vpop.f32.mrb[36].mxu1 }
 0x3bd   :  { %v1310_v54 = vadd.f32 %v1304_v25, %v18737_v40  ;;  %v15562_v22 = vpop.f32.mrb[37].mxu1  ;;  %v21340_v25 = vmov 0   ;;  %v18938_v40 = vld [vmem:[#allocation19 + $0x20] ss:$8 sps:$4 sm:$0xff]  }
 0x3be   :  { %v1307_v12 = vpop.f32.mrb[38].mxu1  ;;  %v18929_v22 = vld [vmem:[#allocation19 + $0x10] ss:$8 sps:$4 sm:$0xff]  }
 0x3bf   :  { %17749 = vtanh.f32 %v1310_v54  ;;  %v15563_v27 = vpop.f32.mrb[39].mxu1  ;;  %v18947_v54 = vld [vmem:[#allocation19 + $0x44] ss:$8 sps:$4 sm:$0xff]   ;;  %v18956_v12 = vld [vmem:[#allocation19 + $0x50] ss:$8 sps:$4 sm:$0xff]  }
 0x3c0   :  { %v18944_v27 = vld [vmem:[#allocation19 + $0x30] ss:$8 sps:$4 sm:$0xff]  }
 0x3c9   :  { %v17750_v33 = vpop.eup %17749 }
 0x3ca   :  { %v1314_v15 = vmul.f32 %v17750_v33, %v1313_v38  ;;  %v18950_v38 = vld [vmem:[#allocation19 + $0x40] ss:$8 sps:$4 sm:$0xff]  }
 0x3cb   :  { %v18962_v33 = vld [vmem:[#allocation19 + $0x60] ss:$8 sps:$4 sm:$0xff]  }
 0x3cc   :  { %v18916_v20 = vadd.f32 %v1314_v15, %v1312_v23  ;;  %v18933_v23 = vld [vmem:[#allocation19 + $0x24] ss:$8 sps:$4 sm:$0xff]   ;;  %v18941_v15 = vld [vmem:[#allocation19 + $0x34] ss:$8 sps:$4 sm:$0xff]  }
 0x3ce   :  { %v18922_v58 = vpack.c.bf16 %v18916_v20, %v18916_v20 }
 0x3d0   :  { %1511 = vmatmul.mubr.bf16.vlgmr.msra.gmra.mrb[28].mxu0 %v18922_v58  ;;  %15581 = vmatmul.mubr.bf16.vlgmr.msra.gmra.mrb[40].mxu1 %v18922_v58 }
 0x3d1   :  { %1659 = vmatpush1.bf16.msra.mxu0 %v18918_v28  ;;  %1690 = vmatprep.mubr.bf16.mxu0 %v21340_v25 }
 0x3d2   :  { %1660 = vmatprep.subr.bf16.mxu0 %v18924_v35  ;;  %15600 = vmatprep.mubr.msk.bf16.mxu1 %vm18375_vm0, %v21339_v31 }
 0x3d5   :  { %1661 = vmatpush1.bf16.msra.mxu0 %v18929_v22 }
 0x3d6   :  { %1662 = vmatprep.subr.bf16.mxu0 %v18933_v23 }
 0x3d9   :  { %1663 = vmatpush1.bf16.msra.mxu0 %v18938_v40 }
 0x3da   :  { %1664 = vmatprep.subr.bf16.mxu0 %v18941_v15 }
 0x3dd   :  { %1665 = vmatpush1.bf16.msra.mxu0 %v18944_v27 }
 0x3de   :  { %1666 = vmatprep.subr.bf16.mxu0 %v18947_v54 }
 0x3e1   :  { %1667 = vmatpush1.bf16.msra.mxu0 %v18950_v38 }
 0x3e2   :  { %1668 = vmatprep.subr.bf16.mxu0 %v18953_v55 }
 0x3e5   :  { %1669 = vmatpush1.bf16.msra.mxu0 %v18956_v12 }
 0x3e6   :  { %1670 = vmatprep.subr.bf16.mxu0 %v18959_v29 }
 0x3e9   :  { %1671 = vmatpush1.bf16.msra.mxu0 %v18962_v33 }
 0x3ea   :  { %1672 = vmatprep.subr.bf16.mxu0 %v18965_v37 }
 0x3ed   :  { %1673 = vmatpush1.bf16.msra.mxu0 %v18968_v17 }
 0x3ee   :  { %1928 = vmatprep.subr.bf16.mxu0 %v18061_v30  ;;  %v18070_v30 = vld [vmem:[#allocation14 + $0x40] ss:$8 sps:$4 sm:$0xff]  }
 0x3f0   :  { %1691 = vmatmul.mubr.bf16.vlgmr.msra.gmra.mrb[28].mxu0 %v18653_v62  ;;  %v18071_v62 = vld [vmem:[#allocation14 + $0x54] ss:$8 sps:$4 sm:$0xff]  }
 0x3f1   :  { %1929 = vmatpush1.bf16.msra.mxu0 %v18062_v19  ;;  %1960 = vmatprep.mubr.bf16.mxu0 %v21340_v25  ;;  %v18072_v19 = vld [vmem:[#allocation14 + $0x50] ss:$8 sps:$4 sm:$0xff]  }
 0x3f2   :  { %1930 = vmatprep.subr.bf16.mxu0 %v18063_v41  ;;  %v18074_v41 = vld [vmem:[#allocation14 + $0x60] ss:$8 sps:$4 sm:$0xff]  }
 0x3f5   :  { %1931 = vmatpush1.bf16.msra.mxu0 %v18064_v24  ;;  %v18075_v24 = vld [vmem:[#allocation14 + $0x74] ss:$8 sps:$4 sm:$0xff]  }
 0x3f6   :  { %1932 = vmatprep.subr.bf16.mxu0 %v18065_v63  ;;  %v18076_v63 = vld [vmem:[#allocation14 + $0x70] ss:$8 sps:$4 sm:$0xff]  }
 0x3f9   :  { %1933 = vmatpush1.bf16.msra.mxu0 %v18066_v13 }
 0x3fa   :  { %1934 = vmatprep.subr.bf16.mxu0 %v18067_v59 }
 0x3fd   :  { %1935 = vmatpush1.bf16.msra.mxu0 %v18068_v53  ;;  %v19004_v53 = vld [vmem:[%s21297_s12] sm:$0x7]  ;;  %s18376_s12 = smov [#allocation23]  }
 0x3fe   :  { %1936 = vmatprep.subr.bf16.mxu0 %v18069_v51  ;;  %s13632_s22 = sshll.u32 %s18376_s12, 4  ;;  %s13633_s22 = int_to_ptr.vmem [resolvable:$true] %s13632_s22 }
 0x3ff   :  { %s18297_s15 = scalar_lea.vmem %s13633_s22, 256  ;;  %p18302_p11 = scmp.lt.s32.totalorder %s13633_s22, %s13633_s22 }
 0x400   :  { %p18298_p10 = scmp.ne.s32.totalorder %s13633_s22, %s18297_s15  ;;  %p18303_p12 = scmp.lt.s32.totalorder %s18297_s15, %s18297_s15 }
 0x401   :  { %1937 = vmatpush1.bf16.msra.mxu0 %v18070_v30 }
 0x402   :  { %1938 = vmatprep.subr.bf16.mxu0 %v18071_v62  ;;  %p18304_p13 = por %p18303_p12, %p18302_p11 }
 0x404   :  { %p18305_p0 = pnand %p18304_p13, %p18298_p10 }
 0x405   :  { %1939 = vmatpush1.bf16.msra.mxu0 %v18072_v19 }
 0x406   :  { %1940 = vmatprep.subr.bf16.mxu0 %v18073_v42  ;;  %v21341_v42 = vsub.s32 1, %v18707_v21 }
 0x408   :  { %v19009_v51 = vrot.slane %v19004_v53, %v21341_v42 }
 0x409   :  { %1941 = vmatpush1.bf16.msra.mxu0 %v18074_v41 }
 0x40a   :  { %1942 = vmatprep.subr.bf16.mxu0 %v18075_v24 }
 0x40d   :  { %1943 = vmatpush1.bf16.msra.mxu0 %v18076_v63 }
 0x40e   :  { %2257 = vmatprep.subr.bf16.mxu0 %v18685_v5  ;;  %v16870_v5 = vld [vmem:[#allocation20 + $0x8] sm:$0xff]  }
 0x410   :  { %1961 = vmatmul.mubr.bf16.vlgmr.msra.gmra.mrb[32].mxu0 %v18922_v58 }
 0x411   :  { %2258 = vmatpush1.bf16.msra.mxu0 %v18683_v4  ;;  %2289 = vmatprep.mubr.bf16.mxu0 %v21340_v25  ;;  %v16869_v4 = vld [vmem:[#allocation20] sm:$0xff]  }
 0x412   :  { %2259 = vmatprep.subr.bf16.mxu0 %v18687_v6  ;;  %15585 = vmatpush3.bf16.msra.mxu1 %v16869_v4  ;;  %v16871_v6 = vld [vmem:[#allocation20 + $0x10] sm:$0xff]   ;;  %v16878_v4 = vld [vmem:[#allocation16 + $0x8] sm:$0xff]  }
 0x413   :  { %15586 = vmatprep.subr.bf16.mxu1 %v21339_v31 }
 0x415   :  { %2260 = vmatpush1.bf16.msra.mxu0 %v18690_v7  ;;  %v16872_v7 = vld [vmem:[#allocation20 + $0x18] sm:$0xff]  }
 0x416   :  { %2261 = vmatprep.subr.bf16.mxu0 %v18694_v8  ;;  %15587 = vmatpush3.bf16.msra.mxu1 %v16870_v5  ;;  %v16873_v8 = vld [vmem:[#allocation20 + $0x20] sm:$0xff]  }
 0x417   :  { %15588 = vmatprep.subr.bf16.mxu1 %v21339_v31 }
 0x419   :  { %2262 = vmatpush1.bf16.msra.mxu0 %v18696_v9  ;;  %v16874_v9 = vld [vmem:[#allocation20 + $0x28] sm:$0xff]  }
 0x41a   :  { %2263 = vmatprep.subr.bf16.mxu0 %v18702_v11  ;;  %15589 = vmatpush3.bf16.msra.mxu1 %v16871_v6  ;;  %v16876_v11 = vld [vmem:[#allocation20 + $0x38] sm:$0xff]   ;;  %v16879_v6 = vld [vmem:[#allocation16 + $0x10] sm:$0xff]  }
 0x41b   :  { %15590 = vmatprep.subr.bf16.mxu1 %v21339_v31 }
 0x41d   :  { %2264 = vmatpush1.bf16.msra.mxu0 %v18700_v10  ;;  %v16875_v10 = vld [vmem:[#allocation20 + $0x30] sm:$0xff]  }
 0x41e   :  { %2265 = vmatprep.subr.bf16.mxu0 %v18881_v45  ;;  %15591 = vmatpush3.bf16.msra.mxu1 %v16872_v7 }
 0x41f   :  { %15592 = vmatprep.subr.bf16.mxu1 %v21339_v31 }
 0x421   :  { %2266 = vmatpush1.bf16.msra.mxu0 %v18883_v0 }
 0x422   :  { %2267 = vmatprep.subr.bf16.mxu0 %v18888_v16  ;;  %15593 = vmatpush3.bf16.msra.mxu1 %v16873_v8 }
 0x423   :  { %15594 = vmatprep.subr.bf16.mxu1 %v21339_v31 }
 0x425   :  { %2268 = vmatpush1.bf16.msra.mxu0 %v18890_v47 }
 0x426   :  { %2269 = vmatprep.subr.bf16.mxu0 %v18895_v39  ;;  %15595 = vmatpush3.bf16.msra.mxu1 %v16874_v9  ;;  %v16882_v9 = vld [vmem:[#allocation16 + $0x28] sm:$0xff]  }
 0x427   :  { %15596 = vmatprep.subr.bf16.mxu1 %v21339_v31 }
 0x429   :  { %2270 = vmatpush1.bf16.msra.mxu0 %v18897_v50 }
 0x42a   :  { %2271 = vmatprep.subr.bf16.mxu0 %v18902_v32  ;;  %15597 = vmatpush3.bf16.msra.mxu1 %v16875_v10  ;;  %v16883_v10 = vld [vmem:[#allocation16 + $0x30] sm:$0xff]  }
 0x42b   :  { %15598 = vmatprep.subr.bf16.mxu1 %v21339_v31 }
 0x42d   :  { %2272 = vmatpush1.bf16.msra.mxu0 %v18904_v46 }
 0x42e   :  { %2436 = vmatprep.subr.bf16.mxu0 %v18908_v1  ;;  %15599 = vmatpush3.bf16.msra.mxu1 %v16876_v11  ;;  %v16877_v1 = vld [vmem:[#allocation16] sm:$0xff]   ;;  %v16884_v11 = vld [vmem:[#allocation16 + $0x38] sm:$0xff]  }
 0x42f   :  { %15604 = vmatprep.subr.bf16.mxu1 %v21339_v31 }
 0x4c3   :  { %v19011_v59 = vpop.f32.mrb[28].mxu0 }
 0x4c4   :  { %v1694_v13 = vpop.f32.mrb[29].mxu0 }
 0x4c5   :  { %v16505_v45 = vadd.f32 %v1694_v13, %v19009_v51  ;;  %v1696_v0 = vpop.f32.mrb[30].mxu0 }
 0x4c6   :  { %v1697_v16 = vpop.f32.mrb[31].mxu0  ;;  %v16885_v0 = vld [vmem:[#allocation17 + $0x8] ss:$12 sps:$4 sm:$0xff]  }
 0x4c7   :  { %v13785_v47 = vmul.f32 -1.442695, %v16505_v45  ;;  %v16886_v16 = vld [vmem:[#allocation17 + $0x20] ss:$12 sps:$4 sm:$0xff]  }
 0x4c9   :  { %17751 = vpow2.f32 %v13785_v47  ;;  %v16887_v47 = vld [vmem:[#allocation17 + $0x38] ss:$12 sps:$4 sm:$0xff]  }
 0x4d3   :  { %v17752_v39 = vpop.eup %17751 }
 0x4d4   :  { %v1710_v50 = vadd.f32 1.0, %v17752_v39  ;;  %v16888_v39 = vld [vmem:[#allocation17 + $0x50] ss:$12 sps:$4 sm:$0xff]  }
 0x4d6   :  { %17753 = vrcp.f32 %v1710_v50  ;;  %v16889_v50 = vld [vmem:[#allocation17 + $0x68] ss:$12 sps:$4 sm:$0xff]  }
 0x4e0   :  { %v17754_v32 = vpop.eup %17753 }
 0x4e1   :  { %v1713_v46 = vmul.f32 %v17754_v32, %v18649_v61  ;;  %v16890_v32 = vld [vmem:[#allocation17 + $0x80] ss:$12 sps:$4 sm:$0xff]  }
 0x4e3   :  { %v1962_v58 = vpop.f32.mrb[32].mxu0  ;;  %v1714_v30 = vpack.c.bf16 %v1713_v46, %v1713_v46  ;;  %v16891_v46 = vld [vmem:[#allocation17 + $0x98] ss:$12 sps:$4 sm:$0xff]  }
 0x4e4   :  { %v19016_v62 = vadd.f32 %v1962_v58, %v18740_v43  ;;  %v1964_v19 = vpop.f32.mrb[33].mxu0  ;;  %v16880_v43 = vld [vmem:[#allocation16 + $0x18] sm:$0xff]   ;;  %v21342_v58 = vsub.s32 0, %v18707_v21 }
 0x4e5   :  { %v1976_v41 = vadd.f32 %v1964_v19, %v18746_v48  ;;  %15601 = vmatmul.mubr.bf16.vlgmr.msra.gmra.mrb[40].mxu1 %v1714_v30  ;;  %v1966_v24 = vpop.f32.mrb[34].mxu0  ;;  %v16881_v48 = vld [vmem:[#allocation16 + $0x20] sm:$0xff]  }
 0x4e6   :  { %v1967_v63 = vpop.f32.mrb[35].mxu0  ;;  %15605 = vmatpush3.bf16.msra.mxu1 %v16877_v1  ;;  %15620 = vmatprep.mubr.msk.bf16.mxu1 %vm18375_vm0, %v21339_v31  ;;  %v16892_v1 = vld [vmem:[#allocation17 + $0xb0] ss:$12 sps:$4 sm:$0xff]   ;;  %v19043_v30 = vrot.slane %v19004_v53, %v21342_v58 }
 0x4e7   :  { %v13811_v5 = vmul.f32 -1.442695, %v1976_v41  ;;  %15606 = vmatprep.subr.bf16.mxu1 %v21339_v31 }
 0x4e8   :  { %v16504_v19 = vadd.f32 %v19011_v59, %v19043_v30  ;;  %v13810_v59 = vmul.f32 -1.442695, %v19016_v62 }
 0x4e9   :  { %17755 = vpow2.f32 %v13811_v5 }
 0x4ea   :  { %15607 = vmatpush3.bf16.msra.mxu1 %v16878_v4  ;;  %v13784_v41 = vmul.f32 -1.442695, %v16504_v19  ;;  %v21343_v4 = vsub.s32 2, %v18707_v21 }
 0x4eb   :  { %15608 = vmatprep.subr.bf16.mxu1 %v21339_v31 }
 0x4ec   :  { %v19050_v5 = vrot.slane %v19004_v53, %v21343_v4  ;;  %v16920_v4 = vld [vmem:[#allocation20 + $0x18] sm:$0xff]  }
 0x4ee   :  { %15609 = vmatpush3.bf16.msra.mxu1 %v16879_v6 }
 0x4ef   :  { %15610 = vmatprep.subr.bf16.mxu1 %v21339_v31 }
 0x4f2   :  { %15611 = vmatpush3.bf16.msra.mxu1 %v16880_v43 }
 0x4f3   :  { %v17756_v7 = vpop.eup %17755  ;;  %15612 = vmatprep.subr.bf16.mxu1 %v21339_v31 }
 0x4f4   :  { %v1980_v8 = vadd.f32 1.0, %v17756_v7 }
 0x4f6   :  { %17757 = vrcp.f32 %v1980_v8  ;;  %15613 = vmatpush3.bf16.msra.mxu1 %v16881_v48 }
 0x4f7   :  { %15614 = vmatprep.subr.bf16.mxu1 %v21339_v31  ;;  %17759 = vpow2.f32 %v13784_v41  ;;  %v16917_v41 = vld [vmem:[#allocation20] sm:$0xff]  }
 0x4fa   :  { %15615 = vmatpush3.bf16.msra.mxu1 %v16882_v9 }
 0x4fb   :  { %15616 = vmatprep.subr.bf16.mxu1 %v21339_v31 }
 0x4fe   :  { %15617 = vmatpush3.bf16.msra.mxu1 %v16883_v10 }
 0x4ff   :  { %15618 = vmatprep.subr.bf16.mxu1 %v21339_v31 }
 0x500   :  { %v17758_v42 = vpop.eup %17757 }
 0x501   :  { %v1983_v13 = vmul.f32 %v17758_v42, %v18916_v20  ;;  %v17760_v24 = vpop.eup %17759 }
 0x502   :  { %15619 = vmatpush3.bf16.msra.mxu1 %v16884_v11  ;;  %v1703_v63 = vadd.f32 1.0, %v17760_v24  ;;  %v16918_v24 = vld [vmem:[#allocation20 + $0x8] sm:$0xff]  }
 0x503   :  { %v1984_v45 = vpack.c.bf16 %v1983_v13, %v1983_v13  ;;  %15624 = vmatprep.subr.bf16.mxu1 %v21339_v31 }
 0x504   :  { %17761 = vrcp.f32 %v1703_v63  ;;  %v16919_v63 = vld [vmem:[#allocation20 + $0x10] sm:$0xff]  }
 0x505   :  { %15621 = vmatmul.mubr.bf16.vlgmr.msra.gmra.mrb[44].mxu1 %v1984_v45 }
 0x506   :  { %15640 = vmatprep.mubr.msk.bf16.mxu1 %vm18375_vm0, %v21339_v31  ;;  %15625 = vmatpush3.bf16.msra.mxu1 %v16885_v0 }
 0x507   :  { %15626 = vmatprep.subr.bf16.mxu1 %v21339_v31 }
 0x50a   :  { %15627 = vmatpush3.bf16.msra.mxu1 %v16886_v16 }
 0x50b   :  { %15628 = vmatprep.subr.bf16.mxu1 %v21339_v31 }
 0x50e   :  { %15629 = vmatpush3.bf16.msra.mxu1 %v16887_v47  ;;  %v17762_v9 = vpop.eup %17761 }
 0x50f   :  { %15630 = vmatprep.subr.bf16.mxu1 %v21339_v31  ;;  %v1822_v10 = vsub.f32 1.0, %v17762_v9  ;;  %v1821_v42 = vmul.f32 %v17762_v9, %v18649_v61 }
 0x512   :  { %15631 = vmatpush3.bf16.msra.mxu1 %v16888_v39 }
 0x513   :  { %15632 = vmatprep.subr.bf16.mxu1 %v21339_v31 }
 0x516   :  { %15633 = vmatpush3.bf16.msra.mxu1 %v16889_v50 }
 0x517   :  { %15634 = vmatprep.subr.bf16.mxu1 %v21339_v31 }
 0x51a   :  { %15635 = vmatpush3.bf16.msra.mxu1 %v16890_v32 }
 0x51b   :  { %15636 = vmatprep.subr.bf16.mxu1 %v21339_v31 }
 0x51e   :  { %15637 = vmatpush3.bf16.msra.mxu1 %v16891_v46 }
 0x51f   :  { %15638 = vmatprep.subr.bf16.mxu1 %v21339_v31 }
 0x522   :  { %15639 = vmatpush3.bf16.msra.mxu1 %v16892_v1 }
 0x523   :  { %15644 = vmatprep.subr.bf16.mxu1 %v21339_v31 }
 0x5b8   :  { %v1813_v6 = vpop.f32.mrb[40].mxu1 }
 0x5b9   :  { %v16506_v43 = vadd.f32 %v1813_v6, %v19050_v5  ;;  %v15602_v48 = vpop.f32.mrb[41].mxu1  ;;  %v16921_v6 = vld [vmem:[#allocation20 + $0x20] sm:$0xff]  }
 0x5ba   :  { %v1816_v7 = vpop.f32.mrb[42].mxu1  ;;  %v16923_v48 = vld [vmem:[#allocation20 + $0x30] sm:$0xff]  }
 0x5bb   :  { %17763 = vtanh.f32 %v16506_v43  ;;  %v15603_v8 = vpop.f32.mrb[43].mxu1  ;;  %v16922_v43 = vld [vmem:[#allocation20 + $0x28] sm:$0xff]   ;;  %v16924_v7 = vld [vmem:[#allocation20 + $0x38] sm:$0xff]  }
 0x5bc   :  { %17765 = vpow2.f32 %v13810_v59 }
 0x5c5   :  { %v17764_v11 = vpop.eup %17763 }
 0x5c6   :  { %v1823_v21 = vmul.f32 %v17764_v11, %v1822_v10  ;;  %v17766_v53 = vpop.eup %17765 }
 0x5c7   :  { %v1973_v45 = vadd.f32 1.0, %v17766_v53 }
 0x5c8   :  { %v19055_v13 = vadd.f32 %v1823_v21, %v1821_v42 }
 0x5c9   :  { %17767 = vrcp.f32 %v1973_v45 }
 0x5d3   :  { %v17768_v32 = vpop.eup %17767 }
 0x5d4   :  { %v2092_v62 = vsub.f32 1.0, %v17768_v32  ;;  %v2091_v61 = vmul.f32 %v17768_v32, %v18916_v20  ;;  %v19083_v20 = vld [vmem:[#allocation14] ss:$8 sps:$4 sm:$0xff]  }
 0x5d8   :  { %v2083_v0 = vpop.f32.mrb[44].mxu1 }
 0x5d9   :  { %v2089_v16 = vadd.f32 %v2083_v0, %v18749_v49  ;;  %v15622_v47 = vpop.f32.mrb[45].mxu1  ;;  %v19080_v49 = vld [vmem:[#allocation14 + $0x4] ss:$8 sps:$4 sm:$0xff]  }
 0x5da   :  { %v2086_v39 = vpop.f32.mrb[46].mxu1 }
 0x5db   :  { %17769 = vtanh.f32 %v2089_v16  ;;  %v15623_v50 = vpop.f32.mrb[47].mxu1  ;;  %v16925_v16 = vld [vmem:[#allocation16] sm:$0xff]  }
 0x5e5   :  { %v17770_v46 = vpop.eup %17769 }
 0x5e6   :  { %v2093_v1 = vmul.f32 %v17770_v46, %v2092_v62 }
 0x5e8   :  { %v19059_v58 = vadd.f32 %v2093_v1, %v2091_v61  ;;  %v16926_v61 = vld [vmem:[#allocation16 + $0x8] sm:$0xff]  }
 0x5ea   :  { %v2096_v19 = vpack.c.bf16 %v19059_v58, %v19059_v58 }
 0x5ec   :  { %2290 = vmatmul.mubr.bf16.vlgmr.msra.gmra.mrb[36].mxu0 %v2096_v19  ;;  %15641 = vmatmul.mubr.bf16.vlgmr.msra.gmra.mrb[48].mxu1 %v2096_v19 }
 0x5ed   :  { %2437 = vmatpush1.bf16.msra.mxu0 %v18918_v28  ;;  %2468 = vmatprep.mubr.bf16.mxu0 %v21340_v25  ;;  %v2339_v28 = vpack.c.bf16 %v19055_v13, %v19055_v13 }
 0x5ee   :  { %2438 = vmatprep.subr.bf16.mxu0 %v18924_v35  ;;  %15660 = vmatprep.mubr.msk.bf16.mxu1 %vm18375_vm0, %v21339_v31  ;;  %v19088_v35 = vld [vmem:[#allocation14 + $0x14] ss:$8 sps:$4 sm:$0xff]  }
 0x5ef   :  { %15645 = vmatpush3.bf16.msra.mxu1 %v16917_v41 }
 0x5f0   :  { %15646 = vmatprep.subr.bf16.mxu1 %v21339_v31 }
 0x5f1   :  { %2439 = vmatpush1.bf16.msra.mxu0 %v18929_v22  ;;  %v19091_v22 = vld [vmem:[#allocation14 + $0x10] ss:$8 sps:$4 sm:$0xff]  }
 0x5f2   :  { %2440 = vmatprep.subr.bf16.mxu0 %v18933_v23  ;;  %v19101_v23 = vld [vmem:[#allocation14 + $0x34] ss:$8 sps:$4 sm:$0xff]  }
 0x5f3   :  { %15647 = vmatpush3.bf16.msra.mxu1 %v16918_v24 }
 0x5f4   :  { %15648 = vmatprep.subr.bf16.mxu1 %v21339_v31 }
 0x5f5   :  { %2441 = vmatpush1.bf16.msra.mxu0 %v18938_v40  ;;  %v19104_v40 = vld [vmem:[#allocation14 + $0x30] ss:$8 sps:$4 sm:$0xff]  }
 0x5f6   :  { %2442 = vmatprep.subr.bf16.mxu0 %v18941_v15  ;;  %v19107_v15 = vld [vmem:[#allocation14 + $0x44] ss:$8 sps:$4 sm:$0xff]  }
 0x5f7   :  { %15649 = vmatpush3.bf16.msra.mxu1 %v16919_v63  ;;  %v16930_v63 = vld [vmem:[#allocation16 + $0x28] sm:$0xff]  }
 0x5f8   :  { %15650 = vmatprep.subr.bf16.mxu1 %v21339_v31 }
 0x5f9   :  { %2443 = vmatpush1.bf16.msra.mxu0 %v18944_v27  ;;  %v19110_v27 = vld [vmem:[#allocation14 + $0x40] ss:$8 sps:$4 sm:$0xff]  }
 0x5fa   :  { %2444 = vmatprep.subr.bf16.mxu0 %v18947_v54  ;;  %v19113_v54 = vld [vmem:[#allocation14 + $0x54] ss:$8 sps:$4 sm:$0xff]  }
 0x5fb   :  { %15651 = vmatpush3.bf16.msra.mxu1 %v16920_v4  ;;  %v16931_v4 = vld [vmem:[#allocation16 + $0x30] sm:$0xff]  }
 0x5fc   :  { %15652 = vmatprep.subr.bf16.mxu1 %v21339_v31 }
 0x5fd   :  { %2445 = vmatpush1.bf16.msra.mxu0 %v18950_v38  ;;  %v19116_v38 = vld [vmem:[#allocation14 + $0x50] ss:$8 sps:$4 sm:$0xff]  }
 0x5fe   :  { %2446 = vmatprep.subr.bf16.mxu0 %v18953_v55  ;;  %v19119_v55 = vld [vmem:[#allocation14 + $0x64] ss:$8 sps:$4 sm:$0xff]  }
 0x5ff   :  { %15653 = vmatpush3.bf16.msra.mxu1 %v16921_v6  ;;  %v16932_v6 = vld [vmem:[#allocation16 + $0x38] sm:$0xff]  }
 0x600   :  { %15654 = vmatprep.subr.bf16.mxu1 %v21339_v31 }
 0x601   :  { %2447 = vmatpush1.bf16.msra.mxu0 %v18956_v12  ;;  %v19122_v12 = vld [vmem:[#allocation14 + $0x60] ss:$8 sps:$4 sm:$0xff]  }
 0x602   :  { %2448 = vmatprep.subr.bf16.mxu0 %v18959_v29  ;;  %v19125_v29 = vld [vmem:[#allocation14 + $0x74] ss:$8 sps:$4 sm:$0xff]  }
 0x603   :  { %15655 = vmatpush3.bf16.msra.mxu1 %v16922_v43 }
 0x604   :  { %15656 = vmatprep.subr.bf16.mxu1 %v21339_v31 }
 0x605   :  { %2449 = vmatpush1.bf16.msra.mxu0 %v18962_v33  ;;  %v19128_v33 = vld [vmem:[#allocation14 + $0x70] ss:$8 sps:$4 sm:$0xff]  }
 0x606   :  { %2450 = vmatprep.subr.bf16.mxu0 %v18965_v37  ;;  %v19095_v37 = vld [vmem:[#allocation14 + $0x24] ss:$8 sps:$4 sm:$0xff]  }
 0x607   :  { %15657 = vmatpush3.bf16.msra.mxu1 %v16923_v48 }
 0x608   :  { %15658 = vmatprep.subr.bf16.mxu1 %v21339_v31 }
 0x609   :  { %2451 = vmatpush1.bf16.msra.mxu0 %v18968_v17  ;;  %v19098_v17 = vld [vmem:[#allocation14 + $0x20] ss:$8 sps:$4 sm:$0xff]  }
 0x60a   :  { %2707 = vmatprep.subr.bf16.mxu0 %v19080_v49 }
 0x60b   :  { %15659 = vmatpush3.bf16.msra.mxu1 %v16924_v7 }
 0x60c   :  { %2469 = vmatmul.mubr.bf16.vlgmr.msra.gmra.mrb[36].mxu0 %v2339_v28  ;;  %15664 = vmatprep.subr.bf16.mxu1 %v21339_v31  ;;  %v16927_v28 = vld [vmem:[#allocation16 + $0x10] sm:$0xff]  }
 0x60d   :  { %2708 = vmatpush1.bf16.msra.mxu0 %v19083_v20  ;;  %2739 = vmatprep.mubr.bf16.mxu0 %v21340_v25 }
 0x60e   :  { %2709 = vmatprep.subr.bf16.mxu0 %v19088_v35 }
 0x611   :  { %2710 = vmatpush1.bf16.msra.mxu0 %v19091_v22 }
 0x612   :  { %2711 = vmatprep.subr.bf16.mxu0 %v19095_v37 }
 0x615   :  { %2712 = vmatpush1.bf16.msra.mxu0 %v19098_v17 }
 0x616   :  { %2713 = vmatprep.subr.bf16.mxu0 %v19101_v23 }
 0x619   :  { %2714 = vmatpush1.bf16.msra.mxu0 %v19104_v40 }
 0x61a   :  { %2715 = vmatprep.subr.bf16.mxu0 %v19107_v15 }
 0x61d   :  { %2716 = vmatpush1.bf16.msra.mxu0 %v19110_v27 }
 0x61e   :  { %2717 = vmatprep.subr.bf16.mxu0 %v19113_v54 }
 0x621   :  { %2718 = vmatpush1.bf16.msra.mxu0 %v19116_v38 }
 0x622   :  { %2719 = vmatprep.subr.bf16.mxu0 %v19119_v55 }
 0x625   :  { %2720 = vmatpush1.bf16.msra.mxu0 %v19122_v12 }
 0x626   :  { %2721 = vmatprep.subr.bf16.mxu0 %v19125_v29 }
 0x629   :  { %2722 = vmatpush1.bf16.msra.mxu0 %v19128_v33 }
 0x62c   :  { %2740 = vmatmul.mubr.bf16.vlgmr.msra.gmra.mrb[40].mxu0 %v2096_v19 }
 0x62d   :  { %3068 = vmatprep.mubr.bf16.mxu0 %v21340_v25 }
 0x6df   :  { %v19141_v8 = vpop.f32.mrb[36].mxu0 }
 0x6e0   :  { %v2472_v9 = vpop.f32.mrb[37].mxu0 }
 0x6e1   :  { %v16508_v59 = vadd.f32 %v2472_v9, %v19009_v51  ;;  %v2474_v10 = vpop.f32.mrb[38].mxu0  ;;  %v19162_v9 = vld [vmem:[#allocation17 + $0x4] ss:$12 sps:$4 sm:$0xff]  }
 0x6e2   :  { %v2475_v11 = vpop.f32.mrb[39].mxu0  ;;  %3036 = vmatprep.subr.bf16.mxu0 %v19162_v9  ;;  %v16936_v10 = vld [vmem:[#allocation17 + $0x8] ss:$12 sps:$4 sm:$0xff]  }
 0x6e3   :  { %v13861_v42 = vmul.f32 -1.442695, %v16508_v59  ;;  %v19164_v59 = vld [vmem:[#allocation17] ss:$12 sps:$4 sm:$0xff]   ;;  %v19168_v11 = vld [vmem:[#allocation17 + $0x18] ss:$12 sps:$4 sm:$0xff]  }
 0x6e4   :  { %3037 = vmatpush1.bf16.msra.mxu0 %v19164_v59 }
 0x6e5   :  { %17771 = vpow2.f32 %v13861_v42  ;;  %v19170_v42 = vld [vmem:[#allocation17 + $0x1c] ss:$12 sps:$4 sm:$0xff]  }
 0x6e6   :  { %3038 = vmatprep.subr.bf16.mxu0 %v19170_v42 }
 0x6e8   :  { %3039 = vmatpush1.bf16.msra.mxu0 %v19168_v11 }
 0x6ef   :  { %v17772_v21 = vpop.eup %17771 }
 0x6f0   :  { %v2488_v53 = vadd.f32 1.0, %v17772_v21  ;;  %v16940_v21 = vld [vmem:[#allocation17 + $0x20] ss:$12 sps:$4 sm:$0xff]  }
 0x6f2   :  { %17773 = vrcp.f32 %v2488_v53  ;;  %v19172_v53 = vld [vmem:[#allocation17 + $0x34] ss:$12 sps:$4 sm:$0xff]  }
 0x6f3   :  { %3040 = vmatprep.subr.bf16.mxu0 %v19172_v53 }
 0x6fc   :  { %v17774_v45 = vpop.eup %17773 }
 0x6fd   :  { %v2491_v0 = vmul.f32 %v17774_v45, %v19055_v13  ;;  %v19177_v45 = vld [vmem:[#allocation17 + $0x30] ss:$12 sps:$4 sm:$0xff]  }
 0x6fe   :  { %3041 = vmatpush1.bf16.msra.mxu0 %v19177_v45 }
 0x6ff   :  { %v2741_v47 = vpop.f32.mrb[40].mxu0  ;;  %v2492_v39 = vpack.c.bf16 %v2491_v0, %v2491_v0  ;;  %v16944_v0 = vld [vmem:[#allocation17 + $0x38] ss:$12 sps:$4 sm:$0xff]  }
 0x700   :  { %v19146_v50 = vadd.f32 %v2741_v47, %v18752_v52  ;;  %v2743_v32 = vpop.f32.mrb[41].mxu0  ;;  %v16928_v52 = vld [vmem:[#allocation16 + $0x18] sm:$0xff]   ;;  %v19184_v47 = vld [vmem:[#allocation17 + $0x48] ss:$12 sps:$4 sm:$0xff]  }
 0x701   :  { %v2755_v62 = vadd.f32 %v2743_v32, %v18758_v56  ;;  %15661 = vmatmul.mubr.bf16.vlgmr.msra.gmra.mrb[48].mxu1 %v2492_v39  ;;  %v2745_v46 = vpop.f32.mrb[42].mxu0  ;;  %v16929_v56 = vld [vmem:[#allocation16 + $0x20] sm:$0xff]   ;;  %v16948_v39 = vld [vmem:[#allocation17 + $0x50] ss:$12 sps:$4 sm:$0xff]  }
 0x702   :  { %v2746_v1 = vpop.f32.mrb[43].mxu0  ;;  %15665 = vmatpush3.bf16.msra.mxu1 %v16925_v16  ;;  %15680 = vmatprep.mubr.msk.bf16.mxu1 %vm18375_vm0, %v21339_v31  ;;  %v19180_v16 = vld [vmem:[#allocation17 + $0x4c] ss:$12 sps:$4 sm:$0xff]   ;;  %v19189_v32 = vld [vmem:[#allocation17 + $0x64] ss:$12 sps:$4 sm:$0xff]  }
 0x703   :  { %v13887_v19 = vmul.f32 -1.442695, %v2755_v62  ;;  %15666 = vmatprep.subr.bf16.mxu1 %v21339_v31  ;;  %3042 = vmatprep.subr.bf16.mxu0 %v19180_v16  ;;  %v19191_v62 = vld [vmem:[#allocation17 + $0x60] ss:$12 sps:$4 sm:$0xff]   ;;  %v16952_v46 = vld [vmem:[#allocation17 + $0x68] ss:$12 sps:$4 sm:$0xff]  }
 0x704   :  { %3043 = vmatpush1.bf16.msra.mxu0 %v19184_v47  ;;  %v19196_v1 = vld [vmem:[#allocation17 + $0x7c] ss:$12 sps:$4 sm:$0xff]  }
 0x705   :  { %17775 = vpow2.f32 %v13887_v19  ;;  %3044 = vmatprep.subr.bf16.mxu0 %v19189_v32  ;;  %v16956_v19 = vld [vmem:[#allocation17 + $0x80] ss:$12 sps:$4 sm:$0xff]  }
 0x706   :  { %15667 = vmatpush3.bf16.msra.mxu1 %v16926_v61  ;;  %v19198_v61 = vld [vmem:[#allocation17 + $0x78] ss:$12 sps:$4 sm:$0xff]  }
 0x707   :  { %15668 = vmatprep.subr.bf16.mxu1 %v21339_v31 }
 0x708   :  { %3045 = vmatpush1.bf16.msra.mxu0 %v19191_v62 }
 0x709   :  { %3046 = vmatprep.subr.bf16.mxu0 %v19196_v1 }
 0x70a   :  { %15669 = vmatpush3.bf16.msra.mxu1 %v16927_v28  ;;  %v19203_v28 = vld [vmem:[#allocation17 + $0x94] ss:$12 sps:$4 sm:$0xff]  }
 0x70b   :  { %15670 = vmatprep.subr.bf16.mxu1 %v21339_v31 }
 0x70c   :  { %3047 = vmatpush1.bf16.msra.mxu0 %v19198_v61 }
 0x70d   :  { %3048 = vmatprep.subr.bf16.mxu0 %v19203_v28 }
 0x70e   :  { %15671 = vmatpush3.bf16.msra.mxu1 %v16928_v52  ;;  %v19205_v52 = vld [vmem:[#allocation17 + $0x90] ss:$12 sps:$4 sm:$0xff]  }
 0x70f   :  { %v17776_v41 = vpop.eup %17775  ;;  %15672 = vmatprep.subr.bf16.mxu1 %v21339_v31 }
 0x710   :  { %v2759_v24 = vadd.f32 1.0, %v17776_v41  ;;  %3049 = vmatpush1.bf16.msra.mxu0 %v19205_v52  ;;  %v19210_v41 = vld [vmem:[#allocation17 + $0xac] ss:$12 sps:$4 sm:$0xff]  }
 0x711   :  { %3050 = vmatprep.subr.bf16.mxu0 %v19210_v41 }
 0x712   :  { %17777 = vrcp.f32 %v2759_v24  ;;  %15673 = vmatpush3.bf16.msra.mxu1 %v16929_v56  ;;  %v16960_v56 = vld [vmem:[#allocation17 + $0x98] ss:$12 sps:$4 sm:$0xff]   ;;  %v19212_v24 = vld [vmem:[#allocation17 + $0xa8] ss:$12 sps:$4 sm:$0xff]  }
 0x713   :  { %15674 = vmatprep.subr.bf16.mxu1 %v21339_v31 }
 0x714   :  { %3051 = vmatpush1.bf16.msra.mxu0 %v19212_v24 }
 0x716   :  { %15675 = vmatpush3.bf16.msra.mxu1 %v16930_v63  ;;  %v16964_v63 = vld [vmem:[#allocation17 + $0xb0] ss:$12 sps:$4 sm:$0xff]  }
 0x717   :  { %15676 = vmatprep.subr.bf16.mxu1 %v21339_v31 }
 0x71a   :  { %15677 = vmatpush3.bf16.msra.mxu1 %v16931_v4  ;;  %v19216_v4 = vld [vmem:[#allocation19 + $0x4] ss:$8 sps:$4 sm:$0xff]  }
 0x71b   :  { %15678 = vmatprep.subr.bf16.mxu1 %v21339_v31  ;;  %3215 = vmatprep.subr.bf16.mxu0 %v19216_v4 }
 0x71c   :  { %v17778_v43 = vpop.eup %17777 }
 0x71d   :  { %v2762_v48 = vmul.f32 %v17778_v43, %v19059_v58 }
 0x71e   :  { %15679 = vmatpush3.bf16.msra.mxu1 %v16932_v6  ;;  %v16507_v6 = vadd.f32 %v19141_v8, %v19043_v30 }
 0x71f   :  { %v2763_v7 = vpack.c.bf16 %v2762_v48, %v2762_v48  ;;  %15684 = vmatprep.subr.bf16.mxu1 %v21339_v31 }
 0x720   :  { %v13860_v43 = vmul.f32 -1.442695, %v16507_v6 }
 0x721   :  { %15681 = vmatmul.mubr.bf16.vlgmr.msra.gmra.mrb[52].mxu1 %v2763_v7 }
 0x722   :  { %15700 = vmatprep.mubr.msk.bf16.mxu1 %vm18375_vm0, %v21339_v31  ;;  %15685 = vmatpush3.bf16.msra.mxu1 %v16936_v10  ;;  %17779 = vpow2.f32 %v13860_v43 }
 0x723   :  { %15686 = vmatprep.subr.bf16.mxu1 %v21339_v31 }
 0x726   :  { %15687 = vmatpush3.bf16.msra.mxu1 %v16940_v21 }
 0x727   :  { %15688 = vmatprep.subr.bf16.mxu1 %v21339_v31 }
 0x72a   :  { %15689 = vmatpush3.bf16.msra.mxu1 %v16944_v0 }
 0x72b   :  { %15690 = vmatprep.subr.bf16.mxu1 %v21339_v31 }
 0x72c   :  { %v17780_v48 = vpop.eup %17779 }
 0x72d   :  { %v2481_v7 = vadd.f32 1.0, %v17780_v48 }
 0x72e   :  { %15691 = vmatpush3.bf16.msra.mxu1 %v16948_v39 }
 0x72f   :  { %15692 = vmatprep.subr.bf16.mxu1 %v21339_v31  ;;  %17781 = vrcp.f32 %v2481_v7 }
 0x732   :  { %15693 = vmatpush3.bf16.msra.mxu1 %v16952_v46 }
 0x733   :  { %15694 = vmatprep.subr.bf16.mxu1 %v21339_v31 }
 0x736   :  { %15695 = vmatpush3.bf16.msra.mxu1 %v16956_v19 }
 0x737   :  { %15696 = vmatprep.subr.bf16.mxu1 %v21339_v31 }
 0x739   :  { %v17782_v19 = vpop.eup %17781 }
 0x73a   :  { %15697 = vmatpush3.bf16.msra.mxu1 %v16960_v56  ;;  %v13886_v56 = vmul.f32 -1.442695, %v19146_v50  ;;  %v2599_v34 = vmul.f32 %v17782_v19, %v19055_v13 }
 0x73b   :  { %15698 = vmatprep.subr.bf16.mxu1 %v21339_v31 }
 0x73e   :  { %15699 = vmatpush3.bf16.msra.mxu1 %v16964_v63  ;;  %v2600_v63 = vsub.f32 1.0, %v17782_v19 }
 0x73f   :  { %15704 = vmatprep.subr.bf16.mxu1 %v21339_v31 }
 0x7d4   :  { %v2591_v10 = vpop.f32.mrb[48].mxu1 }
 0x7d5   :  { %v16509_v21 = vadd.f32 %v2591_v10, %v19050_v5  ;;  %v15662_v0 = vpop.f32.mrb[49].mxu1 }
 0x7d6   :  { %v2594_v39 = vpop.f32.mrb[50].mxu1 }
 0x7d7   :  { %17783 = vtanh.f32 %v16509_v21  ;;  %v15663_v46 = vpop.f32.mrb[51].mxu1 }
 0x7d8   :  { %17785 = vpow2.f32 %v13886_v56 }
 0x7e1   :  { %v17784_v3 = vpop.eup %17783 }
 0x7e2   :  { %v2601_v8 = vmul.f32 %v17784_v3, %v2600_v63  ;;  %v17786_v48 = vpop.eup %17785 }
 0x7e3   :  { %v2752_v7 = vadd.f32 1.0, %v17786_v48  ;;  %v19250_v48 = vld [vmem:[#allocation19 + $0x20] ss:$8 sps:$4 sm:$0xff]  }
 0x7e4   :  { %v19226_v6 = vadd.f32 %v2601_v8, %v2599_v34 }
 0x7e5   :  { %17787 = vrcp.f32 %v2752_v7  ;;  %v19253_v7 = vld [vmem:[#allocation19 + $0x34] ss:$8 sps:$4 sm:$0xff]  }
 0x7e6   :  { %v14969_v43 = vpack.c.bf16 %v19226_v6, %v19055_v13  ;;  %v19234_v13 = vld [vmem:[#allocation19] ss:$8 sps:$4 sm:$0xff]  }
 0x7e8   :  { %14970 = vst [vmem:[#allocation22] sm:$0xff] %v14969_v43   ;;  %v19238_v43 = vld [vmem:[#allocation19 + $0x14] ss:$8 sps:$4 sm:$0xff]  }
 0x7ef   :  { %v17788_v46 = vpop.eup %17787 }
 0x7f0   :  { %v2871_v19 = vsub.f32 1.0, %v17788_v46  ;;  %v2870_v34 = vmul.f32 %v17788_v46, %v19059_v58  ;;  %v19245_v58 = vld [vmem:[#allocation19 + $0x24] ss:$8 sps:$4 sm:$0xff]  }
 0x7f1   :  { %v19271_v46 = vld [vmem:[#allocation19 + $0x64] ss:$8 sps:$4 sm:$0xff]  }
 0x7f4   :  { %v2862_v10 = vpop.f32.mrb[52].mxu1 }
 0x7f5   :  { %v2868_v21 = vadd.f32 %v2862_v10, %v18731_v36  ;;  %v15682_v0 = vpop.f32.mrb[53].mxu1  ;;  %v19241_v36 = vld [vmem:[#allocation19 + $0x10] ss:$8 sps:$4 sm:$0xff]  }
 0x7f6   :  { %v2865_v50 = vpop.f32.mrb[54].mxu1  ;;  %v19256_v10 = vld [vmem:[#allocation19 + $0x30] ss:$8 sps:$4 sm:$0xff]   ;;  %v19262_v0 = vld [vmem:[#allocation19 + $0x40] ss:$8 sps:$4 sm:$0xff]  }
 0x7f7   :  { %17789 = vtanh.f32 %v2868_v21  ;;  %v15683_v39 = vpop.f32.mrb[55].mxu1  ;;  %v19259_v21 = vld [vmem:[#allocation19 + $0x44] ss:$8 sps:$4 sm:$0xff]   ;;  %v19265_v50 = vld [vmem:[#allocation19 + $0x54] ss:$8 sps:$4 sm:$0xff]  }
 0x7f8   :  { %v19268_v39 = vld [vmem:[#allocation19 + $0x50] ss:$8 sps:$4 sm:$0xff]  }
 0x801   :  { %v17790_v56 = vpop.eup %17789 }
 0x802   :  { %v2872_v3 = vmul.f32 %v17790_v56, %v2871_v19  ;;  %v19274_v19 = vld [vmem:[#allocation19 + $0x60] ss:$8 sps:$4 sm:$0xff]   ;;  %v19277_v56 = vld [vmem:[#allocation19 + $0x74] ss:$8 sps:$4 sm:$0xff]  }
 0x804   :  { %v19232_v63 = vadd.f32 %v2872_v3, %v2870_v34  ;;  %v19280_v3 = vld [vmem:[#allocation19 + $0x70] ss:$8 sps:$4 sm:$0xff]   ;;  %v3118_v34 = vpack.c.bf16 %v19226_v6, %v19226_v6 }
 0x806   :  { %v2875_v8 = vpack.c.bf16 %v19232_v63, %v19232_v63 }
 0x808   :  { %3069 = vmatmul.mubr.bf16.vlgmr.msra.gmra.mrb[44].mxu0 %v2875_v8  ;;  %15701 = vmatmul.mubr.bf16.vlgmr.msra.gmra.mrb[56].mxu1 %v2875_v8 }
 0x809   :  { %3216 = vmatpush1.bf16.msra.mxu0 %v19234_v13  ;;  %3247 = vmatprep.mubr.bf16.mxu0 %v21340_v25 }
 0x80a   :  { %3217 = vmatprep.subr.bf16.mxu0 %v19238_v43  ;;  %15720 = vmatprep.mubr.msk.bf16.mxu1 %vm18375_vm0, %v21339_v31 }
 0x80d   :  { %3218 = vmatpush1.bf16.msra.mxu0 %v19241_v36 }
 0x80e   :  { %3219 = vmatprep.subr.bf16.mxu0 %v19245_v58 }
 0x811   :  { %3220 = vmatpush1.bf16.msra.mxu0 %v19250_v48 }
 0x812   :  { %3221 = vmatprep.subr.bf16.mxu0 %v19253_v7 }
 0x815   :  { %3222 = vmatpush1.bf16.msra.mxu0 %v19256_v10 }
 0x816   :  { %3223 = vmatprep.subr.bf16.mxu0 %v19259_v21 }
 0x819   :  { %3224 = vmatpush1.bf16.msra.mxu0 %v19262_v0 }
 0x81a   :  { %3225 = vmatprep.subr.bf16.mxu0 %v19265_v50 }
 0x81d   :  { %3226 = vmatpush1.bf16.msra.mxu0 %v19268_v39 }
 0x81e   :  { %3227 = vmatprep.subr.bf16.mxu0 %v19271_v46 }
 0x821   :  { %3228 = vmatpush1.bf16.msra.mxu0 %v19274_v19 }
 0x822   :  { %3229 = vmatprep.subr.bf16.mxu0 %v19277_v56 }
 0x825   :  { %3230 = vmatpush1.bf16.msra.mxu0 %v19280_v3 }
 0x826   :  { %3486 = vmatprep.subr.bf16.mxu0 %v19080_v49  ;;  %v16989_v49 = vld [vmem:[#allocation20] sm:$0xff]  }
 0x827   :  { %15705 = vmatpush3.bf16.msra.mxu1 %v16989_v49 }
 0x828   :  { %3248 = vmatmul.mubr.bf16.vlgmr.msra.gmra.mrb[44].mxu0 %v3118_v34  ;;  %15706 = vmatprep.subr.bf16.mxu1 %v21339_v31 }
 0x829   :  { %3487 = vmatpush1.bf16.msra.mxu0 %v19083_v20  ;;  %3518 = vmatprep.mubr.bf16.mxu0 %v21340_v25  ;;  %v16990_v20 = vld [vmem:[#allocation20 + $0x8] sm:$0xff]  }
 0x82a   :  { %3488 = vmatprep.subr.bf16.mxu0 %v19088_v35  ;;  %v16991_v35 = vld [vmem:[#allocation20 + $0x10] sm:$0xff]  }
 0x82b   :  { %15707 = vmatpush3.bf16.msra.mxu1 %v16990_v20 }
 0x82c   :  { %15708 = vmatprep.subr.bf16.mxu1 %v21339_v31 }
 0x82d   :  { %3489 = vmatpush1.bf16.msra.mxu0 %v19091_v22  ;;  %v16992_v22 = vld [vmem:[#allocation20 + $0x18] sm:$0xff]  }
 0x82e   :  { %3490 = vmatprep.subr.bf16.mxu0 %v19095_v37  ;;  %v16993_v37 = vld [vmem:[#allocation20 + $0x20] sm:$0xff]  }
 0x82f   :  { %15709 = vmatpush3.bf16.msra.mxu1 %v16991_v35  ;;  %v17005_v35 = vld [vmem:[#allocation17 + $0x8] ss:$12 sps:$4 sm:$0xff]  }
 0x830   :  { %15710 = vmatprep.subr.bf16.mxu1 %v21339_v31 }
 0x831   :  { %3491 = vmatpush1.bf16.msra.mxu0 %v19098_v17  ;;  %v16994_v17 = vld [vmem:[#allocation20 + $0x28] sm:$0xff]  }
 0x832   :  { %3492 = vmatprep.subr.bf16.mxu0 %v19101_v23  ;;  %v16995_v23 = vld [vmem:[#allocation20 + $0x30] sm:$0xff]  }
 0x833   :  { %15711 = vmatpush3.bf16.msra.mxu1 %v16992_v22  ;;  %v17006_v22 = vld [vmem:[#allocation17 + $0x20] ss:$12 sps:$4 sm:$0xff]  }
 0x834   :  { %15712 = vmatprep.subr.bf16.mxu1 %v21339_v31 }
 0x835   :  { %3493 = vmatpush1.bf16.msra.mxu0 %v19104_v40  ;;  %v16996_v40 = vld [vmem:[#allocation20 + $0x38] sm:$0xff]  }
 0x836   :  { %3494 = vmatprep.subr.bf16.mxu0 %v19107_v15 }
 0x837   :  { %15713 = vmatpush3.bf16.msra.mxu1 %v16993_v37  ;;  %v17007_v37 = vld [vmem:[#allocation17 + $0x38] ss:$12 sps:$4 sm:$0xff]  }
 0x838   :  { %15714 = vmatprep.subr.bf16.mxu1 %v21339_v31 }
 0x839   :  { %3495 = vmatpush1.bf16.msra.mxu0 %v19110_v27 }
 0x83a   :  { %3496 = vmatprep.subr.bf16.mxu0 %v19113_v54 }
 0x83b   :  { %15715 = vmatpush3.bf16.msra.mxu1 %v16994_v17  ;;  %v17008_v17 = vld [vmem:[#allocation17 + $0x50] ss:$12 sps:$4 sm:$0xff]  }
 0x83c   :  { %15716 = vmatprep.subr.bf16.mxu1 %v21339_v31 }
 0x83d   :  { %3497 = vmatpush1.bf16.msra.mxu0 %v19116_v38 }
 0x83e   :  { %3498 = vmatprep.subr.bf16.mxu0 %v19119_v55 }
 0x83f   :  { %15717 = vmatpush3.bf16.msra.mxu1 %v16995_v23  ;;  %v17009_v23 = vld [vmem:[#allocation17 + $0x68] ss:$12 sps:$4 sm:$0xff]  }
 0x840   :  { %15718 = vmatprep.subr.bf16.mxu1 %v21339_v31 }
 0x841   :  { %3499 = vmatpush1.bf16.msra.mxu0 %v19122_v12 }
 0x842   :  { %3500 = vmatprep.subr.bf16.mxu0 %v19125_v29 }
 0x843   :  { %15719 = vmatpush3.bf16.msra.mxu1 %v16996_v40  ;;  %v17010_v40 = vld [vmem:[#allocation17 + $0x80] ss:$12 sps:$4 sm:$0xff]  }
 0x844   :  { %15724 = vmatprep.subr.bf16.mxu1 %v21339_v31 }
 0x845   :  { %3501 = vmatpush1.bf16.msra.mxu0 %v19128_v33 }
 0x846   :  { %3815 = vmatprep.subr.bf16.mxu0 %v19162_v9 }
 0x848   :  { %3519 = vmatmul.mubr.bf16.vlgmr.msra.gmra.mrb[48].mxu0 %v2875_v8  ;;  %v17004_v8 = vld [vmem:[#allocation16 + $0x38] sm:$0xff]  }
 0x849   :  { %3816 = vmatpush1.bf16.msra.mxu0 %v19164_v59  ;;  %3847 = vmatprep.mubr.bf16.mxu0 %v21340_v25 }
 0x84a   :  { %3817 = vmatprep.subr.bf16.mxu0 %v19170_v42 }
 0x84d   :  { %3818 = vmatpush1.bf16.msra.mxu0 %v19168_v11  ;;  %v16997_v11 = vld [vmem:[#allocation16] sm:$0xff]  }
 0x84e   :  { %3819 = vmatprep.subr.bf16.mxu0 %v19172_v53 }
 0x851   :  { %3820 = vmatpush1.bf16.msra.mxu0 %v19177_v45 }
 0x852   :  { %3821 = vmatprep.subr.bf16.mxu0 %v19180_v16 }
 0x855   :  { %3822 = vmatpush1.bf16.msra.mxu0 %v19184_v47 }
 0x856   :  { %3823 = vmatprep.subr.bf16.mxu0 %v19189_v32 }
 0x859   :  { %3824 = vmatpush1.bf16.msra.mxu0 %v19191_v62 }
 0x85a   :  { %3825 = vmatprep.subr.bf16.mxu0 %v19196_v1  ;;  %v16998_v1 = vld [vmem:[#allocation16 + $0x8] sm:$0xff]  }
 0x85d   :  { %3826 = vmatpush1.bf16.msra.mxu0 %v19198_v61 }
 0x85e   :  { %3827 = vmatprep.subr.bf16.mxu0 %v19203_v28  ;;  %v16999_v28 = vld [vmem:[#allocation16 + $0x10] sm:$0xff]  }
 0x861   :  { %3828 = vmatpush1.bf16.msra.mxu0 %v19205_v52 }
 0x862   :  { %3829 = vmatprep.subr.bf16.mxu0 %v19210_v41 }
 0x865   :  { %3830 = vmatpush1.bf16.msra.mxu0 %v19212_v24  ;;  %v17002_v24 = vld [vmem:[#allocation16 + $0x28] sm:$0xff]  }
 0x866   :  { %3994 = vmatprep.subr.bf16.mxu0 %v19216_v4  ;;  %v17003_v4 = vld [vmem:[#allocation16 + $0x30] sm:$0xff]  }
 0x8fb   :  { %v19329_v15 = vpop.f32.mrb[44].mxu0 }
 0x8fc   :  { %v3251_v27 = vpop.f32.mrb[45].mxu0 }
 0x8fd   :  { %v16511_v54 = vadd.f32 %v3251_v27, %v19009_v51  ;;  %v3253_v38 = vpop.f32.mrb[46].mxu0  ;;  %v17011_v27 = vld [vmem:[#allocation17 + $0x98] ss:$12 sps:$4 sm:$0xff]  }
 0x8fe   :  { %v3254_v55 = vpop.f32.mrb[47].mxu0  ;;  %v16510_v38 = vadd.f32 %v19329_v15, %v19043_v30 }
 0x8ff   :  { %v13937_v12 = vmul.f32 -1.442695, %v16511_v54  ;;  %v17012_v54 = vld [vmem:[#allocation17 + $0xb0] ss:$12 sps:$4 sm:$0xff]  }
 0x900   :  { %v13936_v55 = vmul.f32 -1.442695, %v16510_v38 }
 0x901   :  { %17791 = vpow2.f32 %v13937_v12 }
 0x90b   :  { %v17792_v29 = vpop.eup %17791 }
 0x90c   :  { %v3267_v33 = vadd.f32 1.0, %v17792_v29 }
 0x90e   :  { %17793 = vrcp.f32 %v3267_v33 }
 0x918   :  { %v17794_v9 = vpop.eup %17793 }
 0x919   :  { %v3270_v59 = vmul.f32 %v17794_v9, %v19226_v6 }
 0x91b   :  { %v3520_v42 = vpop.f32.mrb[48].mxu0  ;;  %v3271_v53 = vpack.c.bf16 %v3270_v59, %v3270_v59 }
 0x91c   :  { %v19334_v45 = vadd.f32 %v3520_v42, %v18764_v60  ;;  %v3522_v16 = vpop.f32.mrb[49].mxu0  ;;  %v17000_v60 = vld [vmem:[#allocation16 + $0x18] sm:$0xff]  }
 0x91d   :  { %v3534_v47 = vadd.f32 %v3522_v16, %v18770_v2  ;;  %15721 = vmatmul.mubr.bf16.vlgmr.msra.gmra.mrb[56].mxu1 %v3271_v53  ;;  %v3524_v32 = vpop.f32.mrb[50].mxu0  ;;  %v17001_v2 = vld [vmem:[#allocation16 + $0x20] sm:$0xff]  }
 0x91e   :  { %v3525_v62 = vpop.f32.mrb[51].mxu0  ;;  %15725 = vmatpush3.bf16.msra.mxu1 %v16997_v11  ;;  %15740 = vmatprep.mubr.msk.bf16.mxu1 %vm18375_vm0, %v21339_v31  ;;  %v13962_v16 = vmul.f32 -1.442695, %v19334_v45 }
 0x91f   :  { %v13963_v61 = vmul.f32 -1.442695, %v3534_v47  ;;  %15726 = vmatprep.subr.bf16.mxu1 %v21339_v31 }
 0x921   :  { %17795 = vpow2.f32 %v13963_v61 }
 0x922   :  { %15727 = vmatpush3.bf16.msra.mxu1 %v16998_v1 }
 0x923   :  { %15728 = vmatprep.subr.bf16.mxu1 %v21339_v31 }
 0x926   :  { %15729 = vmatpush3.bf16.msra.mxu1 %v16999_v28 }
 0x927   :  { %15730 = vmatprep.subr.bf16.mxu1 %v21339_v31 }
 0x92a   :  { %15731 = vmatpush3.bf16.msra.mxu1 %v17000_v60 }
 0x92b   :  { %v17796_v52 = vpop.eup %17795  ;;  %15732 = vmatprep.subr.bf16.mxu1 %v21339_v31 }
 0x92c   :  { %v3538_v41 = vadd.f32 1.0, %v17796_v52 }
 0x92e   :  { %17797 = vrcp.f32 %v3538_v41  ;;  %15733 = vmatpush3.bf16.msra.mxu1 %v17001_v2 }
 0x92f   :  { %15734 = vmatprep.subr.bf16.mxu1 %v21339_v31  ;;  %17799 = vpow2.f32 %v13936_v55 }
 0x932   :  { %15735 = vmatpush3.bf16.msra.mxu1 %v17002_v24 }
 0x933   :  { %15736 = vmatprep.subr.bf16.mxu1 %v21339_v31 }
 0x936   :  { %15737 = vmatpush3.bf16.msra.mxu1 %v17003_v4 }
 0x937   :  { %15738 = vmatprep.subr.bf16.mxu1 %v21339_v31 }
 0x938   :  { %v17798_v34 = vpop.eup %17797 }
 0x939   :  { %v3541_v49 = vmul.f32 %v17798_v34, %v19232_v63  ;;  %v17800_v12 = vpop.eup %17799 }
 0x93a   :  { %15739 = vmatpush3.bf16.msra.mxu1 %v17004_v8  ;;  %v3260_v29 = vadd.f32 1.0, %v17800_v12 }
 0x93b   :  { %v3542_v20 = vpack.c.bf16 %v3541_v49, %v3541_v49  ;;  %15744 = vmatprep.subr.bf16.mxu1 %v21339_v31 }
 0x93c   :  { %17801 = vrcp.f32 %v3260_v29 }
 0x93d   :  { %15741 = vmatmul.mubr.bf16.vlgmr.msra.gmra.mrb[60].mxu1 %v3542_v20 }
 0x93e   :  { %15760 = vmatprep.mubr.msk.bf16.mxu1 %vm18375_vm0, %v21339_v31  ;;  %15745 = vmatpush3.bf16.msra.mxu1 %v17005_v35  ;;  %v17037_v35 = vld [vmem:[#allocation20] sm:$0xff]  }
 0x93f   :  { %15746 = vmatprep.subr.bf16.mxu1 %v21339_v31 }
 0x942   :  { %15747 = vmatpush3.bf16.msra.mxu1 %v17006_v22  ;;  %v17038_v22 = vld [vmem:[#allocation20 + $0x8] sm:$0xff]  }
 0x943   :  { %15748 = vmatprep.subr.bf16.mxu1 %v21339_v31 }
 0x946   :  { %15749 = vmatpush3.bf16.msra.mxu1 %v17007_v37  ;;  %v17802_v53 = vpop.eup %17801  ;;  %v17039_v37 = vld [vmem:[#allocation20 + $0x10] sm:$0xff]  }
 0x947   :  { %15750 = vmatprep.subr.bf16.mxu1 %v21339_v31  ;;  %v3379_v47 = vsub.f32 1.0, %v17802_v53  ;;  %v3378_v62 = vmul.f32 %v17802_v53, %v19226_v6 }
 0x94a   :  { %15751 = vmatpush3.bf16.msra.mxu1 %v17008_v17  ;;  %v17040_v17 = vld [vmem:[#allocation20 + $0x18] sm:$0xff]  }
 0x94b   :  { %15752 = vmatprep.subr.bf16.mxu1 %v21339_v31 }
 0x94e   :  { %15753 = vmatpush3.bf16.msra.mxu1 %v17009_v23  ;;  %v17041_v23 = vld [vmem:[#allocation20 + $0x20] sm:$0xff]  }
 0x94f   :  { %15754 = vmatprep.subr.bf16.mxu1 %v21339_v31 }
 0x952   :  { %15755 = vmatpush3.bf16.msra.mxu1 %v17010_v40  ;;  %v17042_v40 = vld [vmem:[#allocation20 + $0x28] sm:$0xff]  }
 0x953   :  { %15756 = vmatprep.subr.bf16.mxu1 %v21339_v31 }
 0x956   :  { %15757 = vmatpush3.bf16.msra.mxu1 %v17011_v27  ;;  %v17043_v27 = vld [vmem:[#allocation20 + $0x30] sm:$0xff]  }
 0x957   :  { %15758 = vmatprep.subr.bf16.mxu1 %v21339_v31 }
 0x95a   :  { %15759 = vmatpush3.bf16.msra.mxu1 %v17012_v54  ;;  %v17044_v54 = vld [vmem:[#allocation20 + $0x38] sm:$0xff]  }
 0x95b   :  { %15764 = vmatprep.subr.bf16.mxu1 %v21339_v31 }
 0x9f0   :  { %v3370_v33 = vpop.f32.mrb[56].mxu1 }
 0x9f1   :  { %v16512_v9 = vadd.f32 %v3370_v33, %v19050_v5  ;;  %v15722_v59 = vpop.f32.mrb[57].mxu1 }
 0x9f2   :  { %v3373_v11 = vpop.f32.mrb[58].mxu1 }
 0x9f3   :  { %17803 = vtanh.f32 %v16512_v9  ;;  %v15723_v42 = vpop.f32.mrb[59].mxu1 }
 0x9f4   :  { %17805 = vpow2.f32 %v13962_v16  ;;  %v17045_v16 = vld [vmem:[#allocation16] sm:$0xff]  }
 0x9fd   :  { %v17804_v32 = vpop.eup %17803 }
 0x9fe   :  { %v3380_v15 = vmul.f32 %v17804_v32, %v3379_v47  ;;  %v17806_v61 = vpop.eup %17805 }
 0x9ff   :  { %v3531_v28 = vadd.f32 1.0, %v17806_v61 }
 0xa00   :  { %v19363_v1 = vadd.f32 %v3380_v15, %v3378_v62 }
 0xa01   :  { %17807 = vrcp.f32 %v3531_v28 }
 0xa0b   :  { %v17808_v4 = vpop.eup %17807 }
 0xa0c   :  { %v3650_v45 = vsub.f32 1.0, %v17808_v4  ;;  %v3649_v6 = vmul.f32 %v17808_v4, %v19232_v63  ;;  %v19391_v63 = vld [vmem:[#allocation14] ss:$8 sps:$4 sm:$0xff]  }
 0xa10   :  { %v3641_v60 = vpop.f32.mrb[60].mxu1 }
 0xa11   :  { %v3647_v2 = vadd.f32 %v3641_v60, %v18743_v44  ;;  %v15742_v52 = vpop.f32.mrb[61].mxu1  ;;  %v19388_v44 = vld [vmem:[#allocation14 + $0x4] ss:$8 sps:$4 sm:$0xff]  }
 0xa12   :  { %v3644_v41 = vpop.f32.mrb[62].mxu1 }
 0xa13   :  { %17809 = vtanh.f32 %v3647_v2  ;;  %v15743_v24 = vpop.f32.mrb[63].mxu1  ;;  %v17046_v2 = vld [vmem:[#allocation16 + $0x8] sm:$0xff]   ;;  %v17047_v41 = vld [vmem:[#allocation16 + $0x10] sm:$0xff]  }
 0xa1d   :  { %v17810_v8 = vpop.eup %17809 }
 0xa1e   :  { %v3651_v34 = vmul.f32 %v17810_v8, %v3650_v45  ;;  %v17050_v45 = vld [vmem:[#allocation16 + $0x28] sm:$0xff]   ;;  %v17051_v8 = vld [vmem:[#allocation16 + $0x30] sm:$0xff]  }
 0xa20   :  { %v19367_v49 = vadd.f32 %v3651_v34, %v3649_v6  ;;  %v17052_v34 = vld [vmem:[#allocation16 + $0x38] sm:$0xff]  }
 0xa22   :  { %v3654_v20 = vpack.c.bf16 %v19367_v49, %v19367_v49 }
 0xa24   :  { %3848 = vmatmul.mubr.bf16.vlgmr.msra.gmra.mrb[52].mxu0 %v3654_v20  ;;  %15761 = vmatmul.mubr.bf16.vlgmr.msra.gmra.mrb[64].mxu1 %v3654_v20 }
 0xa25   :  { %3995 = vmatpush1.bf16.msra.mxu0 %v19234_v13  ;;  %4026 = vmatprep.mubr.bf16.mxu0 %v21340_v25  ;;  %v3897_v13 = vpack.c.bf16 %v19363_v1, %v19363_v1 }
 0xa26   :  { %3996 = vmatprep.subr.bf16.mxu0 %v19238_v43  ;;  %15780 = vmatprep.mubr.msk.bf16.mxu1 %vm18375_vm0, %v21339_v31  ;;  %v19396_v43 = vld [vmem:[#allocation14 + $0x14] ss:$8 sps:$4 sm:$0xff]  }
 0xa27   :  { %15765 = vmatpush3.bf16.msra.mxu1 %v17037_v35  ;;  %v19470_v35 = vld [vmem:[#allocation17 + $0x4] ss:$12 sps:$4 sm:$0xff]  }
 0xa28   :  { %15766 = vmatprep.subr.bf16.mxu1 %v21339_v31 }
 0xa29   :  { %3997 = vmatpush1.bf16.msra.mxu0 %v19241_v36  ;;  %v19399_v36 = vld [vmem:[#allocation14 + $0x10] ss:$8 sps:$4 sm:$0xff]  }
 0xa2a   :  { %3998 = vmatprep.subr.bf16.mxu0 %v19245_v58  ;;  %v19403_v58 = vld [vmem:[#allocation14 + $0x24] ss:$8 sps:$4 sm:$0xff]  }
 0xa2b   :  { %15767 = vmatpush3.bf16.msra.mxu1 %v17038_v22  ;;  %v19472_v22 = vld [vmem:[#allocation17] ss:$12 sps:$4 sm:$0xff]  }
 0xa2c   :  { %15768 = vmatprep.subr.bf16.mxu1 %v21339_v31 }
 0xa2d   :  { %3999 = vmatpush1.bf16.msra.mxu0 %v19250_v48  ;;  %v19406_v48 = vld [vmem:[#allocation14 + $0x20] ss:$8 sps:$4 sm:$0xff]  }
 0xa2e   :  { %4000 = vmatprep.subr.bf16.mxu0 %v19253_v7  ;;  %v19409_v7 = vld [vmem:[#allocation14 + $0x34] ss:$8 sps:$4 sm:$0xff]  }
 0xa2f   :  { %15769 = vmatpush3.bf16.msra.mxu1 %v17039_v37  ;;  %v17056_v37 = vld [vmem:[#allocation17 + $0x8] ss:$12 sps:$4 sm:$0xff]  }
 0xa30   :  { %15770 = vmatprep.subr.bf16.mxu1 %v21339_v31 }
 0xa31   :  { %4001 = vmatpush1.bf16.msra.mxu0 %v19256_v10  ;;  %v19412_v10 = vld [vmem:[#allocation14 + $0x30] ss:$8 sps:$4 sm:$0xff]  }
 0xa32   :  { %4002 = vmatprep.subr.bf16.mxu0 %v19259_v21  ;;  %v19415_v21 = vld [vmem:[#allocation14 + $0x44] ss:$8 sps:$4 sm:$0xff]  }
 0xa33   :  { %15771 = vmatpush3.bf16.msra.mxu1 %v17040_v17  ;;  %v19476_v17 = vld [vmem:[#allocation17 + $0x18] ss:$12 sps:$4 sm:$0xff]  }
 0xa34   :  { %15772 = vmatprep.subr.bf16.mxu1 %v21339_v31 }
 0xa35   :  { %4003 = vmatpush1.bf16.msra.mxu0 %v19262_v0  ;;  %v19418_v0 = vld [vmem:[#allocation14 + $0x40] ss:$8 sps:$4 sm:$0xff]  }
 0xa36   :  { %4004 = vmatprep.subr.bf16.mxu0 %v19265_v50  ;;  %v19421_v50 = vld [vmem:[#allocation14 + $0x54] ss:$8 sps:$4 sm:$0xff]  }
 0xa37   :  { %15773 = vmatpush3.bf16.msra.mxu1 %v17041_v23  ;;  %v19478_v23 = vld [vmem:[#allocation17 + $0x1c] ss:$12 sps:$4 sm:$0xff]  }
 0xa38   :  { %15774 = vmatprep.subr.bf16.mxu1 %v21339_v31 }
 0xa39   :  { %4005 = vmatpush1.bf16.msra.mxu0 %v19268_v39  ;;  %v19424_v39 = vld [vmem:[#allocation14 + $0x50] ss:$8 sps:$4 sm:$0xff]  }
 0xa3a   :  { %4006 = vmatprep.subr.bf16.mxu0 %v19271_v46  ;;  %v19427_v46 = vld [vmem:[#allocation14 + $0x64] ss:$8 sps:$4 sm:$0xff]  }
 0xa3b   :  { %15775 = vmatpush3.bf16.msra.mxu1 %v17042_v40  ;;  %v17060_v40 = vld [vmem:[#allocation17 + $0x20] ss:$12 sps:$4 sm:$0xff]  }
 0xa3c   :  { %15776 = vmatprep.subr.bf16.mxu1 %v21339_v31 }
 0xa3d   :  { %4007 = vmatpush1.bf16.msra.mxu0 %v19274_v19  ;;  %v19430_v19 = vld [vmem:[#allocation14 + $0x60] ss:$8 sps:$4 sm:$0xff]  }
 0xa3e   :  { %4008 = vmatprep.subr.bf16.mxu0 %v19277_v56  ;;  %v19433_v56 = vld [vmem:[#allocation14 + $0x74] ss:$8 sps:$4 sm:$0xff]  }
 0xa3f   :  { %15777 = vmatpush3.bf16.msra.mxu1 %v17043_v27  ;;  %v19480_v27 = vld [vmem:[#allocation17 + $0x34] ss:$12 sps:$4 sm:$0xff]  }
 0xa40   :  { %15778 = vmatprep.subr.bf16.mxu1 %v21339_v31 }
 0xa41   :  { %4009 = vmatpush1.bf16.msra.mxu0 %v19280_v3  ;;  %v19436_v3 = vld [vmem:[#allocation14 + $0x70] ss:$8 sps:$4 sm:$0xff]  }
 0xa42   :  { %4265 = vmatprep.subr.bf16.mxu0 %v19388_v44 }
 0xa43   :  { %15779 = vmatpush3.bf16.msra.mxu1 %v17044_v54  ;;  %v19485_v54 = vld [vmem:[#allocation17 + $0x30] ss:$12 sps:$4 sm:$0xff]  }
 0xa44   :  { %4027 = vmatmul.mubr.bf16.vlgmr.msra.gmra.mrb[52].mxu0 %v3897_v13  ;;  %15784 = vmatprep.subr.bf16.mxu1 %v21339_v31 }
 0xa45   :  { %4266 = vmatpush1.bf16.msra.mxu0 %v19391_v63  ;;  %4297 = vmatprep.mubr.bf16.mxu0 %v21340_v25 }
 0xa46   :  { %4267 = vmatprep.subr.bf16.mxu0 %v19396_v43 }
 0xa49   :  { %4268 = vmatpush1.bf16.msra.mxu0 %v19399_v36 }
 0xa4a   :  { %4269 = vmatprep.subr.bf16.mxu0 %v19403_v58 }
 0xa4d   :  { %4270 = vmatpush1.bf16.msra.mxu0 %v19406_v48 }
 0xa4e   :  { %4271 = vmatprep.subr.bf16.mxu0 %v19409_v7 }
 0xa51   :  { %4272 = vmatpush1.bf16.msra.mxu0 %v19412_v10 }
 0xa52   :  { %4273 = vmatprep.subr.bf16.mxu0 %v19415_v21 }
 0xa55   :  { %4274 = vmatpush1.bf16.msra.mxu0 %v19418_v0 }
 0xa56   :  { %4275 = vmatprep.subr.bf16.mxu0 %v19421_v50 }
 0xa59   :  { %4276 = vmatpush1.bf16.msra.mxu0 %v19424_v39 }
 0xa5a   :  { %4277 = vmatprep.subr.bf16.mxu0 %v19427_v46 }
 0xa5d   :  { %4278 = vmatpush1.bf16.msra.mxu0 %v19430_v19 }
 0xa5e   :  { %4279 = vmatprep.subr.bf16.mxu0 %v19433_v56 }
 0xa61   :  { %4280 = vmatpush1.bf16.msra.mxu0 %v19436_v3 }
 0xa62   :  { %4594 = vmatprep.subr.bf16.mxu0 %v19470_v35 }
 0xa64   :  { %4298 = vmatmul.mubr.bf16.vlgmr.msra.gmra.mrb[56].mxu0 %v3654_v20 }
 0xa65   :  { %4626 = vmatprep.mubr.bf16.mxu0 %v21340_v25  ;;  %4595 = vmatpush1.bf16.msra.mxu0 %v19472_v22 }
 0xa66   :  { %4596 = vmatprep.subr.bf16.mxu0 %v19478_v23 }
 0xa69   :  { %4597 = vmatpush1.bf16.msra.mxu0 %v19476_v17 }
 0xa6a   :  { %4598 = vmatprep.subr.bf16.mxu0 %v19480_v27 }
 0xa6d   :  { %4599 = vmatpush1.bf16.msra.mxu0 %v19485_v54 }
 0xb17   :  { %v19449_v38 = vpop.f32.mrb[52].mxu0 }
 0xb18   :  { %v4030_v55 = vpop.f32.mrb[53].mxu0 }
 0xb19   :  { %v16514_v12 = vadd.f32 %v4030_v55, %v19009_v51  ;;  %v4032_v29 = vpop.f32.mrb[54].mxu0  ;;  %v17064_v55 = vld [vmem:[#allocation17 + $0x38] ss:$12 sps:$4 sm:$0xff]  }
 0xb1a   :  { %v4033_v33 = vpop.f32.mrb[55].mxu0  ;;  %v19492_v29 = vld [vmem:[#allocation17 + $0x48] ss:$12 sps:$4 sm:$0xff]  }
 0xb1b   :  { %v14013_v9 = vmul.f32 -1.442695, %v16514_v12  ;;  %v19488_v12 = vld [vmem:[#allocation17 + $0x4c] ss:$12 sps:$4 sm:$0xff]   ;;  %v17068_v33 = vld [vmem:[#allocation17 + $0x50] ss:$12 sps:$4 sm:$0xff]  }
 0xb1c   :  { %4600 = vmatprep.subr.bf16.mxu0 %v19488_v12 }
 0xb1d   :  { %17811 = vpow2.f32 %v14013_v9  ;;  %4601 = vmatpush1.bf16.msra.mxu0 %v19492_v29  ;;  %v19497_v9 = vld [vmem:[#allocation17 + $0x64] ss:$12 sps:$4 sm:$0xff]  }
 0xb1e   :  { %4602 = vmatprep.subr.bf16.mxu0 %v19497_v9 }
 0xb27   :  { %v17812_v59 = vpop.eup %17811 }
 0xb28   :  { %v4046_v11 = vadd.f32 1.0, %v17812_v59  ;;  %v19499_v59 = vld [vmem:[#allocation17 + $0x60] ss:$12 sps:$4 sm:$0xff]  }
 0xb29   :  { %4603 = vmatpush1.bf16.msra.mxu0 %v19499_v59 }
 0xb2a   :  { %17813 = vrcp.f32 %v4046_v11  ;;  %v17072_v11 = vld [vmem:[#allocation17 + $0x68] ss:$12 sps:$4 sm:$0xff]  }
 0xb34   :  { %v17814_v42 = vpop.eup %17813 }
 0xb35   :  { %v4049_v53 = vmul.f32 %v17814_v42, %v19363_v1  ;;  %v19504_v42 = vld [vmem:[#allocation17 + $0x7c] ss:$12 sps:$4 sm:$0xff]  }
 0xb36   :  { %4604 = vmatprep.subr.bf16.mxu0 %v19504_v42 }
 0xb37   :  { %v4299_v47 = vpop.f32.mrb[56].mxu0  ;;  %v4050_v32 = vpack.c.bf16 %v4049_v53, %v4049_v53  ;;  %v19506_v53 = vld [vmem:[#allocation17 + $0x78] ss:$12 sps:$4 sm:$0xff]  }
 0xb38   :  { %v19454_v62 = vadd.f32 %v4299_v47, %v18776_v14  ;;  %v4301_v15 = vpop.f32.mrb[57].mxu0  ;;  %v17048_v14 = vld [vmem:[#allocation16 + $0x18] sm:$0xff]   ;;  %4605 = vmatpush1.bf16.msra.mxu0 %v19506_v53  ;;  %v19511_v47 = vld [vmem:[#allocation17 + $0x94] ss:$12 sps:$4 sm:$0xff]  }
 0xb39   :  { %v4313_v61 = vadd.f32 %v4301_v15, %v18782_v18  ;;  %15781 = vmatmul.mubr.bf16.vlgmr.msra.gmra.mrb[64].mxu1 %v4050_v32  ;;  %v4303_v28 = vpop.f32.mrb[58].mxu0  ;;  %v17049_v18 = vld [vmem:[#allocation16 + $0x20] sm:$0xff]   ;;  %v19513_v32 = vld [vmem:[#allocation17 + $0x90] ss:$12 sps:$4 sm:$0xff]   ;;  %4606 = vmatprep.subr.bf16.mxu0 %v19511_v47 }
 0xb3a   :  { %v4304_v60 = vpop.f32.mrb[59].mxu0  ;;  %15785 = vmatpush3.bf16.msra.mxu1 %v17045_v16  ;;  %15800 = vmatprep.mubr.msk.bf16.mxu1 %vm18375_vm0, %v21339_v31  ;;  %v17076_v16 = vld [vmem:[#allocation17 + $0x80] ss:$12 sps:$4 sm:$0xff]   ;;  %v17080_v15 = vld [vmem:[#allocation17 + $0x98] ss:$12 sps:$4 sm:$0xff]  }
 0xb3b   :  { %v14039_v52 = vmul.f32 -1.442695, %v4313_v61  ;;  %15786 = vmatprep.subr.bf16.mxu1 %v21339_v31  ;;  %v19518_v61 = vld [vmem:[#allocation17 + $0xac] ss:$12 sps:$4 sm:$0xff]   ;;  %v19520_v28 = vld [vmem:[#allocation17 + $0xa8] ss:$12 sps:$4 sm:$0xff]  }
 0xb3c   :  { %4607 = vmatpush1.bf16.msra.mxu0 %v19513_v32  ;;  %v17084_v60 = vld [vmem:[#allocation17 + $0xb0] ss:$12 sps:$4 sm:$0xff]  }
 0xb3d   :  { %17815 = vpow2.f32 %v14039_v52  ;;  %4608 = vmatprep.subr.bf16.mxu0 %v19518_v61  ;;  %v16513_v52 = vadd.f32 %v19449_v38, %v19043_v30 }
 0xb3e   :  { %15787 = vmatpush3.bf16.msra.mxu1 %v17046_v2  ;;  %v19524_v2 = vld [vmem:[#allocation19 + $0x4] ss:$8 sps:$4 sm:$0xff]  }
 0xb3f   :  { %15788 = vmatprep.subr.bf16.mxu1 %v21339_v31 }
 0xb40   :  { %4609 = vmatpush1.bf16.msra.mxu0 %v19520_v28 }
 0xb41   :  { %4773 = vmatprep.subr.bf16.mxu0 %v19524_v2 }
 0xb42   :  { %15789 = vmatpush3.bf16.msra.mxu1 %v17047_v41  ;;  %v14012_v41 = vmul.f32 -1.442695, %v16513_v52 }
 0xb43   :  { %15790 = vmatprep.subr.bf16.mxu1 %v21339_v31 }
 0xb46   :  { %15791 = vmatpush3.bf16.msra.mxu1 %v17048_v14 }
 0xb47   :  { %v17816_v24 = vpop.eup %17815  ;;  %15792 = vmatprep.subr.bf16.mxu1 %v21339_v31 }
 0xb48   :  { %v4317_v4 = vadd.f32 1.0, %v17816_v24 }
 0xb4a   :  { %17817 = vrcp.f32 %v4317_v4  ;;  %15793 = vmatpush3.bf16.msra.mxu1 %v17049_v18 }
 0xb4b   :  { %15794 = vmatprep.subr.bf16.mxu1 %v21339_v31  ;;  %17819 = vpow2.f32 %v14012_v41 }
 0xb4e   :  { %15795 = vmatpush3.bf16.msra.mxu1 %v17050_v45 }
 0xb4f   :  { %15796 = vmatprep.subr.bf16.mxu1 %v21339_v31 }
 0xb52   :  { %15797 = vmatpush3.bf16.msra.mxu1 %v17051_v8 }
 0xb53   :  { %15798 = vmatprep.subr.bf16.mxu1 %v21339_v31 }
 0xb54   :  { %v17818_v6 = vpop.eup %17817 }
 0xb55   :  { %v4320_v20 = vmul.f32 %v17818_v6, %v19367_v49  ;;  %v17820_v14 = vpop.eup %17819 }
 0xb56   :  { %15799 = vmatpush3.bf16.msra.mxu1 %v17052_v34  ;;  %v4039_v18 = vadd.f32 1.0, %v17820_v14 }
 0xb57   :  { %v4321_v13 = vpack.c.bf16 %v4320_v20, %v4320_v20  ;;  %15804 = vmatprep.subr.bf16.mxu1 %v21339_v31  ;;  %v14038_v20 = vmul.f32 -1.442695, %v19454_v62 }
 0xb58   :  { %17821 = vrcp.f32 %v4039_v18 }
 0xb59   :  { %15801 = vmatmul.mubr.bf16.vlgmr.msra.gmra.mrb[68].mxu1 %v4321_v13 }
 0xb5a   :  { %15820 = vmatprep.mubr.msk.bf16.mxu1 %vm18375_vm0, %v21339_v31  ;;  %15805 = vmatpush3.bf16.msra.mxu1 %v17056_v37 }
 0xb5b   :  { %15806 = vmatprep.subr.bf16.mxu1 %v21339_v31 }
 0xb5e   :  { %15807 = vmatpush3.bf16.msra.mxu1 %v17060_v40 }
 0xb5f   :  { %15808 = vmatprep.subr.bf16.mxu1 %v21339_v31 }
 0xb62   :  { %15809 = vmatpush3.bf16.msra.mxu1 %v17064_v55  ;;  %v17822_v6 = vpop.eup %17821 }
 0xb63   :  { %15810 = vmatprep.subr.bf16.mxu1 %v21339_v31  ;;  %v4158_v13 = vsub.f32 1.0, %v17822_v6  ;;  %v4157_v40 = vmul.f32 %v17822_v6, %v19363_v1  ;;  %v19546_v6 = vld [vmem:[#allocation19 + $0x14] ss:$8 sps:$4 sm:$0xff]  }
 0xb66   :  { %15811 = vmatpush3.bf16.msra.mxu1 %v17068_v33 }
 0xb67   :  { %15812 = vmatprep.subr.bf16.mxu1 %v21339_v31 }
 0xb6a   :  { %15813 = vmatpush3.bf16.msra.mxu1 %v17072_v11 }
 0xb6b   :  { %15814 = vmatprep.subr.bf16.mxu1 %v21339_v31 }
 0xb6e   :  { %15815 = vmatpush3.bf16.msra.mxu1 %v17076_v16 }
 0xb6f   :  { %15816 = vmatprep.subr.bf16.mxu1 %v21339_v31 }
 0xb72   :  { %15817 = vmatpush3.bf16.msra.mxu1 %v17080_v15 }
 0xb73   :  { %15818 = vmatprep.subr.bf16.mxu1 %v21339_v31 }
 0xb76   :  { %15819 = vmatpush3.bf16.msra.mxu1 %v17084_v60 }
 0xb77   :  { %15824 = vmatprep.subr.bf16.mxu1 %v21339_v31 }
 0xc0c   :  { %v4149_v24 = vpop.f32.mrb[64].mxu1 }
 0xc0d   :  { %v16515_v4 = vadd.f32 %v4149_v24, %v19050_v5  ;;  %v15782_v45 = vpop.f32.mrb[65].mxu1 }
 0xc0e   :  { %v4152_v8 = vpop.f32.mrb[66].mxu1 }
 0xc0f   :  { %17823 = vtanh.f32 %v16515_v4  ;;  %v15783_v34 = vpop.f32.mrb[67].mxu1 }
 0xc10   :  { %17825 = vpow2.f32 %v14038_v20  ;;  %v19558_v20 = vld [vmem:[#allocation19 + $0x20] ss:$8 sps:$4 sm:$0xff]  }
 0xc19   :  { %v17824_v37 = vpop.eup %17823 }
 0xc1a   :  { %v4159_v38 = vmul.f32 %v17824_v37, %v4158_v13  ;;  %v17826_v11 = vpop.eup %17825  ;;  %v19561_v13 = vld [vmem:[#allocation19 + $0x34] ss:$8 sps:$4 sm:$0xff]   ;;  %v19564_v37 = vld [vmem:[#allocation19 + $0x30] ss:$8 sps:$4 sm:$0xff]  }
 0xc1b   :  { %v4310_v16 = vadd.f32 1.0, %v17826_v11  ;;  %v19576_v11 = vld [vmem:[#allocation19 + $0x50] ss:$8 sps:$4 sm:$0xff]  }
 0xc1c   :  { %v19534_v55 = vadd.f32 %v4159_v38, %v4157_v40  ;;  %v19567_v40 = vld [vmem:[#allocation19 + $0x44] ss:$8 sps:$4 sm:$0xff]   ;;  %v19570_v38 = vld [vmem:[#allocation19 + $0x40] ss:$8 sps:$4 sm:$0xff]  }
 0xc1d   :  { %17827 = vrcp.f32 %v4310_v16  ;;  %v19579_v16 = vld [vmem:[#allocation19 + $0x64] ss:$8 sps:$4 sm:$0xff]  }
 0xc1e   :  { %v14974_v33 = vpack.c.bf16 %v19534_v55, %v19363_v1  ;;  %v19542_v1 = vld [vmem:[#allocation19] ss:$8 sps:$4 sm:$0xff]  }
 0xc20   :  { %15006 = vst [vmem:[#allocation22 + $0x8] sm:$0xff] %v14974_v33   ;;  %v19573_v33 = vld [vmem:[#allocation19 + $0x54] ss:$8 sps:$4 sm:$0xff]  }
 0xc27   :  { %v17828_v14 = vpop.eup %17827 }
 0xc28   :  { %v4429_v18 = vsub.f32 1.0, %v17828_v14  ;;  %v4428_v45 = vmul.f32 %v17828_v14, %v19367_v49  ;;  %v19553_v49 = vld [vmem:[#allocation19 + $0x24] ss:$8 sps:$4 sm:$0xff]   ;;  %v17123_v14 = vld [vmem:[#allocation16 + $0x30] sm:$0xff]  }
 0xc2c   :  { %v4420_v15 = vpop.f32.mrb[68].mxu1 }
 0xc2d   :  { %v4426_v60 = vadd.f32 %v4420_v15, %v18761_v57  ;;  %v15802_v52 = vpop.f32.mrb[69].mxu1  ;;  %v19549_v57 = vld [vmem:[#allocation19 + $0x10] ss:$8 sps:$4 sm:$0xff]   ;;  %v19582_v15 = vld [vmem:[#allocation19 + $0x60] ss:$8 sps:$4 sm:$0xff]  }
 0xc2e   :  { %v4423_v62 = vpop.f32.mrb[70].mxu1  ;;  %v19588_v52 = vld [vmem:[#allocation19 + $0x70] ss:$8 sps:$4 sm:$0xff]  }
 0xc2f   :  { %17829 = vtanh.f32 %v4426_v60  ;;  %v15803_v41 = vpop.f32.mrb[71].mxu1  ;;  %v19585_v60 = vld [vmem:[#allocation19 + $0x74] ss:$8 sps:$4 sm:$0xff]   ;;  %v4676_v62 = vpack.c.bf16 %v19534_v55, %v19534_v55 }
 0xc30   :  { %v17122_v41 = vld [vmem:[#allocation16 + $0x28] sm:$0xff]  }
 0xc39   :  { %v17830_v24 = vpop.eup %17829 }
 0xc3a   :  { %v4430_v4 = vmul.f32 %v17830_v24, %v4429_v18  ;;  %v17124_v18 = vld [vmem:[#allocation16 + $0x38] sm:$0xff]  }
 0xc3c   :  { %v19540_v8 = vadd.f32 %v4430_v4, %v4428_v45 }
 0xc3e   :  { %v4433_v34 = vpack.c.bf16 %v19540_v8, %v19540_v8 }
 0xc40   :  { %4627 = vmatmul.mubr.bf16.vlgmr.msra.gmra.mrb[60].mxu0 %v4433_v34  ;;  %15821 = vmatmul.mubr.bf16.vlgmr.msra.gmra.mrb[72].mxu1 %v4433_v34 }
 0xc41   :  { %4774 = vmatpush1.bf16.msra.mxu0 %v19542_v1  ;;  %4805 = vmatprep.mubr.bf16.mxu0 %v21340_v25 }
 0xc42   :  { %4775 = vmatprep.subr.bf16.mxu0 %v19546_v6  ;;  %15840 = vmatprep.mubr.msk.bf16.mxu1 %vm18375_vm0, %v21339_v31 }
 0xc45   :  { %4776 = vmatpush1.bf16.msra.mxu0 %v19549_v57 }
 0xc46   :  { %4777 = vmatprep.subr.bf16.mxu0 %v19553_v49 }
 0xc49   :  { %4778 = vmatpush1.bf16.msra.mxu0 %v19558_v20 }
 0xc4a   :  { %4779 = vmatprep.subr.bf16.mxu0 %v19561_v13 }
 0xc4d   :  { %4780 = vmatpush1.bf16.msra.mxu0 %v19564_v37 }
 0xc4e   :  { %4781 = vmatprep.subr.bf16.mxu0 %v19567_v40 }
 0xc51   :  { %4782 = vmatpush1.bf16.msra.mxu0 %v19570_v38 }
 0xc52   :  { %4783 = vmatprep.subr.bf16.mxu0 %v19573_v33 }
 0xc55   :  { %4784 = vmatpush1.bf16.msra.mxu0 %v19576_v11 }
 0xc56   :  { %4785 = vmatprep.subr.bf16.mxu0 %v19579_v16 }
 0xc59   :  { %4786 = vmatpush1.bf16.msra.mxu0 %v19582_v15 }
 0xc5a   :  { %4787 = vmatprep.subr.bf16.mxu0 %v19585_v60 }
 0xc5d   :  { %4788 = vmatpush1.bf16.msra.mxu0 %v19588_v52 }
 0xc5e   :  { %5044 = vmatprep.subr.bf16.mxu0 %v19388_v44  ;;  %v17109_v44 = vld [vmem:[#allocation20] sm:$0xff]  }
 0xc5f   :  { %15825 = vmatpush3.bf16.msra.mxu1 %v17109_v44  ;;  %v17127_v44 = vld [vmem:[#allocation17 + $0x38] ss:$12 sps:$4 sm:$0xff]  }
 0xc60   :  { %4806 = vmatmul.mubr.bf16.vlgmr.msra.gmra.mrb[60].mxu0 %v4676_v62  ;;  %15826 = vmatprep.subr.bf16.mxu1 %v21339_v31  ;;  %v17126_v62 = vld [vmem:[#allocation17 + $0x20] ss:$12 sps:$4 sm:$0xff]  }
 0xc61   :  { %5045 = vmatpush1.bf16.msra.mxu0 %v19391_v63  ;;  %5076 = vmatprep.mubr.bf16.mxu0 %v21340_v25  ;;  %v17110_v63 = vld [vmem:[#allocation20 + $0x8] sm:$0xff]  }
 0xc62   :  { %5046 = vmatprep.subr.bf16.mxu0 %v19396_v43  ;;  %v17111_v43 = vld [vmem:[#allocation20 + $0x10] sm:$0xff]  }
 0xc63   :  { %15827 = vmatpush3.bf16.msra.mxu1 %v17110_v63  ;;  %v17128_v63 = vld [vmem:[#allocation17 + $0x50] ss:$12 sps:$4 sm:$0xff]  }
 0xc64   :  { %15828 = vmatprep.subr.bf16.mxu1 %v21339_v31 }
 0xc65   :  { %5047 = vmatpush1.bf16.msra.mxu0 %v19399_v36  ;;  %v17112_v36 = vld [vmem:[#allocation20 + $0x18] sm:$0xff]  }
 0xc66   :  { %5048 = vmatprep.subr.bf16.mxu0 %v19403_v58  ;;  %v17113_v58 = vld [vmem:[#allocation20 + $0x20] sm:$0xff]  }
 0xc67   :  { %15829 = vmatpush3.bf16.msra.mxu1 %v17111_v43  ;;  %v17129_v43 = vld [vmem:[#allocation17 + $0x68] ss:$12 sps:$4 sm:$0xff]  }
 0xc68   :  { %15830 = vmatprep.subr.bf16.mxu1 %v21339_v31 }
 0xc69   :  { %5049 = vmatpush1.bf16.msra.mxu0 %v19406_v48  ;;  %v17114_v48 = vld [vmem:[#allocation20 + $0x28] sm:$0xff]  }
 0xc6a   :  { %5050 = vmatprep.subr.bf16.mxu0 %v19409_v7  ;;  %v17115_v7 = vld [vmem:[#allocation20 + $0x30] sm:$0xff]  }
 0xc6b   :  { %15831 = vmatpush3.bf16.msra.mxu1 %v17112_v36  ;;  %v17130_v36 = vld [vmem:[#allocation17 + $0x80] ss:$12 sps:$4 sm:$0xff]  }
 0xc6c   :  { %15832 = vmatprep.subr.bf16.mxu1 %v21339_v31 }
 0xc6d   :  { %5051 = vmatpush1.bf16.msra.mxu0 %v19412_v10  ;;  %v17116_v10 = vld [vmem:[#allocation20 + $0x38] sm:$0xff]  }
 0xc6e   :  { %5052 = vmatprep.subr.bf16.mxu0 %v19415_v21 }
 0xc6f   :  { %15833 = vmatpush3.bf16.msra.mxu1 %v17113_v58  ;;  %v17131_v58 = vld [vmem:[#allocation17 + $0x98] ss:$12 sps:$4 sm:$0xff]  }
 0xc70   :  { %15834 = vmatprep.subr.bf16.mxu1 %v21339_v31 }
 0xc71   :  { %5053 = vmatpush1.bf16.msra.mxu0 %v19418_v0 }
 0xc72   :  { %5054 = vmatprep.subr.bf16.mxu0 %v19421_v50 }
 0xc73   :  { %15835 = vmatpush3.bf16.msra.mxu1 %v17114_v48  ;;  %v17132_v48 = vld [vmem:[#allocation17 + $0xb0] ss:$12 sps:$4 sm:$0xff]  }
 0xc74   :  { %15836 = vmatprep.subr.bf16.mxu1 %v21339_v31 }
 0xc75   :  { %5055 = vmatpush1.bf16.msra.mxu0 %v19424_v39 }
 0xc76   :  { %5056 = vmatprep.subr.bf16.mxu0 %v19427_v46 }
 0xc77   :  { %15837 = vmatpush3.bf16.msra.mxu1 %v17115_v7 }
 0xc78   :  { %15838 = vmatprep.subr.bf16.mxu1 %v21339_v31 }
 0xc79   :  { %5057 = vmatpush1.bf16.msra.mxu0 %v19430_v19 }
 0xc7a   :  { %5058 = vmatprep.subr.bf16.mxu0 %v19433_v56 }
 0xc7b   :  { %15839 = vmatpush3.bf16.msra.mxu1 %v17116_v10 }
 0xc7c   :  { %15844 = vmatprep.subr.bf16.mxu1 %v21339_v31 }
 0xc7d   :  { %5059 = vmatpush1.bf16.msra.mxu0 %v19436_v3 }
 0xc7e   :  { %5373 = vmatprep.subr.bf16.mxu0 %v19470_v35 }
 0xc80   :  { %5077 = vmatmul.mubr.bf16.vlgmr.msra.gmra.mrb[64].mxu0 %v4433_v34  ;;  %v17125_v34 = vld [vmem:[#allocation17 + $0x8] ss:$12 sps:$4 sm:$0xff]  }
 0xc81   :  { %5374 = vmatpush1.bf16.msra.mxu0 %v19472_v22  ;;  %5405 = vmatprep.mubr.bf16.mxu0 %v21340_v25 }
 0xc82   :  { %5375 = vmatprep.subr.bf16.mxu0 %v19478_v23 }
 0xc85   :  { %5376 = vmatpush1.bf16.msra.mxu0 %v19476_v17  ;;  %v17117_v17 = vld [vmem:[#allocation16] sm:$0xff]  }
 0xc86   :  { %5377 = vmatprep.subr.bf16.mxu0 %v19480_v27 }
 0xc89   :  { %5378 = vmatpush1.bf16.msra.mxu0 %v19485_v54 }
 0xc8a   :  { %5379 = vmatprep.subr.bf16.mxu0 %v19488_v12 }
 0xc8d   :  { %5380 = vmatpush1.bf16.msra.mxu0 %v19492_v29  ;;  %v21344_v29 = vld [vmem:[#allocation39_spill] sm:$0xff] }
 0xc8e   :  { %5381 = vmatprep.subr.bf16.mxu0 %v19497_v9 }
 0xc91   :  { %5382 = vmatpush1.bf16.msra.mxu0 %v19499_v59 }
 0xc92   :  { %5383 = vmatprep.subr.bf16.mxu0 %v19504_v42 }
 0xc95   :  { %5384 = vmatpush1.bf16.msra.mxu0 %v19506_v53  ;;  %v17118_v53 = vld [vmem:[#allocation16 + $0x8] sm:$0xff]  }
 0xc96   :  { %5385 = vmatprep.subr.bf16.mxu0 %v19511_v47 }
 0xc99   :  { %5386 = vmatpush1.bf16.msra.mxu0 %v19513_v32  ;;  %v17119_v32 = vld [vmem:[#allocation16 + $0x10] sm:$0xff]  }
 0xc9a   :  { %5387 = vmatprep.subr.bf16.mxu0 %v19518_v61  ;;  %v17121_v61 = vld [vmem:[#allocation16 + $0x20] sm:$0xff]  }
 0xc9d   :  { %5388 = vmatpush1.bf16.msra.mxu0 %v19520_v28 }
 0xc9e   :  { %5552 = vmatprep.subr.bf16.mxu0 %v19524_v2 }
 0xd33   :  { %v19637_v21 = vpop.f32.mrb[60].mxu0 }
 0xd34   :  { %v4809_v0 = vpop.f32.mrb[61].mxu0  ;;  %v16516_v7 = vadd.f32 %v19637_v21, %v19043_v30 }
 0xd35   :  { %v16517_v50 = vadd.f32 %v4809_v0, %v19009_v51  ;;  %v4811_v39 = vpop.f32.mrb[62].mxu0 }
 0xd36   :  { %v4812_v46 = vpop.f32.mrb[63].mxu0  ;;  %v14088_v10 = vmul.f32 -1.442695, %v16516_v7 }
 0xd37   :  { %v14089_v19 = vmul.f32 -1.442695, %v16517_v50 }
 0xd39   :  { %17831 = vpow2.f32 %v14089_v19 }
 0xd43   :  { %v17832_v56 = vpop.eup %17831 }
 0xd44   :  { %v4825_v3 = vadd.f32 1.0, %v17832_v56 }
 0xd46   :  { %17833 = vrcp.f32 %v4825_v3 }
 0xd50   :  { %v17834_v35 = vpop.eup %17833 }
 0xd51   :  { %v4828_v22 = vmul.f32 %v17834_v35, %v19534_v55 }
 0xd53   :  { %v5078_v23 = vpop.f32.mrb[64].mxu0  ;;  %v4829_v27 = vpack.c.bf16 %v4828_v22, %v4828_v22 }
 0xd54   :  { %v19642_v54 = vadd.f32 %v5078_v23, %v18788_v26  ;;  %v5080_v12 = vpop.f32.mrb[65].mxu0  ;;  %v17120_v26 = vld [vmem:[#allocation16 + $0x18] sm:$0xff]  }
 0xd55   :  { %v5092_v9 = vadd.f32 %v5080_v12, %v21344_v29  ;;  %15841 = vmatmul.mubr.bf16.vlgmr.msra.gmra.mrb[72].mxu1 %v4829_v27  ;;  %v5082_v59 = vpop.f32.mrb[66].mxu0 }
 0xd56   :  { %v5083_v42 = vpop.f32.mrb[67].mxu0  ;;  %15845 = vmatpush3.bf16.msra.mxu1 %v17117_v17  ;;  %15860 = vmatprep.mubr.msk.bf16.mxu1 %vm18375_vm0, %v21339_v31  ;;  %v14114_v22 = vmul.f32 -1.442695, %v19642_v54 }
 0xd57   :  { %v14115_v47 = vmul.f32 -1.442695, %v5092_v9  ;;  %15846 = vmatprep.subr.bf16.mxu1 %v21339_v31  ;;  %v21345_v42 = vld [vmem:[#allocation35_spill] sm:$0xff] }
 0xd59   :  { %17835 = vpow2.f32 %v14115_v47 }
 0xd5a   :  { %15847 = vmatpush3.bf16.msra.mxu1 %v17118_v53 }
 0xd5b   :  { %15848 = vmatprep.subr.bf16.mxu1 %v21339_v31 }
 0xd5e   :  { %15849 = vmatpush3.bf16.msra.mxu1 %v17119_v32 }
 0xd5f   :  { %15850 = vmatprep.subr.bf16.mxu1 %v21339_v31 }
 0xd62   :  { %15851 = vmatpush3.bf16.msra.mxu1 %v17120_v26 }
 0xd63   :  { %v17836_v28 = vpop.eup %17835  ;;  %15852 = vmatprep.subr.bf16.mxu1 %v21339_v31 }
 0xd64   :  { %v5096_v2 = vadd.f32 1.0, %v17836_v28 }
 0xd66   :  { %17837 = vrcp.f32 %v5096_v2  ;;  %15853 = vmatpush3.bf16.msra.mxu1 %v17121_v61 }
 0xd67   :  { %15854 = vmatprep.subr.bf16.mxu1 %v21339_v31  ;;  %17839 = vpow2.f32 %v14088_v10 }
 0xd6a   :  { %15855 = vmatpush3.bf16.msra.mxu1 %v17122_v41 }
 0xd6b   :  { %15856 = vmatprep.subr.bf16.mxu1 %v21339_v31 }
 0xd6e   :  { %15857 = vmatpush3.bf16.msra.mxu1 %v17123_v14 }
 0xd6f   :  { %15858 = vmatprep.subr.bf16.mxu1 %v21339_v31 }
 0xd70   :  { %v17838_v24 = vpop.eup %17837 }
 0xd71   :  { %v5099_v4 = vmul.f32 %v17838_v24, %v19540_v8  ;;  %v17840_v0 = vpop.eup %17839  ;;  %v17157_v24 = vld [vmem:[#allocation20] sm:$0xff]  }
 0xd72   :  { %15859 = vmatpush3.bf16.msra.mxu1 %v17124_v18  ;;  %v4818_v50 = vadd.f32 1.0, %v17840_v0  ;;  %v19744_v18 = vld [vmem:[#allocation14 + $0x70] ss:$8 sps:$4 sm:$0xff]  }
 0xd73   :  { %v5100_v45 = vpack.c.bf16 %v5099_v4, %v5099_v4  ;;  %15864 = vmatprep.subr.bf16.mxu1 %v21339_v31  ;;  %v17158_v4 = vld [vmem:[#allocation20 + $0x8] sm:$0xff]  }
 0xd74   :  { %17841 = vrcp.f32 %v4818_v50 }
 0xd75   :  { %15861 = vmatmul.mubr.bf16.vlgmr.msra.gmra.mrb[76].mxu1 %v5100_v45  ;;  %v17159_v45 = vld [vmem:[#allocation20 + $0x10] sm:$0xff]  }
 0xd76   :  { %15880 = vmatprep.mubr.msk.bf16.mxu1 %vm18375_vm0, %v21339_v31  ;;  %15865 = vmatpush3.bf16.msra.mxu1 %v17125_v34  ;;  %v17160_v34 = vld [vmem:[#allocation20 + $0x18] sm:$0xff]  }
 0xd77   :  { %15866 = vmatprep.subr.bf16.mxu1 %v21339_v31 }
 0xd7a   :  { %15867 = vmatpush3.bf16.msra.mxu1 %v17126_v62  ;;  %v17161_v62 = vld [vmem:[#allocation20 + $0x20] sm:$0xff]  }
 0xd7b   :  { %15868 = vmatprep.subr.bf16.mxu1 %v21339_v31 }
 0xd7e   :  { %15869 = vmatpush3.bf16.msra.mxu1 %v17127_v44  ;;  %v17842_v35 = vpop.eup %17841  ;;  %v17162_v44 = vld [vmem:[#allocation20 + $0x28] sm:$0xff]  }
 0xd7f   :  { %15870 = vmatprep.subr.bf16.mxu1 %v21339_v31  ;;  %v4937_v17 = vsub.f32 1.0, %v17842_v35  ;;  %v4936_v27 = vmul.f32 %v17842_v35, %v19534_v55 }
 0xd82   :  { %15871 = vmatpush3.bf16.msra.mxu1 %v17128_v63  ;;  %v17163_v63 = vld [vmem:[#allocation20 + $0x30] sm:$0xff]  }
 0xd83   :  { %15872 = vmatprep.subr.bf16.mxu1 %v21339_v31 }
 0xd86   :  { %15873 = vmatpush3.bf16.msra.mxu1 %v17129_v43  ;;  %v17164_v43 = vld [vmem:[#allocation20 + $0x38] sm:$0xff]  }
 0xd87   :  { %15874 = vmatprep.subr.bf16.mxu1 %v21339_v31 }
 0xd8a   :  { %15875 = vmatpush3.bf16.msra.mxu1 %v17130_v36 }
 0xd8b   :  { %15876 = vmatprep.subr.bf16.mxu1 %v21339_v31 }
 0xd8e   :  { %15877 = vmatpush3.bf16.msra.mxu1 %v17131_v58 }
 0xd8f   :  { %15878 = vmatprep.subr.bf16.mxu1 %v21339_v31 }
 0xd92   :  { %15879 = vmatpush3.bf16.msra.mxu1 %v17132_v48 }
 0xd93   :  { %15884 = vmatprep.subr.bf16.mxu1 %v21339_v31 }
 0xe28   :  { %v4928_v39 = vpop.f32.mrb[72].mxu1 }
 0xe29   :  { %v16518_v46 = vadd.f32 %v4928_v39, %v19050_v5  ;;  %v15842_v19 = vpop.f32.mrb[73].mxu1 }
 0xe2a   :  { %v4931_v56 = vpop.f32.mrb[74].mxu1 }
 0xe2b   :  { %17843 = vtanh.f32 %v16518_v46  ;;  %v15843_v3 = vpop.f32.mrb[75].mxu1  ;;  %v17165_v56 = vld [vmem:[#allocation16] sm:$0xff]  }
 0xe2c   :  { %17845 = vpow2.f32 %v14114_v22  ;;  %v21346_v22 = vld [vmem:[#allocation41_spill] sm:$0xff] }
 0xe35   :  { %v17844_v23 = vpop.eup %17843 }
 0xe36   :  { %v4938_v21 = vmul.f32 %v17844_v23, %v4937_v17  ;;  %v17846_v29 = vpop.eup %17845 }
 0xe37   :  { %v5089_v9 = vadd.f32 1.0, %v17846_v29 }
 0xe38   :  { %v19671_v12 = vadd.f32 %v4938_v21, %v4936_v27  ;;  %v21347_v27 = vld [vmem:[#allocation43_spill] sm:$0xff] }
 0xe39   :  { %17847 = vrcp.f32 %v5089_v9 }
 0xe43   :  { %v17848_v61 = vpop.eup %17847 }
 0xe44   :  { %v5208_v54 = vsub.f32 1.0, %v17848_v61  ;;  %v5207_v55 = vmul.f32 %v17848_v61, %v19540_v8  ;;  %v19696_v8 = vld [vmem:[#allocation14 + $0x4] ss:$8 sps:$4 sm:$0xff]  }
 0xe48   :  { %v5199_v59 = vpop.f32.mrb[76].mxu1 }
 0xe49   :  { %v5205_v53 = vadd.f32 %v5199_v59, %v21345_v42  ;;  %v15862_v47 = vpop.f32.mrb[77].mxu1  ;;  %v17166_v59 = vld [vmem:[#allocation16 + $0x8] sm:$0xff]  }
 0xe4a   :  { %v5202_v32 = vpop.f32.mrb[78].mxu1  ;;  %v17168_v47 = vld [vmem:[#allocation16 + $0x18] sm:$0xff]  }
 0xe4b   :  { %17849 = vtanh.f32 %v5205_v53  ;;  %v15863_v26 = vpop.f32.mrb[79].mxu1  ;;  %v17167_v53 = vld [vmem:[#allocation16 + $0x10] sm:$0xff]   ;;  %v17169_v32 = vld [vmem:[#allocation16 + $0x20] sm:$0xff]  }
 0xe55   :  { %v17850_v28 = vpop.eup %17849 }
 0xe56   :  { %v5209_v2 = vmul.f32 %v17850_v28, %v5208_v54  ;;  %v17170_v54 = vld [vmem:[#allocation16 + $0x28] sm:$0xff]   ;;  %v17171_v28 = vld [vmem:[#allocation16 + $0x30] sm:$0xff]  }
 0xe58   :  { %v19675_v41 = vadd.f32 %v5209_v2, %v5207_v55  ;;  %v17172_v2 = vld [vmem:[#allocation16 + $0x38] sm:$0xff]  }
 0xe5a   :  { %v5212_v14 = vpack.c.bf16 %v19675_v41, %v19675_v41 }
 0xe5c   :  { %5406 = vmatmul.mubr.bf16.vlgmr.msra.gmra.mrb[68].mxu0 %v5212_v14  ;;  %15881 = vmatmul.mubr.bf16.vlgmr.msra.gmra.mrb[80].mxu1 %v5212_v14 }
 0xe5d   :  { %5553 = vmatpush1.bf16.msra.mxu0 %v19542_v1  ;;  %5584 = vmatprep.mubr.bf16.mxu0 %v21340_v25  ;;  %v19699_v1 = vld [vmem:[#allocation14] ss:$8 sps:$4 sm:$0xff]  }
 0xe5e   :  { %5554 = vmatprep.subr.bf16.mxu0 %v19546_v6  ;;  %15900 = vmatprep.mubr.msk.bf16.mxu1 %vm18375_vm0, %v21339_v31  ;;  %v5455_v6 = vpack.c.bf16 %v19671_v12, %v19671_v12 }
 0xe5f   :  { %15885 = vmatpush3.bf16.msra.mxu1 %v17157_v24  ;;  %v19778_v24 = vld [vmem:[#allocation17 + $0x4] ss:$12 sps:$4 sm:$0xff]  }
 0xe60   :  { %15886 = vmatprep.subr.bf16.mxu1 %v21339_v31 }
 0xe61   :  { %5555 = vmatpush1.bf16.msra.mxu0 %v19549_v57  ;;  %v19704_v57 = vld [vmem:[#allocation14 + $0x14] ss:$8 sps:$4 sm:$0xff]  }
 0xe62   :  { %5556 = vmatprep.subr.bf16.mxu0 %v19553_v49  ;;  %v19707_v49 = vld [vmem:[#allocation14 + $0x10] ss:$8 sps:$4 sm:$0xff]  }
 0xe63   :  { %15887 = vmatpush3.bf16.msra.mxu1 %v17158_v4  ;;  %v19780_v4 = vld [vmem:[#allocation17] ss:$12 sps:$4 sm:$0xff]  }
 0xe64   :  { %15888 = vmatprep.subr.bf16.mxu1 %v21339_v31 }
 0xe65   :  { %5557 = vmatpush1.bf16.msra.mxu0 %v19558_v20  ;;  %v19711_v20 = vld [vmem:[#allocation14 + $0x24] ss:$8 sps:$4 sm:$0xff]  }
 0xe66   :  { %5558 = vmatprep.subr.bf16.mxu0 %v19561_v13  ;;  %v19714_v13 = vld [vmem:[#allocation14 + $0x20] ss:$8 sps:$4 sm:$0xff]  }
 0xe67   :  { %15889 = vmatpush3.bf16.msra.mxu1 %v17159_v45  ;;  %v17176_v45 = vld [vmem:[#allocation17 + $0x8] ss:$12 sps:$4 sm:$0xff]  }
 0xe68   :  { %15890 = vmatprep.subr.bf16.mxu1 %v21339_v31 }
 0xe69   :  { %5559 = vmatpush1.bf16.msra.mxu0 %v19564_v37  ;;  %v19717_v37 = vld [vmem:[#allocation14 + $0x34] ss:$8 sps:$4 sm:$0xff]  }
 0xe6a   :  { %5560 = vmatprep.subr.bf16.mxu0 %v19567_v40  ;;  %v19720_v40 = vld [vmem:[#allocation14 + $0x30] ss:$8 sps:$4 sm:$0xff]  }
 0xe6b   :  { %15891 = vmatpush3.bf16.msra.mxu1 %v17160_v34  ;;  %v19784_v34 = vld [vmem:[#allocation17 + $0x18] ss:$12 sps:$4 sm:$0xff]  }
 0xe6c   :  { %15892 = vmatprep.subr.bf16.mxu1 %v21339_v31 }
 0xe6d   :  { %5561 = vmatpush1.bf16.msra.mxu0 %v19570_v38  ;;  %v19723_v38 = vld [vmem:[#allocation14 + $0x44] ss:$8 sps:$4 sm:$0xff]  }
 0xe6e   :  { %5562 = vmatprep.subr.bf16.mxu0 %v19573_v33  ;;  %v19726_v33 = vld [vmem:[#allocation14 + $0x40] ss:$8 sps:$4 sm:$0xff]  }
 0xe6f   :  { %15893 = vmatpush3.bf16.msra.mxu1 %v17161_v62  ;;  %v19786_v62 = vld [vmem:[#allocation17 + $0x1c] ss:$12 sps:$4 sm:$0xff]  }
 0xe70   :  { %15894 = vmatprep.subr.bf16.mxu1 %v21339_v31 }
 0xe71   :  { %5563 = vmatpush1.bf16.msra.mxu0 %v19576_v11  ;;  %v19729_v11 = vld [vmem:[#allocation14 + $0x54] ss:$8 sps:$4 sm:$0xff]  }
 0xe72   :  { %5564 = vmatprep.subr.bf16.mxu0 %v19579_v16  ;;  %v19732_v16 = vld [vmem:[#allocation14 + $0x50] ss:$8 sps:$4 sm:$0xff]  }
 0xe73   :  { %15895 = vmatpush3.bf16.msra.mxu1 %v17162_v44  ;;  %v17180_v44 = vld [vmem:[#allocation17 + $0x20] ss:$12 sps:$4 sm:$0xff]  }
 0xe74   :  { %15896 = vmatprep.subr.bf16.mxu1 %v21339_v31 }
 0xe75   :  { %5565 = vmatpush1.bf16.msra.mxu0 %v19582_v15  ;;  %v19735_v15 = vld [vmem:[#allocation14 + $0x64] ss:$8 sps:$4 sm:$0xff]  }
 0xe76   :  { %5566 = vmatprep.subr.bf16.mxu0 %v19585_v60  ;;  %v19738_v60 = vld [vmem:[#allocation14 + $0x60] ss:$8 sps:$4 sm:$0xff]  }
 0xe77   :  { %15897 = vmatpush3.bf16.msra.mxu1 %v17163_v63  ;;  %v19788_v63 = vld [vmem:[#allocation17 + $0x34] ss:$12 sps:$4 sm:$0xff]  }
 0xe78   :  { %15898 = vmatprep.subr.bf16.mxu1 %v21339_v31 }
 0xe79   :  { %5567 = vmatpush1.bf16.msra.mxu0 %v19588_v52  ;;  %v19741_v52 = vld [vmem:[#allocation14 + $0x74] ss:$8 sps:$4 sm:$0xff]  }
 0xe7a   :  { %5823 = vmatprep.subr.bf16.mxu0 %v19696_v8 }
 0xe7b   :  { %15899 = vmatpush3.bf16.msra.mxu1 %v17164_v43  ;;  %v19793_v43 = vld [vmem:[#allocation17 + $0x30] ss:$12 sps:$4 sm:$0xff]  }
 0xe7c   :  { %5585 = vmatmul.mubr.bf16.vlgmr.msra.gmra.mrb[68].mxu0 %v5455_v6  ;;  %15904 = vmatprep.subr.bf16.mxu1 %v21339_v31 }
 0xe7d   :  { %5824 = vmatpush1.bf16.msra.mxu0 %v19699_v1  ;;  %5855 = vmatprep.mubr.bf16.mxu0 %v21340_v25 }
 0xe7e   :  { %5825 = vmatprep.subr.bf16.mxu0 %v19704_v57 }
 0xe81   :  { %5826 = vmatpush1.bf16.msra.mxu0 %v19707_v49 }
 0xe82   :  { %5827 = vmatprep.subr.bf16.mxu0 %v19711_v20 }
 0xe85   :  { %5828 = vmatpush1.bf16.msra.mxu0 %v19714_v13 }
 0xe86   :  { %5829 = vmatprep.subr.bf16.mxu0 %v19717_v37 }
 0xe89   :  { %5830 = vmatpush1.bf16.msra.mxu0 %v19720_v40 }
 0xe8a   :  { %5831 = vmatprep.subr.bf16.mxu0 %v19723_v38 }
 0xe8d   :  { %5832 = vmatpush1.bf16.msra.mxu0 %v19726_v33 }
 0xe8e   :  { %5833 = vmatprep.subr.bf16.mxu0 %v19729_v11 }
 0xe91   :  { %5834 = vmatpush1.bf16.msra.mxu0 %v19732_v16 }
 0xe92   :  { %5835 = vmatprep.subr.bf16.mxu0 %v19735_v15 }
 0xe95   :  { %5836 = vmatpush1.bf16.msra.mxu0 %v19738_v60 }
 0xe96   :  { %5837 = vmatprep.subr.bf16.mxu0 %v19741_v52 }
 0xe99   :  { %5838 = vmatpush1.bf16.msra.mxu0 %v19744_v18 }
 0xe9a   :  { %6152 = vmatprep.subr.bf16.mxu0 %v19778_v24 }
 0xe9c   :  { %5856 = vmatmul.mubr.bf16.vlgmr.msra.gmra.mrb[72].mxu0 %v5212_v14 }
 0xe9d   :  { %6184 = vmatprep.mubr.bf16.mxu0 %v21340_v25  ;;  %6153 = vmatpush1.bf16.msra.mxu0 %v19780_v4 }
 0xe9e   :  { %6154 = vmatprep.subr.bf16.mxu0 %v19786_v62 }
 0xea1   :  { %6155 = vmatpush1.bf16.msra.mxu0 %v19784_v34 }
 0xea2   :  { %6156 = vmatprep.subr.bf16.mxu0 %v19788_v63 }
 0xea5   :  { %6157 = vmatpush1.bf16.msra.mxu0 %v19793_v43 }
 0xf4f   :  { %v19757_v36 = vpop.f32.mrb[68].mxu0 }
 0xf50   :  { %v5588_v58 = vpop.f32.mrb[69].mxu0 }
 0xf51   :  { %v16520_v48 = vadd.f32 %v5588_v58, %v19009_v51  ;;  %v5590_v7 = vpop.f32.mrb[70].mxu0  ;;  %v17184_v58 = vld [vmem:[#allocation17 + $0x38] ss:$12 sps:$4 sm:$0xff]  }
 0xf52   :  { %v5591_v10 = vpop.f32.mrb[71].mxu0  ;;  %v19800_v7 = vld [vmem:[#allocation17 + $0x48] ss:$12 sps:$4 sm:$0xff]  }
 0xf53   :  { %v14165_v0 = vmul.f32 -1.442695, %v16520_v48  ;;  %v19796_v48 = vld [vmem:[#allocation17 + $0x4c] ss:$12 sps:$4 sm:$0xff]   ;;  %v17188_v10 = vld [vmem:[#allocation17 + $0x50] ss:$12 sps:$4 sm:$0xff]  }
 0xf54   :  { %6158 = vmatprep.subr.bf16.mxu0 %v19796_v48 }
 0xf55   :  { %17851 = vpow2.f32 %v14165_v0  ;;  %6159 = vmatpush1.bf16.msra.mxu0 %v19800_v7  ;;  %v19805_v0 = vld [vmem:[#allocation17 + $0x64] ss:$12 sps:$4 sm:$0xff]  }
 0xf56   :  { %6160 = vmatprep.subr.bf16.mxu0 %v19805_v0 }
 0xf5f   :  { %v17852_v50 = vpop.eup %17851 }
 0xf60   :  { %v5604_v39 = vadd.f32 1.0, %v17852_v50  ;;  %v19807_v50 = vld [vmem:[#allocation17 + $0x60] ss:$12 sps:$4 sm:$0xff]  }
 0xf61   :  { %6161 = vmatpush1.bf16.msra.mxu0 %v19807_v50 }
 0xf62   :  { %17853 = vrcp.f32 %v5604_v39  ;;  %v17192_v39 = vld [vmem:[#allocation17 + $0x68] ss:$12 sps:$4 sm:$0xff]  }
 0xf6c   :  { %v17854_v46 = vpop.eup %17853 }
 0xf6d   :  { %v5607_v19 = vmul.f32 %v17854_v46, %v19671_v12  ;;  %v19812_v46 = vld [vmem:[#allocation17 + $0x7c] ss:$12 sps:$4 sm:$0xff]  }
 0xf6e   :  { %6162 = vmatprep.subr.bf16.mxu0 %v19812_v46 }
 0xf6f   :  { %v5857_v3 = vpop.f32.mrb[72].mxu0  ;;  %v5608_v35 = vpack.c.bf16 %v5607_v19, %v5607_v19  ;;  %v19814_v19 = vld [vmem:[#allocation17 + $0x78] ss:$12 sps:$4 sm:$0xff]  }
 0xf70   :  { %v19762_v17 = vadd.f32 %v5857_v3, %v21346_v22  ;;  %v5859_v23 = vpop.f32.mrb[73].mxu0  ;;  %6163 = vmatpush1.bf16.msra.mxu0 %v19814_v19  ;;  %v19819_v3 = vld [vmem:[#allocation17 + $0x94] ss:$12 sps:$4 sm:$0xff]   ;;  %v17200_v22 = vld [vmem:[#allocation17 + $0x98] ss:$12 sps:$4 sm:$0xff]  }
 0xf71   :  { %v5871_v21 = vadd.f32 %v5859_v23, %v21347_v27  ;;  %15901 = vmatmul.mubr.bf16.vlgmr.msra.gmra.mrb[80].mxu1 %v5608_v35  ;;  %v5861_v29 = vpop.f32.mrb[74].mxu0  ;;  %v19821_v35 = vld [vmem:[#allocation17 + $0x90] ss:$12 sps:$4 sm:$0xff]   ;;  %6164 = vmatprep.subr.bf16.mxu0 %v19819_v3  ;;  %v19826_v23 = vld [vmem:[#allocation17 + $0xac] ss:$12 sps:$4 sm:$0xff]  }
 0xf72   :  { %v5862_v9 = vpop.f32.mrb[75].mxu0  ;;  %15905 = vmatpush3.bf16.msra.mxu1 %v17165_v56  ;;  %15920 = vmatprep.mubr.msk.bf16.mxu1 %vm18375_vm0, %v21339_v31  ;;  %v17196_v56 = vld [vmem:[#allocation17 + $0x80] ss:$12 sps:$4 sm:$0xff]   ;;  %v19828_v27 = vld [vmem:[#allocation17 + $0xa8] ss:$12 sps:$4 sm:$0xff]  }
 0xf73   :  { %v14191_v42 = vmul.f32 -1.442695, %v5871_v21  ;;  %15906 = vmatprep.subr.bf16.mxu1 %v21339_v31  ;;  %v17204_v21 = vld [vmem:[#allocation17 + $0xb0] ss:$12 sps:$4 sm:$0xff]   ;;  %v19832_v29 = vld [vmem:[#allocation19 + $0x4] ss:$8 sps:$4 sm:$0xff]   ;;  %v16519_v9 = vadd.f32 %v19757_v36, %v19043_v30 }
 0xf74   :  { %6165 = vmatpush1.bf16.msra.mxu0 %v19821_v35 }
 0xf75   :  { %17855 = vpow2.f32 %v14191_v42  ;;  %6166 = vmatprep.subr.bf16.mxu0 %v19826_v23 }
 0xf76   :  { %15907 = vmatpush3.bf16.msra.mxu1 %v17166_v59  ;;  %v14164_v59 = vmul.f32 -1.442695, %v16519_v9 }
 0xf77   :  { %15908 = vmatprep.subr.bf16.mxu1 %v21339_v31 }
 0xf78   :  { %6167 = vmatpush1.bf16.msra.mxu0 %v19828_v27 }
 0xf79   :  { %6331 = vmatprep.subr.bf16.mxu0 %v19832_v29 }
 0xf7a   :  { %15909 = vmatpush3.bf16.msra.mxu1 %v17167_v53 }
 0xf7b   :  { %15910 = vmatprep.subr.bf16.mxu1 %v21339_v31 }
 0xf7e   :  { %15911 = vmatpush3.bf16.msra.mxu1 %v17168_v47 }
 0xf7f   :  { %v17856_v26 = vpop.eup %17855  ;;  %15912 = vmatprep.subr.bf16.mxu1 %v21339_v31 }
 0xf80   :  { %v5875_v61 = vadd.f32 1.0, %v17856_v26 }
 0xf82   :  { %17857 = vrcp.f32 %v5875_v61  ;;  %15913 = vmatpush3.bf16.msra.mxu1 %v17169_v32 }
 0xf83   :  { %15914 = vmatprep.subr.bf16.mxu1 %v21339_v31  ;;  %17859 = vpow2.f32 %v14164_v59 }
 0xf86   :  { %15915 = vmatpush3.bf16.msra.mxu1 %v17170_v54 }
 0xf87   :  { %15916 = vmatprep.subr.bf16.mxu1 %v21339_v31 }
 0xf8a   :  { %15917 = vmatpush3.bf16.msra.mxu1 %v17171_v28 }
 0xf8b   :  { %15918 = vmatprep.subr.bf16.mxu1 %v21339_v31 }
 0xf8c   :  { %v17858_v55 = vpop.eup %17857 }
 0xf8d   :  { %v5878_v14 = vmul.f32 %v17858_v55, %v19675_v41  ;;  %v17860_v42 = vpop.eup %17859 }
 0xf8e   :  { %15919 = vmatpush3.bf16.msra.mxu1 %v17172_v2  ;;  %v5597_v53 = vadd.f32 1.0, %v17860_v42  ;;  %v14190_v2 = vmul.f32 -1.442695, %v19762_v17 }
 0xf8f   :  { %v5879_v6 = vpack.c.bf16 %v5878_v14, %v5878_v14  ;;  %15924 = vmatprep.subr.bf16.mxu1 %v21339_v31 }
 0xf90   :  { %17861 = vrcp.f32 %v5597_v53 }
 0xf91   :  { %15921 = vmatmul.mubr.bf16.vlgmr.msra.gmra.mrb[84].mxu1 %v5879_v6 }
 0xf92   :  { %15940 = vmatprep.mubr.msk.bf16.mxu1 %vm18375_vm0, %v21339_v31  ;;  %15925 = vmatpush3.bf16.msra.mxu1 %v17176_v45 }
 0xf93   :  { %15926 = vmatprep.subr.bf16.mxu1 %v21339_v31 }
 0xf96   :  { %15927 = vmatpush3.bf16.msra.mxu1 %v17180_v44 }
 0xf97   :  { %15928 = vmatprep.subr.bf16.mxu1 %v21339_v31 }
 0xf9a   :  { %15929 = vmatpush3.bf16.msra.mxu1 %v17184_v58  ;;  %v17862_v28 = vpop.eup %17861 }
 0xf9b   :  { %15930 = vmatprep.subr.bf16.mxu1 %v21339_v31  ;;  %v5716_v55 = vsub.f32 1.0, %v17862_v28  ;;  %v5715_v6 = vmul.f32 %v17862_v28, %v19671_v12  ;;  %v19857_v28 = vld [vmem:[#allocation19 + $0x10] ss:$8 sps:$4 sm:$0xff]  }
 0xf9e   :  { %15931 = vmatpush3.bf16.msra.mxu1 %v17188_v10 }
 0xf9f   :  { %15932 = vmatprep.subr.bf16.mxu1 %v21339_v31 }
 0xfa2   :  { %15933 = vmatpush3.bf16.msra.mxu1 %v17192_v39 }
 0xfa3   :  { %15934 = vmatprep.subr.bf16.mxu1 %v21339_v31 }
 0xfa6   :  { %15935 = vmatpush3.bf16.msra.mxu1 %v17196_v56  ;;  %v21348_v56 = vld [vmem:[#allocation33_spill] sm:$0xff] }
 0xfa7   :  { %15936 = vmatprep.subr.bf16.mxu1 %v21339_v31 }
 0xfaa   :  { %15937 = vmatpush3.bf16.msra.mxu1 %v17200_v22 }
 0xfab   :  { %15938 = vmatprep.subr.bf16.mxu1 %v21339_v31 }
 0xfae   :  { %15939 = vmatpush3.bf16.msra.mxu1 %v17204_v21 }
 0xfaf   :  { %15944 = vmatprep.subr.bf16.mxu1 %v21339_v31 }
0x1044   :  { %v5707_v47 = vpop.f32.mrb[80].mxu1 }
0x1045   :  { %v16521_v32 = vadd.f32 %v5707_v47, %v19050_v5  ;;  %v15902_v26 = vpop.f32.mrb[81].mxu1 }
0x1046   :  { %v5710_v61 = vpop.f32.mrb[82].mxu1 }
0x1047   :  { %17863 = vtanh.f32 %v16521_v32  ;;  %v15903_v54 = vpop.f32.mrb[83].mxu1 }
0x1048   :  { %17865 = vpow2.f32 %v14190_v2  ;;  %v19854_v54 = vld [vmem:[#allocation19 + $0x14] ss:$8 sps:$4 sm:$0xff]   ;;  %v19866_v2 = vld [vmem:[#allocation19 + $0x20] ss:$8 sps:$4 sm:$0xff]  }
0x1051   :  { %v17864_v14 = vpop.eup %17863 }
0x1052   :  { %v5717_v36 = vmul.f32 %v17864_v14, %v5716_v55  ;;  %v17866_v58 = vpop.eup %17865  ;;  %v19869_v55 = vld [vmem:[#allocation19 + $0x34] ss:$8 sps:$4 sm:$0xff]   ;;  %v19872_v14 = vld [vmem:[#allocation19 + $0x30] ss:$8 sps:$4 sm:$0xff]  }
0x1053   :  { %v5868_v10 = vadd.f32 1.0, %v17866_v58  ;;  %v19884_v58 = vld [vmem:[#allocation19 + $0x50] ss:$8 sps:$4 sm:$0xff]  }
0x1054   :  { %v19842_v45 = vadd.f32 %v5717_v36, %v5715_v6  ;;  %v19875_v6 = vld [vmem:[#allocation19 + $0x44] ss:$8 sps:$4 sm:$0xff]   ;;  %v19878_v36 = vld [vmem:[#allocation19 + $0x40] ss:$8 sps:$4 sm:$0xff]  }
0x1055   :  { %17867 = vrcp.f32 %v5868_v10  ;;  %v19887_v10 = vld [vmem:[#allocation19 + $0x64] ss:$8 sps:$4 sm:$0xff]  }
0x1056   :  { %v14979_v44 = vpack.c.bf16 %v19842_v45, %v19671_v12  ;;  %v19850_v12 = vld [vmem:[#allocation19] ss:$8 sps:$4 sm:$0xff]  }
0x1058   :  { %15007 = vst [vmem:[#allocation22 + $0x10] sm:$0xff] %v14979_v44   ;;  %v19881_v44 = vld [vmem:[#allocation19 + $0x54] ss:$8 sps:$4 sm:$0xff]  }
0x105f   :  { %v17868_v59 = vpop.eup %17867 }
0x1060   :  { %v5987_v42 = vsub.f32 1.0, %v17868_v59  ;;  %v5986_v32 = vmul.f32 %v17868_v59, %v19675_v41  ;;  %v19861_v41 = vld [vmem:[#allocation19 + $0x24] ss:$8 sps:$4 sm:$0xff]  }
0x1061   :  { %v17242_v59 = vld [vmem:[#allocation16 + $0x28] sm:$0xff]  }
0x1064   :  { %v5978_v39 = vpop.f32.mrb[84].mxu1 }
0x1065   :  { %v5984_v22 = vadd.f32 %v5978_v39, %v21348_v56  ;;  %v15922_v21 = vpop.f32.mrb[85].mxu1  ;;  %v19890_v39 = vld [vmem:[#allocation19 + $0x60] ss:$8 sps:$4 sm:$0xff]   ;;  %v19893_v56 = vld [vmem:[#allocation19 + $0x74] ss:$8 sps:$4 sm:$0xff]  }
0x1066   :  { %v5981_v17 = vpop.f32.mrb[86].mxu1  ;;  %v6234_v21 = vpack.c.bf16 %v19842_v45, %v19842_v45 }
0x1067   :  { %17869 = vtanh.f32 %v5984_v22  ;;  %v15923_v9 = vpop.f32.mrb[87].mxu1  ;;  %v19896_v22 = vld [vmem:[#allocation19 + $0x70] ss:$8 sps:$4 sm:$0xff]  }
0x1071   :  { %v17870_v53 = vpop.eup %17869 }
0x1072   :  { %v5988_v47 = vmul.f32 %v17870_v53, %v5987_v42  ;;  %v17243_v42 = vld [vmem:[#allocation16 + $0x30] sm:$0xff]   ;;  %v17244_v53 = vld [vmem:[#allocation16 + $0x38] sm:$0xff]  }
0x1074   :  { %v19848_v26 = vadd.f32 %v5988_v47, %v5986_v32 }
0x1076   :  { %v5991_v61 = vpack.c.bf16 %v19848_v26, %v19848_v26 }
0x1078   :  { %6185 = vmatmul.mubr.bf16.vlgmr.msra.gmra.mrb[76].mxu0 %v5991_v61  ;;  %15941 = vmatmul.mubr.bf16.vlgmr.msra.gmra.mrb[88].mxu1 %v5991_v61 }
0x1079   :  { %6332 = vmatpush1.bf16.msra.mxu0 %v19850_v12  ;;  %6363 = vmatprep.mubr.bf16.mxu0 %v21340_v25 }
0x107a   :  { %6333 = vmatprep.subr.bf16.mxu0 %v19854_v54  ;;  %15960 = vmatprep.mubr.msk.bf16.mxu1 %vm18375_vm0, %v21339_v31 }
0x107d   :  { %6334 = vmatpush1.bf16.msra.mxu0 %v19857_v28 }
0x107e   :  { %6335 = vmatprep.subr.bf16.mxu0 %v19861_v41 }
0x1081   :  { %6336 = vmatpush1.bf16.msra.mxu0 %v19866_v2 }
0x1082   :  { %6337 = vmatprep.subr.bf16.mxu0 %v19869_v55 }
0x1085   :  { %6338 = vmatpush1.bf16.msra.mxu0 %v19872_v14 }
0x1086   :  { %6339 = vmatprep.subr.bf16.mxu0 %v19875_v6 }
0x1089   :  { %6340 = vmatpush1.bf16.msra.mxu0 %v19878_v36 }
0x108a   :  { %6341 = vmatprep.subr.bf16.mxu0 %v19881_v44 }
0x108d   :  { %6342 = vmatpush1.bf16.msra.mxu0 %v19884_v58 }
0x108e   :  { %6343 = vmatprep.subr.bf16.mxu0 %v19887_v10 }
0x1091   :  { %6344 = vmatpush1.bf16.msra.mxu0 %v19890_v39 }
0x1092   :  { %6345 = vmatprep.subr.bf16.mxu0 %v19893_v56 }
0x1095   :  { %6346 = vmatpush1.bf16.msra.mxu0 %v19896_v22 }
0x1096   :  { %6602 = vmatprep.subr.bf16.mxu0 %v19696_v8  ;;  %v17229_v8 = vld [vmem:[#allocation20] sm:$0xff]  }
0x1097   :  { %15945 = vmatpush3.bf16.msra.mxu1 %v17229_v8  ;;  %v17246_v8 = vld [vmem:[#allocation17 + $0x20] ss:$12 sps:$4 sm:$0xff]  }
0x1098   :  { %6364 = vmatmul.mubr.bf16.vlgmr.msra.gmra.mrb[76].mxu0 %v6234_v21  ;;  %15946 = vmatprep.subr.bf16.mxu1 %v21339_v31  ;;  %v17245_v21 = vld [vmem:[#allocation17 + $0x8] ss:$12 sps:$4 sm:$0xff]  }
0x1099   :  { %6603 = vmatpush1.bf16.msra.mxu0 %v19699_v1  ;;  %6634 = vmatprep.mubr.bf16.mxu0 %v21340_v25  ;;  %v17230_v1 = vld [vmem:[#allocation20 + $0x8] sm:$0xff]  }
0x109a   :  { %6604 = vmatprep.subr.bf16.mxu0 %v19704_v57  ;;  %v17231_v57 = vld [vmem:[#allocation20 + $0x10] sm:$0xff]  }
0x109b   :  { %15947 = vmatpush3.bf16.msra.mxu1 %v17230_v1  ;;  %v17247_v1 = vld [vmem:[#allocation17 + $0x38] ss:$12 sps:$4 sm:$0xff]  }
0x109c   :  { %15948 = vmatprep.subr.bf16.mxu1 %v21339_v31 }
0x109d   :  { %6605 = vmatpush1.bf16.msra.mxu0 %v19707_v49  ;;  %v17232_v49 = vld [vmem:[#allocation20 + $0x18] sm:$0xff]  }
0x109e   :  { %6606 = vmatprep.subr.bf16.mxu0 %v19711_v20  ;;  %v17233_v20 = vld [vmem:[#allocation20 + $0x20] sm:$0xff]  }
0x109f   :  { %15949 = vmatpush3.bf16.msra.mxu1 %v17231_v57  ;;  %v17248_v57 = vld [vmem:[#allocation17 + $0x50] ss:$12 sps:$4 sm:$0xff]  }
0x10a0   :  { %15950 = vmatprep.subr.bf16.mxu1 %v21339_v31 }
0x10a1   :  { %6607 = vmatpush1.bf16.msra.mxu0 %v19714_v13  ;;  %v17234_v13 = vld [vmem:[#allocation20 + $0x28] sm:$0xff]  }
0x10a2   :  { %6608 = vmatprep.subr.bf16.mxu0 %v19717_v37  ;;  %v17235_v37 = vld [vmem:[#allocation20 + $0x30] sm:$0xff]  }
0x10a3   :  { %15951 = vmatpush3.bf16.msra.mxu1 %v17232_v49  ;;  %v17249_v49 = vld [vmem:[#allocation17 + $0x68] ss:$12 sps:$4 sm:$0xff]  }
0x10a4   :  { %15952 = vmatprep.subr.bf16.mxu1 %v21339_v31 }
0x10a5   :  { %6609 = vmatpush1.bf16.msra.mxu0 %v19720_v40  ;;  %v17236_v40 = vld [vmem:[#allocation20 + $0x38] sm:$0xff]  }
0x10a6   :  { %6610 = vmatprep.subr.bf16.mxu0 %v19723_v38 }
0x10a7   :  { %15953 = vmatpush3.bf16.msra.mxu1 %v17233_v20  ;;  %v17250_v20 = vld [vmem:[#allocation17 + $0x80] ss:$12 sps:$4 sm:$0xff]  }
0x10a8   :  { %15954 = vmatprep.subr.bf16.mxu1 %v21339_v31 }
0x10a9   :  { %6611 = vmatpush1.bf16.msra.mxu0 %v19726_v33 }
0x10aa   :  { %6612 = vmatprep.subr.bf16.mxu0 %v19729_v11 }
0x10ab   :  { %15955 = vmatpush3.bf16.msra.mxu1 %v17234_v13  ;;  %v17251_v13 = vld [vmem:[#allocation17 + $0x98] ss:$12 sps:$4 sm:$0xff]  }
0x10ac   :  { %15956 = vmatprep.subr.bf16.mxu1 %v21339_v31 }
0x10ad   :  { %6613 = vmatpush1.bf16.msra.mxu0 %v19732_v16 }
0x10ae   :  { %6614 = vmatprep.subr.bf16.mxu0 %v19735_v15 }
0x10af   :  { %15957 = vmatpush3.bf16.msra.mxu1 %v17235_v37  ;;  %v17252_v37 = vld [vmem:[#allocation17 + $0xb0] ss:$12 sps:$4 sm:$0xff]  }
0x10b0   :  { %15958 = vmatprep.subr.bf16.mxu1 %v21339_v31 }
0x10b1   :  { %6615 = vmatpush1.bf16.msra.mxu0 %v19738_v60 }
0x10b2   :  { %6616 = vmatprep.subr.bf16.mxu0 %v19741_v52 }
0x10b3   :  { %15959 = vmatpush3.bf16.msra.mxu1 %v17236_v40 }
0x10b4   :  { %15964 = vmatprep.subr.bf16.mxu1 %v21339_v31 }
0x10b5   :  { %6617 = vmatpush1.bf16.msra.mxu0 %v19744_v18 }
0x10b6   :  { %6931 = vmatprep.subr.bf16.mxu0 %v19778_v24 }
0x10b8   :  { %6635 = vmatmul.mubr.bf16.vlgmr.msra.gmra.mrb[80].mxu0 %v5991_v61 }
0x10b9   :  { %6932 = vmatpush1.bf16.msra.mxu0 %v19780_v4  ;;  %6963 = vmatprep.mubr.bf16.mxu0 %v21340_v25 }
0x10ba   :  { %6933 = vmatprep.subr.bf16.mxu0 %v19786_v62 }
0x10bd   :  { %6934 = vmatpush1.bf16.msra.mxu0 %v19784_v34  ;;  %v17237_v34 = vld [vmem:[#allocation16] sm:$0xff]  }
0x10be   :  { %6935 = vmatprep.subr.bf16.mxu0 %v19788_v63 }
0x10c1   :  { %6936 = vmatpush1.bf16.msra.mxu0 %v19793_v43  ;;  %v21349_v43 = vld [vmem:[#allocation45_spill] sm:$0xff] }
0x10c2   :  { %6937 = vmatprep.subr.bf16.mxu0 %v19796_v48 }
0x10c5   :  { %6938 = vmatpush1.bf16.msra.mxu0 %v19800_v7 }
0x10c6   :  { %6939 = vmatprep.subr.bf16.mxu0 %v19805_v0  ;;  %v21350_v0 = vld [vmem:[#allocation47_spill] sm:$0xff] }
0x10c9   :  { %6940 = vmatpush1.bf16.msra.mxu0 %v19807_v50 }
0x10ca   :  { %6941 = vmatprep.subr.bf16.mxu0 %v19812_v46 }
0x10cd   :  { %6942 = vmatpush1.bf16.msra.mxu0 %v19814_v19 }
0x10ce   :  { %6943 = vmatprep.subr.bf16.mxu0 %v19819_v3  ;;  %v17238_v3 = vld [vmem:[#allocation16 + $0x8] sm:$0xff]  }
0x10d1   :  { %6944 = vmatpush1.bf16.msra.mxu0 %v19821_v35 }
0x10d2   :  { %6945 = vmatprep.subr.bf16.mxu0 %v19826_v23  ;;  %v17239_v23 = vld [vmem:[#allocation16 + $0x10] sm:$0xff]  }
0x10d5   :  { %6946 = vmatpush1.bf16.msra.mxu0 %v19828_v27  ;;  %v17240_v27 = vld [vmem:[#allocation16 + $0x18] sm:$0xff]  }
0x10d6   :  { %7110 = vmatprep.subr.bf16.mxu0 %v19832_v29  ;;  %v17241_v29 = vld [vmem:[#allocation16 + $0x20] sm:$0xff]  }
0x116b   :  { %v19945_v38 = vpop.f32.mrb[76].mxu0 }
0x116c   :  { %v6367_v33 = vpop.f32.mrb[77].mxu0  ;;  %v16522_v40 = vadd.f32 %v19945_v38, %v19043_v30 }
0x116d   :  { %v16523_v11 = vadd.f32 %v6367_v33, %v19009_v51  ;;  %v6369_v16 = vpop.f32.mrb[78].mxu0 }
0x116e   :  { %v6370_v15 = vpop.f32.mrb[79].mxu0  ;;  %v14240_v33 = vmul.f32 -1.442695, %v16522_v40 }
0x116f   :  { %v14241_v60 = vmul.f32 -1.442695, %v16523_v11 }
0x1171   :  { %17871 = vpow2.f32 %v14241_v60 }
0x117b   :  { %v17872_v52 = vpop.eup %17871 }
0x117c   :  { %v6383_v18 = vadd.f32 1.0, %v17872_v52 }
0x117e   :  { %17873 = vrcp.f32 %v6383_v18 }
0x1188   :  { %v17874_v24 = vpop.eup %17873 }
0x1189   :  { %v6386_v4 = vmul.f32 %v17874_v24, %v19842_v45 }
0x118b   :  { %v6636_v62 = vpop.f32.mrb[80].mxu0  ;;  %v6387_v63 = vpack.c.bf16 %v6386_v4, %v6386_v4 }
0x118c   :  { %v19950_v48 = vadd.f32 %v6636_v62, %v21349_v43  ;;  %v6638_v7 = vpop.f32.mrb[81].mxu0 }
0x118d   :  { %v6650_v50 = vadd.f32 %v6638_v7, %v21350_v0  ;;  %15961 = vmatmul.mubr.bf16.vlgmr.msra.gmra.mrb[88].mxu1 %v6387_v63  ;;  %v6640_v46 = vpop.f32.mrb[82].mxu0 }
0x118e   :  { %v6641_v19 = vpop.f32.mrb[83].mxu0  ;;  %15965 = vmatpush3.bf16.msra.mxu1 %v17237_v34  ;;  %15980 = vmatprep.mubr.msk.bf16.mxu1 %vm18375_vm0, %v21339_v31  ;;  %v14266_v34 = vmul.f32 -1.442695, %v19950_v48 }
0x118f   :  { %v14267_v35 = vmul.f32 -1.442695, %v6650_v50  ;;  %15966 = vmatprep.subr.bf16.mxu1 %v21339_v31  ;;  %v21351_v19 = vld [vmem:[#allocation34_spill] sm:$0xff] }
0x1191   :  { %17875 = vpow2.f32 %v14267_v35 }
0x1192   :  { %15967 = vmatpush3.bf16.msra.mxu1 %v17238_v3 }
0x1193   :  { %15968 = vmatprep.subr.bf16.mxu1 %v21339_v31 }
0x1196   :  { %15969 = vmatpush3.bf16.msra.mxu1 %v17239_v23 }
0x1197   :  { %15970 = vmatprep.subr.bf16.mxu1 %v21339_v31 }
0x119a   :  { %15971 = vmatpush3.bf16.msra.mxu1 %v17240_v27 }
0x119b   :  { %v17876_v17 = vpop.eup %17875  ;;  %15972 = vmatprep.subr.bf16.mxu1 %v21339_v31 }
0x119c   :  { %v6654_v9 = vadd.f32 1.0, %v17876_v17 }
0x119e   :  { %17877 = vrcp.f32 %v6654_v9  ;;  %15973 = vmatpush3.bf16.msra.mxu1 %v17241_v29 }
0x119f   :  { %15974 = vmatprep.subr.bf16.mxu1 %v21339_v31  ;;  %17879 = vpow2.f32 %v14240_v33 }
0x11a2   :  { %15975 = vmatpush3.bf16.msra.mxu1 %v17242_v59 }
0x11a3   :  { %15976 = vmatprep.subr.bf16.mxu1 %v21339_v31 }
0x11a6   :  { %15977 = vmatpush3.bf16.msra.mxu1 %v17243_v42 }
0x11a7   :  { %15978 = vmatprep.subr.bf16.mxu1 %v21339_v31 }
0x11a8   :  { %v17878_v47 = vpop.eup %17877 }
0x11a9   :  { %v6657_v32 = vmul.f32 %v17878_v47, %v19848_v26  ;;  %v17880_v11 = vpop.eup %17879  ;;  %v17277_v47 = vld [vmem:[#allocation20] sm:$0xff]  }
0x11aa   :  { %15979 = vmatpush3.bf16.msra.mxu1 %v17244_v53  ;;  %v6376_v16 = vadd.f32 1.0, %v17880_v11  ;;  %v20052_v53 = vld [vmem:[#allocation14 + $0x70] ss:$8 sps:$4 sm:$0xff]  }
0x11ab   :  { %v6658_v61 = vpack.c.bf16 %v6657_v32, %v6657_v32  ;;  %15984 = vmatprep.subr.bf16.mxu1 %v21339_v31  ;;  %v17278_v32 = vld [vmem:[#allocation20 + $0x8] sm:$0xff]  }
0x11ac   :  { %17881 = vrcp.f32 %v6376_v16 }
0x11ad   :  { %15981 = vmatmul.mubr.bf16.vlgmr.msra.gmra.mrb[92].mxu1 %v6658_v61  ;;  %v17279_v61 = vld [vmem:[#allocation20 + $0x10] sm:$0xff]  }
0x11ae   :  { %16000 = vmatprep.mubr.msk.bf16.mxu1 %vm18375_vm0, %v21339_v31  ;;  %15985 = vmatpush3.bf16.msra.mxu1 %v17245_v21  ;;  %v17280_v21 = vld [vmem:[#allocation20 + $0x18] sm:$0xff]  }
0x11af   :  { %15986 = vmatprep.subr.bf16.mxu1 %v21339_v31 }
0x11b2   :  { %15987 = vmatpush3.bf16.msra.mxu1 %v17246_v8  ;;  %v17281_v8 = vld [vmem:[#allocation20 + $0x20] sm:$0xff]  }
0x11b3   :  { %15988 = vmatprep.subr.bf16.mxu1 %v21339_v31 }
0x11b6   :  { %15989 = vmatpush3.bf16.msra.mxu1 %v17247_v1  ;;  %v17882_v4 = vpop.eup %17881  ;;  %v17282_v1 = vld [vmem:[#allocation20 + $0x28] sm:$0xff]  }
0x11b7   :  { %15990 = vmatprep.subr.bf16.mxu1 %v21339_v31  ;;  %v6495_v62 = vsub.f32 1.0, %v17882_v4  ;;  %v6494_v43 = vmul.f32 %v17882_v4, %v19842_v45 }
0x11ba   :  { %15991 = vmatpush3.bf16.msra.mxu1 %v17248_v57  ;;  %v17283_v57 = vld [vmem:[#allocation20 + $0x30] sm:$0xff]  }
0x11bb   :  { %15992 = vmatprep.subr.bf16.mxu1 %v21339_v31 }
0x11be   :  { %15993 = vmatpush3.bf16.msra.mxu1 %v17249_v49  ;;  %v17284_v49 = vld [vmem:[#allocation20 + $0x38] sm:$0xff]  }
0x11bf   :  { %15994 = vmatprep.subr.bf16.mxu1 %v21339_v31 }
0x11c2   :  { %15995 = vmatpush3.bf16.msra.mxu1 %v17250_v20 }
0x11c3   :  { %15996 = vmatprep.subr.bf16.mxu1 %v21339_v31 }
0x11c6   :  { %15997 = vmatpush3.bf16.msra.mxu1 %v17251_v13 }
0x11c7   :  { %15998 = vmatprep.subr.bf16.mxu1 %v21339_v31 }
0x11ca   :  { %15999 = vmatpush3.bf16.msra.mxu1 %v17252_v37 }
0x11cb   :  { %16004 = vmatprep.subr.bf16.mxu1 %v21339_v31 }
0x1260   :  { %v6486_v15 = vpop.f32.mrb[88].mxu1 }
0x1261   :  { %v16524_v60 = vadd.f32 %v6486_v15, %v19050_v5  ;;  %v15962_v52 = vpop.f32.mrb[89].mxu1 }
0x1262   :  { %v6489_v18 = vpop.f32.mrb[90].mxu1 }
0x1263   :  { %17883 = vtanh.f32 %v16524_v60  ;;  %v15963_v24 = vpop.f32.mrb[91].mxu1  ;;  %v17285_v18 = vld [vmem:[#allocation16] sm:$0xff]  }
0x1264   :  { %17885 = vpow2.f32 %v14266_v34  ;;  %v21352_v34 = vld [vmem:[#allocation49_spill] sm:$0xff] }
0x126d   :  { %v17884_v63 = vpop.eup %17883 }
0x126e   :  { %v6496_v38 = vmul.f32 %v17884_v63, %v6495_v62  ;;  %v17886_v0 = vpop.eup %17885 }
0x126f   :  { %v6647_v50 = vadd.f32 1.0, %v17886_v0 }
0x1270   :  { %v19979_v7 = vadd.f32 %v6496_v38, %v6494_v43  ;;  %v21353_v43 = vld [vmem:[#allocation50_spill] sm:$0xff] }
0x1271   :  { %17887 = vrcp.f32 %v6647_v50 }
0x127b   :  { %v17888_v29 = vpop.eup %17887 }
0x127c   :  { %v6766_v48 = vsub.f32 1.0, %v17888_v29  ;;  %v6765_v45 = vmul.f32 %v17888_v29, %v19848_v26  ;;  %v20004_v26 = vld [vmem:[#allocation14 + $0x4] ss:$8 sps:$4 sm:$0xff]  }
0x1280   :  { %v6757_v46 = vpop.f32.mrb[92].mxu1 }
0x1281   :  { %v6763_v3 = vadd.f32 %v6757_v46, %v21351_v19  ;;  %v15982_v35 = vpop.f32.mrb[93].mxu1  ;;  %v17286_v46 = vld [vmem:[#allocation16 + $0x8] sm:$0xff]  }
0x1282   :  { %v6760_v23 = vpop.f32.mrb[94].mxu1  ;;  %v17288_v35 = vld [vmem:[#allocation16 + $0x18] sm:$0xff]  }
0x1283   :  { %17889 = vtanh.f32 %v6763_v3  ;;  %v15983_v27 = vpop.f32.mrb[95].mxu1  ;;  %v17287_v3 = vld [vmem:[#allocation16 + $0x10] sm:$0xff]   ;;  %v17289_v23 = vld [vmem:[#allocation16 + $0x20] sm:$0xff]  }
0x128d   :  { %v17890_v17 = vpop.eup %17889 }
0x128e   :  { %v6767_v9 = vmul.f32 %v17890_v17, %v6766_v48  ;;  %v17290_v48 = vld [vmem:[#allocation16 + $0x28] sm:$0xff]   ;;  %v17291_v17 = vld [vmem:[#allocation16 + $0x30] sm:$0xff]  }
0x1290   :  { %v19983_v59 = vadd.f32 %v6767_v9, %v6765_v45  ;;  %v17292_v9 = vld [vmem:[#allocation16 + $0x38] sm:$0xff]  }
0x1292   :  { %v6770_v42 = vpack.c.bf16 %v19983_v59, %v19983_v59 }
0x1294   :  { %6964 = vmatmul.mubr.bf16.vlgmr.msra.gmra.mrb[84].mxu0 %v6770_v42  ;;  %16001 = vmatmul.mubr.bf16.vlgmr.msra.gmra.mrb[96].mxu1 %v6770_v42 }
0x1295   :  { %7111 = vmatpush1.bf16.msra.mxu0 %v19850_v12  ;;  %7142 = vmatprep.mubr.bf16.mxu0 %v21340_v25  ;;  %v20007_v12 = vld [vmem:[#allocation14] ss:$8 sps:$4 sm:$0xff]  }
0x1296   :  { %7112 = vmatprep.subr.bf16.mxu0 %v19854_v54  ;;  %16020 = vmatprep.mubr.msk.bf16.mxu1 %vm18375_vm0, %v21339_v31  ;;  %v7013_v54 = vpack.c.bf16 %v19979_v7, %v19979_v7 }
0x1297   :  { %16005 = vmatpush3.bf16.msra.mxu1 %v17277_v47  ;;  %v20086_v47 = vld [vmem:[#allocation17 + $0x4] ss:$12 sps:$4 sm:$0xff]  }
0x1298   :  { %16006 = vmatprep.subr.bf16.mxu1 %v21339_v31 }
0x1299   :  { %7113 = vmatpush1.bf16.msra.mxu0 %v19857_v28  ;;  %v20012_v28 = vld [vmem:[#allocation14 + $0x14] ss:$8 sps:$4 sm:$0xff]  }
0x129a   :  { %7114 = vmatprep.subr.bf16.mxu0 %v19861_v41  ;;  %v20015_v41 = vld [vmem:[#allocation14 + $0x10] ss:$8 sps:$4 sm:$0xff]  }
0x129b   :  { %16007 = vmatpush3.bf16.msra.mxu1 %v17278_v32  ;;  %v20088_v32 = vld [vmem:[#allocation17] ss:$12 sps:$4 sm:$0xff]  }
0x129c   :  { %16008 = vmatprep.subr.bf16.mxu1 %v21339_v31 }
0x129d   :  { %7115 = vmatpush1.bf16.msra.mxu0 %v19866_v2  ;;  %v20019_v2 = vld [vmem:[#allocation14 + $0x24] ss:$8 sps:$4 sm:$0xff]  }
0x129e   :  { %7116 = vmatprep.subr.bf16.mxu0 %v19869_v55  ;;  %v20022_v55 = vld [vmem:[#allocation14 + $0x20] ss:$8 sps:$4 sm:$0xff]  }
0x129f   :  { %16009 = vmatpush3.bf16.msra.mxu1 %v17279_v61  ;;  %v17296_v61 = vld [vmem:[#allocation17 + $0x8] ss:$12 sps:$4 sm:$0xff]  }
0x12a0   :  { %16010 = vmatprep.subr.bf16.mxu1 %v21339_v31 }
0x12a1   :  { %7117 = vmatpush1.bf16.msra.mxu0 %v19872_v14  ;;  %v20025_v14 = vld [vmem:[#allocation14 + $0x34] ss:$8 sps:$4 sm:$0xff]  }
0x12a2   :  { %7118 = vmatprep.subr.bf16.mxu0 %v19875_v6  ;;  %v20028_v6 = vld [vmem:[#allocation14 + $0x30] ss:$8 sps:$4 sm:$0xff]  }
0x12a3   :  { %16011 = vmatpush3.bf16.msra.mxu1 %v17280_v21  ;;  %v20092_v21 = vld [vmem:[#allocation17 + $0x18] ss:$12 sps:$4 sm:$0xff]  }
0x12a4   :  { %16012 = vmatprep.subr.bf16.mxu1 %v21339_v31 }
0x12a5   :  { %7119 = vmatpush1.bf16.msra.mxu0 %v19878_v36  ;;  %v20031_v36 = vld [vmem:[#allocation14 + $0x44] ss:$8 sps:$4 sm:$0xff]  }
0x12a6   :  { %7120 = vmatprep.subr.bf16.mxu0 %v19881_v44  ;;  %v20034_v44 = vld [vmem:[#allocation14 + $0x40] ss:$8 sps:$4 sm:$0xff]  }
0x12a7   :  { %16013 = vmatpush3.bf16.msra.mxu1 %v17281_v8  ;;  %v20094_v8 = vld [vmem:[#allocation17 + $0x1c] ss:$12 sps:$4 sm:$0xff]  }
0x12a8   :  { %16014 = vmatprep.subr.bf16.mxu1 %v21339_v31 }
0x12a9   :  { %7121 = vmatpush1.bf16.msra.mxu0 %v19884_v58  ;;  %v20037_v58 = vld [vmem:[#allocation14 + $0x54] ss:$8 sps:$4 sm:$0xff]  }
0x12aa   :  { %7122 = vmatprep.subr.bf16.mxu0 %v19887_v10  ;;  %v20040_v10 = vld [vmem:[#allocation14 + $0x50] ss:$8 sps:$4 sm:$0xff]  }
0x12ab   :  { %16015 = vmatpush3.bf16.msra.mxu1 %v17282_v1  ;;  %v17300_v1 = vld [vmem:[#allocation17 + $0x20] ss:$12 sps:$4 sm:$0xff]  }
0x12ac   :  { %16016 = vmatprep.subr.bf16.mxu1 %v21339_v31 }
0x12ad   :  { %7123 = vmatpush1.bf16.msra.mxu0 %v19890_v39  ;;  %v20043_v39 = vld [vmem:[#allocation14 + $0x64] ss:$8 sps:$4 sm:$0xff]  }
0x12ae   :  { %7124 = vmatprep.subr.bf16.mxu0 %v19893_v56  ;;  %v20046_v56 = vld [vmem:[#allocation14 + $0x60] ss:$8 sps:$4 sm:$0xff]  }
0x12af   :  { %16017 = vmatpush3.bf16.msra.mxu1 %v17283_v57  ;;  %v20096_v57 = vld [vmem:[#allocation17 + $0x34] ss:$12 sps:$4 sm:$0xff]  }
0x12b0   :  { %16018 = vmatprep.subr.bf16.mxu1 %v21339_v31 }
0x12b1   :  { %7125 = vmatpush1.bf16.msra.mxu0 %v19896_v22  ;;  %v20049_v22 = vld [vmem:[#allocation14 + $0x74] ss:$8 sps:$4 sm:$0xff]  }
0x12b2   :  { %7381 = vmatprep.subr.bf16.mxu0 %v20004_v26 }
0x12b3   :  { %16019 = vmatpush3.bf16.msra.mxu1 %v17284_v49  ;;  %v20101_v49 = vld [vmem:[#allocation17 + $0x30] ss:$12 sps:$4 sm:$0xff]  }
0x12b4   :  { %7143 = vmatmul.mubr.bf16.vlgmr.msra.gmra.mrb[84].mxu0 %v7013_v54  ;;  %16024 = vmatprep.subr.bf16.mxu1 %v21339_v31 }
0x12b5   :  { %7382 = vmatpush1.bf16.msra.mxu0 %v20007_v12  ;;  %7413 = vmatprep.mubr.bf16.mxu0 %v21340_v25 }
0x12b6   :  { %7383 = vmatprep.subr.bf16.mxu0 %v20012_v28 }
0x12b9   :  { %7384 = vmatpush1.bf16.msra.mxu0 %v20015_v41 }
0x12ba   :  { %7385 = vmatprep.subr.bf16.mxu0 %v20019_v2 }
0x12bd   :  { %7386 = vmatpush1.bf16.msra.mxu0 %v20022_v55 }
0x12be   :  { %7387 = vmatprep.subr.bf16.mxu0 %v20025_v14 }
0x12c1   :  { %7388 = vmatpush1.bf16.msra.mxu0 %v20028_v6 }
0x12c2   :  { %7389 = vmatprep.subr.bf16.mxu0 %v20031_v36 }
0x12c5   :  { %7390 = vmatpush1.bf16.msra.mxu0 %v20034_v44 }
0x12c6   :  { %7391 = vmatprep.subr.bf16.mxu0 %v20037_v58 }
0x12c9   :  { %7392 = vmatpush1.bf16.msra.mxu0 %v20040_v10 }
0x12ca   :  { %7393 = vmatprep.subr.bf16.mxu0 %v20043_v39 }
0x12cd   :  { %7394 = vmatpush1.bf16.msra.mxu0 %v20046_v56 }
0x12ce   :  { %7395 = vmatprep.subr.bf16.mxu0 %v20049_v22 }
0x12d1   :  { %7396 = vmatpush1.bf16.msra.mxu0 %v20052_v53 }
0x12d2   :  { %7710 = vmatprep.subr.bf16.mxu0 %v20086_v47 }
0x12d4   :  { %7414 = vmatmul.mubr.bf16.vlgmr.msra.gmra.mrb[88].mxu0 %v6770_v42 }
0x12d5   :  { %7742 = vmatprep.mubr.bf16.mxu0 %v21340_v25  ;;  %7711 = vmatpush1.bf16.msra.mxu0 %v20088_v32 }
0x12d6   :  { %7712 = vmatprep.subr.bf16.mxu0 %v20094_v8 }
0x12d9   :  { %7713 = vmatpush1.bf16.msra.mxu0 %v20092_v21 }
0x12da   :  { %7714 = vmatprep.subr.bf16.mxu0 %v20096_v57 }
0x12dd   :  { %7715 = vmatpush1.bf16.msra.mxu0 %v20101_v49 }
0x1387   :  { %v20065_v20 = vpop.f32.mrb[84].mxu0 }
0x1388   :  { %v7146_v13 = vpop.f32.mrb[85].mxu0 }
0x1389   :  { %v16526_v37 = vadd.f32 %v7146_v13, %v19009_v51  ;;  %v7148_v40 = vpop.f32.mrb[86].mxu0  ;;  %v17304_v13 = vld [vmem:[#allocation17 + $0x38] ss:$12 sps:$4 sm:$0xff]  }
0x138a   :  { %v7149_v33 = vpop.f32.mrb[87].mxu0  ;;  %v20108_v40 = vld [vmem:[#allocation17 + $0x48] ss:$12 sps:$4 sm:$0xff]  }
0x138b   :  { %v14317_v11 = vmul.f32 -1.442695, %v16526_v37  ;;  %v20104_v37 = vld [vmem:[#allocation17 + $0x4c] ss:$12 sps:$4 sm:$0xff]   ;;  %v17308_v33 = vld [vmem:[#allocation17 + $0x50] ss:$12 sps:$4 sm:$0xff]  }
0x138c   :  { %7716 = vmatprep.subr.bf16.mxu0 %v20104_v37 }
0x138d   :  { %17891 = vpow2.f32 %v14317_v11  ;;  %7717 = vmatpush1.bf16.msra.mxu0 %v20108_v40  ;;  %v20113_v11 = vld [vmem:[#allocation17 + $0x64] ss:$12 sps:$4 sm:$0xff]  }
0x138e   :  { %7718 = vmatprep.subr.bf16.mxu0 %v20113_v11 }
0x1397   :  { %v17892_v16 = vpop.eup %17891 }
0x1398   :  { %v7162_v15 = vadd.f32 1.0, %v17892_v16  ;;  %v20115_v16 = vld [vmem:[#allocation17 + $0x60] ss:$12 sps:$4 sm:$0xff]  }
0x1399   :  { %7719 = vmatpush1.bf16.msra.mxu0 %v20115_v16 }
0x139a   :  { %17893 = vrcp.f32 %v7162_v15  ;;  %v17312_v15 = vld [vmem:[#allocation17 + $0x68] ss:$12 sps:$4 sm:$0xff]  }
0x13a4   :  { %v17894_v60 = vpop.eup %17893 }
0x13a5   :  { %v7165_v52 = vmul.f32 %v17894_v60, %v19979_v7  ;;  %v20120_v60 = vld [vmem:[#allocation17 + $0x7c] ss:$12 sps:$4 sm:$0xff]  }
0x13a6   :  { %7720 = vmatprep.subr.bf16.mxu0 %v20120_v60 }
0x13a7   :  { %v7415_v24 = vpop.f32.mrb[88].mxu0  ;;  %v7166_v4 = vpack.c.bf16 %v7165_v52, %v7165_v52  ;;  %v20122_v52 = vld [vmem:[#allocation17 + $0x78] ss:$12 sps:$4 sm:$0xff]  }
0x13a8   :  { %v20070_v62 = vadd.f32 %v7415_v24, %v21352_v34  ;;  %v7417_v63 = vpop.f32.mrb[89].mxu0  ;;  %7721 = vmatpush1.bf16.msra.mxu0 %v20122_v52  ;;  %v20127_v24 = vld [vmem:[#allocation17 + $0x94] ss:$12 sps:$4 sm:$0xff]   ;;  %v17320_v34 = vld [vmem:[#allocation17 + $0x98] ss:$12 sps:$4 sm:$0xff]  }
0x13a9   :  { %v7429_v38 = vadd.f32 %v7417_v63, %v21353_v43  ;;  %16021 = vmatmul.mubr.bf16.vlgmr.msra.gmra.mrb[96].mxu1 %v7166_v4  ;;  %v7419_v0 = vpop.f32.mrb[90].mxu0  ;;  %v20129_v4 = vld [vmem:[#allocation17 + $0x90] ss:$12 sps:$4 sm:$0xff]   ;;  %7722 = vmatprep.subr.bf16.mxu0 %v20127_v24  ;;  %v20134_v63 = vld [vmem:[#allocation17 + $0xac] ss:$12 sps:$4 sm:$0xff]  }
0x13aa   :  { %v7420_v50 = vpop.f32.mrb[91].mxu0  ;;  %16025 = vmatpush3.bf16.msra.mxu1 %v17285_v18  ;;  %16040 = vmatprep.mubr.msk.bf16.mxu1 %vm18375_vm0, %v21339_v31  ;;  %v17316_v18 = vld [vmem:[#allocation17 + $0x80] ss:$12 sps:$4 sm:$0xff]   ;;  %v20136_v43 = vld [vmem:[#allocation17 + $0xa8] ss:$12 sps:$4 sm:$0xff]  }
0x13ab   :  { %v14343_v19 = vmul.f32 -1.442695, %v7429_v38  ;;  %16026 = vmatprep.subr.bf16.mxu1 %v21339_v31  ;;  %v17324_v38 = vld [vmem:[#allocation17 + $0xb0] ss:$12 sps:$4 sm:$0xff]   ;;  %v20140_v0 = vld [vmem:[#allocation19 + $0x4] ss:$8 sps:$4 sm:$0xff]   ;;  %v16525_v50 = vadd.f32 %v20065_v20, %v19043_v30 }
0x13ac   :  { %7723 = vmatpush1.bf16.msra.mxu0 %v20129_v4 }
0x13ad   :  { %17895 = vpow2.f32 %v14343_v19  ;;  %7724 = vmatprep.subr.bf16.mxu0 %v20134_v63 }
0x13ae   :  { %16027 = vmatpush3.bf16.msra.mxu1 %v17286_v46  ;;  %v14316_v46 = vmul.f32 -1.442695, %v16525_v50 }
0x13af   :  { %16028 = vmatprep.subr.bf16.mxu1 %v21339_v31 }
0x13b0   :  { %7725 = vmatpush1.bf16.msra.mxu0 %v20136_v43 }
0x13b1   :  { %7889 = vmatprep.subr.bf16.mxu0 %v20140_v0 }
0x13b2   :  { %16029 = vmatpush3.bf16.msra.mxu1 %v17287_v3 }
0x13b3   :  { %16030 = vmatprep.subr.bf16.mxu1 %v21339_v31 }
0x13b6   :  { %16031 = vmatpush3.bf16.msra.mxu1 %v17288_v35 }
0x13b7   :  { %v17896_v27 = vpop.eup %17895  ;;  %16032 = vmatprep.subr.bf16.mxu1 %v21339_v31 }
0x13b8   :  { %v7433_v29 = vadd.f32 1.0, %v17896_v27 }
0x13ba   :  { %17897 = vrcp.f32 %v7433_v29  ;;  %16033 = vmatpush3.bf16.msra.mxu1 %v17289_v23 }
0x13bb   :  { %16034 = vmatprep.subr.bf16.mxu1 %v21339_v31  ;;  %17899 = vpow2.f32 %v14316_v46 }
0x13be   :  { %16035 = vmatpush3.bf16.msra.mxu1 %v17290_v48 }
0x13bf   :  { %16036 = vmatprep.subr.bf16.mxu1 %v21339_v31 }
0x13c2   :  { %16037 = vmatpush3.bf16.msra.mxu1 %v17291_v17 }
0x13c3   :  { %16038 = vmatprep.subr.bf16.mxu1 %v21339_v31 }
0x13c4   :  { %v17898_v45 = vpop.eup %17897 }
0x13c5   :  { %v7436_v42 = vmul.f32 %v17898_v45, %v19983_v59  ;;  %v17900_v19 = vpop.eup %17899 }
0x13c6   :  { %16039 = vmatpush3.bf16.msra.mxu1 %v17292_v9  ;;  %v7155_v3 = vadd.f32 1.0, %v17900_v19  ;;  %v14342_v9 = vmul.f32 -1.442695, %v20070_v62 }
0x13c7   :  { %v7437_v54 = vpack.c.bf16 %v7436_v42, %v7436_v42  ;;  %16044 = vmatprep.subr.bf16.mxu1 %v21339_v31 }
0x13c8   :  { %17901 = vrcp.f32 %v7155_v3 }
0x13c9   :  { %16041 = vmatmul.mubr.bf16.vlgmr.msra.gmra.mrb[100].mxu1 %v7437_v54 }
0x13ca   :  { %16060 = vmatprep.mubr.msk.bf16.mxu1 %vm18375_vm0, %v21339_v31  ;;  %16045 = vmatpush3.bf16.msra.mxu1 %v17296_v61 }
0x13cb   :  { %16046 = vmatprep.subr.bf16.mxu1 %v21339_v31 }
0x13ce   :  { %16047 = vmatpush3.bf16.msra.mxu1 %v17300_v1 }
0x13cf   :  { %16048 = vmatprep.subr.bf16.mxu1 %v21339_v31 }
0x13d2   :  { %16049 = vmatpush3.bf16.msra.mxu1 %v17304_v13  ;;  %v17902_v17 = vpop.eup %17901 }
0x13d3   :  { %16050 = vmatprep.subr.bf16.mxu1 %v21339_v31  ;;  %v7274_v45 = vsub.f32 1.0, %v17902_v17  ;;  %v7273_v54 = vmul.f32 %v17902_v17, %v19979_v7  ;;  %v20165_v17 = vld [vmem:[#allocation19 + $0x10] ss:$8 sps:$4 sm:$0xff]  }
0x13d6   :  { %16051 = vmatpush3.bf16.msra.mxu1 %v17308_v33 }
0x13d7   :  { %16052 = vmatprep.subr.bf16.mxu1 %v21339_v31 }
0x13da   :  { %16053 = vmatpush3.bf16.msra.mxu1 %v17312_v15 }
0x13db   :  { %16054 = vmatprep.subr.bf16.mxu1 %v21339_v31 }
0x13de   :  { %16055 = vmatpush3.bf16.msra.mxu1 %v17316_v18  ;;  %v21354_v18 = vld [vmem:[#allocation37_spill] sm:$0xff] }
0x13df   :  { %16056 = vmatprep.subr.bf16.mxu1 %v21339_v31 }
0x13e2   :  { %16057 = vmatpush3.bf16.msra.mxu1 %v17320_v34 }
0x13e3   :  { %16058 = vmatprep.subr.bf16.mxu1 %v21339_v31 }
0x13e6   :  { %16059 = vmatpush3.bf16.msra.mxu1 %v17324_v38 }
0x13e7   :  { %16064 = vmatprep.subr.bf16.mxu1 %v21339_v31 }
0x147c   :  { %v7265_v35 = vpop.f32.mrb[96].mxu1 }
0x147d   :  { %v16527_v23 = vadd.f32 %v7265_v35, %v19050_v5  ;;  %v16022_v27 = vpop.f32.mrb[97].mxu1 }
0x147e   :  { %v7268_v29 = vpop.f32.mrb[98].mxu1 }
0x147f   :  { %17903 = vtanh.f32 %v16527_v23  ;;  %v16023_v48 = vpop.f32.mrb[99].mxu1 }
0x1480   :  { %17905 = vpow2.f32 %v14342_v9  ;;  %v20162_v48 = vld [vmem:[#allocation19 + $0x14] ss:$8 sps:$4 sm:$0xff]   ;;  %v20174_v9 = vld [vmem:[#allocation19 + $0x20] ss:$8 sps:$4 sm:$0xff]  }
0x1489   :  { %v17904_v42 = vpop.eup %17903 }
0x148a   :  { %v7275_v20 = vmul.f32 %v17904_v42, %v7274_v45  ;;  %v17906_v13 = vpop.eup %17905  ;;  %v20177_v45 = vld [vmem:[#allocation19 + $0x34] ss:$8 sps:$4 sm:$0xff]   ;;  %v20180_v42 = vld [vmem:[#allocation19 + $0x30] ss:$8 sps:$4 sm:$0xff]  }
0x148b   :  { %v7426_v33 = vadd.f32 1.0, %v17906_v13  ;;  %v20192_v13 = vld [vmem:[#allocation19 + $0x50] ss:$8 sps:$4 sm:$0xff]  }
0x148c   :  { %v20150_v61 = vadd.f32 %v7275_v20, %v7273_v54  ;;  %v20183_v54 = vld [vmem:[#allocation19 + $0x44] ss:$8 sps:$4 sm:$0xff]   ;;  %v20186_v20 = vld [vmem:[#allocation19 + $0x40] ss:$8 sps:$4 sm:$0xff]  }
0x148d   :  { %17907 = vrcp.f32 %v7426_v33  ;;  %v20195_v33 = vld [vmem:[#allocation19 + $0x64] ss:$8 sps:$4 sm:$0xff]  }
0x148e   :  { %v14984_v1 = vpack.c.bf16 %v20150_v61, %v19979_v7  ;;  %v20158_v7 = vld [vmem:[#allocation19] ss:$8 sps:$4 sm:$0xff]  }
0x1490   :  { %15008 = vst [vmem:[#allocation22 + $0x18] sm:$0xff] %v14984_v1   ;;  %v20189_v1 = vld [vmem:[#allocation19 + $0x54] ss:$8 sps:$4 sm:$0xff]  }
0x1497   :  { %v17908_v46 = vpop.eup %17907 }
0x1498   :  { %v7545_v19 = vsub.f32 1.0, %v17908_v46  ;;  %v7544_v23 = vmul.f32 %v17908_v46, %v19983_v59  ;;  %v20169_v59 = vld [vmem:[#allocation19 + $0x24] ss:$8 sps:$4 sm:$0xff]  }
0x1499   :  { %v17362_v46 = vld [vmem:[#allocation16 + $0x28] sm:$0xff]  }
0x149c   :  { %v7536_v15 = vpop.f32.mrb[100].mxu1 }
0x149d   :  { %v7542_v34 = vadd.f32 %v7536_v15, %v21354_v18  ;;  %v16042_v38 = vpop.f32.mrb[101].mxu1  ;;  %v20198_v15 = vld [vmem:[#allocation19 + $0x60] ss:$8 sps:$4 sm:$0xff]   ;;  %v20201_v18 = vld [vmem:[#allocation19 + $0x74] ss:$8 sps:$4 sm:$0xff]  }
0x149e   :  { %v7539_v62 = vpop.f32.mrb[102].mxu1  ;;  %v7792_v38 = vpack.c.bf16 %v20150_v61, %v20150_v61 }
0x149f   :  { %17909 = vtanh.f32 %v7542_v34  ;;  %v16043_v50 = vpop.f32.mrb[103].mxu1  ;;  %v20204_v34 = vld [vmem:[#allocation19 + $0x70] ss:$8 sps:$4 sm:$0xff]  }
0x14a9   :  { %v17910_v3 = vpop.eup %17909 }
0x14aa   :  { %v7546_v35 = vmul.f32 %v17910_v3, %v7545_v19  ;;  %v17363_v19 = vld [vmem:[#allocation16 + $0x30] sm:$0xff]   ;;  %v17364_v3 = vld [vmem:[#allocation16 + $0x38] sm:$0xff]  }
0x14ac   :  { %v20156_v27 = vadd.f32 %v7546_v35, %v7544_v23 }
0x14ae   :  { %v7549_v29 = vpack.c.bf16 %v20156_v27, %v20156_v27 }
0x14b0   :  { %7743 = vmatmul.mubr.bf16.vlgmr.msra.gmra.mrb[92].mxu0 %v7549_v29  ;;  %16061 = vmatmul.mubr.bf16.vlgmr.msra.gmra.mrb[104].mxu1 %v7549_v29 }
0x14b1   :  { %7890 = vmatpush1.bf16.msra.mxu0 %v20158_v7  ;;  %7921 = vmatprep.mubr.bf16.mxu0 %v21340_v25 }
0x14b2   :  { %7891 = vmatprep.subr.bf16.mxu0 %v20162_v48  ;;  %16080 = vmatprep.mubr.msk.bf16.mxu1 %vm18375_vm0, %v21339_v31 }
0x14b5   :  { %7892 = vmatpush1.bf16.msra.mxu0 %v20165_v17 }
0x14b6   :  { %7893 = vmatprep.subr.bf16.mxu0 %v20169_v59 }
0x14b9   :  { %7894 = vmatpush1.bf16.msra.mxu0 %v20174_v9 }
0x14ba   :  { %7895 = vmatprep.subr.bf16.mxu0 %v20177_v45 }
0x14bd   :  { %7896 = vmatpush1.bf16.msra.mxu0 %v20180_v42 }
0x14be   :  { %7897 = vmatprep.subr.bf16.mxu0 %v20183_v54 }
0x14c1   :  { %7898 = vmatpush1.bf16.msra.mxu0 %v20186_v20 }
0x14c2   :  { %7899 = vmatprep.subr.bf16.mxu0 %v20189_v1 }
0x14c5   :  { %7900 = vmatpush1.bf16.msra.mxu0 %v20192_v13 }
0x14c6   :  { %7901 = vmatprep.subr.bf16.mxu0 %v20195_v33 }
0x14c9   :  { %7902 = vmatpush1.bf16.msra.mxu0 %v20198_v15 }
0x14ca   :  { %7903 = vmatprep.subr.bf16.mxu0 %v20201_v18 }
0x14cd   :  { %7904 = vmatpush1.bf16.msra.mxu0 %v20204_v34 }
0x14ce   :  { %8160 = vmatprep.subr.bf16.mxu0 %v20004_v26  ;;  %v17349_v26 = vld [vmem:[#allocation20] sm:$0xff]  }
0x14cf   :  { %16065 = vmatpush3.bf16.msra.mxu1 %v17349_v26  ;;  %v17366_v26 = vld [vmem:[#allocation17 + $0x20] ss:$12 sps:$4 sm:$0xff]  }
0x14d0   :  { %7922 = vmatmul.mubr.bf16.vlgmr.msra.gmra.mrb[92].mxu0 %v7792_v38  ;;  %16066 = vmatprep.subr.bf16.mxu1 %v21339_v31  ;;  %v17365_v38 = vld [vmem:[#allocation17 + $0x8] ss:$12 sps:$4 sm:$0xff]  }
0x14d1   :  { %8161 = vmatpush1.bf16.msra.mxu0 %v20007_v12  ;;  %8192 = vmatprep.mubr.bf16.mxu0 %v21340_v25  ;;  %v17350_v12 = vld [vmem:[#allocation20 + $0x8] sm:$0xff]  }
0x14d2   :  { %8162 = vmatprep.subr.bf16.mxu0 %v20012_v28  ;;  %v17351_v28 = vld [vmem:[#allocation20 + $0x10] sm:$0xff]  }
0x14d3   :  { %16067 = vmatpush3.bf16.msra.mxu1 %v17350_v12  ;;  %v17367_v12 = vld [vmem:[#allocation17 + $0x38] ss:$12 sps:$4 sm:$0xff]  }
0x14d4   :  { %16068 = vmatprep.subr.bf16.mxu1 %v21339_v31 }
0x14d5   :  { %8163 = vmatpush1.bf16.msra.mxu0 %v20015_v41  ;;  %v17352_v41 = vld [vmem:[#allocation20 + $0x18] sm:$0xff]  }
0x14d6   :  { %8164 = vmatprep.subr.bf16.mxu0 %v20019_v2  ;;  %v17353_v2 = vld [vmem:[#allocation20 + $0x20] sm:$0xff]  }
0x14d7   :  { %16069 = vmatpush3.bf16.msra.mxu1 %v17351_v28  ;;  %v17368_v28 = vld [vmem:[#allocation17 + $0x50] ss:$12 sps:$4 sm:$0xff]  }
0x14d8   :  { %16070 = vmatprep.subr.bf16.mxu1 %v21339_v31 }
0x14d9   :  { %8165 = vmatpush1.bf16.msra.mxu0 %v20022_v55  ;;  %v17354_v55 = vld [vmem:[#allocation20 + $0x28] sm:$0xff]  }
0x14da   :  { %8166 = vmatprep.subr.bf16.mxu0 %v20025_v14  ;;  %v17355_v14 = vld [vmem:[#allocation20 + $0x30] sm:$0xff]  }
0x14db   :  { %16071 = vmatpush3.bf16.msra.mxu1 %v17352_v41  ;;  %v17369_v41 = vld [vmem:[#allocation17 + $0x68] ss:$12 sps:$4 sm:$0xff]  }
0x14dc   :  { %16072 = vmatprep.subr.bf16.mxu1 %v21339_v31 }
0x14dd   :  { %8167 = vmatpush1.bf16.msra.mxu0 %v20028_v6  ;;  %v17356_v6 = vld [vmem:[#allocation20 + $0x38] sm:$0xff]  }
0x14de   :  { %8168 = vmatprep.subr.bf16.mxu0 %v20031_v36 }
0x14df   :  { %16073 = vmatpush3.bf16.msra.mxu1 %v17353_v2  ;;  %v17370_v2 = vld [vmem:[#allocation17 + $0x80] ss:$12 sps:$4 sm:$0xff]  }
0x14e0   :  { %16074 = vmatprep.subr.bf16.mxu1 %v21339_v31 }
0x14e1   :  { %8169 = vmatpush1.bf16.msra.mxu0 %v20034_v44 }
0x14e2   :  { %8170 = vmatprep.subr.bf16.mxu0 %v20037_v58 }
0x14e3   :  { %16075 = vmatpush3.bf16.msra.mxu1 %v17354_v55  ;;  %v17371_v55 = vld [vmem:[#allocation17 + $0x98] ss:$12 sps:$4 sm:$0xff]  }
0x14e4   :  { %16076 = vmatprep.subr.bf16.mxu1 %v21339_v31 }
0x14e5   :  { %8171 = vmatpush1.bf16.msra.mxu0 %v20040_v10 }
0x14e6   :  { %8172 = vmatprep.subr.bf16.mxu0 %v20043_v39 }
0x14e7   :  { %16077 = vmatpush3.bf16.msra.mxu1 %v17355_v14  ;;  %v17372_v14 = vld [vmem:[#allocation17 + $0xb0] ss:$12 sps:$4 sm:$0xff]  }
0x14e8   :  { %16078 = vmatprep.subr.bf16.mxu1 %v21339_v31 }
0x14e9   :  { %8173 = vmatpush1.bf16.msra.mxu0 %v20046_v56 }
0x14ea   :  { %8174 = vmatprep.subr.bf16.mxu0 %v20049_v22 }
0x14eb   :  { %16079 = vmatpush3.bf16.msra.mxu1 %v17356_v6 }
0x14ec   :  { %16084 = vmatprep.subr.bf16.mxu1 %v21339_v31 }
0x14ed   :  { %8175 = vmatpush1.bf16.msra.mxu0 %v20052_v53 }
0x14ee   :  { %8489 = vmatprep.subr.bf16.mxu0 %v20086_v47 }
0x14f0   :  { %8193 = vmatmul.mubr.bf16.vlgmr.msra.gmra.mrb[96].mxu0 %v7549_v29 }
0x14f1   :  { %8490 = vmatpush1.bf16.msra.mxu0 %v20088_v32  ;;  %8521 = vmatprep.mubr.bf16.mxu0 %v21340_v25 }
0x14f2   :  { %8491 = vmatprep.subr.bf16.mxu0 %v20094_v8 }
0x14f5   :  { %8492 = vmatpush1.bf16.msra.mxu0 %v20092_v21  ;;  %v17357_v21 = vld [vmem:[#allocation16] sm:$0xff]  }
0x14f6   :  { %8493 = vmatprep.subr.bf16.mxu0 %v20096_v57 }
0x14f9   :  { %8494 = vmatpush1.bf16.msra.mxu0 %v20101_v49  ;;  %v21355_v49 = vld [vmem:[#allocation51_spill] sm:$0xff] }
0x14fa   :  { %8495 = vmatprep.subr.bf16.mxu0 %v20104_v37 }
0x14fd   :  { %8496 = vmatpush1.bf16.msra.mxu0 %v20108_v40 }
0x14fe   :  { %8497 = vmatprep.subr.bf16.mxu0 %v20113_v11  ;;  %v21356_v11 = vld [vmem:[#allocation52_spill] sm:$0xff] }
0x1501   :  { %8498 = vmatpush1.bf16.msra.mxu0 %v20115_v16 }
0x1502   :  { %8499 = vmatprep.subr.bf16.mxu0 %v20120_v60 }
0x1505   :  { %8500 = vmatpush1.bf16.msra.mxu0 %v20122_v52 }
0x1506   :  { %8501 = vmatprep.subr.bf16.mxu0 %v20127_v24  ;;  %v17358_v24 = vld [vmem:[#allocation16 + $0x8] sm:$0xff]  }
0x1509   :  { %8502 = vmatpush1.bf16.msra.mxu0 %v20129_v4 }
0x150a   :  { %8503 = vmatprep.subr.bf16.mxu0 %v20134_v63  ;;  %v17359_v63 = vld [vmem:[#allocation16 + $0x10] sm:$0xff]  }
0x150d   :  { %8504 = vmatpush1.bf16.msra.mxu0 %v20136_v43  ;;  %v17360_v43 = vld [vmem:[#allocation16 + $0x18] sm:$0xff]  }
0x150e   :  { %8668 = vmatprep.subr.bf16.mxu0 %v20140_v0  ;;  %v17361_v0 = vld [vmem:[#allocation16 + $0x20] sm:$0xff]  }
0x15a3   :  { %v20253_v36 = vpop.f32.mrb[92].mxu0 }
0x15a4   :  { %v7925_v44 = vpop.f32.mrb[93].mxu0  ;;  %v16528_v6 = vadd.f32 %v20253_v36, %v19043_v30 }
0x15a5   :  { %v16529_v58 = vadd.f32 %v7925_v44, %v19009_v51  ;;  %v7927_v10 = vpop.f32.mrb[94].mxu0 }
0x15a6   :  { %v7928_v39 = vpop.f32.mrb[95].mxu0  ;;  %v14392_v44 = vmul.f32 -1.442695, %v16528_v6 }
0x15a7   :  { %v14393_v56 = vmul.f32 -1.442695, %v16529_v58 }
0x15a9   :  { %17911 = vpow2.f32 %v14393_v56 }
0x15b3   :  { %v17912_v22 = vpop.eup %17911 }
0x15b4   :  { %v7941_v53 = vadd.f32 1.0, %v17912_v22 }
0x15b6   :  { %17913 = vrcp.f32 %v7941_v53 }
0x15c0   :  { %v17914_v47 = vpop.eup %17913 }
0x15c1   :  { %v7944_v32 = vmul.f32 %v17914_v47, %v20150_v61 }
0x15c3   :  { %v8194_v8 = vpop.f32.mrb[96].mxu0  ;;  %v7945_v57 = vpack.c.bf16 %v7944_v32, %v7944_v32 }
0x15c4   :  { %v20258_v37 = vadd.f32 %v8194_v8, %v21355_v49  ;;  %v8196_v40 = vpop.f32.mrb[97].mxu0 }
0x15c5   :  { %v8208_v16 = vadd.f32 %v8196_v40, %v21356_v11  ;;  %16081 = vmatmul.mubr.bf16.vlgmr.msra.gmra.mrb[104].mxu1 %v7945_v57  ;;  %v8198_v60 = vpop.f32.mrb[98].mxu0 }
0x15c6   :  { %v8199_v52 = vpop.f32.mrb[99].mxu0  ;;  %16085 = vmatpush3.bf16.msra.mxu1 %v17357_v21  ;;  %16100 = vmatprep.mubr.msk.bf16.mxu1 %vm18375_vm0, %v21339_v31  ;;  %v14418_v21 = vmul.f32 -1.442695, %v20258_v37 }
0x15c7   :  { %v14419_v4 = vmul.f32 -1.442695, %v8208_v16  ;;  %16086 = vmatprep.subr.bf16.mxu1 %v21339_v31  ;;  %v21357_v52 = vld [vmem:[#allocation40_spill] sm:$0xff] }
0x15c9   :  { %17915 = vpow2.f32 %v14419_v4 }
0x15ca   :  { %16087 = vmatpush3.bf16.msra.mxu1 %v17358_v24 }
0x15cb   :  { %16088 = vmatprep.subr.bf16.mxu1 %v21339_v31 }
0x15ce   :  { %16089 = vmatpush3.bf16.msra.mxu1 %v17359_v63 }
0x15cf   :  { %16090 = vmatprep.subr.bf16.mxu1 %v21339_v31 }
0x15d2   :  { %16091 = vmatpush3.bf16.msra.mxu1 %v17360_v43 }
0x15d3   :  { %v17916_v62 = vpop.eup %17915  ;;  %16092 = vmatprep.subr.bf16.mxu1 %v21339_v31 }
0x15d4   :  { %v8212_v50 = vadd.f32 1.0, %v17916_v62 }
0x15d6   :  { %17917 = vrcp.f32 %v8212_v50  ;;  %16093 = vmatpush3.bf16.msra.mxu1 %v17361_v0 }
0x15d7   :  { %16094 = vmatprep.subr.bf16.mxu1 %v21339_v31  ;;  %17919 = vpow2.f32 %v14392_v44 }
0x15da   :  { %16095 = vmatpush3.bf16.msra.mxu1 %v17362_v46 }
0x15db   :  { %16096 = vmatprep.subr.bf16.mxu1 %v21339_v31 }
0x15de   :  { %16097 = vmatpush3.bf16.msra.mxu1 %v17363_v19 }
0x15df   :  { %16098 = vmatprep.subr.bf16.mxu1 %v21339_v31 }
0x15e0   :  { %v17918_v35 = vpop.eup %17917 }
0x15e1   :  { %v8215_v23 = vmul.f32 %v17918_v35, %v20156_v27  ;;  %v17920_v58 = vpop.eup %17919  ;;  %v17397_v35 = vld [vmem:[#allocation20] sm:$0xff]  }
0x15e2   :  { %16099 = vmatpush3.bf16.msra.mxu1 %v17364_v3  ;;  %v7934_v10 = vadd.f32 1.0, %v17920_v58  ;;  %v20360_v3 = vld [vmem:[#allocation14 + $0x70] ss:$8 sps:$4 sm:$0xff]  }
0x15e3   :  { %v8216_v29 = vpack.c.bf16 %v8215_v23, %v8215_v23  ;;  %16104 = vmatprep.subr.bf16.mxu1 %v21339_v31  ;;  %v17398_v23 = vld [vmem:[#allocation20 + $0x8] sm:$0xff]  }
0x15e4   :  { %17921 = vrcp.f32 %v7934_v10 }
0x15e5   :  { %16101 = vmatmul.mubr.bf16.vlgmr.msra.gmra.mrb[108].mxu1 %v8216_v29  ;;  %v17399_v29 = vld [vmem:[#allocation20 + $0x10] sm:$0xff]  }
0x15e6   :  { %16120 = vmatprep.mubr.msk.bf16.mxu1 %vm18375_vm0, %v21339_v31  ;;  %16105 = vmatpush3.bf16.msra.mxu1 %v17365_v38  ;;  %v17400_v38 = vld [vmem:[#allocation20 + $0x18] sm:$0xff]  }
0x15e7   :  { %16106 = vmatprep.subr.bf16.mxu1 %v21339_v31 }
0x15ea   :  { %16107 = vmatpush3.bf16.msra.mxu1 %v17366_v26  ;;  %v17401_v26 = vld [vmem:[#allocation20 + $0x20] sm:$0xff]  }
0x15eb   :  { %16108 = vmatprep.subr.bf16.mxu1 %v21339_v31 }
0x15ee   :  { %16109 = vmatpush3.bf16.msra.mxu1 %v17367_v12  ;;  %v17922_v32 = vpop.eup %17921  ;;  %v17402_v12 = vld [vmem:[#allocation20 + $0x28] sm:$0xff]  }
0x15ef   :  { %16110 = vmatprep.subr.bf16.mxu1 %v21339_v31  ;;  %v8053_v8 = vsub.f32 1.0, %v17922_v32  ;;  %v8052_v49 = vmul.f32 %v17922_v32, %v20150_v61 }
0x15f2   :  { %16111 = vmatpush3.bf16.msra.mxu1 %v17368_v28  ;;  %v17403_v28 = vld [vmem:[#allocation20 + $0x30] sm:$0xff]  }
0x15f3   :  { %16112 = vmatprep.subr.bf16.mxu1 %v21339_v31 }
0x15f6   :  { %16113 = vmatpush3.bf16.msra.mxu1 %v17369_v41  ;;  %v17404_v41 = vld [vmem:[#allocation20 + $0x38] sm:$0xff]  }
0x15f7   :  { %16114 = vmatprep.subr.bf16.mxu1 %v21339_v31 }
0x15fa   :  { %16115 = vmatpush3.bf16.msra.mxu1 %v17370_v2 }
0x15fb   :  { %16116 = vmatprep.subr.bf16.mxu1 %v21339_v31 }
0x15fe   :  { %16117 = vmatpush3.bf16.msra.mxu1 %v17371_v55 }
0x15ff   :  { %16118 = vmatprep.subr.bf16.mxu1 %v21339_v31 }
0x1602   :  { %16119 = vmatpush3.bf16.msra.mxu1 %v17372_v14 }
0x1603   :  { %16124 = vmatprep.subr.bf16.mxu1 %v21339_v31 }
0x1698   :  { %v8044_v39 = vpop.f32.mrb[104].mxu1 }
0x1699   :  { %v16530_v56 = vadd.f32 %v8044_v39, %v19050_v5  ;;  %v16082_v22 = vpop.f32.mrb[105].mxu1 }
0x169a   :  { %v8047_v53 = vpop.f32.mrb[106].mxu1 }
0x169b   :  { %17923 = vtanh.f32 %v16530_v56  ;;  %v16083_v47 = vpop.f32.mrb[107].mxu1  ;;  %v17405_v53 = vld [vmem:[#allocation16] sm:$0xff]  }
0x169c   :  { %17925 = vpow2.f32 %v14418_v21  ;;  %v21358_v21 = vld [vmem:[#allocation53_spill] sm:$0xff] }
0x16a5   :  { %v17924_v57 = vpop.eup %17923 }
0x16a6   :  { %v8054_v36 = vmul.f32 %v17924_v57, %v8053_v8  ;;  %v17926_v11 = vpop.eup %17925 }
0x16a7   :  { %v8205_v16 = vadd.f32 1.0, %v17926_v11 }
0x16a8   :  { %v20287_v40 = vadd.f32 %v8054_v36, %v8052_v49  ;;  %v21359_v49 = vld [vmem:[#allocation54_spill] sm:$0xff] }
0x16a9   :  { %17927 = vrcp.f32 %v8205_v16 }
0x16b3   :  { %v17928_v0 = vpop.eup %17927 }
0x16b4   :  { %v8324_v37 = vsub.f32 1.0, %v17928_v0  ;;  %v8323_v61 = vmul.f32 %v17928_v0, %v20156_v27  ;;  %v20312_v27 = vld [vmem:[#allocation14 + $0x4] ss:$8 sps:$4 sm:$0xff]  }
0x16b8   :  { %v8315_v60 = vpop.f32.mrb[108].mxu1 }
0x16b9   :  { %v8321_v24 = vadd.f32 %v8315_v60, %v21357_v52  ;;  %v16102_v4 = vpop.f32.mrb[109].mxu1  ;;  %v17406_v60 = vld [vmem:[#allocation16 + $0x8] sm:$0xff]  }
0x16ba   :  { %v8318_v63 = vpop.f32.mrb[110].mxu1  ;;  %v17408_v4 = vld [vmem:[#allocation16 + $0x18] sm:$0xff]  }
0x16bb   :  { %17929 = vtanh.f32 %v8321_v24  ;;  %v16103_v43 = vpop.f32.mrb[111].mxu1  ;;  %v17407_v24 = vld [vmem:[#allocation16 + $0x10] sm:$0xff]   ;;  %v17409_v63 = vld [vmem:[#allocation16 + $0x20] sm:$0xff]  }
0x16c5   :  { %v17930_v62 = vpop.eup %17929 }
0x16c6   :  { %v8325_v50 = vmul.f32 %v17930_v62, %v8324_v37  ;;  %v17410_v37 = vld [vmem:[#allocation16 + $0x28] sm:$0xff]   ;;  %v17411_v62 = vld [vmem:[#allocation16 + $0x30] sm:$0xff]  }
0x16c8   :  { %v20291_v46 = vadd.f32 %v8325_v50, %v8323_v61  ;;  %v17412_v50 = vld [vmem:[#allocation16 + $0x38] sm:$0xff]  }
0x16ca   :  { %v8328_v19 = vpack.c.bf16 %v20291_v46, %v20291_v46 }
0x16cc   :  { %8522 = vmatmul.mubr.bf16.vlgmr.msra.gmra.mrb[100].mxu0 %v8328_v19  ;;  %16121 = vmatmul.mubr.bf16.vlgmr.msra.gmra.mrb[112].mxu1 %v8328_v19 }
0x16cd   :  { %8669 = vmatpush1.bf16.msra.mxu0 %v20158_v7  ;;  %8700 = vmatprep.mubr.bf16.mxu0 %v21340_v25  ;;  %v20315_v7 = vld [vmem:[#allocation14] ss:$8 sps:$4 sm:$0xff]  }
0x16ce   :  { %8670 = vmatprep.subr.bf16.mxu0 %v20162_v48  ;;  %16140 = vmatprep.mubr.msk.bf16.mxu1 %vm18375_vm0, %v21339_v31  ;;  %v8571_v48 = vpack.c.bf16 %v20287_v40, %v20287_v40 }
0x16cf   :  { %16125 = vmatpush3.bf16.msra.mxu1 %v17397_v35  ;;  %v20394_v35 = vld [vmem:[#allocation17 + $0x4] ss:$12 sps:$4 sm:$0xff]  }
0x16d0   :  { %16126 = vmatprep.subr.bf16.mxu1 %v21339_v31 }
0x16d1   :  { %8671 = vmatpush1.bf16.msra.mxu0 %v20165_v17  ;;  %v20320_v17 = vld [vmem:[#allocation14 + $0x14] ss:$8 sps:$4 sm:$0xff]  }
0x16d2   :  { %8672 = vmatprep.subr.bf16.mxu0 %v20169_v59  ;;  %v20323_v59 = vld [vmem:[#allocation14 + $0x10] ss:$8 sps:$4 sm:$0xff]  }
0x16d3   :  { %16127 = vmatpush3.bf16.msra.mxu1 %v17398_v23  ;;  %v20396_v23 = vld [vmem:[#allocation17] ss:$12 sps:$4 sm:$0xff]  }
0x16d4   :  { %16128 = vmatprep.subr.bf16.mxu1 %v21339_v31 }
0x16d5   :  { %8673 = vmatpush1.bf16.msra.mxu0 %v20174_v9  ;;  %v20327_v9 = vld [vmem:[#allocation14 + $0x24] ss:$8 sps:$4 sm:$0xff]  }
0x16d6   :  { %8674 = vmatprep.subr.bf16.mxu0 %v20177_v45  ;;  %v20330_v45 = vld [vmem:[#allocation14 + $0x20] ss:$8 sps:$4 sm:$0xff]  }
0x16d7   :  { %16129 = vmatpush3.bf16.msra.mxu1 %v17399_v29  ;;  %v17416_v29 = vld [vmem:[#allocation17 + $0x8] ss:$12 sps:$4 sm:$0xff]  }
0x16d8   :  { %16130 = vmatprep.subr.bf16.mxu1 %v21339_v31 }
0x16d9   :  { %8675 = vmatpush1.bf16.msra.mxu0 %v20180_v42  ;;  %v20333_v42 = vld [vmem:[#allocation14 + $0x34] ss:$8 sps:$4 sm:$0xff]  }
0x16da   :  { %8676 = vmatprep.subr.bf16.mxu0 %v20183_v54  ;;  %v20336_v54 = vld [vmem:[#allocation14 + $0x30] ss:$8 sps:$4 sm:$0xff]  }
0x16db   :  { %16131 = vmatpush3.bf16.msra.mxu1 %v17400_v38  ;;  %v20400_v38 = vld [vmem:[#allocation17 + $0x18] ss:$12 sps:$4 sm:$0xff]  }
0x16dc   :  { %16132 = vmatprep.subr.bf16.mxu1 %v21339_v31 }
0x16dd   :  { %8677 = vmatpush1.bf16.msra.mxu0 %v20186_v20  ;;  %v20339_v20 = vld [vmem:[#allocation14 + $0x44] ss:$8 sps:$4 sm:$0xff]  }
0x16de   :  { %8678 = vmatprep.subr.bf16.mxu0 %v20189_v1  ;;  %v20342_v1 = vld [vmem:[#allocation14 + $0x40] ss:$8 sps:$4 sm:$0xff]  }
0x16df   :  { %16133 = vmatpush3.bf16.msra.mxu1 %v17401_v26  ;;  %v20402_v26 = vld [vmem:[#allocation17 + $0x1c] ss:$12 sps:$4 sm:$0xff]  }
0x16e0   :  { %16134 = vmatprep.subr.bf16.mxu1 %v21339_v31 }
0x16e1   :  { %8679 = vmatpush1.bf16.msra.mxu0 %v20192_v13  ;;  %v20345_v13 = vld [vmem:[#allocation14 + $0x54] ss:$8 sps:$4 sm:$0xff]  }
0x16e2   :  { %8680 = vmatprep.subr.bf16.mxu0 %v20195_v33  ;;  %v20348_v33 = vld [vmem:[#allocation14 + $0x50] ss:$8 sps:$4 sm:$0xff]  }
0x16e3   :  { %16135 = vmatpush3.bf16.msra.mxu1 %v17402_v12  ;;  %v17420_v12 = vld [vmem:[#allocation17 + $0x20] ss:$12 sps:$4 sm:$0xff]  }
0x16e4   :  { %16136 = vmatprep.subr.bf16.mxu1 %v21339_v31 }
0x16e5   :  { %8681 = vmatpush1.bf16.msra.mxu0 %v20198_v15  ;;  %v20351_v15 = vld [vmem:[#allocation14 + $0x64] ss:$8 sps:$4 sm:$0xff]  }
0x16e6   :  { %8682 = vmatprep.subr.bf16.mxu0 %v20201_v18  ;;  %v20354_v18 = vld [vmem:[#allocation14 + $0x60] ss:$8 sps:$4 sm:$0xff]  }
0x16e7   :  { %16137 = vmatpush3.bf16.msra.mxu1 %v17403_v28  ;;  %v20404_v28 = vld [vmem:[#allocation17 + $0x34] ss:$12 sps:$4 sm:$0xff]  }
0x16e8   :  { %16138 = vmatprep.subr.bf16.mxu1 %v21339_v31 }
0x16e9   :  { %8683 = vmatpush1.bf16.msra.mxu0 %v20204_v34  ;;  %v20357_v34 = vld [vmem:[#allocation14 + $0x74] ss:$8 sps:$4 sm:$0xff]  }
0x16ea   :  { %8939 = vmatprep.subr.bf16.mxu0 %v20312_v27 }
0x16eb   :  { %16139 = vmatpush3.bf16.msra.mxu1 %v17404_v41  ;;  %v20409_v41 = vld [vmem:[#allocation17 + $0x30] ss:$12 sps:$4 sm:$0xff]  }
0x16ec   :  { %8701 = vmatmul.mubr.bf16.vlgmr.msra.gmra.mrb[100].mxu0 %v8571_v48  ;;  %16144 = vmatprep.subr.bf16.mxu1 %v21339_v31 }
0x16ed   :  { %8940 = vmatpush1.bf16.msra.mxu0 %v20315_v7  ;;  %8971 = vmatprep.mubr.bf16.mxu0 %v21340_v25 }
0x16ee   :  { %8941 = vmatprep.subr.bf16.mxu0 %v20320_v17 }
0x16f1   :  { %8942 = vmatpush1.bf16.msra.mxu0 %v20323_v59 }
0x16f2   :  { %8943 = vmatprep.subr.bf16.mxu0 %v20327_v9 }
0x16f5   :  { %8944 = vmatpush1.bf16.msra.mxu0 %v20330_v45 }
0x16f6   :  { %8945 = vmatprep.subr.bf16.mxu0 %v20333_v42 }
0x16f9   :  { %8946 = vmatpush1.bf16.msra.mxu0 %v20336_v54 }
0x16fa   :  { %8947 = vmatprep.subr.bf16.mxu0 %v20339_v20 }
0x16fd   :  { %8948 = vmatpush1.bf16.msra.mxu0 %v20342_v1 }
0x16fe   :  { %8949 = vmatprep.subr.bf16.mxu0 %v20345_v13 }
0x1701   :  { %8950 = vmatpush1.bf16.msra.mxu0 %v20348_v33 }
0x1702   :  { %8951 = vmatprep.subr.bf16.mxu0 %v20351_v15 }
0x1705   :  { %8952 = vmatpush1.bf16.msra.mxu0 %v20354_v18 }
0x1706   :  { %8953 = vmatprep.subr.bf16.mxu0 %v20357_v34 }
0x1709   :  { %8954 = vmatpush1.bf16.msra.mxu0 %v20360_v3 }
0x170a   :  { %9268 = vmatprep.subr.bf16.mxu0 %v20394_v35 }
0x170c   :  { %8972 = vmatmul.mubr.bf16.vlgmr.msra.gmra.mrb[104].mxu0 %v8328_v19 }
0x170d   :  { %9300 = vmatprep.mubr.bf16.mxu0 %v21340_v25  ;;  %9269 = vmatpush1.bf16.msra.mxu0 %v20396_v23 }
0x170e   :  { %9270 = vmatprep.subr.bf16.mxu0 %v20402_v26 }
0x1711   :  { %9271 = vmatpush1.bf16.msra.mxu0 %v20400_v38 }
0x1712   :  { %9272 = vmatprep.subr.bf16.mxu0 %v20404_v28 }
0x1715   :  { %9273 = vmatpush1.bf16.msra.mxu0 %v20409_v41 }
0x17bf   :  { %v20373_v2 = vpop.f32.mrb[100].mxu0 }
0x17c0   :  { %v8704_v55 = vpop.f32.mrb[101].mxu0 }
0x17c1   :  { %v16532_v14 = vadd.f32 %v8704_v55, %v19009_v51  ;;  %v8706_v6 = vpop.f32.mrb[102].mxu0  ;;  %v17424_v55 = vld [vmem:[#allocation17 + $0x38] ss:$12 sps:$4 sm:$0xff]  }
0x17c2   :  { %v8707_v44 = vpop.f32.mrb[103].mxu0  ;;  %v20416_v6 = vld [vmem:[#allocation17 + $0x48] ss:$12 sps:$4 sm:$0xff]  }
0x17c3   :  { %v14469_v58 = vmul.f32 -1.442695, %v16532_v14  ;;  %v20412_v14 = vld [vmem:[#allocation17 + $0x4c] ss:$12 sps:$4 sm:$0xff]   ;;  %v17428_v44 = vld [vmem:[#allocation17 + $0x50] ss:$12 sps:$4 sm:$0xff]  }
0x17c4   :  { %9274 = vmatprep.subr.bf16.mxu0 %v20412_v14 }
0x17c5   :  { %17931 = vpow2.f32 %v14469_v58  ;;  %9275 = vmatpush1.bf16.msra.mxu0 %v20416_v6  ;;  %v20421_v58 = vld [vmem:[#allocation17 + $0x64] ss:$12 sps:$4 sm:$0xff]  }
0x17c6   :  { %9276 = vmatprep.subr.bf16.mxu0 %v20421_v58 }
0x17cf   :  { %v17932_v10 = vpop.eup %17931 }
0x17d0   :  { %v8720_v39 = vadd.f32 1.0, %v17932_v10  ;;  %v20423_v10 = vld [vmem:[#allocation17 + $0x60] ss:$12 sps:$4 sm:$0xff]  }
0x17d1   :  { %9277 = vmatpush1.bf16.msra.mxu0 %v20423_v10 }
0x17d2   :  { %17933 = vrcp.f32 %v8720_v39  ;;  %v17432_v39 = vld [vmem:[#allocation17 + $0x68] ss:$12 sps:$4 sm:$0xff]  }
0x17dc   :  { %v17934_v56 = vpop.eup %17933 }
0x17dd   :  { %v8723_v22 = vmul.f32 %v17934_v56, %v20287_v40  ;;  %v20428_v56 = vld [vmem:[#allocation17 + $0x7c] ss:$12 sps:$4 sm:$0xff]  }
0x17de   :  { %9278 = vmatprep.subr.bf16.mxu0 %v20428_v56 }
0x17df   :  { %v8973_v47 = vpop.f32.mrb[104].mxu0  ;;  %v8724_v32 = vpack.c.bf16 %v8723_v22, %v8723_v22  ;;  %v20430_v22 = vld [vmem:[#allocation17 + $0x78] ss:$12 sps:$4 sm:$0xff]  }
0x17e0   :  { %v20378_v8 = vadd.f32 %v8973_v47, %v21358_v21  ;;  %v8975_v57 = vpop.f32.mrb[105].mxu0  ;;  %9279 = vmatpush1.bf16.msra.mxu0 %v20430_v22  ;;  %v20435_v47 = vld [vmem:[#allocation17 + $0x94] ss:$12 sps:$4 sm:$0xff]   ;;  %v17440_v21 = vld [vmem:[#allocation17 + $0x98] ss:$12 sps:$4 sm:$0xff]  }
0x17e1   :  { %v8987_v36 = vadd.f32 %v8975_v57, %v21359_v49  ;;  %16141 = vmatmul.mubr.bf16.vlgmr.msra.gmra.mrb[112].mxu1 %v8724_v32  ;;  %v8977_v11 = vpop.f32.mrb[106].mxu0  ;;  %v20437_v32 = vld [vmem:[#allocation17 + $0x90] ss:$12 sps:$4 sm:$0xff]   ;;  %9280 = vmatprep.subr.bf16.mxu0 %v20435_v47  ;;  %v20442_v57 = vld [vmem:[#allocation17 + $0xac] ss:$12 sps:$4 sm:$0xff]  }
0x17e2   :  { %v8978_v16 = vpop.f32.mrb[107].mxu0  ;;  %16145 = vmatpush3.bf16.msra.mxu1 %v17405_v53  ;;  %16160 = vmatprep.mubr.msk.bf16.mxu1 %vm18375_vm0, %v21339_v31  ;;  %v17436_v53 = vld [vmem:[#allocation17 + $0x80] ss:$12 sps:$4 sm:$0xff]   ;;  %v20444_v49 = vld [vmem:[#allocation17 + $0xa8] ss:$12 sps:$4 sm:$0xff]  }
0x17e3   :  { %v14495_v52 = vmul.f32 -1.442695, %v8987_v36  ;;  %16146 = vmatprep.subr.bf16.mxu1 %v21339_v31  ;;  %v17444_v36 = vld [vmem:[#allocation17 + $0xb0] ss:$12 sps:$4 sm:$0xff]   ;;  %v20448_v11 = vld [vmem:[#allocation19 + $0x4] ss:$8 sps:$4 sm:$0xff]   ;;  %v16531_v16 = vadd.f32 %v20373_v2, %v19043_v30 }
0x17e4   :  { %9281 = vmatpush1.bf16.msra.mxu0 %v20437_v32 }
0x17e5   :  { %17935 = vpow2.f32 %v14495_v52  ;;  %9282 = vmatprep.subr.bf16.mxu0 %v20442_v57 }
0x17e6   :  { %16147 = vmatpush3.bf16.msra.mxu1 %v17406_v60  ;;  %v14468_v60 = vmul.f32 -1.442695, %v16531_v16 }
0x17e7   :  { %16148 = vmatprep.subr.bf16.mxu1 %v21339_v31 }
0x17e8   :  { %9283 = vmatpush1.bf16.msra.mxu0 %v20444_v49 }
0x17e9   :  { %9447 = vmatprep.subr.bf16.mxu0 %v20448_v11 }
0x17ea   :  { %16149 = vmatpush3.bf16.msra.mxu1 %v17407_v24 }
0x17eb   :  { %16150 = vmatprep.subr.bf16.mxu1 %v21339_v31 }
0x17ee   :  { %16151 = vmatpush3.bf16.msra.mxu1 %v17408_v4 }
0x17ef   :  { %v17936_v43 = vpop.eup %17935  ;;  %16152 = vmatprep.subr.bf16.mxu1 %v21339_v31 }
0x17f0   :  { %v8991_v0 = vadd.f32 1.0, %v17936_v43 }
0x17f2   :  { %17937 = vrcp.f32 %v8991_v0  ;;  %16153 = vmatpush3.bf16.msra.mxu1 %v17409_v63 }
0x17f3   :  { %16154 = vmatprep.subr.bf16.mxu1 %v21339_v31  ;;  %17939 = vpow2.f32 %v14468_v60 }
0x17f6   :  { %16155 = vmatpush3.bf16.msra.mxu1 %v17410_v37 }
0x17f7   :  { %16156 = vmatprep.subr.bf16.mxu1 %v21339_v31 }
0x17fa   :  { %16157 = vmatpush3.bf16.msra.mxu1 %v17411_v62 }
0x17fb   :  { %16158 = vmatprep.subr.bf16.mxu1 %v21339_v31 }
0x17fc   :  { %v17938_v61 = vpop.eup %17937 }
0x17fd   :  { %v8994_v19 = vmul.f32 %v17938_v61, %v20291_v46  ;;  %v17940_v52 = vpop.eup %17939 }
0x17fe   :  { %16159 = vmatpush3.bf16.msra.mxu1 %v17412_v50  ;;  %v8713_v24 = vadd.f32 1.0, %v17940_v52  ;;  %v14494_v50 = vmul.f32 -1.442695, %v20378_v8 }
0x17ff   :  { %v8995_v48 = vpack.c.bf16 %v8994_v19, %v8994_v19  ;;  %16164 = vmatprep.subr.bf16.mxu1 %v21339_v31 }
0x1800   :  { %17941 = vrcp.f32 %v8713_v24 }
0x1801   :  { %16161 = vmatmul.mubr.bf16.vlgmr.msra.gmra.mrb[116].mxu1 %v8995_v48 }
0x1802   :  { %16180 = vmatprep.mubr.msk.bf16.mxu1 %vm18375_vm0, %v21339_v31  ;;  %16165 = vmatpush3.bf16.msra.mxu1 %v17416_v29 }
0x1803   :  { %16166 = vmatprep.subr.bf16.mxu1 %v21339_v31 }
0x1806   :  { %16167 = vmatpush3.bf16.msra.mxu1 %v17420_v12 }
0x1807   :  { %16168 = vmatprep.subr.bf16.mxu1 %v21339_v31 }
0x180a   :  { %16169 = vmatpush3.bf16.msra.mxu1 %v17424_v55  ;;  %v17942_v62 = vpop.eup %17941 }
0x180b   :  { %16170 = vmatprep.subr.bf16.mxu1 %v21339_v31  ;;  %v8832_v61 = vsub.f32 1.0, %v17942_v62  ;;  %v8831_v48 = vmul.f32 %v17942_v62, %v20287_v40  ;;  %v20473_v62 = vld [vmem:[#allocation19 + $0x10] ss:$8 sps:$4 sm:$0xff]  }
0x180e   :  { %16171 = vmatpush3.bf16.msra.mxu1 %v17428_v44 }
0x180f   :  { %16172 = vmatprep.subr.bf16.mxu1 %v21339_v31 }
0x1812   :  { %16173 = vmatpush3.bf16.msra.mxu1 %v17432_v39 }
0x1813   :  { %16174 = vmatprep.subr.bf16.mxu1 %v21339_v31 }
0x1816   :  { %16175 = vmatpush3.bf16.msra.mxu1 %v17436_v53  ;;  %v21360_v53 = vld [vmem:[#allocation36_spill] sm:$0xff] }
0x1817   :  { %16176 = vmatprep.subr.bf16.mxu1 %v21339_v31 }
0x181a   :  { %16177 = vmatpush3.bf16.msra.mxu1 %v17440_v21 }
0x181b   :  { %16178 = vmatprep.subr.bf16.mxu1 %v21339_v31 }
0x181e   :  { %16179 = vmatpush3.bf16.msra.mxu1 %v17444_v36 }
0x181f   :  { %16184 = vmatprep.subr.bf16.mxu1 %v21339_v31 }
0x18b4   :  { %v8823_v4 = vpop.f32.mrb[112].mxu1 }
0x18b5   :  { %v16533_v63 = vadd.f32 %v8823_v4, %v19050_v5  ;;  %v16142_v43 = vpop.f32.mrb[113].mxu1 }
0x18b6   :  { %v8826_v0 = vpop.f32.mrb[114].mxu1 }
0x18b7   :  { %17943 = vtanh.f32 %v16533_v63  ;;  %v16143_v37 = vpop.f32.mrb[115].mxu1 }
0x18b8   :  { %17945 = vpow2.f32 %v14494_v50  ;;  %v20470_v37 = vld [vmem:[#allocation19 + $0x14] ss:$8 sps:$4 sm:$0xff]   ;;  %v20482_v50 = vld [vmem:[#allocation19 + $0x20] ss:$8 sps:$4 sm:$0xff]  }
0x18c1   :  { %v17944_v19 = vpop.eup %17943 }
0x18c2   :  { %v8833_v2 = vmul.f32 %v17944_v19, %v8832_v61  ;;  %v17946_v55 = vpop.eup %17945  ;;  %v20485_v61 = vld [vmem:[#allocation19 + $0x34] ss:$8 sps:$4 sm:$0xff]   ;;  %v20488_v19 = vld [vmem:[#allocation19 + $0x30] ss:$8 sps:$4 sm:$0xff]  }
0x18c3   :  { %v8984_v44 = vadd.f32 1.0, %v17946_v55  ;;  %v20500_v55 = vld [vmem:[#allocation19 + $0x50] ss:$8 sps:$4 sm:$0xff]  }
0x18c4   :  { %v20458_v29 = vadd.f32 %v8833_v2, %v8831_v48  ;;  %v20491_v48 = vld [vmem:[#allocation19 + $0x44] ss:$8 sps:$4 sm:$0xff]   ;;  %v20494_v2 = vld [vmem:[#allocation19 + $0x40] ss:$8 sps:$4 sm:$0xff]  }
0x18c5   :  { %17947 = vrcp.f32 %v8984_v44  ;;  %v20503_v44 = vld [vmem:[#allocation19 + $0x64] ss:$8 sps:$4 sm:$0xff]  }
0x18c6   :  { %v14989_v12 = vpack.c.bf16 %v20458_v29, %v20287_v40  ;;  %v20466_v40 = vld [vmem:[#allocation19] ss:$8 sps:$4 sm:$0xff]  }
0x18c8   :  { %15009 = vst [vmem:[#allocation22 + $0x20] sm:$0xff] %v14989_v12   ;;  %v20497_v12 = vld [vmem:[#allocation19 + $0x54] ss:$8 sps:$4 sm:$0xff]  }
0x18cf   :  { %v17948_v60 = vpop.eup %17947 }
0x18d0   :  { %v9103_v52 = vsub.f32 1.0, %v17948_v60  ;;  %v9102_v63 = vmul.f32 %v17948_v60, %v20291_v46  ;;  %v20477_v46 = vld [vmem:[#allocation19 + $0x24] ss:$8 sps:$4 sm:$0xff]  }
0x18d1   :  { %v17482_v60 = vld [vmem:[#allocation16 + $0x28] sm:$0xff]  }
0x18d4   :  { %v9094_v39 = vpop.f32.mrb[116].mxu1 }
0x18d5   :  { %v9100_v21 = vadd.f32 %v9094_v39, %v21360_v53  ;;  %v16162_v36 = vpop.f32.mrb[117].mxu1  ;;  %v20506_v39 = vld [vmem:[#allocation19 + $0x60] ss:$8 sps:$4 sm:$0xff]   ;;  %v20509_v53 = vld [vmem:[#allocation19 + $0x74] ss:$8 sps:$4 sm:$0xff]  }
0x18d6   :  { %v9097_v8 = vpop.f32.mrb[118].mxu1  ;;  %v9350_v36 = vpack.c.bf16 %v20458_v29, %v20458_v29 }
0x18d7   :  { %17949 = vtanh.f32 %v9100_v21  ;;  %v16163_v16 = vpop.f32.mrb[119].mxu1  ;;  %v20512_v21 = vld [vmem:[#allocation19 + $0x70] ss:$8 sps:$4 sm:$0xff]  }
0x18e1   :  { %v17950_v24 = vpop.eup %17949 }
0x18e2   :  { %v9104_v4 = vmul.f32 %v17950_v24, %v9103_v52  ;;  %v17483_v52 = vld [vmem:[#allocation16 + $0x30] sm:$0xff]   ;;  %v17484_v24 = vld [vmem:[#allocation16 + $0x38] sm:$0xff]  }
0x18e4   :  { %v20464_v43 = vadd.f32 %v9104_v4, %v9102_v63 }
0x18e6   :  { %v9107_v0 = vpack.c.bf16 %v20464_v43, %v20464_v43 }
0x18e8   :  { %9301 = vmatmul.mubr.bf16.vlgmr.msra.gmra.mrb[108].mxu0 %v9107_v0  ;;  %16181 = vmatmul.mubr.bf16.vlgmr.msra.gmra.mrb[120].mxu1 %v9107_v0 }
0x18e9   :  { %9448 = vmatpush1.bf16.msra.mxu0 %v20466_v40  ;;  %9479 = vmatprep.mubr.bf16.mxu0 %v21340_v25 }
0x18ea   :  { %9449 = vmatprep.subr.bf16.mxu0 %v20470_v37  ;;  %16200 = vmatprep.mubr.msk.bf16.mxu1 %vm18375_vm0, %v21339_v31 }
0x18ed   :  { %9450 = vmatpush1.bf16.msra.mxu0 %v20473_v62 }
0x18ee   :  { %9451 = vmatprep.subr.bf16.mxu0 %v20477_v46 }
0x18f1   :  { %9452 = vmatpush1.bf16.msra.mxu0 %v20482_v50 }
0x18f2   :  { %9453 = vmatprep.subr.bf16.mxu0 %v20485_v61 }
0x18f5   :  { %9454 = vmatpush1.bf16.msra.mxu0 %v20488_v19 }
0x18f6   :  { %9455 = vmatprep.subr.bf16.mxu0 %v20491_v48 }
0x18f9   :  { %9456 = vmatpush1.bf16.msra.mxu0 %v20494_v2 }
0x18fa   :  { %9457 = vmatprep.subr.bf16.mxu0 %v20497_v12 }
0x18fd   :  { %9458 = vmatpush1.bf16.msra.mxu0 %v20500_v55 }
0x18fe   :  { %9459 = vmatprep.subr.bf16.mxu0 %v20503_v44 }
0x1901   :  { %9460 = vmatpush1.bf16.msra.mxu0 %v20506_v39 }
0x1902   :  { %9461 = vmatprep.subr.bf16.mxu0 %v20509_v53 }
0x1905   :  { %9462 = vmatpush1.bf16.msra.mxu0 %v20512_v21 }
0x1906   :  { %9718 = vmatprep.subr.bf16.mxu0 %v20312_v27  ;;  %v17469_v27 = vld [vmem:[#allocation20] sm:$0xff]  }
0x1907   :  { %16185 = vmatpush3.bf16.msra.mxu1 %v17469_v27  ;;  %v17486_v27 = vld [vmem:[#allocation17 + $0x20] ss:$12 sps:$4 sm:$0xff]  }
0x1908   :  { %9480 = vmatmul.mubr.bf16.vlgmr.msra.gmra.mrb[108].mxu0 %v9350_v36  ;;  %16186 = vmatprep.subr.bf16.mxu1 %v21339_v31  ;;  %v17485_v36 = vld [vmem:[#allocation17 + $0x8] ss:$12 sps:$4 sm:$0xff]  }
0x1909   :  { %9719 = vmatpush1.bf16.msra.mxu0 %v20315_v7  ;;  %9750 = vmatprep.mubr.bf16.mxu0 %v21340_v25  ;;  %v17470_v7 = vld [vmem:[#allocation20 + $0x8] sm:$0xff]  }
0x190a   :  { %9720 = vmatprep.subr.bf16.mxu0 %v20320_v17  ;;  %v17471_v17 = vld [vmem:[#allocation20 + $0x10] sm:$0xff]  }
0x190b   :  { %16187 = vmatpush3.bf16.msra.mxu1 %v17470_v7  ;;  %v17487_v7 = vld [vmem:[#allocation17 + $0x38] ss:$12 sps:$4 sm:$0xff]  }
0x190c   :  { %16188 = vmatprep.subr.bf16.mxu1 %v21339_v31 }
0x190d   :  { %9721 = vmatpush1.bf16.msra.mxu0 %v20323_v59  ;;  %v17472_v59 = vld [vmem:[#allocation20 + $0x18] sm:$0xff]  }
0x190e   :  { %9722 = vmatprep.subr.bf16.mxu0 %v20327_v9  ;;  %v17473_v9 = vld [vmem:[#allocation20 + $0x20] sm:$0xff]  }
0x190f   :  { %16189 = vmatpush3.bf16.msra.mxu1 %v17471_v17  ;;  %v17488_v17 = vld [vmem:[#allocation17 + $0x50] ss:$12 sps:$4 sm:$0xff]  }
0x1910   :  { %16190 = vmatprep.subr.bf16.mxu1 %v21339_v31 }
0x1911   :  { %9723 = vmatpush1.bf16.msra.mxu0 %v20330_v45  ;;  %v17474_v45 = vld [vmem:[#allocation20 + $0x28] sm:$0xff]  }
0x1912   :  { %9724 = vmatprep.subr.bf16.mxu0 %v20333_v42  ;;  %v17475_v42 = vld [vmem:[#allocation20 + $0x30] sm:$0xff]  }
0x1913   :  { %16191 = vmatpush3.bf16.msra.mxu1 %v17472_v59  ;;  %v17489_v59 = vld [vmem:[#allocation17 + $0x68] ss:$12 sps:$4 sm:$0xff]  }
0x1914   :  { %16192 = vmatprep.subr.bf16.mxu1 %v21339_v31 }
0x1915   :  { %9725 = vmatpush1.bf16.msra.mxu0 %v20336_v54  ;;  %v17476_v54 = vld [vmem:[#allocation20 + $0x38] sm:$0xff]  }
0x1916   :  { %9726 = vmatprep.subr.bf16.mxu0 %v20339_v20 }
0x1917   :  { %16193 = vmatpush3.bf16.msra.mxu1 %v17473_v9  ;;  %v17490_v9 = vld [vmem:[#allocation17 + $0x80] ss:$12 sps:$4 sm:$0xff]  }
0x1918   :  { %16194 = vmatprep.subr.bf16.mxu1 %v21339_v31 }
0x1919   :  { %9727 = vmatpush1.bf16.msra.mxu0 %v20342_v1 }
0x191a   :  { %9728 = vmatprep.subr.bf16.mxu0 %v20345_v13 }
0x191b   :  { %16195 = vmatpush3.bf16.msra.mxu1 %v17474_v45  ;;  %v17491_v45 = vld [vmem:[#allocation17 + $0x98] ss:$12 sps:$4 sm:$0xff]  }
0x191c   :  { %16196 = vmatprep.subr.bf16.mxu1 %v21339_v31 }
0x191d   :  { %9729 = vmatpush1.bf16.msra.mxu0 %v20348_v33 }
0x191e   :  { %9730 = vmatprep.subr.bf16.mxu0 %v20351_v15 }
0x191f   :  { %16197 = vmatpush3.bf16.msra.mxu1 %v17475_v42  ;;  %v17492_v42 = vld [vmem:[#allocation17 + $0xb0] ss:$12 sps:$4 sm:$0xff]  }
0x1920   :  { %16198 = vmatprep.subr.bf16.mxu1 %v21339_v31 }
0x1921   :  { %9731 = vmatpush1.bf16.msra.mxu0 %v20354_v18 }
0x1922   :  { %9732 = vmatprep.subr.bf16.mxu0 %v20357_v34 }
0x1923   :  { %16199 = vmatpush3.bf16.msra.mxu1 %v17476_v54 }
0x1924   :  { %16204 = vmatprep.subr.bf16.mxu1 %v21339_v31 }
0x1925   :  { %9733 = vmatpush1.bf16.msra.mxu0 %v20360_v3 }
0x1926   :  { %10047 = vmatprep.subr.bf16.mxu0 %v20394_v35 }
0x1928   :  { %9751 = vmatmul.mubr.bf16.vlgmr.msra.gmra.mrb[112].mxu0 %v9107_v0 }
0x1929   :  { %10048 = vmatpush1.bf16.msra.mxu0 %v20396_v23  ;;  %10079 = vmatprep.mubr.bf16.mxu0 %v21340_v25 }
0x192a   :  { %10049 = vmatprep.subr.bf16.mxu0 %v20402_v26 }
0x192d   :  { %10050 = vmatpush1.bf16.msra.mxu0 %v20400_v38  ;;  %v17477_v38 = vld [vmem:[#allocation16] sm:$0xff]  }
0x192e   :  { %10051 = vmatprep.subr.bf16.mxu0 %v20404_v28 }
0x1931   :  { %10052 = vmatpush1.bf16.msra.mxu0 %v20409_v41  ;;  %v21361_v41 = vld [vmem:[#allocation55_spill] sm:$0xff] }
0x1932   :  { %10053 = vmatprep.subr.bf16.mxu0 %v20412_v14 }
0x1935   :  { %10054 = vmatpush1.bf16.msra.mxu0 %v20416_v6 }
0x1936   :  { %10055 = vmatprep.subr.bf16.mxu0 %v20421_v58  ;;  %v21362_v58 = vld [vmem:[#allocation56_spill] sm:$0xff] }
0x1939   :  { %10056 = vmatpush1.bf16.msra.mxu0 %v20423_v10 }
0x193a   :  { %10057 = vmatprep.subr.bf16.mxu0 %v20428_v56 }
0x193d   :  { %10058 = vmatpush1.bf16.msra.mxu0 %v20430_v22 }
0x193e   :  { %10059 = vmatprep.subr.bf16.mxu0 %v20435_v47  ;;  %v17478_v47 = vld [vmem:[#allocation16 + $0x8] sm:$0xff]  }
0x1941   :  { %10060 = vmatpush1.bf16.msra.mxu0 %v20437_v32 }
0x1942   :  { %10061 = vmatprep.subr.bf16.mxu0 %v20442_v57  ;;  %v17479_v57 = vld [vmem:[#allocation16 + $0x10] sm:$0xff]  }
0x1945   :  { %10062 = vmatpush1.bf16.msra.mxu0 %v20444_v49  ;;  %v17480_v49 = vld [vmem:[#allocation16 + $0x18] sm:$0xff]  }
0x1946   :  { %10226 = vmatprep.subr.bf16.mxu0 %v20448_v11  ;;  %v17481_v11 = vld [vmem:[#allocation16 + $0x20] sm:$0xff]  }
0x19db   :  { %v20561_v20 = vpop.f32.mrb[108].mxu0 }
0x19dc   :  { %v9483_v1 = vpop.f32.mrb[109].mxu0  ;;  %v16534_v54 = vadd.f32 %v20561_v20, %v19043_v30 }
0x19dd   :  { %v16535_v13 = vadd.f32 %v9483_v1, %v19009_v51  ;;  %v9485_v33 = vpop.f32.mrb[110].mxu0 }
0x19de   :  { %v9486_v15 = vpop.f32.mrb[111].mxu0  ;;  %v14544_v1 = vmul.f32 -1.442695, %v16534_v54 }
0x19df   :  { %v14545_v18 = vmul.f32 -1.442695, %v16535_v13 }
0x19e1   :  { %17951 = vpow2.f32 %v14545_v18 }
0x19eb   :  { %v17952_v34 = vpop.eup %17951 }
0x19ec   :  { %v9499_v3 = vadd.f32 1.0, %v17952_v34 }
0x19ee   :  { %17953 = vrcp.f32 %v9499_v3 }
0x19f8   :  { %v17954_v35 = vpop.eup %17953 }
0x19f9   :  { %v9502_v23 = vmul.f32 %v17954_v35, %v20458_v29 }
0x19fb   :  { %v9752_v26 = vpop.f32.mrb[112].mxu0  ;;  %v9503_v28 = vpack.c.bf16 %v9502_v23, %v9502_v23 }
0x19fc   :  { %v20566_v14 = vadd.f32 %v9752_v26, %v21361_v41  ;;  %v9754_v6 = vpop.f32.mrb[113].mxu0 }
0x19fd   :  { %v9766_v10 = vadd.f32 %v9754_v6, %v21362_v58  ;;  %16201 = vmatmul.mubr.bf16.vlgmr.msra.gmra.mrb[120].mxu1 %v9503_v28  ;;  %v9756_v56 = vpop.f32.mrb[114].mxu0 }
0x19fe   :  { %v9757_v22 = vpop.f32.mrb[115].mxu0  ;;  %16205 = vmatpush3.bf16.msra.mxu1 %v17477_v38  ;;  %16220 = vmatprep.mubr.msk.bf16.mxu1 %vm18375_vm0, %v21339_v31  ;;  %v14570_v38 = vmul.f32 -1.442695, %v20566_v14 }
0x19ff   :  { %v14571_v32 = vmul.f32 -1.442695, %v9766_v10  ;;  %16206 = vmatprep.subr.bf16.mxu1 %v21339_v31  ;;  %v21363_v22 = vld [vmem:[#allocation38_spill] sm:$0xff] }
0x1a01   :  { %17955 = vpow2.f32 %v14571_v32 }
0x1a02   :  { %16207 = vmatpush3.bf16.msra.mxu1 %v17478_v47 }
0x1a03   :  { %16208 = vmatprep.subr.bf16.mxu1 %v21339_v31 }
0x1a06   :  { %16209 = vmatpush3.bf16.msra.mxu1 %v17479_v57 }
0x1a07   :  { %16210 = vmatprep.subr.bf16.mxu1 %v21339_v31 }
0x1a0a   :  { %16211 = vmatpush3.bf16.msra.mxu1 %v17480_v49 }
0x1a0b   :  { %v17956_v8 = vpop.eup %17955  ;;  %16212 = vmatprep.subr.bf16.mxu1 %v21339_v31 }
0x1a0c   :  { %v9770_v16 = vadd.f32 1.0, %v17956_v8 }
0x1a0e   :  { %17957 = vrcp.f32 %v9770_v16  ;;  %16213 = vmatpush3.bf16.msra.mxu1 %v17481_v11 }
0x1a0f   :  { %16214 = vmatprep.subr.bf16.mxu1 %v21339_v31  ;;  %17959 = vpow2.f32 %v14544_v1 }
0x1a12   :  { %16215 = vmatpush3.bf16.msra.mxu1 %v17482_v60 }
0x1a13   :  { %16216 = vmatprep.subr.bf16.mxu1 %v21339_v31 }
0x1a16   :  { %16217 = vmatpush3.bf16.msra.mxu1 %v17483_v52 }
0x1a17   :  { %16218 = vmatprep.subr.bf16.mxu1 %v21339_v31 }
0x1a18   :  { %v17958_v4 = vpop.eup %17957 }
0x1a19   :  { %v9773_v63 = vmul.f32 %v17958_v4, %v20464_v43  ;;  %v17960_v13 = vpop.eup %17959  ;;  %v17517_v4 = vld [vmem:[#allocation20] sm:$0xff]  }
0x1a1a   :  { %16219 = vmatpush3.bf16.msra.mxu1 %v17484_v24  ;;  %v9492_v33 = vadd.f32 1.0, %v17960_v13  ;;  %v20668_v24 = vld [vmem:[#allocation14 + $0x70] ss:$8 sps:$4 sm:$0xff]  }
0x1a1b   :  { %v9774_v0 = vpack.c.bf16 %v9773_v63, %v9773_v63  ;;  %16224 = vmatprep.subr.bf16.mxu1 %v21339_v31  ;;  %v17518_v63 = vld [vmem:[#allocation20 + $0x8] sm:$0xff]  }
0x1a1c   :  { %17961 = vrcp.f32 %v9492_v33 }
0x1a1d   :  { %16221 = vmatmul.mubr.bf16.vlgmr.msra.gmra.mrb[124].mxu1 %v9774_v0  ;;  %v17519_v0 = vld [vmem:[#allocation20 + $0x10] sm:$0xff]  }
0x1a1e   :  { %16240 = vmatprep.mubr.msk.bf16.mxu1 %vm18375_vm0, %v21339_v31  ;;  %16225 = vmatpush3.bf16.msra.mxu1 %v17485_v36  ;;  %v17520_v36 = vld [vmem:[#allocation20 + $0x18] sm:$0xff]  }
0x1a1f   :  { %16226 = vmatprep.subr.bf16.mxu1 %v21339_v31 }
0x1a22   :  { %16227 = vmatpush3.bf16.msra.mxu1 %v17486_v27  ;;  %v17521_v27 = vld [vmem:[#allocation20 + $0x20] sm:$0xff]  }
0x1a23   :  { %16228 = vmatprep.subr.bf16.mxu1 %v21339_v31 }
0x1a26   :  { %16229 = vmatpush3.bf16.msra.mxu1 %v17487_v7  ;;  %v17962_v23 = vpop.eup %17961  ;;  %v17522_v7 = vld [vmem:[#allocation20 + $0x28] sm:$0xff]  }
0x1a27   :  { %16230 = vmatprep.subr.bf16.mxu1 %v21339_v31  ;;  %v9611_v26 = vsub.f32 1.0, %v17962_v23  ;;  %v9610_v41 = vmul.f32 %v17962_v23, %v20458_v29 }
0x1a2a   :  { %16231 = vmatpush3.bf16.msra.mxu1 %v17488_v17  ;;  %v17523_v17 = vld [vmem:[#allocation20 + $0x30] sm:$0xff]  }
0x1a2b   :  { %16232 = vmatprep.subr.bf16.mxu1 %v21339_v31 }
0x1a2e   :  { %16233 = vmatpush3.bf16.msra.mxu1 %v17489_v59  ;;  %v17524_v59 = vld [vmem:[#allocation20 + $0x38] sm:$0xff]  }
0x1a2f   :  { %16234 = vmatprep.subr.bf16.mxu1 %v21339_v31 }
0x1a32   :  { %16235 = vmatpush3.bf16.msra.mxu1 %v17490_v9 }
0x1a33   :  { %16236 = vmatprep.subr.bf16.mxu1 %v21339_v31 }
0x1a36   :  { %16237 = vmatpush3.bf16.msra.mxu1 %v17491_v45 }
0x1a37   :  { %16238 = vmatprep.subr.bf16.mxu1 %v21339_v31 }
0x1a3a   :  { %16239 = vmatpush3.bf16.msra.mxu1 %v17492_v42 }
0x1a3b   :  { %16244 = vmatprep.subr.bf16.mxu1 %v21339_v31 }
0x1ad0   :  { %v9602_v15 = vpop.f32.mrb[120].mxu1 }
0x1ad1   :  { %v16536_v18 = vadd.f32 %v9602_v15, %v19050_v5  ;;  %v16202_v34 = vpop.f32.mrb[121].mxu1 }
0x1ad2   :  { %v9605_v3 = vpop.f32.mrb[122].mxu1 }
0x1ad3   :  { %17963 = vtanh.f32 %v16536_v18  ;;  %v16203_v35 = vpop.f32.mrb[123].mxu1  ;;  %v17525_v3 = vld [vmem:[#allocation16] sm:$0xff]  }
0x1ad4   :  { %17965 = vpow2.f32 %v14570_v38  ;;  %v21364_v38 = vld [vmem:[#allocation57_spill] sm:$0xff] }
0x1add   :  { %v17964_v28 = vpop.eup %17963 }
0x1ade   :  { %v9612_v20 = vmul.f32 %v17964_v28, %v9611_v26  ;;  %v17966_v58 = vpop.eup %17965 }
0x1adf   :  { %v9763_v10 = vadd.f32 1.0, %v17966_v58 }
0x1ae0   :  { %v20595_v6 = vadd.f32 %v9612_v20, %v9610_v41  ;;  %v21365_v41 = vld [vmem:[#allocation58_spill] sm:$0xff] }
0x1ae1   :  { %17967 = vrcp.f32 %v9763_v10 }
0x1aeb   :  { %v17968_v11 = vpop.eup %17967 }
0x1aec   :  { %v9882_v14 = vsub.f32 1.0, %v17968_v11  ;;  %v9881_v29 = vmul.f32 %v17968_v11, %v20464_v43  ;;  %v20620_v43 = vld [vmem:[#allocation14 + $0x4] ss:$8 sps:$4 sm:$0xff]  }
0x1af0   :  { %v9873_v56 = vpop.f32.mrb[124].mxu1 }
0x1af1   :  { %v9879_v47 = vadd.f32 %v9873_v56, %v21363_v22  ;;  %v16222_v32 = vpop.f32.mrb[125].mxu1  ;;  %v17526_v56 = vld [vmem:[#allocation16 + $0x8] sm:$0xff]  }
0x1af2   :  { %v9876_v57 = vpop.f32.mrb[126].mxu1  ;;  %v17528_v32 = vld [vmem:[#allocation16 + $0x18] sm:$0xff]  }
0x1af3   :  { %17969 = vtanh.f32 %v9879_v47  ;;  %v16223_v49 = vpop.f32.mrb[127].mxu1  ;;  %v17527_v47 = vld [vmem:[#allocation16 + $0x10] sm:$0xff]   ;;  %v17529_v57 = vld [vmem:[#allocation16 + $0x20] sm:$0xff]  }
0x1afd   :  { %v17970_v8 = vpop.eup %17969 }
0x1afe   :  { %v9883_v16 = vmul.f32 %v17970_v8, %v9882_v14  ;;  %v17530_v14 = vld [vmem:[#allocation16 + $0x28] sm:$0xff]   ;;  %v17531_v8 = vld [vmem:[#allocation16 + $0x30] sm:$0xff]  }
0x1b00   :  { %v20599_v60 = vadd.f32 %v9883_v16, %v9881_v29  ;;  %v17532_v16 = vld [vmem:[#allocation16 + $0x38] sm:$0xff]  }
0x1b02   :  { %v9886_v52 = vpack.c.bf16 %v20599_v60, %v20599_v60 }
0x1b04   :  { %10080 = vmatmul.mubr.bf16.vlgmr.msra.gmra.mrb[116].mxu0 %v9886_v52  ;;  %16241 = vmatmul.mubr.bf16.vlgmr.msra.gmra.mrb[128].mxu1 %v9886_v52 }
0x1b05   :  { %10227 = vmatpush1.bf16.msra.mxu0 %v20466_v40  ;;  %10258 = vmatprep.mubr.bf16.mxu0 %v21340_v25  ;;  %v20623_v40 = vld [vmem:[#allocation14] ss:$8 sps:$4 sm:$0xff]  }
0x1b06   :  { %10228 = vmatprep.subr.bf16.mxu0 %v20470_v37  ;;  %16260 = vmatprep.mubr.msk.bf16.mxu1 %vm18375_vm0, %v21339_v31  ;;  %v10129_v37 = vpack.c.bf16 %v20595_v6, %v20595_v6 }
0x1b07   :  { %16245 = vmatpush3.bf16.msra.mxu1 %v17517_v4  ;;  %v20702_v4 = vld [vmem:[#allocation17 + $0x4] ss:$12 sps:$4 sm:$0xff]  }
0x1b08   :  { %16246 = vmatprep.subr.bf16.mxu1 %v21339_v31 }
0x1b09   :  { %10229 = vmatpush1.bf16.msra.mxu0 %v20473_v62  ;;  %v20628_v62 = vld [vmem:[#allocation14 + $0x14] ss:$8 sps:$4 sm:$0xff]  }
0x1b0a   :  { %10230 = vmatprep.subr.bf16.mxu0 %v20477_v46  ;;  %v20631_v46 = vld [vmem:[#allocation14 + $0x10] ss:$8 sps:$4 sm:$0xff]  }
0x1b0b   :  { %16247 = vmatpush3.bf16.msra.mxu1 %v17518_v63  ;;  %v20704_v63 = vld [vmem:[#allocation17] ss:$12 sps:$4 sm:$0xff]  }
0x1b0c   :  { %16248 = vmatprep.subr.bf16.mxu1 %v21339_v31 }
0x1b0d   :  { %10231 = vmatpush1.bf16.msra.mxu0 %v20482_v50  ;;  %v20635_v50 = vld [vmem:[#allocation14 + $0x24] ss:$8 sps:$4 sm:$0xff]  }
0x1b0e   :  { %10232 = vmatprep.subr.bf16.mxu0 %v20485_v61  ;;  %v20638_v61 = vld [vmem:[#allocation14 + $0x20] ss:$8 sps:$4 sm:$0xff]  }
0x1b0f   :  { %16249 = vmatpush3.bf16.msra.mxu1 %v17519_v0  ;;  %v17536_v0 = vld [vmem:[#allocation17 + $0x8] ss:$12 sps:$4 sm:$0xff]  }
0x1b10   :  { %16250 = vmatprep.subr.bf16.mxu1 %v21339_v31 }
0x1b11   :  { %10233 = vmatpush1.bf16.msra.mxu0 %v20488_v19  ;;  %v20641_v19 = vld [vmem:[#allocation14 + $0x34] ss:$8 sps:$4 sm:$0xff]  }
0x1b12   :  { %10234 = vmatprep.subr.bf16.mxu0 %v20491_v48  ;;  %v20644_v48 = vld [vmem:[#allocation14 + $0x30] ss:$8 sps:$4 sm:$0xff]  }
0x1b13   :  { %16251 = vmatpush3.bf16.msra.mxu1 %v17520_v36  ;;  %v20708_v36 = vld [vmem:[#allocation17 + $0x18] ss:$12 sps:$4 sm:$0xff]  }
0x1b14   :  { %16252 = vmatprep.subr.bf16.mxu1 %v21339_v31 }
0x1b15   :  { %10235 = vmatpush1.bf16.msra.mxu0 %v20494_v2  ;;  %v20647_v2 = vld [vmem:[#allocation14 + $0x44] ss:$8 sps:$4 sm:$0xff]  }
0x1b16   :  { %10236 = vmatprep.subr.bf16.mxu0 %v20497_v12  ;;  %v20650_v12 = vld [vmem:[#allocation14 + $0x40] ss:$8 sps:$4 sm:$0xff]  }
0x1b17   :  { %16253 = vmatpush3.bf16.msra.mxu1 %v17521_v27  ;;  %v20710_v27 = vld [vmem:[#allocation17 + $0x1c] ss:$12 sps:$4 sm:$0xff]  }
0x1b18   :  { %16254 = vmatprep.subr.bf16.mxu1 %v21339_v31 }
0x1b19   :  { %10237 = vmatpush1.bf16.msra.mxu0 %v20500_v55  ;;  %v20653_v55 = vld [vmem:[#allocation14 + $0x54] ss:$8 sps:$4 sm:$0xff]  }
0x1b1a   :  { %10238 = vmatprep.subr.bf16.mxu0 %v20503_v44  ;;  %v20656_v44 = vld [vmem:[#allocation14 + $0x50] ss:$8 sps:$4 sm:$0xff]  }
0x1b1b   :  { %16255 = vmatpush3.bf16.msra.mxu1 %v17522_v7  ;;  %v17540_v7 = vld [vmem:[#allocation17 + $0x20] ss:$12 sps:$4 sm:$0xff]  }
0x1b1c   :  { %16256 = vmatprep.subr.bf16.mxu1 %v21339_v31 }
0x1b1d   :  { %10239 = vmatpush1.bf16.msra.mxu0 %v20506_v39  ;;  %v20659_v39 = vld [vmem:[#allocation14 + $0x64] ss:$8 sps:$4 sm:$0xff]  }
0x1b1e   :  { %10240 = vmatprep.subr.bf16.mxu0 %v20509_v53  ;;  %v20662_v53 = vld [vmem:[#allocation14 + $0x60] ss:$8 sps:$4 sm:$0xff]  }
0x1b1f   :  { %16257 = vmatpush3.bf16.msra.mxu1 %v17523_v17  ;;  %v20712_v17 = vld [vmem:[#allocation17 + $0x34] ss:$12 sps:$4 sm:$0xff]  }
0x1b20   :  { %16258 = vmatprep.subr.bf16.mxu1 %v21339_v31 }
0x1b21   :  { %10241 = vmatpush1.bf16.msra.mxu0 %v20512_v21  ;;  %v20665_v21 = vld [vmem:[#allocation14 + $0x74] ss:$8 sps:$4 sm:$0xff]  }
0x1b22   :  { %10497 = vmatprep.subr.bf16.mxu0 %v20620_v43 }
0x1b23   :  { %16259 = vmatpush3.bf16.msra.mxu1 %v17524_v59  ;;  %v20717_v59 = vld [vmem:[#allocation17 + $0x30] ss:$12 sps:$4 sm:$0xff]  }
0x1b24   :  { %10259 = vmatmul.mubr.bf16.vlgmr.msra.gmra.mrb[116].mxu0 %v10129_v37  ;;  %16264 = vmatprep.subr.bf16.mxu1 %v21339_v31 }
0x1b25   :  { %10498 = vmatpush1.bf16.msra.mxu0 %v20623_v40  ;;  %10529 = vmatprep.mubr.bf16.mxu0 %v21340_v25 }
0x1b26   :  { %10499 = vmatprep.subr.bf16.mxu0 %v20628_v62 }
0x1b29   :  { %10500 = vmatpush1.bf16.msra.mxu0 %v20631_v46 }
0x1b2a   :  { %10501 = vmatprep.subr.bf16.mxu0 %v20635_v50 }
0x1b2d   :  { %10502 = vmatpush1.bf16.msra.mxu0 %v20638_v61 }
0x1b2e   :  { %10503 = vmatprep.subr.bf16.mxu0 %v20641_v19 }
0x1b31   :  { %10504 = vmatpush1.bf16.msra.mxu0 %v20644_v48 }
0x1b32   :  { %10505 = vmatprep.subr.bf16.mxu0 %v20647_v2 }
0x1b35   :  { %10506 = vmatpush1.bf16.msra.mxu0 %v20650_v12 }
0x1b36   :  { %10507 = vmatprep.subr.bf16.mxu0 %v20653_v55 }
0x1b39   :  { %10508 = vmatpush1.bf16.msra.mxu0 %v20656_v44 }
0x1b3a   :  { %10509 = vmatprep.subr.bf16.mxu0 %v20659_v39 }
0x1b3d   :  { %10510 = vmatpush1.bf16.msra.mxu0 %v20662_v53 }
0x1b3e   :  { %10511 = vmatprep.subr.bf16.mxu0 %v20665_v21 }
0x1b41   :  { %10512 = vmatpush1.bf16.msra.mxu0 %v20668_v24 }
0x1b42   :  { %10826 = vmatprep.subr.bf16.mxu0 %v20702_v4 }
0x1b44   :  { %10530 = vmatmul.mubr.bf16.vlgmr.msra.gmra.mrb[120].mxu0 %v9886_v52 }
0x1b45   :  { %10858 = vmatprep.mubr.bf16.mxu0 %v21340_v25  ;;  %10827 = vmatpush1.bf16.msra.mxu0 %v20704_v63 }
0x1b46   :  { %10828 = vmatprep.subr.bf16.mxu0 %v20710_v27 }
0x1b49   :  { %10829 = vmatpush1.bf16.msra.mxu0 %v20708_v36 }
0x1b4a   :  { %10830 = vmatprep.subr.bf16.mxu0 %v20712_v17 }
0x1b4d   :  { %10831 = vmatpush1.bf16.msra.mxu0 %v20717_v59 }
0x1bf7   :  { %v20681_v9 = vpop.f32.mrb[116].mxu0 }
0x1bf8   :  { %v10262_v45 = vpop.f32.mrb[117].mxu0 }
0x1bf9   :  { %v16538_v42 = vadd.f32 %v10262_v45, %v19009_v51  ;;  %v10264_v54 = vpop.f32.mrb[118].mxu0  ;;  %v17544_v45 = vld [vmem:[#allocation17 + $0x38] ss:$12 sps:$4 sm:$0xff]  }
0x1bfa   :  { %v10265_v1 = vpop.f32.mrb[119].mxu0  ;;  %v20724_v54 = vld [vmem:[#allocation17 + $0x48] ss:$12 sps:$4 sm:$0xff]  }
0x1bfb   :  { %v14621_v13 = vmul.f32 -1.442695, %v16538_v42  ;;  %v20720_v42 = vld [vmem:[#allocation17 + $0x4c] ss:$12 sps:$4 sm:$0xff]   ;;  %v17548_v1 = vld [vmem:[#allocation17 + $0x50] ss:$12 sps:$4 sm:$0xff]  }
0x1bfc   :  { %10832 = vmatprep.subr.bf16.mxu0 %v20720_v42 }
0x1bfd   :  { %17971 = vpow2.f32 %v14621_v13  ;;  %10833 = vmatpush1.bf16.msra.mxu0 %v20724_v54  ;;  %v20729_v13 = vld [vmem:[#allocation17 + $0x64] ss:$12 sps:$4 sm:$0xff]  }
0x1bfe   :  { %10834 = vmatprep.subr.bf16.mxu0 %v20729_v13 }
0x1c07   :  { %v17972_v33 = vpop.eup %17971 }
0x1c08   :  { %v10278_v15 = vadd.f32 1.0, %v17972_v33  ;;  %v20731_v33 = vld [vmem:[#allocation17 + $0x60] ss:$12 sps:$4 sm:$0xff]  }
0x1c09   :  { %10835 = vmatpush1.bf16.msra.mxu0 %v20731_v33 }
0x1c0a   :  { %17973 = vrcp.f32 %v10278_v15  ;;  %v17552_v15 = vld [vmem:[#allocation17 + $0x68] ss:$12 sps:$4 sm:$0xff]  }
0x1c14   :  { %v17974_v18 = vpop.eup %17973 }
0x1c15   :  { %v10281_v34 = vmul.f32 %v17974_v18, %v20595_v6  ;;  %v20736_v18 = vld [vmem:[#allocation17 + $0x7c] ss:$12 sps:$4 sm:$0xff]  }
0x1c16   :  { %10836 = vmatprep.subr.bf16.mxu0 %v20736_v18 }
0x1c17   :  { %v10531_v35 = vpop.f32.mrb[120].mxu0  ;;  %v10282_v23 = vpack.c.bf16 %v10281_v34, %v10281_v34  ;;  %v20738_v34 = vld [vmem:[#allocation17 + $0x78] ss:$12 sps:$4 sm:$0xff]  }
0x1c18   :  { %v20686_v26 = vadd.f32 %v10531_v35, %v21364_v38  ;;  %v10533_v28 = vpop.f32.mrb[121].mxu0  ;;  %10837 = vmatpush1.bf16.msra.mxu0 %v20738_v34  ;;  %v20743_v35 = vld [vmem:[#allocation17 + $0x94] ss:$12 sps:$4 sm:$0xff]   ;;  %v17560_v38 = vld [vmem:[#allocation17 + $0x98] ss:$12 sps:$4 sm:$0xff]  }
0x1c19   :  { %v10545_v20 = vadd.f32 %v10533_v28, %v21365_v41  ;;  %16261 = vmatmul.mubr.bf16.vlgmr.msra.gmra.mrb[128].mxu1 %v10282_v23  ;;  %v10535_v58 = vpop.f32.mrb[122].mxu0  ;;  %v20745_v23 = vld [vmem:[#allocation17 + $0x90] ss:$12 sps:$4 sm:$0xff]   ;;  %10838 = vmatprep.subr.bf16.mxu0 %v20743_v35  ;;  %v20750_v28 = vld [vmem:[#allocation17 + $0xac] ss:$12 sps:$4 sm:$0xff]  }
0x1c1a   :  { %v10536_v10 = vpop.f32.mrb[123].mxu0  ;;  %16265 = vmatpush3.bf16.msra.mxu1 %v17525_v3  ;;  %16280 = vmatprep.mubr.msk.bf16.mxu1 %vm18375_vm0, %v21339_v31  ;;  %v17556_v3 = vld [vmem:[#allocation17 + $0x80] ss:$12 sps:$4 sm:$0xff]   ;;  %v20752_v41 = vld [vmem:[#allocation17 + $0xa8] ss:$12 sps:$4 sm:$0xff]  }
0x1c1b   :  { %v14647_v22 = vmul.f32 -1.442695, %v10545_v20  ;;  %16266 = vmatprep.subr.bf16.mxu1 %v21339_v31  ;;  %v17564_v20 = vld [vmem:[#allocation17 + $0xb0] ss:$12 sps:$4 sm:$0xff]   ;;  %v20756_v58 = vld [vmem:[#allocation19 + $0x4] ss:$8 sps:$4 sm:$0xff]   ;;  %v16537_v10 = vadd.f32 %v20681_v9, %v19043_v30 }
0x1c1c   :  { %10839 = vmatpush1.bf16.msra.mxu0 %v20745_v23 }
0x1c1d   :  { %17975 = vpow2.f32 %v14647_v22  ;;  %10840 = vmatprep.subr.bf16.mxu0 %v20750_v28 }
0x1c1e   :  { %16267 = vmatpush3.bf16.msra.mxu1 %v17526_v56  ;;  %v14620_v56 = vmul.f32 -1.442695, %v16537_v10 }
0x1c1f   :  { %16268 = vmatprep.subr.bf16.mxu1 %v21339_v31 }
0x1c20   :  { %10841 = vmatpush1.bf16.msra.mxu0 %v20752_v41 }
0x1c21   :  { %11005 = vmatprep.subr.bf16.mxu0 %v20756_v58 }
0x1c22   :  { %16269 = vmatpush3.bf16.msra.mxu1 %v17527_v47 }
0x1c23   :  { %16270 = vmatprep.subr.bf16.mxu1 %v21339_v31 }
0x1c26   :  { %16271 = vmatpush3.bf16.msra.mxu1 %v17528_v32 }
0x1c27   :  { %v17976_v49 = vpop.eup %17975  ;;  %16272 = vmatprep.subr.bf16.mxu1 %v21339_v31 }
0x1c28   :  { %v10549_v11 = vadd.f32 1.0, %v17976_v49 }
0x1c2a   :  { %17977 = vrcp.f32 %v10549_v11  ;;  %16273 = vmatpush3.bf16.msra.mxu1 %v17529_v57 }
0x1c2b   :  { %16274 = vmatprep.subr.bf16.mxu1 %v21339_v31  ;;  %17979 = vpow2.f32 %v14620_v56 }
0x1c2e   :  { %16275 = vmatpush3.bf16.msra.mxu1 %v17530_v14 }
0x1c2f   :  { %16276 = vmatprep.subr.bf16.mxu1 %v21339_v31 }
0x1c32   :  { %16277 = vmatpush3.bf16.msra.mxu1 %v17531_v8 }
0x1c33   :  { %16278 = vmatprep.subr.bf16.mxu1 %v21339_v31 }
0x1c34   :  { %v17978_v29 = vpop.eup %17977 }
0x1c35   :  { %v10552_v52 = vmul.f32 %v17978_v29, %v20599_v60  ;;  %v17980_v22 = vpop.eup %17979 }
0x1c36   :  { %16279 = vmatpush3.bf16.msra.mxu1 %v17532_v16  ;;  %v10271_v47 = vadd.f32 1.0, %v17980_v22  ;;  %v14646_v16 = vmul.f32 -1.442695, %v20686_v26 }
0x1c37   :  { %v10553_v37 = vpack.c.bf16 %v10552_v52, %v10552_v52  ;;  %16284 = vmatprep.subr.bf16.mxu1 %v21339_v31 }
0x1c38   :  { %17981 = vrcp.f32 %v10271_v47 }
0x1c39   :  { %16281 = vmatmul.mubr.bf16.vlgmr.msra.gmra.mrb[132].mxu1 %v10553_v37 }
0x1c3a   :  { %16300 = vmatprep.mubr.msk.bf16.mxu1 %vm18375_vm0, %v21339_v31  ;;  %16285 = vmatpush3.bf16.msra.mxu1 %v17536_v0 }
0x1c3b   :  { %16286 = vmatprep.subr.bf16.mxu1 %v21339_v31 }
0x1c3e   :  { %16287 = vmatpush3.bf16.msra.mxu1 %v17540_v7 }
0x1c3f   :  { %16288 = vmatprep.subr.bf16.mxu1 %v21339_v31 }
0x1c42   :  { %16289 = vmatpush3.bf16.msra.mxu1 %v17544_v45  ;;  %v17982_v8 = vpop.eup %17981 }
0x1c43   :  { %16290 = vmatprep.subr.bf16.mxu1 %v21339_v31  ;;  %v10390_v29 = vsub.f32 1.0, %v17982_v8  ;;  %v10389_v37 = vmul.f32 %v17982_v8, %v20595_v6  ;;  %v20781_v8 = vld [vmem:[#allocation19 + $0x10] ss:$8 sps:$4 sm:$0xff]  }
0x1c46   :  { %16291 = vmatpush3.bf16.msra.mxu1 %v17548_v1 }
0x1c47   :  { %16292 = vmatprep.subr.bf16.mxu1 %v21339_v31 }
0x1c4a   :  { %16293 = vmatpush3.bf16.msra.mxu1 %v17552_v15 }
0x1c4b   :  { %16294 = vmatprep.subr.bf16.mxu1 %v21339_v31 }
0x1c4e   :  { %16295 = vmatpush3.bf16.msra.mxu1 %v17556_v3  ;;  %v21366_v3 = vld [vmem:[#allocation44_spill] sm:$0xff] }
0x1c4f   :  { %16296 = vmatprep.subr.bf16.mxu1 %v21339_v31 }
0x1c52   :  { %16297 = vmatpush3.bf16.msra.mxu1 %v17560_v38 }
0x1c53   :  { %16298 = vmatprep.subr.bf16.mxu1 %v21339_v31 }
0x1c56   :  { %16299 = vmatpush3.bf16.msra.mxu1 %v17564_v20 }
0x1c57   :  { %16304 = vmatprep.subr.bf16.mxu1 %v21339_v31 }
0x1cec   :  { %v10381_v32 = vpop.f32.mrb[128].mxu1 }
0x1ced   :  { %v16539_v57 = vadd.f32 %v10381_v32, %v19050_v5  ;;  %v16262_v49 = vpop.f32.mrb[129].mxu1 }
0x1cee   :  { %v10384_v11 = vpop.f32.mrb[130].mxu1 }
0x1cef   :  { %17983 = vtanh.f32 %v16539_v57  ;;  %v16263_v14 = vpop.f32.mrb[131].mxu1 }
0x1cf0   :  { %17985 = vpow2.f32 %v14646_v16  ;;  %v20778_v14 = vld [vmem:[#allocation19 + $0x14] ss:$8 sps:$4 sm:$0xff]   ;;  %v20790_v16 = vld [vmem:[#allocation19 + $0x20] ss:$8 sps:$4 sm:$0xff]  }
0x1cf9   :  { %v17984_v52 = vpop.eup %17983 }
0x1cfa   :  { %v10391_v9 = vmul.f32 %v17984_v52, %v10390_v29  ;;  %v17986_v45 = vpop.eup %17985  ;;  %v20793_v29 = vld [vmem:[#allocation19 + $0x34] ss:$8 sps:$4 sm:$0xff]   ;;  %v20796_v52 = vld [vmem:[#allocation19 + $0x30] ss:$8 sps:$4 sm:$0xff]  }
0x1cfb   :  { %v10542_v1 = vadd.f32 1.0, %v17986_v45  ;;  %v20808_v45 = vld [vmem:[#allocation19 + $0x50] ss:$8 sps:$4 sm:$0xff]  }
0x1cfc   :  { %v20766_v0 = vadd.f32 %v10391_v9, %v10389_v37  ;;  %v20799_v37 = vld [vmem:[#allocation19 + $0x44] ss:$8 sps:$4 sm:$0xff]   ;;  %v20802_v9 = vld [vmem:[#allocation19 + $0x40] ss:$8 sps:$4 sm:$0xff]  }
0x1cfd   :  { %17987 = vrcp.f32 %v10542_v1  ;;  %v20811_v1 = vld [vmem:[#allocation19 + $0x64] ss:$8 sps:$4 sm:$0xff]  }
0x1cfe   :  { %v14994_v7 = vpack.c.bf16 %v20766_v0, %v20595_v6  ;;  %v20774_v6 = vld [vmem:[#allocation19] ss:$8 sps:$4 sm:$0xff]  }
0x1d00   :  { %15010 = vst [vmem:[#allocation22 + $0x28] sm:$0xff] %v14994_v7   ;;  %v20805_v7 = vld [vmem:[#allocation19 + $0x54] ss:$8 sps:$4 sm:$0xff]  }
0x1d07   :  { %v17988_v56 = vpop.eup %17987 }
0x1d08   :  { %v10661_v22 = vsub.f32 1.0, %v17988_v56  ;;  %v10660_v57 = vmul.f32 %v17988_v56, %v20599_v60  ;;  %v20785_v60 = vld [vmem:[#allocation19 + $0x24] ss:$8 sps:$4 sm:$0xff]  }
0x1d09   :  { %v17602_v56 = vld [vmem:[#allocation16 + $0x28] sm:$0xff]  }
0x1d0c   :  { %v10652_v15 = vpop.f32.mrb[132].mxu1 }
0x1d0d   :  { %v10658_v38 = vadd.f32 %v10652_v15, %v21366_v3  ;;  %v16282_v20 = vpop.f32.mrb[133].mxu1  ;;  %v20814_v15 = vld [vmem:[#allocation19 + $0x60] ss:$8 sps:$4 sm:$0xff]   ;;  %v20817_v3 = vld [vmem:[#allocation19 + $0x74] ss:$8 sps:$4 sm:$0xff]  }
0x1d0e   :  { %v10655_v26 = vpop.f32.mrb[134].mxu1  ;;  %v10908_v20 = vpack.c.bf16 %v20766_v0, %v20766_v0 }
0x1d0f   :  { %17989 = vtanh.f32 %v10658_v38  ;;  %v16283_v10 = vpop.f32.mrb[135].mxu1  ;;  %v20820_v38 = vld [vmem:[#allocation19 + $0x70] ss:$8 sps:$4 sm:$0xff]  }
0x1d19   :  { %v17990_v47 = vpop.eup %17989 }
0x1d1a   :  { %v10662_v32 = vmul.f32 %v17990_v47, %v10661_v22  ;;  %v17603_v22 = vld [vmem:[#allocation16 + $0x30] sm:$0xff]   ;;  %v17604_v47 = vld [vmem:[#allocation16 + $0x38] sm:$0xff]  }
0x1d1c   :  { %v20772_v49 = vadd.f32 %v10662_v32, %v10660_v57 }
0x1d1e   :  { %v10665_v11 = vpack.c.bf16 %v20772_v49, %v20772_v49 }
0x1d20   :  { %10859 = vmatmul.mubr.bf16.vlgmr.msra.gmra.mrb[124].mxu0 %v10665_v11  ;;  %16301 = vmatmul.mubr.bf16.vlgmr.msra.gmra.mrb[136].mxu1 %v10665_v11 }
0x1d21   :  { %11006 = vmatpush1.bf16.msra.mxu0 %v20774_v6  ;;  %11037 = vmatprep.mubr.bf16.mxu0 %v21340_v25 }
0x1d22   :  { %11007 = vmatprep.subr.bf16.mxu0 %v20778_v14  ;;  %16320 = vmatprep.mubr.msk.bf16.mxu1 %vm18375_vm0, %v21339_v31 }
0x1d25   :  { %11008 = vmatpush1.bf16.msra.mxu0 %v20781_v8 }
0x1d26   :  { %11009 = vmatprep.subr.bf16.mxu0 %v20785_v60 }
0x1d29   :  { %11010 = vmatpush1.bf16.msra.mxu0 %v20790_v16 }
0x1d2a   :  { %11011 = vmatprep.subr.bf16.mxu0 %v20793_v29 }
0x1d2d   :  { %11012 = vmatpush1.bf16.msra.mxu0 %v20796_v52 }
0x1d2e   :  { %11013 = vmatprep.subr.bf16.mxu0 %v20799_v37 }
0x1d31   :  { %11014 = vmatpush1.bf16.msra.mxu0 %v20802_v9 }
0x1d32   :  { %11015 = vmatprep.subr.bf16.mxu0 %v20805_v7 }
0x1d35   :  { %11016 = vmatpush1.bf16.msra.mxu0 %v20808_v45 }
0x1d36   :  { %11017 = vmatprep.subr.bf16.mxu0 %v20811_v1 }
0x1d39   :  { %11018 = vmatpush1.bf16.msra.mxu0 %v20814_v15 }
0x1d3a   :  { %11019 = vmatprep.subr.bf16.mxu0 %v20817_v3 }
0x1d3d   :  { %11020 = vmatpush1.bf16.msra.mxu0 %v20820_v38 }
0x1d3e   :  { %11276 = vmatprep.subr.bf16.mxu0 %v20620_v43  ;;  %v17589_v43 = vld [vmem:[#allocation20] sm:$0xff]  }
0x1d3f   :  { %16305 = vmatpush3.bf16.msra.mxu1 %v17589_v43  ;;  %v17606_v43 = vld [vmem:[#allocation17 + $0x20] ss:$12 sps:$4 sm:$0xff]  }
0x1d40   :  { %11038 = vmatmul.mubr.bf16.vlgmr.msra.gmra.mrb[124].mxu0 %v10908_v20  ;;  %16306 = vmatprep.subr.bf16.mxu1 %v21339_v31  ;;  %v17605_v20 = vld [vmem:[#allocation17 + $0x8] ss:$12 sps:$4 sm:$0xff]  }
0x1d41   :  { %11277 = vmatpush1.bf16.msra.mxu0 %v20623_v40  ;;  %11308 = vmatprep.mubr.bf16.mxu0 %v21340_v25  ;;  %v17590_v40 = vld [vmem:[#allocation20 + $0x8] sm:$0xff]  }
0x1d42   :  { %11278 = vmatprep.subr.bf16.mxu0 %v20628_v62  ;;  %v17591_v62 = vld [vmem:[#allocation20 + $0x10] sm:$0xff]  }
0x1d43   :  { %16307 = vmatpush3.bf16.msra.mxu1 %v17590_v40  ;;  %v17607_v40 = vld [vmem:[#allocation17 + $0x38] ss:$12 sps:$4 sm:$0xff]  }
0x1d44   :  { %16308 = vmatprep.subr.bf16.mxu1 %v21339_v31 }
0x1d45   :  { %11279 = vmatpush1.bf16.msra.mxu0 %v20631_v46  ;;  %v17592_v46 = vld [vmem:[#allocation20 + $0x18] sm:$0xff]  }
0x1d46   :  { %11280 = vmatprep.subr.bf16.mxu0 %v20635_v50  ;;  %v17593_v50 = vld [vmem:[#allocation20 + $0x20] sm:$0xff]  }
0x1d47   :  { %16309 = vmatpush3.bf16.msra.mxu1 %v17591_v62  ;;  %v17608_v62 = vld [vmem:[#allocation17 + $0x50] ss:$12 sps:$4 sm:$0xff]  }
0x1d48   :  { %16310 = vmatprep.subr.bf16.mxu1 %v21339_v31 }
0x1d49   :  { %11281 = vmatpush1.bf16.msra.mxu0 %v20638_v61  ;;  %v17594_v61 = vld [vmem:[#allocation20 + $0x28] sm:$0xff]  }
0x1d4a   :  { %11282 = vmatprep.subr.bf16.mxu0 %v20641_v19  ;;  %v17595_v19 = vld [vmem:[#allocation20 + $0x30] sm:$0xff]  }
0x1d4b   :  { %16311 = vmatpush3.bf16.msra.mxu1 %v17592_v46  ;;  %v17609_v46 = vld [vmem:[#allocation17 + $0x68] ss:$12 sps:$4 sm:$0xff]  }
0x1d4c   :  { %16312 = vmatprep.subr.bf16.mxu1 %v21339_v31 }
0x1d4d   :  { %11283 = vmatpush1.bf16.msra.mxu0 %v20644_v48  ;;  %v17596_v48 = vld [vmem:[#allocation20 + $0x38] sm:$0xff]  }
0x1d4e   :  { %11284 = vmatprep.subr.bf16.mxu0 %v20647_v2 }
0x1d4f   :  { %16313 = vmatpush3.bf16.msra.mxu1 %v17593_v50  ;;  %v17610_v50 = vld [vmem:[#allocation17 + $0x80] ss:$12 sps:$4 sm:$0xff]  }
0x1d50   :  { %16314 = vmatprep.subr.bf16.mxu1 %v21339_v31 }
0x1d51   :  { %11285 = vmatpush1.bf16.msra.mxu0 %v20650_v12 }
0x1d52   :  { %11286 = vmatprep.subr.bf16.mxu0 %v20653_v55 }
0x1d53   :  { %16315 = vmatpush3.bf16.msra.mxu1 %v17594_v61  ;;  %v17611_v61 = vld [vmem:[#allocation17 + $0x98] ss:$12 sps:$4 sm:$0xff]  }
0x1d54   :  { %16316 = vmatprep.subr.bf16.mxu1 %v21339_v31 }
0x1d55   :  { %11287 = vmatpush1.bf16.msra.mxu0 %v20656_v44 }
0x1d56   :  { %11288 = vmatprep.subr.bf16.mxu0 %v20659_v39 }
0x1d57   :  { %16317 = vmatpush3.bf16.msra.mxu1 %v17595_v19  ;;  %v17612_v19 = vld [vmem:[#allocation17 + $0xb0] ss:$12 sps:$4 sm:$0xff]  }
0x1d58   :  { %16318 = vmatprep.subr.bf16.mxu1 %v21339_v31 }
0x1d59   :  { %11289 = vmatpush1.bf16.msra.mxu0 %v20662_v53 }
0x1d5a   :  { %11290 = vmatprep.subr.bf16.mxu0 %v20665_v21 }
0x1d5b   :  { %16319 = vmatpush3.bf16.msra.mxu1 %v17596_v48 }
0x1d5c   :  { %16324 = vmatprep.subr.bf16.mxu1 %v21339_v31 }
0x1d5d   :  { %11291 = vmatpush1.bf16.msra.mxu0 %v20668_v24 }
0x1d5e   :  { %11605 = vmatprep.subr.bf16.mxu0 %v20702_v4 }
0x1d60   :  { %11309 = vmatmul.mubr.bf16.vlgmr.msra.gmra.mrb[128].mxu0 %v10665_v11 }
0x1d61   :  { %11606 = vmatpush1.bf16.msra.mxu0 %v20704_v63  ;;  %11637 = vmatprep.mubr.bf16.mxu0 %v21340_v25 }
0x1d62   :  { %11607 = vmatprep.subr.bf16.mxu0 %v20710_v27 }
0x1d65   :  { %11608 = vmatpush1.bf16.msra.mxu0 %v20708_v36  ;;  %v17597_v36 = vld [vmem:[#allocation16] sm:$0xff]  }
0x1d66   :  { %11609 = vmatprep.subr.bf16.mxu0 %v20712_v17 }
0x1d69   :  { %11610 = vmatpush1.bf16.msra.mxu0 %v20717_v59  ;;  %v21367_v59 = vld [vmem:[#allocation59_spill] sm:$0xff] }
0x1d6a   :  { %11611 = vmatprep.subr.bf16.mxu0 %v20720_v42 }
0x1d6d   :  { %11612 = vmatpush1.bf16.msra.mxu0 %v20724_v54 }
0x1d6e   :  { %11613 = vmatprep.subr.bf16.mxu0 %v20729_v13  ;;  %v21368_v13 = vld [vmem:[#allocation60_spill] sm:$0xff] }
0x1d71   :  { %11614 = vmatpush1.bf16.msra.mxu0 %v20731_v33 }
0x1d72   :  { %11615 = vmatprep.subr.bf16.mxu0 %v20736_v18 }
0x1d75   :  { %11616 = vmatpush1.bf16.msra.mxu0 %v20738_v34 }
0x1d76   :  { %11617 = vmatprep.subr.bf16.mxu0 %v20743_v35  ;;  %v17598_v35 = vld [vmem:[#allocation16 + $0x8] sm:$0xff]  }
0x1d79   :  { %11618 = vmatpush1.bf16.msra.mxu0 %v20745_v23 }
0x1d7a   :  { %11619 = vmatprep.subr.bf16.mxu0 %v20750_v28  ;;  %v17599_v28 = vld [vmem:[#allocation16 + $0x10] sm:$0xff]  }
0x1d7d   :  { %11620 = vmatpush1.bf16.msra.mxu0 %v20752_v41  ;;  %v17600_v41 = vld [vmem:[#allocation16 + $0x18] sm:$0xff]  }
0x1d7e   :  { %11784 = vmatprep.subr.bf16.mxu0 %v20756_v58  ;;  %v17601_v58 = vld [vmem:[#allocation16 + $0x20] sm:$0xff]  }
0x1e13   :  { %v20869_v2 = vpop.f32.mrb[124].mxu0 }
0x1e14   :  { %v11041_v12 = vpop.f32.mrb[125].mxu0  ;;  %v16540_v48 = vadd.f32 %v20869_v2, %v19043_v30 }
0x1e15   :  { %v16541_v55 = vadd.f32 %v11041_v12, %v19009_v51  ;;  %v11043_v44 = vpop.f32.mrb[126].mxu0 }
0x1e16   :  { %v11044_v39 = vpop.f32.mrb[127].mxu0  ;;  %v14696_v12 = vmul.f32 -1.442695, %v16540_v48 }
0x1e17   :  { %v14697_v53 = vmul.f32 -1.442695, %v16541_v55 }
0x1e19   :  { %17991 = vpow2.f32 %v14697_v53 }
0x1e23   :  { %v17992_v21 = vpop.eup %17991 }
0x1e24   :  { %v11057_v24 = vadd.f32 1.0, %v17992_v21 }
0x1e26   :  { %17993 = vrcp.f32 %v11057_v24 }
0x1e30   :  { %v17994_v4 = vpop.eup %17993 }
0x1e31   :  { %v11060_v63 = vmul.f32 %v17994_v4, %v20766_v0 }
0x1e33   :  { %v11310_v27 = vpop.f32.mrb[128].mxu0  ;;  %v11061_v17 = vpack.c.bf16 %v11060_v63, %v11060_v63 }
0x1e34   :  { %v20874_v42 = vadd.f32 %v11310_v27, %v21367_v59  ;;  %v11312_v54 = vpop.f32.mrb[129].mxu0 }
0x1e35   :  { %v11324_v33 = vadd.f32 %v11312_v54, %v21368_v13  ;;  %16321 = vmatmul.mubr.bf16.vlgmr.msra.gmra.mrb[136].mxu1 %v11061_v17  ;;  %v11314_v18 = vpop.f32.mrb[130].mxu0 }
0x1e36   :  { %v11315_v34 = vpop.f32.mrb[131].mxu0  ;;  %16325 = vmatpush3.bf16.msra.mxu1 %v17597_v36  ;;  %16340 = vmatprep.mubr.msk.bf16.mxu1 %vm18375_vm0, %v21339_v31  ;;  %v14722_v36 = vmul.f32 -1.442695, %v20874_v42 }
0x1e37   :  { %v14723_v23 = vmul.f32 -1.442695, %v11324_v33  ;;  %16326 = vmatprep.subr.bf16.mxu1 %v21339_v31  ;;  %v21369_v34 = vld [vmem:[#allocation48_spill] sm:$0xff] }
0x1e39   :  { %17995 = vpow2.f32 %v14723_v23 }
0x1e3a   :  { %16327 = vmatpush3.bf16.msra.mxu1 %v17598_v35 }
0x1e3b   :  { %16328 = vmatprep.subr.bf16.mxu1 %v21339_v31 }
0x1e3e   :  { %16329 = vmatpush3.bf16.msra.mxu1 %v17599_v28 }
0x1e3f   :  { %16330 = vmatprep.subr.bf16.mxu1 %v21339_v31 }
0x1e42   :  { %16331 = vmatpush3.bf16.msra.mxu1 %v17600_v41 }
0x1e43   :  { %v17996_v26 = vpop.eup %17995  ;;  %16332 = vmatprep.subr.bf16.mxu1 %v21339_v31 }
0x1e44   :  { %v11328_v10 = vadd.f32 1.0, %v17996_v26 }
0x1e46   :  { %17997 = vrcp.f32 %v11328_v10  ;;  %16333 = vmatpush3.bf16.msra.mxu1 %v17601_v58 }
0x1e47   :  { %16334 = vmatprep.subr.bf16.mxu1 %v21339_v31  ;;  %17999 = vpow2.f32 %v14696_v12 }
0x1e4a   :  { %16335 = vmatpush3.bf16.msra.mxu1 %v17602_v56 }
0x1e4b   :  { %16336 = vmatprep.subr.bf16.mxu1 %v21339_v31 }
0x1e4e   :  { %16337 = vmatpush3.bf16.msra.mxu1 %v17603_v22 }
0x1e4f   :  { %16338 = vmatprep.subr.bf16.mxu1 %v21339_v31 }
0x1e50   :  { %v17998_v32 = vpop.eup %17997 }
0x1e51   :  { %v11331_v57 = vmul.f32 %v17998_v32, %v20772_v49  ;;  %v18000_v55 = vpop.eup %17999  ;;  %v17637_v32 = vld [vmem:[#allocation20] sm:$0xff]  }
0x1e52   :  { %16339 = vmatpush3.bf16.msra.mxu1 %v17604_v47  ;;  %v11050_v44 = vadd.f32 1.0, %v18000_v55  ;;  %v20976_v47 = vld [vmem:[#allocation14 + $0x70] ss:$8 sps:$4 sm:$0xff]  }
0x1e53   :  { %v11332_v11 = vpack.c.bf16 %v11331_v57, %v11331_v57  ;;  %16344 = vmatprep.subr.bf16.mxu1 %v21339_v31  ;;  %v17638_v57 = vld [vmem:[#allocation20 + $0x8] sm:$0xff]  }
0x1e54   :  { %18001 = vrcp.f32 %v11050_v44 }
0x1e55   :  { %16341 = vmatmul.mubr.bf16.vlgmr.msra.gmra.mrb[140].mxu1 %v11332_v11  ;;  %v17639_v11 = vld [vmem:[#allocation20 + $0x10] sm:$0xff]  }
0x1e56   :  { %16360 = vmatprep.mubr.msk.bf16.mxu1 %vm18375_vm0, %v21339_v31  ;;  %16345 = vmatpush3.bf16.msra.mxu1 %v17605_v20  ;;  %v17640_v20 = vld [vmem:[#allocation20 + $0x18] sm:$0xff]  }
0x1e57   :  { %16346 = vmatprep.subr.bf16.mxu1 %v21339_v31 }
0x1e5a   :  { %16347 = vmatpush3.bf16.msra.mxu1 %v17606_v43  ;;  %v17641_v43 = vld [vmem:[#allocation20 + $0x20] sm:$0xff]  }
0x1e5b   :  { %16348 = vmatprep.subr.bf16.mxu1 %v21339_v31 }
0x1e5e   :  { %16349 = vmatpush3.bf16.msra.mxu1 %v17607_v40  ;;  %v18002_v63 = vpop.eup %18001  ;;  %v17642_v40 = vld [vmem:[#allocation20 + $0x28] sm:$0xff]  }
0x1e5f   :  { %16350 = vmatprep.subr.bf16.mxu1 %v21339_v31  ;;  %v11169_v27 = vsub.f32 1.0, %v18002_v63  ;;  %v11168_v59 = vmul.f32 %v18002_v63, %v20766_v0 }
0x1e62   :  { %16351 = vmatpush3.bf16.msra.mxu1 %v17608_v62  ;;  %v17643_v62 = vld [vmem:[#allocation20 + $0x30] sm:$0xff]  }
0x1e63   :  { %16352 = vmatprep.subr.bf16.mxu1 %v21339_v31 }
0x1e66   :  { %16353 = vmatpush3.bf16.msra.mxu1 %v17609_v46  ;;  %v17644_v46 = vld [vmem:[#allocation20 + $0x38] sm:$0xff]  }
0x1e67   :  { %16354 = vmatprep.subr.bf16.mxu1 %v21339_v31 }
0x1e6a   :  { %16355 = vmatpush3.bf16.msra.mxu1 %v17610_v50 }
0x1e6b   :  { %16356 = vmatprep.subr.bf16.mxu1 %v21339_v31 }
0x1e6e   :  { %16357 = vmatpush3.bf16.msra.mxu1 %v17611_v61 }
0x1e6f   :  { %16358 = vmatprep.subr.bf16.mxu1 %v21339_v31 }
0x1e72   :  { %16359 = vmatpush3.bf16.msra.mxu1 %v17612_v19 }
0x1e73   :  { %16364 = vmatprep.subr.bf16.mxu1 %v21339_v31 }
0x1f08   :  { %v11160_v39 = vpop.f32.mrb[136].mxu1 }
0x1f09   :  { %v16542_v53 = vadd.f32 %v11160_v39, %v19050_v5  ;;  %v16322_v21 = vpop.f32.mrb[137].mxu1 }
0x1f0a   :  { %v11163_v24 = vpop.f32.mrb[138].mxu1 }
0x1f0b   :  { %18003 = vtanh.f32 %v16542_v53  ;;  %v16323_v4 = vpop.f32.mrb[139].mxu1  ;;  %v17645_v24 = vld [vmem:[#allocation16] sm:$0xff]  }
0x1f0c   :  { %18005 = vpow2.f32 %v14722_v36  ;;  %v21370_v36 = vld [vmem:[#allocation61_spill] sm:$0xff] }
0x1f15   :  { %v18004_v17 = vpop.eup %18003 }
0x1f16   :  { %v11170_v2 = vmul.f32 %v18004_v17, %v11169_v27  ;;  %v18006_v13 = vpop.eup %18005 }
0x1f17   :  { %v11321_v33 = vadd.f32 1.0, %v18006_v13 }
0x1f18   :  { %v20903_v54 = vadd.f32 %v11170_v2, %v11168_v59  ;;  %v21371_v59 = vld [vmem:[#allocation62_spill] sm:$0xff] }
0x1f19   :  { %18007 = vrcp.f32 %v11321_v33 }
0x1f23   :  { %v18008_v58 = vpop.eup %18007 }
0x1f24   :  { %v11440_v42 = vsub.f32 1.0, %v18008_v58  ;;  %v11439_v0 = vmul.f32 %v18008_v58, %v20772_v49  ;;  %v20928_v49 = vld [vmem:[#allocation14 + $0x4] ss:$8 sps:$4 sm:$0xff]  }
0x1f28   :  { %v11431_v18 = vpop.f32.mrb[140].mxu1 }
0x1f29   :  { %v11437_v35 = vadd.f32 %v11431_v18, %v21369_v34  ;;  %v16342_v23 = vpop.f32.mrb[141].mxu1  ;;  %v17646_v18 = vld [vmem:[#allocation16 + $0x8] sm:$0xff]  }
0x1f2a   :  { %v11434_v28 = vpop.f32.mrb[142].mxu1  ;;  %v17648_v23 = vld [vmem:[#allocation16 + $0x18] sm:$0xff]  }
0x1f2b   :  { %18009 = vtanh.f32 %v11437_v35  ;;  %v16343_v41 = vpop.f32.mrb[143].mxu1  ;;  %v17647_v35 = vld [vmem:[#allocation16 + $0x10] sm:$0xff]   ;;  %v17649_v28 = vld [vmem:[#allocation16 + $0x20] sm:$0xff]  }
0x1f35   :  { %v18010_v26 = vpop.eup %18009 }
0x1f36   :  { %v11441_v10 = vmul.f32 %v18010_v26, %v11440_v42  ;;  %v17650_v42 = vld [vmem:[#allocation16 + $0x28] sm:$0xff]   ;;  %v17651_v26 = vld [vmem:[#allocation16 + $0x30] sm:$0xff]  }
0x1f38   :  { %v20907_v56 = vadd.f32 %v11441_v10, %v11439_v0  ;;  %v17652_v10 = vld [vmem:[#allocation16 + $0x38] sm:$0xff]  }
0x1f3a   :  { %v11444_v22 = vpack.c.bf16 %v20907_v56, %v20907_v56 }
0x1f3c   :  { %11638 = vmatmul.mubr.bf16.vlgmr.msra.gmra.mrb[132].mxu0 %v11444_v22  ;;  %16361 = vmatmul.mubr.bf16.vlgmr.msra.gmra.mrb[144].mxu1 %v11444_v22 }
0x1f3d   :  { %11785 = vmatpush1.bf16.msra.mxu0 %v20774_v6  ;;  %11816 = vmatprep.mubr.bf16.mxu0 %v21340_v25  ;;  %v20931_v6 = vld [vmem:[#allocation14] ss:$8 sps:$4 sm:$0xff]  }
0x1f3e   :  { %11786 = vmatprep.subr.bf16.mxu0 %v20778_v14  ;;  %16380 = vmatprep.mubr.msk.bf16.mxu1 %vm18375_vm0, %v21339_v31  ;;  %v11687_v14 = vpack.c.bf16 %v20903_v54, %v20903_v54 }
0x1f3f   :  { %16365 = vmatpush3.bf16.msra.mxu1 %v17637_v32  ;;  %v21010_v32 = vld [vmem:[#allocation17 + $0x4] ss:$12 sps:$4 sm:$0xff]  }
0x1f40   :  { %16366 = vmatprep.subr.bf16.mxu1 %v21339_v31 }
0x1f41   :  { %11787 = vmatpush1.bf16.msra.mxu0 %v20781_v8  ;;  %v20936_v8 = vld [vmem:[#allocation14 + $0x14] ss:$8 sps:$4 sm:$0xff]  }
0x1f42   :  { %11788 = vmatprep.subr.bf16.mxu0 %v20785_v60  ;;  %v20939_v60 = vld [vmem:[#allocation14 + $0x10] ss:$8 sps:$4 sm:$0xff]  }
0x1f43   :  { %16367 = vmatpush3.bf16.msra.mxu1 %v17638_v57  ;;  %v21012_v57 = vld [vmem:[#allocation17] ss:$12 sps:$4 sm:$0xff]  }
0x1f44   :  { %16368 = vmatprep.subr.bf16.mxu1 %v21339_v31 }
0x1f45   :  { %11789 = vmatpush1.bf16.msra.mxu0 %v20790_v16  ;;  %v20943_v16 = vld [vmem:[#allocation14 + $0x24] ss:$8 sps:$4 sm:$0xff]  }
0x1f46   :  { %11790 = vmatprep.subr.bf16.mxu0 %v20793_v29  ;;  %v20946_v29 = vld [vmem:[#allocation14 + $0x20] ss:$8 sps:$4 sm:$0xff]  }
0x1f47   :  { %16369 = vmatpush3.bf16.msra.mxu1 %v17639_v11  ;;  %v17656_v11 = vld [vmem:[#allocation17 + $0x8] ss:$12 sps:$4 sm:$0xff]  }
0x1f48   :  { %16370 = vmatprep.subr.bf16.mxu1 %v21339_v31 }
0x1f49   :  { %11791 = vmatpush1.bf16.msra.mxu0 %v20796_v52  ;;  %v20949_v52 = vld [vmem:[#allocation14 + $0x34] ss:$8 sps:$4 sm:$0xff]  }
0x1f4a   :  { %11792 = vmatprep.subr.bf16.mxu0 %v20799_v37  ;;  %v20952_v37 = vld [vmem:[#allocation14 + $0x30] ss:$8 sps:$4 sm:$0xff]  }
0x1f4b   :  { %16371 = vmatpush3.bf16.msra.mxu1 %v17640_v20  ;;  %v21016_v20 = vld [vmem:[#allocation17 + $0x18] ss:$12 sps:$4 sm:$0xff]  }
0x1f4c   :  { %16372 = vmatprep.subr.bf16.mxu1 %v21339_v31 }
0x1f4d   :  { %11793 = vmatpush1.bf16.msra.mxu0 %v20802_v9  ;;  %v20955_v9 = vld [vmem:[#allocation14 + $0x44] ss:$8 sps:$4 sm:$0xff]  }
0x1f4e   :  { %11794 = vmatprep.subr.bf16.mxu0 %v20805_v7  ;;  %v20958_v7 = vld [vmem:[#allocation14 + $0x40] ss:$8 sps:$4 sm:$0xff]  }
0x1f4f   :  { %16373 = vmatpush3.bf16.msra.mxu1 %v17641_v43  ;;  %v21018_v43 = vld [vmem:[#allocation17 + $0x1c] ss:$12 sps:$4 sm:$0xff]  }
0x1f50   :  { %16374 = vmatprep.subr.bf16.mxu1 %v21339_v31 }
0x1f51   :  { %11795 = vmatpush1.bf16.msra.mxu0 %v20808_v45  ;;  %v20961_v45 = vld [vmem:[#allocation14 + $0x54] ss:$8 sps:$4 sm:$0xff]  }
0x1f52   :  { %11796 = vmatprep.subr.bf16.mxu0 %v20811_v1  ;;  %v20964_v1 = vld [vmem:[#allocation14 + $0x50] ss:$8 sps:$4 sm:$0xff]  }
0x1f53   :  { %16375 = vmatpush3.bf16.msra.mxu1 %v17642_v40  ;;  %v17660_v40 = vld [vmem:[#allocation17 + $0x20] ss:$12 sps:$4 sm:$0xff]  }
0x1f54   :  { %16376 = vmatprep.subr.bf16.mxu1 %v21339_v31 }
0x1f55   :  { %11797 = vmatpush1.bf16.msra.mxu0 %v20814_v15  ;;  %v20967_v15 = vld [vmem:[#allocation14 + $0x64] ss:$8 sps:$4 sm:$0xff]  }
0x1f56   :  { %11798 = vmatprep.subr.bf16.mxu0 %v20817_v3  ;;  %v20970_v3 = vld [vmem:[#allocation14 + $0x60] ss:$8 sps:$4 sm:$0xff]  }
0x1f57   :  { %16377 = vmatpush3.bf16.msra.mxu1 %v17643_v62  ;;  %v21020_v62 = vld [vmem:[#allocation17 + $0x34] ss:$12 sps:$4 sm:$0xff]  }
0x1f58   :  { %16378 = vmatprep.subr.bf16.mxu1 %v21339_v31 }
0x1f59   :  { %11799 = vmatpush1.bf16.msra.mxu0 %v20820_v38  ;;  %v20973_v38 = vld [vmem:[#allocation14 + $0x74] ss:$8 sps:$4 sm:$0xff]  }
0x1f5a   :  { %12055 = vmatprep.subr.bf16.mxu0 %v20928_v49 }
0x1f5b   :  { %16379 = vmatpush3.bf16.msra.mxu1 %v17644_v46  ;;  %v21025_v46 = vld [vmem:[#allocation17 + $0x30] ss:$12 sps:$4 sm:$0xff]  }
0x1f5c   :  { %11817 = vmatmul.mubr.bf16.vlgmr.msra.gmra.mrb[132].mxu0 %v11687_v14  ;;  %16384 = vmatprep.subr.bf16.mxu1 %v21339_v31 }
0x1f5d   :  { %12056 = vmatpush1.bf16.msra.mxu0 %v20931_v6  ;;  %12087 = vmatprep.mubr.bf16.mxu0 %v21340_v25 }
0x1f5e   :  { %12057 = vmatprep.subr.bf16.mxu0 %v20936_v8 }
0x1f61   :  { %12058 = vmatpush1.bf16.msra.mxu0 %v20939_v60 }
0x1f62   :  { %12059 = vmatprep.subr.bf16.mxu0 %v20943_v16 }
0x1f65   :  { %12060 = vmatpush1.bf16.msra.mxu0 %v20946_v29 }
0x1f66   :  { %12061 = vmatprep.subr.bf16.mxu0 %v20949_v52 }
0x1f69   :  { %12062 = vmatpush1.bf16.msra.mxu0 %v20952_v37 }
0x1f6a   :  { %12063 = vmatprep.subr.bf16.mxu0 %v20955_v9 }
0x1f6d   :  { %12064 = vmatpush1.bf16.msra.mxu0 %v20958_v7 }
0x1f6e   :  { %12065 = vmatprep.subr.bf16.mxu0 %v20961_v45 }
0x1f71   :  { %12066 = vmatpush1.bf16.msra.mxu0 %v20964_v1 }
0x1f72   :  { %12067 = vmatprep.subr.bf16.mxu0 %v20967_v15 }
0x1f75   :  { %12068 = vmatpush1.bf16.msra.mxu0 %v20970_v3 }
0x1f76   :  { %12069 = vmatprep.subr.bf16.mxu0 %v20973_v38 }
0x1f79   :  { %12070 = vmatpush1.bf16.msra.mxu0 %v20976_v47 }
0x1f7a   :  { %12384 = vmatprep.subr.bf16.mxu0 %v21010_v32 }
0x1f7c   :  { %12088 = vmatmul.mubr.bf16.vlgmr.msra.gmra.mrb[136].mxu0 %v11444_v22 }
0x1f7d   :  { %12416 = vmatprep.mubr.bf16.mxu0 %v21340_v25  ;;  %12385 = vmatpush1.bf16.msra.mxu0 %v21012_v57 }
0x1f7e   :  { %12386 = vmatprep.subr.bf16.mxu0 %v21018_v43 }
0x1f81   :  { %12387 = vmatpush1.bf16.msra.mxu0 %v21016_v20 }
0x1f82   :  { %12388 = vmatprep.subr.bf16.mxu0 %v21020_v62 }
0x1f85   :  { %12389 = vmatpush1.bf16.msra.mxu0 %v21025_v46 }
0x202f   :  { %v20989_v50 = vpop.f32.mrb[132].mxu0 }
0x2030   :  { %v11820_v61 = vpop.f32.mrb[133].mxu0 }
0x2031   :  { %v16544_v19 = vadd.f32 %v11820_v61, %v19009_v51  ;;  %v11822_v48 = vpop.f32.mrb[134].mxu0  ;;  %v17664_v61 = vld [vmem:[#allocation17 + $0x38] ss:$12 sps:$4 sm:$0xff]  }
0x2032   :  { %v11823_v12 = vpop.f32.mrb[135].mxu0  ;;  %v21032_v48 = vld [vmem:[#allocation17 + $0x48] ss:$12 sps:$4 sm:$0xff]  }
0x2033   :  { %v14773_v55 = vmul.f32 -1.442695, %v16544_v19  ;;  %v21028_v19 = vld [vmem:[#allocation17 + $0x4c] ss:$12 sps:$4 sm:$0xff]   ;;  %v17668_v12 = vld [vmem:[#allocation17 + $0x50] ss:$12 sps:$4 sm:$0xff]  }
0x2034   :  { %12390 = vmatprep.subr.bf16.mxu0 %v21028_v19 }
0x2035   :  { %18011 = vpow2.f32 %v14773_v55  ;;  %12391 = vmatpush1.bf16.msra.mxu0 %v21032_v48  ;;  %v21037_v55 = vld [vmem:[#allocation17 + $0x64] ss:$12 sps:$4 sm:$0xff]  }
0x2036   :  { %12392 = vmatprep.subr.bf16.mxu0 %v21037_v55 }
0x203f   :  { %v18012_v44 = vpop.eup %18011 }
0x2040   :  { %v11836_v39 = vadd.f32 1.0, %v18012_v44  ;;  %v21039_v44 = vld [vmem:[#allocation17 + $0x60] ss:$12 sps:$4 sm:$0xff]  }
0x2041   :  { %12393 = vmatpush1.bf16.msra.mxu0 %v21039_v44 }
0x2042   :  { %18013 = vrcp.f32 %v11836_v39  ;;  %v17672_v39 = vld [vmem:[#allocation17 + $0x68] ss:$12 sps:$4 sm:$0xff]  }
0x204c   :  { %v18014_v53 = vpop.eup %18013 }
0x204d   :  { %v11839_v21 = vmul.f32 %v18014_v53, %v20903_v54  ;;  %v21044_v53 = vld [vmem:[#allocation17 + $0x7c] ss:$12 sps:$4 sm:$0xff]  }
0x204e   :  { %12394 = vmatprep.subr.bf16.mxu0 %v21044_v53 }
0x204f   :  { %v12089_v4 = vpop.f32.mrb[136].mxu0  ;;  %v11840_v63 = vpack.c.bf16 %v11839_v21, %v11839_v21  ;;  %v21046_v21 = vld [vmem:[#allocation17 + $0x78] ss:$12 sps:$4 sm:$0xff]  }
0x2050   :  { %v20994_v27 = vadd.f32 %v12089_v4, %v21370_v36  ;;  %v12091_v17 = vpop.f32.mrb[137].mxu0  ;;  %12395 = vmatpush1.bf16.msra.mxu0 %v21046_v21  ;;  %v21051_v4 = vld [vmem:[#allocation17 + $0x94] ss:$12 sps:$4 sm:$0xff]   ;;  %v17680_v36 = vld [vmem:[#allocation17 + $0x98] ss:$12 sps:$4 sm:$0xff]  }
0x2051   :  { %v12103_v2 = vadd.f32 %v12091_v17, %v21371_v59  ;;  %16381 = vmatmul.mubr.bf16.vlgmr.msra.gmra.mrb[144].mxu1 %v11840_v63  ;;  %v12093_v13 = vpop.f32.mrb[138].mxu0  ;;  %v21053_v63 = vld [vmem:[#allocation17 + $0x90] ss:$12 sps:$4 sm:$0xff]   ;;  %12396 = vmatprep.subr.bf16.mxu0 %v21051_v4  ;;  %v21058_v17 = vld [vmem:[#allocation17 + $0xac] ss:$12 sps:$4 sm:$0xff]  }
0x2052   :  { %v12094_v33 = vpop.f32.mrb[139].mxu0  ;;  %16385 = vmatpush3.bf16.msra.mxu1 %v17645_v24  ;;  %16400 = vmatprep.mubr.msk.bf16.mxu1 %vm18375_vm0, %v21339_v31  ;;  %v17676_v24 = vld [vmem:[#allocation17 + $0x80] ss:$12 sps:$4 sm:$0xff]   ;;  %v21060_v59 = vld [vmem:[#allocation17 + $0xa8] ss:$12 sps:$4 sm:$0xff]  }
0x2053   :  { %v14799_v34 = vmul.f32 -1.442695, %v12103_v2  ;;  %16386 = vmatprep.subr.bf16.mxu1 %v21339_v31  ;;  %v17684_v2 = vld [vmem:[#allocation17 + $0xb0] ss:$12 sps:$4 sm:$0xff]   ;;  %v21064_v13 = vld [vmem:[#allocation19 + $0x4] ss:$8 sps:$4 sm:$0xff]   ;;  %v16543_v33 = vadd.f32 %v20989_v50, %v19043_v30 }
0x2054   :  { %12397 = vmatpush1.bf16.msra.mxu0 %v21053_v63 }
0x2055   :  { %18015 = vpow2.f32 %v14799_v34  ;;  %12398 = vmatprep.subr.bf16.mxu0 %v21058_v17 }
0x2056   :  { %16387 = vmatpush3.bf16.msra.mxu1 %v17646_v18  ;;  %v14772_v18 = vmul.f32 -1.442695, %v16543_v33 }
0x2057   :  { %16388 = vmatprep.subr.bf16.mxu1 %v21339_v31 }
0x2058   :  { %12399 = vmatpush1.bf16.msra.mxu0 %v21060_v59 }
0x2059   :  { %12563 = vmatprep.subr.bf16.mxu0 %v21064_v13 }
0x205a   :  { %16389 = vmatpush3.bf16.msra.mxu1 %v17647_v35 }
0x205b   :  { %16390 = vmatprep.subr.bf16.mxu1 %v21339_v31 }
0x205e   :  { %16391 = vmatpush3.bf16.msra.mxu1 %v17648_v23 }
0x205f   :  { %v18016_v41 = vpop.eup %18015  ;;  %16392 = vmatprep.subr.bf16.mxu1 %v21339_v31 }
0x2060   :  { %v12107_v58 = vadd.f32 1.0, %v18016_v41 }
0x2062   :  { %18017 = vrcp.f32 %v12107_v58  ;;  %16393 = vmatpush3.bf16.msra.mxu1 %v17649_v28 }
0x2063   :  { %16394 = vmatprep.subr.bf16.mxu1 %v21339_v31  ;;  %18019 = vpow2.f32 %v14772_v18 }
0x2066   :  { %16395 = vmatpush3.bf16.msra.mxu1 %v17650_v42 }
0x2067   :  { %16396 = vmatprep.subr.bf16.mxu1 %v21339_v31 }
0x206a   :  { %16397 = vmatpush3.bf16.msra.mxu1 %v17651_v26 }
0x206b   :  { %16398 = vmatprep.subr.bf16.mxu1 %v21339_v31 }
0x206c   :  { %v18018_v0 = vpop.eup %18017 }
0x206d   :  { %v12110_v22 = vmul.f32 %v18018_v0, %v20907_v56  ;;  %v18020_v34 = vpop.eup %18019 }
0x206e   :  { %16399 = vmatpush3.bf16.msra.mxu1 %v17652_v10  ;;  %v11829_v35 = vadd.f32 1.0, %v18020_v34  ;;  %v14798_v10 = vmul.f32 -1.442695, %v20994_v27 }
0x206f   :  { %v12111_v14 = vpack.c.bf16 %v12110_v22, %v12110_v22  ;;  %16404 = vmatprep.subr.bf16.mxu1 %v21339_v31 }
0x2070   :  { %18021 = vrcp.f32 %v11829_v35 }
0x2071   :  { %16401 = vmatmul.mubr.bf16.vlgmr.msra.gmra.mrb[148].mxu1 %v12111_v14 }
0x2072   :  { %16420 = vmatprep.mubr.msk.bf16.mxu1 %vm18375_vm0, %v21339_v31  ;;  %16405 = vmatpush3.bf16.msra.mxu1 %v17656_v11 }
0x2073   :  { %16406 = vmatprep.subr.bf16.mxu1 %v21339_v31 }
0x2076   :  { %16407 = vmatpush3.bf16.msra.mxu1 %v17660_v40 }
0x2077   :  { %16408 = vmatprep.subr.bf16.mxu1 %v21339_v31 }
0x207a   :  { %16409 = vmatpush3.bf16.msra.mxu1 %v17664_v61  ;;  %v18022_v26 = vpop.eup %18021 }
0x207b   :  { %16410 = vmatprep.subr.bf16.mxu1 %v21339_v31  ;;  %v11948_v0 = vsub.f32 1.0, %v18022_v26  ;;  %v11947_v14 = vmul.f32 %v18022_v26, %v20903_v54  ;;  %v21089_v26 = vld [vmem:[#allocation19 + $0x10] ss:$8 sps:$4 sm:$0xff]  }
0x207e   :  { %16411 = vmatpush3.bf16.msra.mxu1 %v17668_v12 }
0x207f   :  { %16412 = vmatprep.subr.bf16.mxu1 %v21339_v31 }
0x2082   :  { %16413 = vmatpush3.bf16.msra.mxu1 %v17672_v39 }
0x2083   :  { %16414 = vmatprep.subr.bf16.mxu1 %v21339_v31 }
0x2086   :  { %16415 = vmatpush3.bf16.msra.mxu1 %v17676_v24  ;;  %v21372_v24 = vld [vmem:[#allocation42_spill] sm:$0xff] }
0x2087   :  { %16416 = vmatprep.subr.bf16.mxu1 %v21339_v31 }
0x208a   :  { %16417 = vmatpush3.bf16.msra.mxu1 %v17680_v36 }
0x208b   :  { %16418 = vmatprep.subr.bf16.mxu1 %v21339_v31 }
0x208e   :  { %16419 = vmatpush3.bf16.msra.mxu1 %v17684_v2 }
0x208f   :  { %16424 = vmatprep.subr.bf16.mxu1 %v21339_v31 }
0x2124   :  { %v11939_v23 = vpop.f32.mrb[144].mxu1 }
0x2125   :  { %v16545_v28 = vadd.f32 %v11939_v23, %v19050_v5  ;;  %v16382_v41 = vpop.f32.mrb[145].mxu1 }
0x2126   :  { %v11942_v58 = vpop.f32.mrb[146].mxu1 }
0x2127   :  { %18023 = vtanh.f32 %v16545_v28  ;;  %v16383_v42 = vpop.f32.mrb[147].mxu1 }
0x2128   :  { %18025 = vpow2.f32 %v14798_v10  ;;  %v21086_v42 = vld [vmem:[#allocation19 + $0x14] ss:$8 sps:$4 sm:$0xff]   ;;  %v21098_v10 = vld [vmem:[#allocation19 + $0x20] ss:$8 sps:$4 sm:$0xff]  }
0x2131   :  { %v18024_v22 = vpop.eup %18023 }
0x2132   :  { %v11949_v50 = vmul.f32 %v18024_v22, %v11948_v0  ;;  %v18026_v61 = vpop.eup %18025  ;;  %v21101_v0 = vld [vmem:[#allocation19 + $0x34] ss:$8 sps:$4 sm:$0xff]   ;;  %v21104_v22 = vld [vmem:[#allocation19 + $0x30] ss:$8 sps:$4 sm:$0xff]  }
0x2133   :  { %v12100_v12 = vadd.f32 1.0, %v18026_v61  ;;  %v21116_v61 = vld [vmem:[#allocation19 + $0x50] ss:$8 sps:$4 sm:$0xff]  }
0x2134   :  { %v21074_v11 = vadd.f32 %v11949_v50, %v11947_v14  ;;  %v21107_v14 = vld [vmem:[#allocation19 + $0x44] ss:$8 sps:$4 sm:$0xff]   ;;  %v21110_v50 = vld [vmem:[#allocation19 + $0x40] ss:$8 sps:$4 sm:$0xff]  }
0x2135   :  { %18027 = vrcp.f32 %v12100_v12  ;;  %v21119_v12 = vld [vmem:[#allocation19 + $0x64] ss:$8 sps:$4 sm:$0xff]  }
0x2136   :  { %v14999_v40 = vpack.c.bf16 %v21074_v11, %v20903_v54  ;;  %v21082_v54 = vld [vmem:[#allocation19] ss:$8 sps:$4 sm:$0xff]  }
0x2138   :  { %15011 = vst [vmem:[#allocation22 + $0x30] sm:$0xff] %v14999_v40   ;;  %v21113_v40 = vld [vmem:[#allocation19 + $0x54] ss:$8 sps:$4 sm:$0xff]  }
0x213f   :  { %v18028_v18 = vpop.eup %18027 }
0x2140   :  { %v12219_v34 = vsub.f32 1.0, %v18028_v18  ;;  %v12218_v28 = vmul.f32 %v18028_v18, %v20907_v56  ;;  %v21093_v56 = vld [vmem:[#allocation19 + $0x24] ss:$8 sps:$4 sm:$0xff]  }
0x2141   :  { %v17722_v18 = vld [vmem:[#allocation16 + $0x28] sm:$0xff]  }
0x2144   :  { %v12210_v39 = vpop.f32.mrb[148].mxu1 }
0x2145   :  { %v12216_v36 = vadd.f32 %v12210_v39, %v21372_v24  ;;  %v16402_v2 = vpop.f32.mrb[149].mxu1  ;;  %v21122_v39 = vld [vmem:[#allocation19 + $0x60] ss:$8 sps:$4 sm:$0xff]   ;;  %v21125_v24 = vld [vmem:[#allocation19 + $0x74] ss:$8 sps:$4 sm:$0xff]  }
0x2146   :  { %v12213_v27 = vpop.f32.mrb[150].mxu1  ;;  %v12466_v2 = vpack.c.bf16 %v21074_v11, %v21074_v11 }
0x2147   :  { %18029 = vtanh.f32 %v12216_v36  ;;  %v16403_v33 = vpop.f32.mrb[151].mxu1  ;;  %v21128_v36 = vld [vmem:[#allocation19 + $0x70] ss:$8 sps:$4 sm:$0xff]  }
0x2151   :  { %v18030_v35 = vpop.eup %18029 }
0x2152   :  { %v12220_v23 = vmul.f32 %v18030_v35, %v12219_v34  ;;  %v17723_v34 = vld [vmem:[#allocation16 + $0x30] sm:$0xff]   ;;  %v17724_v35 = vld [vmem:[#allocation16 + $0x38] sm:$0xff]  }
0x2154   :  { %v21080_v41 = vadd.f32 %v12220_v23, %v12218_v28 }
0x2156   :  { %v12223_v58 = vpack.c.bf16 %v21080_v41, %v21080_v41 }
0x2158   :  { %12417 = vmatmul.mubr.bf16.vlgmr.msra.gmra.mrb[140].mxu0 %v12223_v58  ;;  %16421 = vmatmul.mubr.bf16.vlgmr.msra.gmra.mrb[152].mxu1 %v12223_v58 }
0x2159   :  { %12564 = vmatpush1.bf16.msra.mxu0 %v21082_v54  ;;  %12595 = vmatprep.mubr.bf16.mxu0 %v21340_v25 }
0x215a   :  { %12565 = vmatprep.subr.bf16.mxu0 %v21086_v42  ;;  %16440 = vmatprep.mubr.msk.bf16.mxu1 %vm18375_vm0, %v21339_v31 }
0x215d   :  { %12566 = vmatpush1.bf16.msra.mxu0 %v21089_v26 }
0x215e   :  { %12567 = vmatprep.subr.bf16.mxu0 %v21093_v56 }
0x2161   :  { %12568 = vmatpush1.bf16.msra.mxu0 %v21098_v10 }
0x2162   :  { %12569 = vmatprep.subr.bf16.mxu0 %v21101_v0 }
0x2165   :  { %12570 = vmatpush1.bf16.msra.mxu0 %v21104_v22 }
0x2166   :  { %12571 = vmatprep.subr.bf16.mxu0 %v21107_v14 }
0x2169   :  { %12572 = vmatpush1.bf16.msra.mxu0 %v21110_v50 }
0x216a   :  { %12573 = vmatprep.subr.bf16.mxu0 %v21113_v40 }
0x216d   :  { %12574 = vmatpush1.bf16.msra.mxu0 %v21116_v61 }
0x216e   :  { %12575 = vmatprep.subr.bf16.mxu0 %v21119_v12 }
0x2171   :  { %12576 = vmatpush1.bf16.msra.mxu0 %v21122_v39 }
0x2172   :  { %12577 = vmatprep.subr.bf16.mxu0 %v21125_v24 }
0x2175   :  { %12578 = vmatpush1.bf16.msra.mxu0 %v21128_v36 }
0x2176   :  { %12834 = vmatprep.subr.bf16.mxu0 %v20928_v49  ;;  %v17709_v49 = vld [vmem:[#allocation20] sm:$0xff]  }
0x2177   :  { %16425 = vmatpush3.bf16.msra.mxu1 %v17709_v49  ;;  %v17726_v49 = vld [vmem:[#allocation17 + $0x20] ss:$12 sps:$4 sm:$0xff]  }
0x2178   :  { %12596 = vmatmul.mubr.bf16.vlgmr.msra.gmra.mrb[140].mxu0 %v12466_v2  ;;  %16426 = vmatprep.subr.bf16.mxu1 %v21339_v31  ;;  %v17725_v2 = vld [vmem:[#allocation17 + $0x8] ss:$12 sps:$4 sm:$0xff]  }
0x2179   :  { %12835 = vmatpush1.bf16.msra.mxu0 %v20931_v6  ;;  %12866 = vmatprep.mubr.bf16.mxu0 %v21340_v25  ;;  %v17710_v6 = vld [vmem:[#allocation20 + $0x8] sm:$0xff]  }
0x217a   :  { %12836 = vmatprep.subr.bf16.mxu0 %v20936_v8  ;;  %v17711_v8 = vld [vmem:[#allocation20 + $0x10] sm:$0xff]  }
0x217b   :  { %16427 = vmatpush3.bf16.msra.mxu1 %v17710_v6  ;;  %v17727_v6 = vld [vmem:[#allocation17 + $0x38] ss:$12 sps:$4 sm:$0xff]  }
0x217c   :  { %16428 = vmatprep.subr.bf16.mxu1 %v21339_v31 }
0x217d   :  { %12837 = vmatpush1.bf16.msra.mxu0 %v20939_v60  ;;  %v17712_v60 = vld [vmem:[#allocation20 + $0x18] sm:$0xff]  }
0x217e   :  { %12838 = vmatprep.subr.bf16.mxu0 %v20943_v16  ;;  %v17713_v16 = vld [vmem:[#allocation20 + $0x20] sm:$0xff]  }
0x217f   :  { %16429 = vmatpush3.bf16.msra.mxu1 %v17711_v8  ;;  %v17728_v8 = vld [vmem:[#allocation17 + $0x50] ss:$12 sps:$4 sm:$0xff]  }
0x2180   :  { %16430 = vmatprep.subr.bf16.mxu1 %v21339_v31 }
0x2181   :  { %12839 = vmatpush1.bf16.msra.mxu0 %v20946_v29  ;;  %v17714_v29 = vld [vmem:[#allocation20 + $0x28] sm:$0xff]  }
0x2182   :  { %12840 = vmatprep.subr.bf16.mxu0 %v20949_v52  ;;  %v17715_v52 = vld [vmem:[#allocation20 + $0x30] sm:$0xff]  }
0x2183   :  { %16431 = vmatpush3.bf16.msra.mxu1 %v17712_v60  ;;  %v17729_v60 = vld [vmem:[#allocation17 + $0x68] ss:$12 sps:$4 sm:$0xff]  }
0x2184   :  { %16432 = vmatprep.subr.bf16.mxu1 %v21339_v31 }
0x2185   :  { %12841 = vmatpush1.bf16.msra.mxu0 %v20952_v37  ;;  %v17716_v37 = vld [vmem:[#allocation20 + $0x38] sm:$0xff]  }
0x2186   :  { %12842 = vmatprep.subr.bf16.mxu0 %v20955_v9 }
0x2187   :  { %16433 = vmatpush3.bf16.msra.mxu1 %v17713_v16  ;;  %v17730_v16 = vld [vmem:[#allocation17 + $0x80] ss:$12 sps:$4 sm:$0xff]  }
0x2188   :  { %16434 = vmatprep.subr.bf16.mxu1 %v21339_v31 }
0x2189   :  { %12843 = vmatpush1.bf16.msra.mxu0 %v20958_v7 }
0x218a   :  { %12844 = vmatprep.subr.bf16.mxu0 %v20961_v45 }
0x218b   :  { %16435 = vmatpush3.bf16.msra.mxu1 %v17714_v29  ;;  %v17731_v29 = vld [vmem:[#allocation17 + $0x98] ss:$12 sps:$4 sm:$0xff]  }
0x218c   :  { %16436 = vmatprep.subr.bf16.mxu1 %v21339_v31 }
0x218d   :  { %12845 = vmatpush1.bf16.msra.mxu0 %v20964_v1 }
0x218e   :  { %12846 = vmatprep.subr.bf16.mxu0 %v20967_v15 }
0x218f   :  { %16437 = vmatpush3.bf16.msra.mxu1 %v17715_v52  ;;  %v17732_v52 = vld [vmem:[#allocation17 + $0xb0] ss:$12 sps:$4 sm:$0xff]  }
0x2190   :  { %16438 = vmatprep.subr.bf16.mxu1 %v21339_v31 }
0x2191   :  { %12847 = vmatpush1.bf16.msra.mxu0 %v20970_v3 }
0x2192   :  { %12848 = vmatprep.subr.bf16.mxu0 %v20973_v38 }
0x2193   :  { %16439 = vmatpush3.bf16.msra.mxu1 %v17716_v37 }
0x2194   :  { %16444 = vmatprep.subr.bf16.mxu1 %v21339_v31 }
0x2195   :  { %12849 = vmatpush1.bf16.msra.mxu0 %v20976_v47 }
0x2196   :  { %13163 = vmatprep.subr.bf16.mxu0 %v21010_v32 }
0x2198   :  { %12867 = vmatmul.mubr.bf16.vlgmr.msra.gmra.mrb[144].mxu0 %v12223_v58 }
0x2199   :  { %13164 = vmatpush1.bf16.msra.mxu0 %v21012_v57  ;;  %13195 = vmatprep.mubr.bf16.mxu0 %v21340_v25 }
0x219a   :  { %13165 = vmatprep.subr.bf16.mxu0 %v21018_v43 }
0x219d   :  { %13166 = vmatpush1.bf16.msra.mxu0 %v21016_v20  ;;  %v17717_v20 = vld [vmem:[#allocation16] sm:$0xff]  }
0x219e   :  { %13167 = vmatprep.subr.bf16.mxu0 %v21020_v62 }
0x21a1   :  { %13168 = vmatpush1.bf16.msra.mxu0 %v21025_v46  ;;  %v21373_v46 = vld [vmem:[#allocation63_spill] sm:$0xff] }
0x21a2   :  { %13169 = vmatprep.subr.bf16.mxu0 %v21028_v19 }
0x21a5   :  { %13170 = vmatpush1.bf16.msra.mxu0 %v21032_v48 }
0x21a6   :  { %13171 = vmatprep.subr.bf16.mxu0 %v21037_v55  ;;  %v21374_v55 = vld [vmem:[#allocation64_spill] sm:$0xff] }
0x21a9   :  { %13172 = vmatpush1.bf16.msra.mxu0 %v21039_v44 }
0x21aa   :  { %13173 = vmatprep.subr.bf16.mxu0 %v21044_v53 }
0x21ad   :  { %13174 = vmatpush1.bf16.msra.mxu0 %v21046_v21 }
0x21ae   :  { %13175 = vmatprep.subr.bf16.mxu0 %v21051_v4  ;;  %v17718_v4 = vld [vmem:[#allocation16 + $0x8] sm:$0xff]  }
0x21b1   :  { %13176 = vmatpush1.bf16.msra.mxu0 %v21053_v63 }
0x21b2   :  { %13177 = vmatprep.subr.bf16.mxu0 %v21058_v17  ;;  %v17719_v17 = vld [vmem:[#allocation16 + $0x10] sm:$0xff]  }
0x21b5   :  { %13178 = vmatpush1.bf16.msra.mxu0 %v21060_v59  ;;  %v17720_v59 = vld [vmem:[#allocation16 + $0x18] sm:$0xff]  }
0x21b6   :  { %13342 = vmatprep.subr.bf16.mxu0 %v21064_v13  ;;  %v17721_v13 = vld [vmem:[#allocation16 + $0x20] sm:$0xff]  }
0x224b   :  { %v21177_v9 = vpop.f32.mrb[140].mxu0 }
0x224c   :  { %v12599_v7 = vpop.f32.mrb[141].mxu0  ;;  %v16546_v37 = vadd.f32 %v21177_v9, %v19043_v30 }
0x224d   :  { %v16547_v45 = vadd.f32 %v12599_v7, %v19009_v51  ;;  %v12601_v1 = vpop.f32.mrb[142].mxu0 }
0x224e   :  { %v12602_v15 = vpop.f32.mrb[143].mxu0  ;;  %v14848_v7 = vmul.f32 -1.442695, %v16546_v37 }
0x224f   :  { %v14849_v3 = vmul.f32 -1.442695, %v16547_v45 }
0x2251   :  { %18031 = vpow2.f32 %v14849_v3 }
0x225b   :  { %v18032_v38 = vpop.eup %18031 }
0x225c   :  { %v12615_v47 = vadd.f32 1.0, %v18032_v38 }
0x225e   :  { %18033 = vrcp.f32 %v12615_v47 }
0x2268   :  { %v18034_v32 = vpop.eup %18033 }
0x2269   :  { %v12618_v57 = vmul.f32 %v18034_v32, %v21074_v11 }
0x226b   :  { %v12868_v43 = vpop.f32.mrb[144].mxu0  ;;  %v12619_v62 = vpack.c.bf16 %v12618_v57, %v12618_v57 }
0x226c   :  { %v21182_v19 = vadd.f32 %v12868_v43, %v21373_v46  ;;  %v12870_v48 = vpop.f32.mrb[145].mxu0 }
0x226d   :  { %v12882_v44 = vadd.f32 %v12870_v48, %v21374_v55  ;;  %16441 = vmatmul.mubr.bf16.vlgmr.msra.gmra.mrb[152].mxu1 %v12619_v62  ;;  %v12872_v53 = vpop.f32.mrb[146].mxu0 }
0x226e   :  { %v12873_v21 = vpop.f32.mrb[147].mxu0  ;;  %16445 = vmatpush3.bf16.msra.mxu1 %v17717_v20  ;;  %16460 = vmatprep.mubr.msk.bf16.mxu1 %vm18375_vm0, %v21339_v31  ;;  %v14874_v20 = vmul.f32 -1.442695, %v21182_v19 }
0x226f   :  { %v14875_v63 = vmul.f32 -1.442695, %v12882_v44  ;;  %16446 = vmatprep.subr.bf16.mxu1 %v21339_v31  ;;  %v21375_v21 = vld [vmem:[#allocation46_spill] sm:$0xff] }
0x2271   :  { %18035 = vpow2.f32 %v14875_v63 }
0x2272   :  { %16447 = vmatpush3.bf16.msra.mxu1 %v17718_v4 }
0x2273   :  { %16448 = vmatprep.subr.bf16.mxu1 %v21339_v31 }
0x2276   :  { %16449 = vmatpush3.bf16.msra.mxu1 %v17719_v17 }
0x2277   :  { %16450 = vmatprep.subr.bf16.mxu1 %v21339_v31 }
0x227a   :  { %16451 = vmatpush3.bf16.msra.mxu1 %v17720_v59 }
0x227b   :  { %v18036_v27 = vpop.eup %18035  ;;  %16452 = vmatprep.subr.bf16.mxu1 %v21339_v31 }
0x227c   :  { %v12886_v33 = vadd.f32 1.0, %v18036_v27 }
0x227e   :  { %18037 = vrcp.f32 %v12886_v33  ;;  %16453 = vmatpush3.bf16.msra.mxu1 %v17721_v13 }
0x227f   :  { %16454 = vmatprep.subr.bf16.mxu1 %v21339_v31  ;;  %18039 = vpow2.f32 %v14848_v7 }
0x2282   :  { %16455 = vmatpush3.bf16.msra.mxu1 %v17722_v18 }
0x2283   :  { %16456 = vmatprep.subr.bf16.mxu1 %v21339_v31 }
0x2286   :  { %16457 = vmatpush3.bf16.msra.mxu1 %v17723_v34 }
0x2287   :  { %16458 = vmatprep.subr.bf16.mxu1 %v21339_v31 }
0x2288   :  { %v18038_v23 = vpop.eup %18037 }
0x2289   :  { %v12889_v28 = vmul.f32 %v18038_v23, %v21080_v41  ;;  %v18040_v45 = vpop.eup %18039 }
0x228a   :  { %16459 = vmatpush3.bf16.msra.mxu1 %v17724_v35  ;;  %v12608_v1 = vadd.f32 1.0, %v18040_v45 }
0x228b   :  { %v12890_v58 = vpack.c.bf16 %v12889_v28, %v12889_v28  ;;  %16464 = vmatprep.subr.bf16.mxu1 %v21339_v31 }
0x228c   :  { %18041 = vrcp.f32 %v12608_v1 }
0x228d   :  { %16461 = vmatmul.mubr.bf16.vlgmr.msra.gmra.mrb[156].mxu1 %v12890_v58 }
0x228e   :  { %16480 = vmatprep.mubr.msk.bf16.mxu1 %vm18375_vm0, %v21339_v31  ;;  %16465 = vmatpush3.bf16.msra.mxu1 %v17725_v2 }
0x228f   :  { %16466 = vmatprep.subr.bf16.mxu1 %v21339_v31 }
0x2292   :  { %16467 = vmatpush3.bf16.msra.mxu1 %v17726_v49 }
0x2293   :  { %16468 = vmatprep.subr.bf16.mxu1 %v21339_v31 }
0x2296   :  { %16469 = vmatpush3.bf16.msra.mxu1 %v17727_v6  ;;  %v18042_v57 = vpop.eup %18041 }
0x2297   :  { %16470 = vmatprep.subr.bf16.mxu1 %v21339_v31  ;;  %v12727_v43 = vsub.f32 1.0, %v18042_v57  ;;  %v12726_v46 = vmul.f32 %v18042_v57, %v21074_v11 }
0x229a   :  { %16471 = vmatpush3.bf16.msra.mxu1 %v17728_v8 }
0x229b   :  { %16472 = vmatprep.subr.bf16.mxu1 %v21339_v31 }
0x229e   :  { %16473 = vmatpush3.bf16.msra.mxu1 %v17729_v60 }
0x229f   :  { %16474 = vmatprep.subr.bf16.mxu1 %v21339_v31 }
0x22a2   :  { %16475 = vmatpush3.bf16.msra.mxu1 %v17730_v16 }
0x22a3   :  { %16476 = vmatprep.subr.bf16.mxu1 %v21339_v31 }
0x22a6   :  { %16477 = vmatpush3.bf16.msra.mxu1 %v17731_v29 }
0x22a7   :  { %16478 = vmatprep.subr.bf16.mxu1 %v21339_v31 }
0x22aa   :  { %16479 = vmatpush3.bf16.msra.mxu1 %v17732_v52 }
0x22ab   :  { %16484 = vmatprep.subr.bf16.mxu1 %v21339_v31 }
0x2340   :  { %v12718_v15 = vpop.f32.mrb[152].mxu1 }
0x2341   :  { %v16548_v3 = vadd.f32 %v12718_v15, %v19050_v5  ;;  %v16442_v38 = vpop.f32.mrb[153].mxu1 }
0x2342   :  { %v12721_v47 = vpop.f32.mrb[154].mxu1 }
0x2343   :  { %18043 = vtanh.f32 %v16548_v3  ;;  %v16443_v32 = vpop.f32.mrb[155].mxu1 }
0x2344   :  { %18045 = vpow2.f32 %v14874_v20 }
0x234d   :  { %v18044_v62 = vpop.eup %18043 }
0x234e   :  { %v12728_v9 = vmul.f32 %v18044_v62, %v12727_v43  ;;  %v18046_v55 = vpop.eup %18045 }
0x234f   :  { %v12879_v44 = vadd.f32 1.0, %v18046_v55 }
0x2350   :  { %v21211_v48 = vadd.f32 %v12728_v9, %v12726_v46 }
0x2351   :  { %18047 = vrcp.f32 %v12879_v44 }
0x235b   :  { %v18048_v13 = vpop.eup %18047 }
0x235c   :  { %v12998_v19 = vsub.f32 1.0, %v18048_v13  ;;  %v12997_v33 = vmul.f32 %v18048_v13, %v21080_v41  ;;  %v17733_v41 = vld [vmem:[#allocation20] sm:$0xff]  }
0x2360   :  { %v12989_v53 = vpop.f32.mrb[156].mxu1 }
0x2361   :  { %v12995_v4 = vadd.f32 %v12989_v53, %v21375_v21  ;;  %v16462_v63 = vpop.f32.mrb[157].mxu1 }
0x2362   :  { %v12992_v17 = vpop.f32.mrb[158].mxu1 }
0x2363   :  { %18049 = vtanh.f32 %v12995_v4  ;;  %v16463_v59 = vpop.f32.mrb[159].mxu1 }
0x236d   :  { %v18050_v27 = vpop.eup %18049 }
0x236e   :  { %v12999_v11 = vmul.f32 %v18050_v27, %v12998_v19 }
0x2370   :  { %v13000_v18 = vadd.f32 %v12999_v11, %v12997_v33 }
0x2372   :  { %v13002_v34 = vpack.c.bf16 %v13000_v18, %v13000_v18  ;;  %13613 = vst [vmem:[#allocation23] sm:$0xff] %v13000_v18 }
0x2374   :  { %13196 = vmatmul.mubr.bf16.vlgmr.msra.gmra.mrb[148].mxu0 %v13002_v34  ;;  %16481 = vmatmul.mubr.bf16.vlgmr.msra.gmra.mrb[160].mxu1 %v13002_v34 }
0x2375   :  { %13343 = vmatpush1.bf16.msra.mxu0 %v21082_v54  ;;  %13374 = vmatprep.mubr.bf16.mxu0 %v21340_v25  ;;  %v13245_v25 = vpack.c.bf16 %v21211_v48, %v21211_v48  ;;  %v17734_v54 = vld [vmem:[#allocation20 + $0x8] sm:$0xff]  }
0x2376   :  { %13344 = vmatprep.subr.bf16.mxu0 %v21086_v42  ;;  %16500 = vmatprep.mubr.msk.bf16.mxu1 %vm18375_vm0, %v21339_v31  ;;  %v17735_v42 = vld [vmem:[#allocation20 + $0x10] sm:$0xff]  }
0x2377   :  { %16485 = vmatpush3.bf16.msra.mxu1 %v17733_v41 }
0x2378   :  { %16486 = vmatprep.subr.bf16.mxu1 %v21339_v31 }
0x2379   :  { %13345 = vmatpush1.bf16.msra.mxu0 %v21089_v26  ;;  %v17736_v26 = vld [vmem:[#allocation20 + $0x18] sm:$0xff]  }
0x237a   :  { %13346 = vmatprep.subr.bf16.mxu0 %v21093_v56  ;;  %v17737_v56 = vld [vmem:[#allocation20 + $0x20] sm:$0xff]  }
0x237b   :  { %16487 = vmatpush3.bf16.msra.mxu1 %v17734_v54 }
0x237c   :  { %16488 = vmatprep.subr.bf16.mxu1 %v21339_v31 }
0x237d   :  { %13347 = vmatpush1.bf16.msra.mxu0 %v21098_v10  ;;  %v17738_v10 = vld [vmem:[#allocation20 + $0x28] sm:$0xff]  }
0x237e   :  { %13348 = vmatprep.subr.bf16.mxu0 %v21101_v0  ;;  %v17739_v0 = vld [vmem:[#allocation20 + $0x30] sm:$0xff]  }
0x237f   :  { %16489 = vmatpush3.bf16.msra.mxu1 %v17735_v42 }
0x2380   :  { %16490 = vmatprep.subr.bf16.mxu1 %v21339_v31 }
0x2381   :  { %13349 = vmatpush1.bf16.msra.mxu0 %v21104_v22  ;;  %v17740_v22 = vld [vmem:[#allocation20 + $0x38] sm:$0xff]  }
0x2382   :  { %13350 = vmatprep.subr.bf16.mxu0 %v21107_v14 }
0x2383   :  { %16491 = vmatpush3.bf16.msra.mxu1 %v17736_v26 }
0x2384   :  { %16492 = vmatprep.subr.bf16.mxu1 %v21339_v31 }
0x2385   :  { %13351 = vmatpush1.bf16.msra.mxu0 %v21110_v50 }
0x2386   :  { %13352 = vmatprep.subr.bf16.mxu0 %v21113_v40 }
0x2387   :  { %16493 = vmatpush3.bf16.msra.mxu1 %v17737_v56 }
0x2388   :  { %16494 = vmatprep.subr.bf16.mxu1 %v21339_v31 }
0x2389   :  { %13353 = vmatpush1.bf16.msra.mxu0 %v21116_v61 }
0x238a   :  { %13354 = vmatprep.subr.bf16.mxu0 %v21119_v12 }
0x238b   :  { %16495 = vmatpush3.bf16.msra.mxu1 %v17738_v10 }
0x238c   :  { %16496 = vmatprep.subr.bf16.mxu1 %v21339_v31 }
0x238d   :  { %13355 = vmatpush1.bf16.msra.mxu0 %v21122_v39 }
0x238e   :  { %13356 = vmatprep.subr.bf16.mxu0 %v21125_v24 }
0x238f   :  { %16497 = vmatpush3.bf16.msra.mxu1 %v17739_v0 }
0x2390   :  { %16498 = vmatprep.subr.bf16.mxu1 %v21339_v31 }
0x2391   :  { %13357 = vmatpush1.bf16.msra.mxu0 %v21128_v36 }
0x2393   :  { %16499 = vmatpush3.bf16.msra.mxu1 %v17740_v22 }
0x2394   :  { %13375 = vmatmul.mubr.bf16.vlgmr.msra.gmra.mrb[148].mxu0 %v13245_v25 }
0x2467   :  { %v13376_v14 = vpop.f32.mrb[148].mxu0 }
0x2468   :  { %v13378_v50 = vpop.f32.mrb[149].mxu0  ;;  %v16549_v31 = vadd.f32 %v13376_v14, %v19043_v30 }
0x2469   :  { %v16550_v40 = vadd.f32 %v13378_v50, %v19009_v51  ;;  %v13380_v61 = vpop.f32.mrb[150].mxu0 }
0x246a   :  { %v13381_v12 = vpop.f32.mrb[151].mxu0  ;;  %v14924_v58 = vmul.f32 -1.442695, %v16549_v31 }
0x246b   :  { %v14925_v39 = vmul.f32 -1.442695, %v16550_v40 }
0x246d   :  { %18051 = vpow2.f32 %v14925_v39 }
0x2477   :  { %v18052_v24 = vpop.eup %18051 }
0x2478   :  { %v13394_v36 = vadd.f32 1.0, %v18052_v24 }
0x247a   :  { %18053 = vrcp.f32 %v13394_v36 }
0x247b   :  { %18055 = vpow2.f32 %v14924_v58 }
0x2484   :  { %v18054_v35 = vpop.eup %18053 }
0x2485   :  { %v13397_v23 = vmul.f32 %v18054_v35, %v21211_v48  ;;  %v18056_v2 = vpop.eup %18055 }
0x2486   :  { %v13387_v49 = vadd.f32 1.0, %v18056_v2 }
0x2487   :  { %v13398_v28 = vpack.c.bf16 %v13397_v23, %v13397_v23 }
0x2488   :  { %18057 = vrcp.f32 %v13387_v49 }
0x2489   :  { %16501 = vmatmul.mubr.bf16.vlgmr.msra.gmra.mrb[160].mxu1 %v13398_v28 }
0x2492   :  { %v18058_v29 = vpop.eup %18057 }
0x2493   :  { %v13506_v52 = vsub.f32 1.0, %v18058_v29  ;;  %v13505_v7 = vmul.f32 %v18058_v29, %v21211_v48 }
0x255c   :  { %v13497_v51 = vpop.f32.mrb[160].mxu1 }
0x255d   :  { %v16551_v6 = vadd.f32 %v13497_v51, %v19050_v5  ;;  %v16502_v8 = vpop.f32.mrb[161].mxu1 }
0x255e   :  { %v13500_v60 = vpop.f32.mrb[162].mxu1 }
0x255f   :  { %18059 = vtanh.f32 %v16551_v6  ;;  %v16503_v16 = vpop.f32.mrb[163].mxu1 }
0x2569   :  { %v18060_v37 = vpop.eup %18059 }
0x256a   :  { %v13507_v30 = vmul.f32 %v18060_v37, %v13506_v52 }
0x256c   :  { %v13508_v45 = vadd.f32 %v13507_v30, %v13505_v7 }
0x256e   :  { %v15004_v1 = vpack.c.bf16 %v13508_v45, %v21211_v48  ;;  %13614 = vst [vmem:[#allocation23 + $0x8] sm:$0xff] %v13508_v45 }
0x256f   :  { %18308 = shalt.err (!%p18305_p0)
}
0x2570   :  { %s18309_s18 = scalar_lea.hbm %s21299_s14, 256 }
0x2571   :  { %p18310_p1 = scmp.ne.s32.totalorder %s21299_s14, %s18309_s18  ;;  %p18313_p2 = scmp.lt.u32.totalorder %s18309_s18, %s21299_s14 }
0x2573   :  { %p18315_p3 = pnand %p18313_p2, %p18310_p1 }
0x2575   :  { %18318 = shalt.err (!%p18315_p3)
}
0x2576   :  { %13638 = dma.vmem_to_hbm [thread:$0]  %s13633_s22, 256, %s21299_s14, [#allocation24], %s18363_s16, %s18363_s16, %s18364_s20   ;;  %15012 = vst [vmem:[#allocation22 + $0x38] sm:$0xff] %v15004_v1  }
0x2577   :  { %s18319_s1 = scalar_lea.vmem %s21248_s29, 1024  ;;  %p18324_p5 = scmp.lt.s32.totalorder %s21248_s29, %s21248_s29 }
0x2578   :  { %p18320_p4 = scmp.ne.s32.totalorder %s21248_s29, %s18319_s1  ;;  %p18325_p6 = scmp.lt.s32.totalorder %s18319_s1, %s18319_s1 }
0x257a   :  { %p18326_p7 = por %p18325_p6, %p18324_p5 }
0x257c   :  { %p18327_p8 = pnand %p18326_p7, %p18320_p4 }
0x257e   :  { %18330 = shalt.err (!%p18327_p8)
}
0x257f   :  { %s18331_s10 = scalar_lea.hbm %s21298_s13, 1024 }
0x2580   :  { %p18332_p9 = scmp.ne.s32.totalorder %s21298_s13, %s18331_s10  ;;  %p18335_p10 = scmp.lt.u32.totalorder %s18331_s10, %s21298_s13 }
0x2582   :  { %p18337_p11 = pnand %p18335_p10, %p18332_p9 }
0x2584   :  { %18340 = shalt.err (!%p18337_p11)
}
0x2585   :  { %13626 = dma.vmem_to_hbm [thread:$0]  %s21248_s29, 1024, %s21298_s13, [#allocation7], %s18367_s0, %s18367_s0, %s18368_s4  }
0x2586   :  { %18353 = dma.done.wait [#allocation7], 1024  }
0x2587   :  { %18354 = vsyncadd [#allocation7], 4294966272 }
0x2588   :  { %18355 = dma.done.wait [#allocation24], 256  }
0x2589   :  { %18356 = vsyncadd [#allocation24], 4294967040 }
0x258a   :  { %13645 = vsyncpa [#allocation6], 1 }
0x258b   :  { %13646 = vsyncpa [#allocation9], 1 }
0x258c   :  { %13647 = vsyncpa [#allocation12], 1 }
0x258d   :  { %13648 = vsyncpa [#allocation15], 1 }
0x258e   :  { %13649 = vsyncpa [#allocation18], 1 }
0x258f   :  { %13650 = vsyncpa [#allocation21], 1 }
0x2590   :  { %13651 = vsyncpa [#allocation7], 1 }
0x2591   :  { %13652 = vsyncpa [#allocation24], 1 }

</bundles_post_ra>
